<compile_context>
chip_gen: v7x
topology: tpu7x:2x2x1
jax: 0.10.0
libtpu: 0.0.40
codegen_flags: <defaults>
</compile_context>

<pallas_src>
import functools
import numpy as np
import jax
import jax.numpy as jnp
from jax.experimental import pallas as pl
from jax.experimental.pallas import tpu as pltpu


# ----------------------------- helpers --------------------------------------

def _round_up(x, m):
    return ((x + m - 1) // m) * m


def _idx_i0(i):
    return (i, 0)


def _idx_00(i):
    return (0, 0)


@functools.lru_cache(maxsize=None)
def _vmem_budget():
    """Generation-aware VMEM limit: 48 MiB on 64-MiB chips, 96 MiB on 128-MiB."""
    try:
        cap = int(pltpu.get_tpu_info().vmem_capacity_bytes)
    except Exception:
        cap = 64 * 1024 * 1024
    if cap > 96 * 1024 * 1024:          # v5e / v6e (128 MiB physical)
        return 96 * 1024 * 1024
    return min(48 * 1024 * 1024, int(cap * 3 // 4))   # v7x-class (64 MiB)


def _pick_tm(M):
    cap = 2048 if _vmem_budget() >= 80 * 1024 * 1024 else 1024
    if M <= 16:
        return _round_up(max(M, 8), 8)          # single block
    if M >= 2 * cap:
        return cap
    # >= 2 grid steps for multi-core sharding, 16-row aligned (bf16 tiles)
    return max(16, _round_up(-(-M // 2), 16))


# --------------------- in-kernel math (prologue / epilogue) -----------------

def _celu_pair(a):
    """(elu(a), elu(-a)) with a single exp per element."""
    em1 = jnp.exp(-jnp.abs(a)) - jnp.asarray(1.0, a.dtype)
    pos = jnp.where(a > 0, a, em1)          # elu(a)
    neg = jnp.where(a > 0, em1, -a)         # elu(-a)
    return pos, neg


def _elu(a):
    return jnp.where(a > 0, a, jnp.exp(-jnp.abs(a)) - jnp.asarray(1.0, a.dtype))


def _sigmoid(v):
    # Stable logistic: one exp (EUP) + approx reciprocal (EUP), no divide.
    e = jnp.exp(-jnp.abs(v))
    num = jnp.where(v >= 0, 1.0, e)
    return num * pl.reciprocal(1.0 + e, approx=True)


# ------------------- fused GEMM (+ prologue/epilogue) kernel -----------------
# One kernel family covers every layer:
#   nonlin='none' : out = A @ W + b
#   nonlin='elu'  : out = elu(A) @ W + b                         (final nin_out)
#   nonlin='celu' : out = elu(A) @ Wp + elu(-A) @ Wn + b         (fused concat_elu)
#   has_skip      : ... + elu(As) @ Wsp + elu(-As) @ Wsn         (fused nin_skip)
#   has_gate      : acc_a/acc_b via two N=nf dot pairs;
#                   out = og + acc_a * sigmoid(acc_b)            (fused gated res.)
# Operands are bf16, accumulation f32 on the MXU, output bf16 (f32 for logits).

def _build_kernel(nonlin, has_skip, has_gate, out_dtype):
    if has_gate:
        assert nonlin == 'celu' and not has_skip

    def kernel(*refs):
        o_ref = refs[-1]
        it = iter(refs[:-1])
        a = next(it)[...]
        if nonlin == 'celu':
            ap, an = _celu_pair(a)
        elif nonlin == 'elu':
            ap, an = _elu(a), None
        else:
            ap, an = a, None

        if has_gate:
            wpa = next(it)[...]; wna = next(it)[...]
            wpb = next(it)[...]; wnb = next(it)[...]
            ba = next(it)[...]; bb = next(it)[...]
            og = next(it)[...]
            acc_a = (jnp.dot(ap, wpa, preferred_element_type=jnp.float32)
                     + jnp.dot(an, wna, preferred_element_type=jnp.float32) + ba)
            acc_b = (jnp.dot(ap, wpb, preferred_element_type=jnp.float32)
                     + jnp.dot(an, wnb, preferred_element_type=jnp.float32) + bb)
            out = og.astype(jnp.float32) + acc_a * _sigmoid(acc_b)
            o_ref[...] = out.astype(out_dtype)
        else:
            wp = next(it)[...]
            acc = jnp.dot(ap, wp, preferred_element_type=jnp.float32)
            if nonlin == 'celu':
                wn = next(it)[...]
                acc = acc + jnp.dot(an, wn, preferred_element_type=jnp.float32)
            if has_skip:
                a2 = next(it)[...]
                wsp = next(it)[...]; wsn = next(it)[...]
                sp, sn = _celu_pair(a2)
                acc = acc + jnp.dot(sp, wsp, preferred_element_type=jnp.float32)
                acc = acc + jnp.dot(sn, wsn, preferred_element_type=jnp.float32)
            bias = next(it)[...]
            o_ref[...] = (acc + bias).astype(out_dtype)

    return kernel


@functools.lru_cache(maxsize=None)
def _get_gemm(M, K, npad, ks, cog, nonlin, has_skip, has_gate, out_dtype_name):
    out_dtype = jnp.dtype(out_dtype_name)
    tm = _pick_tm(M)
    Mp = _round_up(M, tm)

    def tile(cols):
        return pl.BlockSpec((tm, cols), _idx_i0)

    def resident(shape):
        return pl.BlockSpec(shape, _idx_00)

    if has_gate:
        in_specs = ([tile(K)] + [resident((K, npad))] * 4
                    + [resident((1, npad))] * 2 + [tile(cog)])
    else:
        in_specs = [tile(K), resident((K, npad))]
        if nonlin == 'celu':
            in_specs.append(resident((K, npad)))
        if has_skip:
            in_specs += [tile(ks), resident((ks, npad)), resident((ks, npad))]
        in_specs.append(resident((1, npad)))

    call = pl.pallas_call(
        _build_kernel(nonlin, has_skip, has_gate, out_dtype),
        out_shape=jax.ShapeDtypeStruct((Mp, npad), out_dtype),
        grid=(Mp // tm,),
        in_specs=in_specs,
        out_specs=pl.BlockSpec((tm, npad), _idx_i0),
        compiler_params=pltpu.CompilerParams(
            dimension_semantics=("parallel",),
            vmem_limit_bytes=_vmem_budget()),
    )
    return call, Mp


def fused_gemm(a, weights, biases, *, nonlin='none', gate=False,
               skip_a=None, skip_w=None, og=None, out_dtype=jnp.bfloat16):
    """out = epilogue(prologue(a) @ W + ...).  a: (M, K) bf16, W*: (K, Npad) bf16."""
    M, K = a.shape
    npad = weights[0].shape[1]
    has_skip = skip_a is not None
    assert gate == (og is not None)
    ks = skip_a.shape[1] if has_skip else 0
    cog = og.shape[1] if gate else 0
    call, Mp = _get_gemm(M, K, npad, ks, cog, nonlin, has_skip, gate,
                         jnp.dtype(out_dtype).name)

    def rows(t):
        return jnp.pad(t, ((0, Mp - M), (0, 0))) if Mp != M else t

    if gate:
        args = [rows(a), *weights, *biases, rows(og)]
    else:
        args = [rows(a), weights[0]]
        if nonlin == 'celu':
            args.append(weights[1])
        if has_skip:
            args += [rows(skip_a), skip_w[0], skip_w[1]]
        args.append(biases[0])
    out = call(*args)
    return out[:M] if Mp != M else out


# ------------------------- NHWC conv wrappers (glue) -------------------------

def _im2col(xp, KH, KW, stride):
    # TODO(synk): im2col is still materialized by XLA (KH*KW blow-up); a fully
    # fused version needs manual halo DMA (overlapping windows cannot be
    # expressed with BlockSpec index maps).
    B, H, Wd, C = xp.shape
    sh, sw = stride
    OH = (H - KH) // sh + 1
    OW = (Wd - KW) // sw + 1
    taps = []
    for kh in range(KH):
        for kw in range(KW):
            taps.append(xp[:, kh:kh + (OH - 1) * sh + 1:sh,
                           kw:kw + (OW - 1) * sw + 1:sw, :])
    A = jnp.concatenate(taps, axis=-1).reshape(B * OH * OW, KH * KW * C)
    return A, OH, OW


def conv_gemm(xp, p, stride=(1, 1), skip_a=None, og=None):
    # xp: spatially pre-padded NHWC bf16 input, channels already sliced to cin.
    A, OH, OW = _im2col(xp, p['kh'], p['kw'], stride)
    Bsz = xp.shape[0]
    M = A.shape[0]
    skip_flat = None if skip_a is None else skip_a.reshape(M, -1)
    og_flat = None if og is None else og.reshape(M, -1)
    out = fused_gemm(A, p['w'], p['b'], nonlin=p['nonlin'], gate=p['gate'],
                     skip_a=skip_flat, skip_w=p.get('skip_w'),
                     og=og_flat, out_dtype=jnp.bfloat16)
    return out.reshape(Bsz, OH, OW, out.shape[-1])


def down_shifted_conv2d(x, p, stride=(1, 1), shift_output_down=False,
                        skip_a=None, og=None):
    KH, KW, cin = p['kh'], p['kw'], p['cin']
    xs = x[..., :cin]
    xp = jnp.pad(xs, ((0, 0), (KH - 1, 0),
                      ((KW - 1) // 2, (KW - 1) // 2), (0, 0)))
    y = conv_gemm(xp, p, stride, skip_a=skip_a, og=og)
    if shift_output_down:
        y = jnp.pad(y[:, :-1, :, :], ((0, 0), (1, 0), (0, 0), (0, 0)))
    return y


def down_right_shifted_conv2d(x, p, stride=(1, 1), shift_output_right=False,
                              skip_a=None, og=None):
    KH, KW, cin = p['kh'], p['kw'], p['cin']
    xs = x[..., :cin]
    xp = jnp.pad(xs, ((0, 0), (KH - 1, 0), (KW - 1, 0), (0, 0)))
    y = conv_gemm(xp, p, stride, skip_a=skip_a, og=og)
    if shift_output_right:
        y = jnp.pad(y[:, :, :-1, :], ((0, 0), (0, 0), (1, 0), (0, 0)))
    return y


def conv_transpose2d(x, p, stride, output_padding=1):
    # TODO(synk): phase/sub-pixel decomposition would avoid the ~4x dead
    # zero-stuffed work of these 4 stride-2 layers.
    KH, KW, cin = p['kh'], p['kw'], p['cin']
    sh, sw = stride
    xs = x[..., :cin]
    B, H, Wd, _ = xs.shape
    xd = jnp.zeros((B, (H - 1) * sh + 1, (Wd - 1) * sw + 1, cin), xs.dtype)
    xd = xd.at[:, ::sh, ::sw, :].set(xs)
    xp = jnp.pad(xd, ((0, 0), (KH - 1, KH - 1 + output_padding),
                      (KW - 1, KW - 1 + output_padding), (0, 0)))
    return conv_gemm(xp, p, (1, 1))


def down_shifted_deconv2d(x, p):
    KH, KW = p['kh'], p['kw']                      # (2, 3)
    y = conv_transpose2d(x, p, stride=(2, 2), output_padding=1)
    Ho, Wo = y.shape[1], y.shape[2]
    return y[:, :Ho - KH + 1, (KW - 1) // 2:Wo - (KW - 1) // 2, :]


def down_right_shifted_deconv2d(x, p):
    KH, KW = p['kh'], p['kw']                      # (2, 2)
    y = conv_transpose2d(x, p, stride=(2, 2), output_padding=1)
    Ho, Wo = y.shape[1], y.shape[2]
    return y[:, :Ho - KH + 1, :Wo - KW + 1, :]


def nin_out_layer(x, p):
    # nin(F.elu(x)) with elu fused into the matmul prologue; f32 logits.
    B, H, Wd, _ = x.shape
    A = x[..., :p['cin']].reshape(-1, p['cin'])
    out = fused_gemm(A, p['w'], p['b'], nonlin='elu', out_dtype=jnp.float32)
    out = out[:, :p['n_true']]
    return out.reshape(B, H, Wd, p['n_true'])


def _conv_op(x, p, conv_type, skip_a=None, og=None):
    if conv_type == 'ds':
        return down_shifted_conv2d(x, p, skip_a=skip_a, og=og)
    return down_right_shifted_conv2d(x, p, skip_a=skip_a, og=og)


def gated_resnet(x, p, conv_type, a=None):
    # conv_input(concat_elu(x)) [+ nin_skip(concat_elu(a))]   -- fully fused
    h = _conv_op(x, p['ci'], conv_type, skip_a=a)
    # nn.Dropout2d(0.5): identity (eval semantics).
    # TODO(synk): train-mode stochastic dropout not reproduced.
    # conv_out(concat_elu(h)) -> chunk -> x + a*sigmoid(b)    -- fully fused
    return _conv_op(h, p['co'], conv_type, og=x)


# -------------------- parameter generation & preparation --------------------

class _ParamGen:
    def __init__(self, seed):
        self.key = jax.random.PRNGKey(seed)
        self.i = 0

    def normal(self, shape, scale):
        k = jax.random.fold_in(self.key, self.i)
        self.i += 1
        return scale * jax.random.normal(k, shape, jnp.float32)


def _conv_p(pg, cin, cout, kh, kw):
    return (pg.normal((kh, kw, cin, cout), 1.0 / np.sqrt(cin * kh * kw)),
            jnp.zeros((cout,), jnp.float32))


def _deconv_p(pg, cin, cout, kh, kw):
    return (pg.normal((cin, cout, kh, kw), 1.0 / np.sqrt(cin * kh * kw)),
            jnp.zeros((cout,), jnp.float32))


def _nin_p(pg, din, dout):
    return (pg.normal((din, dout), 1.0 / np.sqrt(din)),
            jnp.zeros((dout,), jnp.float32))


def _gated_resnet_p(pg, nf, conv_type, skip):
    kh, kw = (2, 3) if conv_type == 'ds' else (2, 2)
    p = {'ci': _conv_p(pg, 2 * nf, nf, kh, kw),
         'co': _conv_p(pg, 2 * nf, 2 * nf, kh, kw)}
    if skip:
        p['skip'] = _nin_p(pg, 2 * skip * nf, nf)
    return p


def init_pixelcnn_params(nr_resnet=5, nr_filters=80, nr_logistic_mix=10,
                         input_channels=3, seed=0):
    pg = _ParamGen(seed)
    nf = nr_filters
    num_mix = 3 if input_channels == 1 else 10
    down_nr = [nr_resnet, nr_resnet + 1, nr_resnet + 1]
    return {
        'up_layers': [[(_gated_resnet_p(pg, nf, 'ds', 0),
                        _gated_resnet_p(pg, nf, 'drs', 1))
                       for _ in range(nr_resnet)] for _ in range(3)],
        'down_layers': [[(_gated_resnet_p(pg, nf, 'ds', 1),
                          _gated_resnet_p(pg, nf, 'drs', 2))
                         for _ in range(down_nr[i])] for i in range(3)],
        'downsize_u': [_conv_p(pg, nf, nf, 2, 3) for _ in range(2)],
        'downsize_ul': [_conv_p(pg, nf, nf, 2, 2) for _ in range(2)],
        'upsize_u': [_deconv_p(pg, nf, nf, 2, 3) for _ in range(2)],
        'upsize_ul': [_deconv_p(pg, nf, nf, 2, 2) for _ in range(2)],
        'u_init': _conv_p(pg, input_channels + 1, nf, 2, 3),
        'ul_init0': _conv_p(pg, input_channels + 1, nf, 1, 3),
        'ul_init1': _conv_p(pg, input_channels + 1, nf, 2, 1),
        'nin_out': _nin_p(pg, nf, num_mix * nr_logistic_mix),
    }


def _pad_cols(m, npad):
    n = m.shape[-1]
    return m if n == npad else jnp.pad(m, ((0, 0), (0, npad - n)))


def _prep_plain_conv(W, b):
    KH, KW, Cin, Cout = W.shape
    npad = _round_up(Cout, 128)
    Wm = _pad_cols(W.reshape(KH * KW * Cin, Cout), npad).astype(jnp.bfloat16)
    bm = _pad_cols(b.reshape(1, Cout), npad).astype(jnp.float32)
    return {'kh': KH, 'kw': KW, 'cin': Cin, 'w': (Wm,), 'b': (bm,),
            'nonlin': 'none', 'gate': False}


def _prep_celu_conv(W, b, extra_bias=None):
    KH, KW, Cin2, Cout = W.shape
    Cx = Cin2 // 2
    npad = _round_up(Cout, 128)
    Wp = _pad_cols(W[:, :, :Cx, :].reshape(KH * KW * Cx, Cout), npad).astype(jnp.bfloat16)
    Wn = _pad_cols(W[:, :, Cx:, :].reshape(KH * KW * Cx, Cout), npad).astype(jnp.bfloat16)
    bb = b if extra_bias is None else b + extra_bias
    bm = _pad_cols(bb.reshape(1, Cout), npad).astype(jnp.float32)
    return {'kh': KH, 'kw': KW, 'cin': Cx, 'w': (Wp, Wn), 'b': (bm,),
            'nonlin': 'celu', 'gate': False}


def _prep_gated_conv(W, b):
    KH, KW, Cin2, Cout2 = W.shape
    Cx = Cin2 // 2
    nf = Cout2 // 2
    npad = _round_up(nf, 128)

    def mat(ci0, ci1, co0, co1):
        return _pad_cols(W[:, :, ci0:ci1, co0:co1].reshape(KH * KW * Cx, nf),
                         npad).astype(jnp.bfloat16)

    Wpa = mat(0, Cx, 0, nf); Wna = mat(Cx, 2 * Cx, 0, nf)
    Wpb = mat(0, Cx, nf, 2 * nf); Wnb = mat(Cx, 2 * Cx, nf, 2 * nf)
    ba = _pad_cols(b[:nf].reshape(1, nf), npad).astype(jnp.float32)
    bb = _pad_cols(b[nf:].reshape(1, nf), npad).astype(jnp.float32)
    return {'kh': KH, 'kw': KW, 'cin': Cx, 'w': (Wpa, Wna, Wpb, Wnb),
            'b': (ba, bb), 'nonlin': 'celu', 'gate': True}


def _prep_deconv(Wt, b):
    # Wt: (Cin, Cout, KH, KW) torch ConvTranspose2d layout -> equivalent conv.
    Wc = jnp.flip(Wt, axis=(2, 3)).transpose(2, 3, 0, 1)   # (KH, KW, Cin, Cout)
    return _prep_plain_conv(Wc, b)


def _prep_nin_out(W, b):
    nf_in, n_out = W.shape
    npad = _round_up(n_out, 128)
    Wm = _pad_cols(W, npad).astype(jnp.bfloat16)
    bm = _pad_cols(b.reshape(1, n_out), npad).astype(jnp.float32)
    return {'cin': nf_in, 'w': (Wm,), 'b': (bm,), 'n_true': n_out,
            'nonlin': 'elu', 'gate': False}


def _prep_gated_resnet(raw, nf):
    extra_b = None
    skip_w = None
    if 'skip' in raw:
        Ws, bs = raw['skip']
        Ca = Ws.shape[0] // 2
        npad = _round_up(nf, 128)
        skip_w = (_pad_cols(Ws[:Ca], npad).astype(jnp.bfloat16),
                  _pad_cols(Ws[Ca:], npad).astype(jnp.bfloat16))
        extra_b = bs
    ci = _prep_celu_conv(*raw['ci'], extra_bias=extra_b)
    if skip_w is not None:
        ci['skip_w'] = skip_w
    return {'ci': ci, 'co': _prep_gated_conv(*raw['co'])}


def prepare_params(raw, nr_filters):
    """One-time (eager) conversion to kernel-ready bf16 / padded layouts."""
    nf = nr_filters
    g = lambda rp: _prep_gated_resnet(rp, nf)
    return {
        'nf': nf,
        'up_layers': [[(g(pu), g(pul)) for (pu, pul) in lvl]
                      for lvl in raw['up_layers']],
        'down_layers': [[(g(pu), g(pul)) for (pu, pul) in lvl]
                        for lvl in raw['down_layers']],
        'downsize_u': [_prep_plain_conv(*p) for p in raw['downsize_u']],
        'downsize_ul': [_prep_plain_conv(*p) for p in raw['downsize_ul']],
        'upsize_u': [_prep_deconv(*p) for p in raw['upsize_u']],
        'upsize_ul': [_prep_deconv(*p) for p in raw['upsize_ul']],
        'u_init': _prep_plain_conv(*raw['u_init']),
        'ul_init0': _prep_plain_conv(*raw['ul_init0']),
        'ul_init1': _prep_plain_conv(*raw['ul_init1']),
        'nin_out': _prep_nin_out(*raw['nin_out']),
    }


# ------------------------------- forward pass -------------------------------
# Internal feature maps are NHWC bf16 with C padded to a 128 multiple; only the
# first `nf` channels are meaningful (the padded tail stays exactly zero).

def pixelcnn_forward(params, x_nchw):
    nf = params['nf']
    x = jnp.transpose(x_nchw, (0, 2, 3, 1)).astype(jnp.float32)   # -> NHWC
    B, H, W, _ = x.shape
    x = jnp.concatenate([x, jnp.ones((B, H, W, 1), jnp.float32)],
                        axis=-1).astype(jnp.bfloat16)

    u_list = [down_shifted_conv2d(x, params['u_init'], shift_output_down=True)]
    ul_list = [down_shifted_conv2d(x, params['ul_init0'], shift_output_down=True)
               + down_right_shifted_conv2d(x, params['ul_init1'],
                                           shift_output_right=True)]

    # up pass
    for i in range(3):
        for (pu, pul) in params['up_layers'][i]:
            u = gated_resnet(u_list[-1], pu, 'ds')
            ul = gated_resnet(ul_list[-1], pul, 'drs', a=u[..., :nf])
            u_list.append(u)
            ul_list.append(ul)
        if i != 2:
            u_list.append(down_shifted_conv2d(u_list[-1],
                                              params['downsize_u'][i],
                                              stride=(2, 2)))
            ul_list.append(down_right_shifted_conv2d(ul_list[-1],
                                                     params['downsize_ul'][i],
                                                     stride=(2, 2)))

    # down pass
    u = u_list.pop()
    ul = ul_list.pop()
    for i in range(3):
        for (pu, pul) in params['down_layers'][i]:
            u = gated_resnet(u, pu, 'ds', a=u_list.pop()[..., :nf])
            ul = gated_resnet(ul, pul, 'drs',
                              a=jnp.concatenate([u[..., :nf],
                                                 ul_list.pop()[..., :nf]],
                                                axis=-1))
        if i != 2:
            u = down_shifted_deconv2d(u, params['upsize_u'][i])
            ul = down_right_shifted_deconv2d(ul, params['upsize_ul'][i])

    assert len(u_list) == 0 and len(ul_list) == 0
    x_out = nin_out_layer(ul, params['nin_out'])     # F.elu fused; f32 logits
    return jnp.transpose(x_out, (0, 3, 1, 2))        # back to NCHW


# ------------------------------------ main -----------------------------------

if __name__ == "__main__":
    B, IC, H, W = 2, 3, 8, 8
    nr_resnet, nr_filters, nr_logistic_mix = 1, 16, 5

    key = jax.random.PRNGKey(0)
    x = jax.random.normal(key, (B, IC, H, W), jnp.float32)

    raw_params = init_pixelcnn_params(nr_resnet=nr_resnet,
                                      nr_filters=nr_filters,
                                      nr_logistic_mix=nr_logistic_mix,
                                      input_channels=IC, seed=0)
    params = prepare_params(raw_params, nr_filters)   # one-time, eager

    fwd = jax.jit(functools.partial(pixelcnn_forward, params))  # single jit
    out = jax.block_until_ready(fwd(x))

    num_mix = 3 if IC == 1 else 10
    assert out.shape == (B, num_mix * nr_logistic_mix, H, W), out.shape
    assert bool(jnp.all(jnp.isfinite(out)))
    print("KERNEL_OK")
</pallas_src>

<mosaic_0001>
module attributes {stable_mosaic.version = 11 : i64} {
  func.func @kernel(%arg0: i32, %arg1: memref<64x24xbf16, #tpu.memory_space<vmem>>, %arg2: memref<24x128xbf16, #tpu.memory_space<vmem>>, %arg3: memref<1x128xf32, #tpu.memory_space<vmem>>, %arg4: memref<64x128xbf16, #tpu.memory_space<vmem>>) attributes {dimension_semantics = [#tpu.dimension_semantics<parallel>], iteration_bounds = array<i64: 2>, scalar_prefetch = 0 : i64, scratch_operands = 0 : i64, tpu.core_type = #tpu.core_type<tc>, window_params = [{transform_indices = @transform_0, window_bounds = array<i64: 64, 24>}, {pipeline_mode = #tpu.pipeline_mode<synchronous>, transform_indices = @transform_1, window_bounds = array<i64: 24, 128>}, {pipeline_mode = #tpu.pipeline_mode<synchronous>, transform_indices = @transform_2, window_bounds = array<i64: 1, 128>}, {transform_indices = @transform_3, window_bounds = array<i64: 64, 128>}]} {
    %c0 = arith.constant 0 : index
    %c0_0 = arith.constant 0 : index
    %0 = vector.load %arg1[%c0, %c0_0] : memref<64x24xbf16, #tpu.memory_space<vmem>>, vector<64x24xbf16>
    %c0_1 = arith.constant 0 : index
    %c0_2 = arith.constant 0 : index
    %1 = vector.load %arg2[%c0_1, %c0_2] : memref<24x128xbf16, #tpu.memory_space<vmem>>, vector<24x128xbf16>
    %cst = arith.constant dense<0.000000e+00> : vector<64x128xf32>
    %2 = tpu.matmul %0, %1, %cst {dimension_numbers = #tpu.dot_dimension_numbers<[1], [0], [0], [1], [0, 0, 1, 1], [], []>} : vector<64x24xbf16>, vector<24x128xbf16>, vector<64x128xf32> -> vector<64x128xf32>
    %c0_3 = arith.constant 0 : index
    %c0_4 = arith.constant 0 : index
    %3 = vector.load %arg3[%c0_3, %c0_4] : memref<1x128xf32, #tpu.memory_space<vmem>>, vector<1x128xf32>
    %4 = vector.broadcast %3 : vector<1x128xf32> to vector<64x128xf32>
    %5 = arith.addf %2, %4 : vector<64x128xf32>
    %6 = arith.truncf %5 : vector<64x128xf32> to vector<64x128xbf16>
    %c0_5 = arith.constant 0 : index
    %c0_6 = arith.constant 0 : index
    %7 = vector.load %arg4[%c0_5, %c0_6] : memref<64x128xbf16, #tpu.memory_space<vmem>>, vector<64x128xbf16>
    tpu.vector_store %arg4[%c0_5, %c0_6], %6 {strides = array<i32>} : memref<64x128xbf16, #tpu.memory_space<vmem>>, vector<64x128xbf16>,
    return
  }
  func.func @transform_0(%arg0: i32) -> (i32, i32) {
    %c0_i32 = arith.constant 0 : i32
    %c0_i32_0 = arith.constant 0 : i32
    return %arg0, %c0_i32 : i32, i32
  }
  func.func @transform_1(%arg0: i32) -> (i32, i32) {
    %c0_i32 = arith.constant 0 : i32
    %c0_i32_0 = arith.constant 0 : i32
    %c0_i32_1 = arith.constant 0 : i32
    return %c0_i32, %c0_i32_0 : i32, i32
  }
  func.func @transform_2(%arg0: i32) -> (i32, i32) {
    %c0_i32 = arith.constant 0 : i32
    %c0_i32_0 = arith.constant 0 : i32
    %c0_i32_1 = arith.constant 0 : i32
    return %c0_i32, %c0_i32_0 : i32, i32
  }
  func.func @transform_3(%arg0: i32) -> (i32, i32) {
    %c0_i32 = arith.constant 0 : i32
    %c0_i32_0 = arith.constant 0 : i32
    return %arg0, %c0_i32 : i32, i32
  }
}

module attributes {stable_mosaic.version = 11 : i64} {
  func.func @kernel(%arg0: i32, %arg1: memref<64x96xbf16, #tpu.memory_space<vmem>>, %arg2: memref<96x128xbf16, #tpu.memory_space<vmem>>, %arg3: memref<96x128xbf16, #tpu.memory_space<vmem>>, %arg4: memref<1x128xf32, #tpu.memory_space<vmem>>, %arg5: memref<64x128xbf16, #tpu.memory_space<vmem>>) attributes {dimension_semantics = [#tpu.dimension_semantics<parallel>], iteration_bounds = array<i64: 2>, scalar_prefetch = 0 : i64, scratch_operands = 0 : i64, tpu.core_type = #tpu.core_type<tc>, window_params = [{transform_indices = @transform_0, window_bounds = array<i64: 64, 96>}, {pipeline_mode = #tpu.pipeline_mode<synchronous>, transform_indices = @transform_1, window_bounds = array<i64: 96, 128>}, {pipeline_mode = #tpu.pipeline_mode<synchronous>, transform_indices = @transform_2, window_bounds = array<i64: 96, 128>}, {pipeline_mode = #tpu.pipeline_mode<synchronous>, transform_indices = @transform_3, window_bounds = array<i64: 1, 128>}, {transform_indices = @transform_4, window_bounds = array<i64: 64, 128>}]} {
    %c0 = arith.constant 0 : index
    %c0_0 = arith.constant 0 : index
    %0 = vector.load %arg1[%c0, %c0_0] : memref<64x96xbf16, #tpu.memory_space<vmem>>, vector<64x96xbf16>
    %1 = math.absf %0 : vector<64x96xbf16>
    %cst = arith.constant 0.000000e+00 : bf16
    %2 = vector.broadcast %cst : bf16 to vector<64x96xbf16>
    %3 = arith.subf %2, %1 : vector<64x96xbf16>
    %4 = math.exp %3 : vector<64x96xbf16>
    %cst_1 = arith.constant 1.000000e+00 : bf16
    %5 = vector.broadcast %cst_1 : bf16 to vector<64x96xbf16>
    %6 = arith.subf %4, %5 : vector<64x96xbf16>
    %cst_2 = arith.constant 0.000000e+00 : bf16
    %7 = vector.broadcast %cst_2 : bf16 to vector<64x96xbf16>
    %8 = arith.cmpf ogt, %0, %7 : vector<64x96xbf16>
    %9 = arith.select %8, %0, %6 : vector<64x96xi1>, vector<64x96xbf16>
    %cst_3 = arith.constant 0.000000e+00 : bf16
    %10 = vector.broadcast %cst_3 : bf16 to vector<64x96xbf16>
    %11 = arith.cmpf ogt, %0, %10 : vector<64x96xbf16>
    %cst_4 = arith.constant 0.000000e+00 : bf16
    %12 = vector.broadcast %cst_4 : bf16 to vector<64x96xbf16>
    %13 = arith.subf %12, %0 : vector<64x96xbf16>
    %14 = arith.select %11, %6, %13 : vector<64x96xi1>, vector<64x96xbf16>
    %c0_5 = arith.constant 0 : index
    %c0_6 = arith.constant 0 : index
    %15 = vector.load %arg2[%c0_5, %c0_6] : memref<96x128xbf16, #tpu.memory_space<vmem>>, vector<96x128xbf16>
    %cst_7 = arith.constant dense<0.000000e+00> : vector<64x128xf32>
    %16 = tpu.matmul %9, %15, %cst_7 {dimension_numbers = #tpu.dot_dimension_numbers<[1], [0], [0], [1], [0, 0, 1, 1], [], []>} : vector<64x96xbf16>, vector<96x128xbf16>, vector<64x128xf32> -> vector<64x128xf32>
    %c0_8 = arith.constant 0 : index
    %c0_9 = arith.constant 0 : index
    %17 = vector.load %arg3[%c0_8, %c0_9] : memref<96x128xbf16, #tpu.memory_space<vmem>>, vector<96x128xbf16>
    %cst_10 = arith.constant dense<0.000000e+00> : vector<64x128xf32>
    %18 = tpu.matmul %14, %17, %cst_10 {dimension_numbers = #tpu.dot_dimension_numbers<[1], [0], [0], [1], [0, 0, 1, 1], [], []>} : vector<64x96xbf16>, vector<96x128xbf16>, vector<64x128xf32> -> vector<64x128xf32>
    %19 = arith.addf %16, %18 : vector<64x128xf32>
    %c0_11 = arith.constant 0 : index
    %c0_12 = arith.constant 0 : index
    %20 = vector.load %arg4[%c0_11, %c0_12] : memref<1x128xf32, #tpu.memory_space<vmem>>, vector<1x128xf32>
    %21 = vector.broadcast %20 : vector<1x128xf32> to vector<64x128xf32>
    %22 = arith.addf %19, %21 : vector<64x128xf32>
    %23 = arith.truncf %22 : vector<64x128xf32> to vector<64x128xbf16>
    %c0_13 = arith.constant 0 : index
    %c0_14 = arith.constant 0 : index
    %24 = vector.load %arg5[%c0_13, %c0_14] : memref<64x128xbf16, #tpu.memory_space<vmem>>, vector<64x128xbf16>
    tpu.vector_store %arg5[%c0_13, %c0_14], %23 {strides = array<i32>} : memref<64x128xbf16, #tpu.memory_space<vmem>>, vector<64x128xbf16>,
    return
  }
  func.func @transform_0(%arg0: i32) -> (i32, i32) {
    %c0_i32 = arith.constant 0 : i32
    %c0_i32_0 = arith.constant 0 : i32
    return %arg0, %c0_i32 : i32, i32
  }
  func.func @transform_1(%arg0: i32) -> (i32, i32) {
    %c0_i32 = arith.constant 0 : i32
    %c0_i32_0 = arith.constant 0 : i32
    %c0_i32_1 = arith.constant 0 : i32
    return %c0_i32, %c0_i32_0 : i32, i32
  }
  func.func @transform_2(%arg0: i32) -> (i32, i32) {
    %c0_i32 = arith.constant 0 : i32
    %c0_i32_0 = arith.constant 0 : i32
    %c0_i32_1 = arith.constant 0 : i32
    return %c0_i32, %c0_i32_0 : i32, i32
  }
  func.func @transform_3(%arg0: i32) -> (i32, i32) {
    %c0_i32 = arith.constant 0 : i32
    %c0_i32_0 = arith.constant 0 : i32
    %c0_i32_1 = arith.constant 0 : i32
    return %c0_i32, %c0_i32_0 : i32, i32
  }
  func.func @transform_4(%arg0: i32) -> (i32, i32) {
    %c0_i32 = arith.constant 0 : i32
    %c0_i32_0 = arith.constant 0 : i32
    return %arg0, %c0_i32 : i32, i32
  }
}

module attributes {stable_mosaic.version = 11 : i64} {
  func.func @kernel(%arg0: i32, %arg1: memref<64x96xbf16, #tpu.memory_space<vmem>>, %arg2: memref<96x128xbf16, #tpu.memory_space<vmem>>, %arg3: memref<96x128xbf16, #tpu.memory_space<vmem>>, %arg4: memref<96x128xbf16, #tpu.memory_space<vmem>>, %arg5: memref<96x128xbf16, #tpu.memory_space<vmem>>, %arg6: memref<1x128xf32, #tpu.memory_space<vmem>>, %arg7: memref<1x128xf32, #tpu.memory_space<vmem>>, %arg8: memref<64x128xbf16, #tpu.memory_space<vmem>>, %arg9: memref<64x128xbf16, #tpu.memory_space<vmem>>) attributes {dimension_semantics = [#tpu.dimension_semantics<parallel>], iteration_bounds = array<i64: 2>, scalar_prefetch = 0 : i64, scratch_operands = 0 : i64, tpu.core_type = #tpu.core_type<tc>, window_params = [{transform_indices = @transform_0, window_bounds = array<i64: 64, 96>}, {pipeline_mode = #tpu.pipeline_mode<synchronous>, transform_indices = @transform_1, window_bounds = array<i64: 96, 128>}, {pipeline_mode = #tpu.pipeline_mode<synchronous>, transform_indices = @transform_2, window_bounds = array<i64: 96, 128>}, {pipeline_mode = #tpu.pipeline_mode<synchronous>, transform_indices = @transform_3, window_bounds = array<i64: 96, 128>}, {pipeline_mode = #tpu.pipeline_mode<synchronous>, transform_indices = @transform_4, window_bounds = array<i64: 96, 128>}, {pipeline_mode = #tpu.pipeline_mode<synchronous>, transform_indices = @transform_5, window_bounds = array<i64: 1, 128>}, {pipeline_mode = #tpu.pipeline_mode<synchronous>, transform_indices = @transform_6, window_bounds = array<i64: 1, 128>}, {transform_indices = @transform_7, window_bounds = array<i64: 64, 128>}, {transform_indices = @transform_8, window_bounds = array<i64: 64, 128>}]} {
    %c0 = arith.constant 0 : index
    %c0_0 = arith.constant 0 : index
    %0 = vector.load %arg1[%c0, %c0_0] : memref<64x96xbf16, #tpu.memory_space<vmem>>, vector<64x96xbf16>
    %1 = math.absf %0 : vector<64x96xbf16>
    %cst = arith.constant 0.000000e+00 : bf16
    %2 = vector.broadcast %cst : bf16 to vector<64x96xbf16>
    %3 = arith.subf %2, %1 : vector<64x96xbf16>
    %4 = math.exp %3 : vector<64x96xbf16>
    %cst_1 = arith.constant 1.000000e+00 : bf16
    %5 = vector.broadcast %cst_1 : bf16 to vector<64x96xbf16>
    %6 = arith.subf %4, %5 : vector<64x96xbf16>
    %cst_2 = arith.constant 0.000000e+00 : bf16
    %7 = vector.broadcast %cst_2 : bf16 to vector<64x96xbf16>
    %8 = arith.cmpf ogt, %0, %7 : vector<64x96xbf16>
    %9 = arith.select %8, %0, %6 : vector<64x96xi1>, vector<64x96xbf16>
    %cst_3 = arith.constant 0.000000e+00 : bf16
    %10 = vector.broadcast %cst_3 : bf16 to vector<64x96xbf16>
    %11 = arith.cmpf ogt, %0, %10 : vector<64x96xbf16>
    %cst_4 = arith.constant 0.000000e+00 : bf16
    %12 = vector.broadcast %cst_4 : bf16 to vector<64x96xbf16>
    %13 = arith.subf %12, %0 : vector<64x96xbf16>
    %14 = arith.select %11, %6, %13 : vector<64x96xi1>, vector<64x96xbf16>
    %c0_5 = arith.constant 0 : index
    %c0_6 = arith.constant 0 : index
    %15 = vector.load %arg2[%c0_5, %c0_6] : memref<96x128xbf16, #tpu.memory_space<vmem>>, vector<96x128xbf16>
    %c0_7 = arith.constant 0 : index
    %c0_8 = arith.constant 0 : index
    %16 = vector.load %arg3[%c0_7, %c0_8] : memref<96x128xbf16, #tpu.memory_space<vmem>>, vector<96x128xbf16>
    %c0_9 = arith.constant 0 : index
    %c0_10 = arith.constant 0 : index
    %17 = vector.load %arg4[%c0_9, %c0_10] : memref<96x128xbf16, #tpu.memory_space<vmem>>, vector<96x128xbf16>
    %c0_11 = arith.constant 0 : index
    %c0_12 = arith.constant 0 : index
    %18 = vector.load %arg5[%c0_11, %c0_12] : memref<96x128xbf16, #tpu.memory_space<vmem>>, vector<96x128xbf16>
    %c0_13 = arith.constant 0 : index
    %c0_14 = arith.constant 0 : index
    %19 = vector.load %arg6[%c0_13, %c0_14] : memref<1x128xf32, #tpu.memory_space<vmem>>, vector<1x128xf32>
    %c0_15 = arith.constant 0 : index
    %c0_16 = arith.constant 0 : index
    %20 = vector.load %arg7[%c0_15, %c0_16] : memref<1x128xf32, #tpu.memory_space<vmem>>, vector<1x128xf32>
    %c0_17 = arith.constant 0 : index
    %c0_18 = arith.constant 0 : index
    %21 = vector.load %arg8[%c0_17, %c0_18] : memref<64x128xbf16, #tpu.memory_space<vmem>>, vector<64x128xbf16>
    %cst_19 = arith.constant dense<0.000000e+00> : vector<64x128xf32>
    %22 = tpu.matmul %9, %15, %cst_19 {dimension_numbers = #tpu.dot_dimension_numbers<[1], [0], [0], [1], [0, 0, 1, 1], [], []>} : vector<64x96xbf16>, vector<96x128xbf16>, vector<64x128xf32> -> vector<64x128xf32>
    %cst_20 = arith.constant dense<0.000000e+00> : vector<64x128xf32>
    %23 = tpu.matmul %14, %16, %cst_20 {dimension_numbers = #tpu.dot_dimension_numbers<[1], [0], [0], [1], [0, 0, 1, 1], [], []>} : vector<64x96xbf16>, vector<96x128xbf16>, vector<64x128xf32> -> vector<64x128xf32>
    %24 = arith.addf %22, %23 : vector<64x128xf32>
    %25 = vector.broadcast %19 : vector<1x128xf32> to vector<64x128xf32>
    %26 = arith.addf %24, %25 : vector<64x128xf32>
    %cst_21 = arith.constant dense<0.000000e+00> : vector<64x128xf32>
    %27 = tpu.matmul %9, %17, %cst_21 {dimension_numbers = #tpu.dot_dimension_numbers<[1], [0], [0], [1], [0, 0, 1, 1], [], []>} : vector<64x96xbf16>, vector<96x128xbf16>, vector<64x128xf32> -> vector<64x128xf32>
    %cst_22 = arith.constant dense<0.000000e+00> : vector<64x128xf32>
    %28 = tpu.matmul %14, %18, %cst_22 {dimension_numbers = #tpu.dot_dimension_numbers<[1], [0], [0], [1], [0, 0, 1, 1], [], []>} : vector<64x96xbf16>, vector<96x128xbf16>, vector<64x128xf32> -> vector<64x128xf32>
    %29 = arith.addf %27, %28 : vector<64x128xf32>
    %30 = vector.broadcast %20 : vector<1x128xf32> to vector<64x128xf32>
    %31 = arith.addf %29, %30 : vector<64x128xf32>
    %32 = arith.extf %21 : vector<64x128xbf16> to vector<64x128xf32>
    %33 = math.absf %31 : vector<64x128xf32>
    %cst_23 = arith.constant 0.000000e+00 : f32
    %34 = vector.broadcast %cst_23 : f32 to vector<64x128xf32>
    %35 = arith.subf %34, %33 : vector<64x128xf32>
    %36 = math.exp %35 : vector<64x128xf32>
    %cst_24 = arith.constant 0.000000e+00 : f32
    %37 = vector.broadcast %cst_24 : f32 to vector<64x128xf32>
    %38 = arith.cmpf oge, %31, %37 : vector<64x128xf32>
    %cst_25 = arith.constant 1.000000e+00 : f32
    %39 = vector.broadcast %cst_25 : f32 to vector<64x128xf32>
    %40 = arith.select %38, %39, %36 : vector<64x128xi1>, vector<64x128xf32>
    %cst_26 = arith.constant 1.000000e+00 : f32
    %41 = vector.broadcast %cst_26 : f32 to vector<64x128xf32>
    %42 = arith.addf %41, %36 : vector<64x128xf32>
    %43 = tpu.reciprocal %42 {approx = true} : vector<64x128xf32> -> vector<64x128xf32>
    %44 = arith.mulf %40, %43 : vector<64x128xf32>
    %45 = arith.mulf %26, %44 : vector<64x128xf32>
    %46 = arith.addf %32, %45 : vector<64x128xf32>
    %47 = arith.truncf %46 : vector<64x128xf32> to vector<64x128xbf16>
    %c0_27 = arith.constant 0 : index
    %c0_28 = arith.constant 0 : index
    %48 = vector.load %arg9[%c0_27, %c0_28] : memref<64x128xbf16, #tpu.memory_space<vmem>>, vector<64x128xbf16>
    tpu.vector_store %arg9[%c0_27, %c0_28], %47 {strides = array<i32>} : memref<64x128xbf16, #tpu.memory_space<vmem>>, vector<64x128xbf16>,
    return
  }
  func.func @transform_0(%arg0: i32) -> (i32, i32) {
    %c0_i32 = arith.constant 0 : i32
    %c0_i32_0 = arith.constant 0 : i32
    return %arg0, %c0_i32 : i32, i32
  }
  func.func @transform_1(%arg0: i32) -> (i32, i32) {
    %c0_i32 = arith.constant 0 : i32
    %c0_i32_0 = arith.constant 0 : i32
    %c0_i32_1 = arith.constant 0 : i32
    return %c0_i32, %c0_i32_0 : i32, i32
  }
  func.func @transform_2(%arg0: i32) -> (i32, i32) {
    %c0_i32 = arith.constant 0 : i32
    %c0_i32_0 = arith.constant 0 : i32
    %c0_i32_1 = arith.constant 0 : i32
    return %c0_i32, %c0_i32_0 : i32, i32
  }
  func.func @transform_3(%arg0: i32) -> (i32, i32) {
    %c0_i32 = arith.constant 0 : i32
    %c0_i32_0 = arith.constant 0 : i32
    %c0_i32_1 = arith.constant 0 : i32
    return %c0_i32, %c0_i32_0 : i32, i32
  }
  func.func @transform_4(%arg0: i32) -> (i32, i32) {
    %c0_i32 = arith.constant 0 : i32
    %c0_i32_0 = arith.constant 0 : i32
    %c0_i32_1 = arith.constant 0 : i32
    return %c0_i32, %c0_i32_0 : i32, i32
  }
  func.func @transform_5(%arg0: i32) -> (i32, i32) {
    %c0_i32 = arith.constant 0 : i32
    %c0_i32_0 = arith.constant 0 : i32
    %c0_i32_1 = arith.constant 0 : i32
    return %c0_i32, %c0_i32_0 : i32, i32
  }
  func.func @transform_6(%arg0: i32) -> (i32, i32) {
    %c0_i32 = arith.constant 0 : i32
    %c0_i32_0 = arith.constant 0 : i32
    %c0_i32_1 = arith.constant 0 : i32
    return %c0_i32, %c0_i32_0 : i32, i32
  }
  func.func @transform_7(%arg0: i32) -> (i32, i32) {
    %c0_i32 = arith.constant 0 : i32
    %c0_i32_0 = arith.constant 0 : i32
    return %arg0, %c0_i32 : i32, i32
  }
  func.func @transform_8(%arg0: i32) -> (i32, i32) {
    %c0_i32 = arith.constant 0 : i32
    %c0_i32_0 = arith.constant 0 : i32
    return %arg0, %c0_i32 : i32, i32
  }
}

module attributes {stable_mosaic.version = 11 : i64} {
  func.func @kernel(%arg0: i32, %arg1: memref<16x96xbf16, #tpu.memory_space<vmem>>, %arg2: memref<96x128xbf16, #tpu.memory_space<vmem>>, %arg3: memref<1x128xf32, #tpu.memory_space<vmem>>, %arg4: memref<16x128xbf16, #tpu.memory_space<vmem>>) attributes {dimension_semantics = [#tpu.dimension_semantics<parallel>], iteration_bounds = array<i64: 2>, scalar_prefetch = 0 : i64, scratch_operands = 0 : i64, tpu.core_type = #tpu.core_type<tc>, window_params = [{transform_indices = @transform_0, window_bounds = array<i64: 16, 96>}, {pipeline_mode = #tpu.pipeline_mode<synchronous>, transform_indices = @transform_1, window_bounds = array<i64: 96, 128>}, {pipeline_mode = #tpu.pipeline_mode<synchronous>, transform_indices = @transform_2, window_bounds = array<i64: 1, 128>}, {transform_indices = @transform_3, window_bounds = array<i64: 16, 128>}]} {
    %c0 = arith.constant 0 : index
    %c0_0 = arith.constant 0 : index
    %0 = vector.load %arg1[%c0, %c0_0] : memref<16x96xbf16, #tpu.memory_space<vmem>>, vector<16x96xbf16>
    %c0_1 = arith.constant 0 : index
    %c0_2 = arith.constant 0 : index
    %1 = vector.load %arg2[%c0_1, %c0_2] : memref<96x128xbf16, #tpu.memory_space<vmem>>, vector<96x128xbf16>
    %cst = arith.constant dense<0.000000e+00> : vector<16x128xf32>
    %2 = tpu.matmul %0, %1, %cst {dimension_numbers = #tpu.dot_dimension_numbers<[1], [0], [0], [1], [0, 0, 1, 1], [], []>} : vector<16x96xbf16>, vector<96x128xbf16>, vector<16x128xf32> -> vector<16x128xf32>
    %c0_3 = arith.constant 0 : index
    %c0_4 = arith.constant 0 : index
    %3 = vector.load %arg3[%c0_3, %c0_4] : memref<1x128xf32, #tpu.memory_space<vmem>>, vector<1x128xf32>
    %4 = vector.broadcast %3 : vector<1x128xf32> to vector<16x128xf32>
    %5 = arith.addf %2, %4 : vector<16x128xf32>
    %6 = arith.truncf %5 : vector<16x128xf32> to vector<16x128xbf16>
    %c0_5 = arith.constant 0 : index
    %c0_6 = arith.constant 0 : index
    %7 = vector.load %arg4[%c0_5, %c0_6] : memref<16x128xbf16, #tpu.memory_space<vmem>>, vector<16x128xbf16>
    tpu.vector_store %arg4[%c0_5, %c0_6], %6 {strides = array<i32>} : memref<16x128xbf16, #tpu.memory_space<vmem>>, vector<16x128xbf16>,
    return
  }
  func.func @transform_0(%arg0: i32) -> (i32, i32) {
    %c0_i32 = arith.constant 0 : i32
    %c0_i32_0 = arith.constant 0 : i32
    return %arg0, %c0_i32 : i32, i32
  }
  func.func @transform_1(%arg0: i32) -> (i32, i32) {
    %c0_i32 = arith.constant 0 : i32
    %c0_i32_0 = arith.constant 0 : i32
    %c0_i32_1 = arith.constant 0 : i32
    return %c0_i32, %c0_i32_0 : i32, i32
  }
  func.func @transform_2(%arg0: i32) -> (i32, i32) {
    %c0_i32 = arith.constant 0 : i32
    %c0_i32_0 = arith.constant 0 : i32
    %c0_i32_1 = arith.constant 0 : i32
    return %c0_i32, %c0_i32_0 : i32, i32
  }
  func.func @transform_3(%arg0: i32) -> (i32, i32) {
    %c0_i32 = arith.constant 0 : i32
    %c0_i32_0 = arith.constant 0 : i32
    return %arg0, %c0_i32 : i32, i32
  }
}

module attributes {stable_mosaic.version = 11 : i64} {
  func.func @kernel(%arg0: i32, %arg1: memref<16x96xbf16, #tpu.memory_space<vmem>>, %arg2: memref<96x128xbf16, #tpu.memory_space<vmem>>, %arg3: memref<96x128xbf16, #tpu.memory_space<vmem>>, %arg4: memref<1x128xf32, #tpu.memory_space<vmem>>, %arg5: memref<16x128xbf16, #tpu.memory_space<vmem>>) attributes {dimension_semantics = [#tpu.dimension_semantics<parallel>], iteration_bounds = array<i64: 2>, scalar_prefetch = 0 : i64, scratch_operands = 0 : i64, tpu.core_type = #tpu.core_type<tc>, window_params = [{transform_indices = @transform_0, window_bounds = array<i64: 16, 96>}, {pipeline_mode = #tpu.pipeline_mode<synchronous>, transform_indices = @transform_1, window_bounds = array<i64: 96, 128>}, {pipeline_mode = #tpu.pipeline_mode<synchronous>, transform_indices = @transform_2, window_bounds = array<i64: 96, 128>}, {pipeline_mode = #tpu.pipeline_mode<synchronous>, transform_indices = @transform_3, window_bounds = array<i64: 1, 128>}, {transform_indices = @transform_4, window_bounds = array<i64: 16, 128>}]} {
    %c0 = arith.constant 0 : index
    %c0_0 = arith.constant 0 : index
    %0 = vector.load %arg1[%c0, %c0_0] : memref<16x96xbf16, #tpu.memory_space<vmem>>, vector<16x96xbf16>
    %1 = math.absf %0 : vector<16x96xbf16>
    %cst = arith.constant 0.000000e+00 : bf16
    %2 = vector.broadcast %cst : bf16 to vector<16x96xbf16>
    %3 = arith.subf %2, %1 : vector<16x96xbf16>
    %4 = math.exp %3 : vector<16x96xbf16>
    %cst_1 = arith.constant 1.000000e+00 : bf16
    %5 = vector.broadcast %cst_1 : bf16 to vector<16x96xbf16>
    %6 = arith.subf %4, %5 : vector<16x96xbf16>
    %cst_2 = arith.constant 0.000000e+00 : bf16
    %7 = vector.broadcast %cst_2 : bf16 to vector<16x96xbf16>
    %8 = arith.cmpf ogt, %0, %7 : vector<16x96xbf16>
    %9 = arith.select %8, %0, %6 : vector<16x96xi1>, vector<16x96xbf16>
    %cst_3 = arith.constant 0.000000e+00 : bf16
    %10 = vector.broadcast %cst_3 : bf16 to vector<16x96xbf16>
    %11 = arith.cmpf ogt, %0, %10 : vector<16x96xbf16>
    %cst_4 = arith.constant 0.000000e+00 : bf16
    %12 = vector.broadcast %cst_4 : bf16 to vector<16x96xbf16>
    %13 = arith.subf %12, %0 : vector<16x96xbf16>
    %14 = arith.select %11, %6, %13 : vector<16x96xi1>, vector<16x96xbf16>
    %c0_5 = arith.constant 0 : index
    %c0_6 = arith.constant 0 : index
    %15 = vector.load %arg2[%c0_5, %c0_6] : memref<96x128xbf16, #tpu.memory_space<vmem>>, vector<96x128xbf16>
    %cst_7 = arith.constant dense<0.000000e+00> : vector<16x128xf32>
    %16 = tpu.matmul %9, %15, %cst_7 {dimension_numbers = #tpu.dot_dimension_numbers<[1], [0], [0], [1], [0, 0, 1, 1], [], []>} : vector<16x96xbf16>, vector<96x128xbf16>, vector<16x128xf32> -> vector<16x128xf32>
    %c0_8 = arith.constant 0 : index
    %c0_9 = arith.constant 0 : index
    %17 = vector.load %arg3[%c0_8, %c0_9] : memref<96x128xbf16, #tpu.memory_space<vmem>>, vector<96x128xbf16>
    %cst_10 = arith.constant dense<0.000000e+00> : vector<16x128xf32>
    %18 = tpu.matmul %14, %17, %cst_10 {dimension_numbers = #tpu.dot_dimension_numbers<[1], [0], [0], [1], [0, 0, 1, 1], [], []>} : vector<16x96xbf16>, vector<96x128xbf16>, vector<16x128xf32> -> vector<16x128xf32>
    %19 = arith.addf %16, %18 : vector<16x128xf32>
    %c0_11 = arith.constant 0 : index
    %c0_12 = arith.constant 0 : index
    %20 = vector.load %arg4[%c0_11, %c0_12] : memref<1x128xf32, #tpu.memory_space<vmem>>, vector<1x128xf32>
    %21 = vector.broadcast %20 : vector<1x128xf32> to vector<16x128xf32>
    %22 = arith.addf %19, %21 : vector<16x128xf32>
    %23 = arith.truncf %22 : vector<16x128xf32> to vector<16x128xbf16>
    %c0_13 = arith.constant 0 : index
    %c0_14 = arith.constant 0 : index
    %24 = vector.load %arg5[%c0_13, %c0_14] : memref<16x128xbf16, #tpu.memory_space<vmem>>, vector<16x128xbf16>
    tpu.vector_store %arg5[%c0_13, %c0_14], %23 {strides = array<i32>} : memref<16x128xbf16, #tpu.memory_space<vmem>>, vector<16x128xbf16>,
    return
  }
  func.func @transform_0(%arg0: i32) -> (i32, i32) {
    %c0_i32 = arith.constant 0 : i32
    %c0_i32_0 = arith.constant 0 : i32
    return %arg0, %c0_i32 : i32, i32
  }
  func.func @transform_1(%arg0: i32) -> (i32, i32) {
    %c0_i32 = arith.constant 0 : i32
    %c0_i32_0 = arith.constant 0 : i32
    %c0_i32_1 = arith.constant 0 : i32
    return %c0_i32, %c0_i32_0 : i32, i32
  }
  func.func @transform_2(%arg0: i32) -> (i32, i32) {
    %c0_i32 = arith.constant 0 : i32
    %c0_i32_0 = arith.constant 0 : i32
    %c0_i32_1 = arith.constant 0 : i32
    return %c0_i32, %c0_i32_0 : i32, i32
  }
  func.func @transform_3(%arg0: i32) -> (i32, i32) {
    %c0_i32 = arith.constant 0 : i32
    %c0_i32_0 = arith.constant 0 : i32
    %c0_i32_1 = arith.constant 0 : i32
    return %c0_i32, %c0_i32_0 : i32, i32
  }
  func.func @transform_4(%arg0: i32) -> (i32, i32) {
    %c0_i32 = arith.constant 0 : i32
    %c0_i32_0 = arith.constant 0 : i32
    return %arg0, %c0_i32 : i32, i32
  }
}

module attributes {stable_mosaic.version = 11 : i64} {
  func.func @kernel(%arg0: i32, %arg1: memref<16x96xbf16, #tpu.memory_space<vmem>>, %arg2: memref<96x128xbf16, #tpu.memory_space<vmem>>, %arg3: memref<96x128xbf16, #tpu.memory_space<vmem>>, %arg4: memref<96x128xbf16, #tpu.memory_space<vmem>>, %arg5: memref<96x128xbf16, #tpu.memory_space<vmem>>, %arg6: memref<1x128xf32, #tpu.memory_space<vmem>>, %arg7: memref<1x128xf32, #tpu.memory_space<vmem>>, %arg8: memref<16x128xbf16, #tpu.memory_space<vmem>>, %arg9: memref<16x128xbf16, #tpu.memory_space<vmem>>) attributes {dimension_semantics = [#tpu.dimension_semantics<parallel>], iteration_bounds = array<i64: 2>, scalar_prefetch = 0 : i64, scratch_operands = 0 : i64, tpu.core_type = #tpu.core_type<tc>, window_params = [{transform_indices = @transform_0, window_bounds = array<i64: 16, 96>}, {pipeline_mode = #tpu.pipeline_mode<synchronous>, transform_indices = @transform_1, window_bounds = array<i64: 96, 128>}, {pipeline_mode = #tpu.pipeline_mode<synchronous>, transform_indices = @transform_2, window_bounds = array<i64: 96, 128>}, {pipeline_mode = #tpu.pipeline_mode<synchronous>, transform_indices = @transform_3, window_bounds = array<i64: 96, 128>}, {pipeline_mode = #tpu.pipeline_mode<synchronous>, transform_indices = @transform_4, window_bounds = array<i64: 96, 128>}, {pipeline_mode = #tpu.pipeline_mode<synchronous>, transform_indices = @transform_5, window_bounds = array<i64: 1, 128>}, {pipeline_mode = #tpu.pipeline_mode<synchronous>, transform_indices = @transform_6, window_bounds = array<i64: 1, 128>}, {transform_indices = @transform_7, window_bounds = array<i64: 16, 128>}, {transform_indices = @transform_8, window_bounds = array<i64: 16, 128>}]} {
    %c0 = arith.constant 0 : index
    %c0_0 = arith.constant 0 : index
    %0 = vector.load %arg1[%c0, %c0_0] : memref<16x96xbf16, #tpu.memory_space<vmem>>, vector<16x96xbf16>
    %1 = math.absf %0 : vector<16x96xbf16>
    %cst = arith.constant 0.000000e+00 : bf16
    %2 = vector.broadcast %cst : bf16 to vector<16x96xbf16>
    %3 = arith.subf %2, %1 : vector<16x96xbf16>
    %4 = math.exp %3 : vector<16x96xbf16>
    %cst_1 = arith.constant 1.000000e+00 : bf16
    %5 = vector.broadcast %cst_1 : bf16 to vector<16x96xbf16>
    %6 = arith.subf %4, %5 : vector<16x96xbf16>
    %cst_2 = arith.constant 0.000000e+00 : bf16
    %7 = vector.broadcast %cst_2 : bf16 to vector<16x96xbf16>
    %8 = arith.cmpf ogt, %0, %7 : vector<16x96xbf16>
    %9 = arith.select %8, %0, %6 : vector<16x96xi1>, vector<16x96xbf16>
    %cst_3 = arith.constant 0.000000e+00 : bf16
    %10 = vector.broadcast %cst_3 : bf16 to vector<16x96xbf16>
    %11 = arith.cmpf ogt, %0, %10 : vector<16x96xbf16>
    %cst_4 = arith.constant 0.000000e+00 : bf16
    %12 = vector.broadcast %cst_4 : bf16 to vector<16x96xbf16>
    %13 = arith.subf %12, %0 : vector<16x96xbf16>
    %14 = arith.select %11, %6, %13 : vector<16x96xi1>, vector<16x96xbf16>
    %c0_5 = arith.constant 0 : index
    %c0_6 = arith.constant 0 : index
    %15 = vector.load %arg2[%c0_5, %c0_6] : memref<96x128xbf16, #tpu.memory_space<vmem>>, vector<96x128xbf16>
    %c0_7 = arith.constant 0 : index
    %c0_8 = arith.constant 0 : index
    %16 = vector.load %arg3[%c0_7, %c0_8] : memref<96x128xbf16, #tpu.memory_space<vmem>>, vector<96x128xbf16>
    %c0_9 = arith.constant 0 : index
    %c0_10 = arith.constant 0 : index
    %17 = vector.load %arg4[%c0_9, %c0_10] : memref<96x128xbf16, #tpu.memory_space<vmem>>, vector<96x128xbf16>
    %c0_11 = arith.constant 0 : index
    %c0_12 = arith.constant 0 : index
    %18 = vector.load %arg5[%c0_11, %c0_12] : memref<96x128xbf16, #tpu.memory_space<vmem>>, vector<96x128xbf16>
    %c0_13 = arith.constant 0 : index
    %c0_14 = arith.constant 0 : index
    %19 = vector.load %arg6[%c0_13, %c0_14] : memref<1x128xf32, #tpu.memory_space<vmem>>, vector<1x128xf32>
    %c0_15 = arith.constant 0 : index
    %c0_16 = arith.constant 0 : index
    %20 = vector.load %arg7[%c0_15, %c0_16] : memref<1x128xf32, #tpu.memory_space<vmem>>, vector<1x128xf32>
    %c0_17 = arith.constant 0 : index
    %c0_18 = arith.constant 0 : index
    %21 = vector.load %arg8[%c0_17, %c0_18] : memref<16x128xbf16, #tpu.memory_space<vmem>>, vector<16x128xbf16>
    %cst_19 = arith.constant dense<0.000000e+00> : vector<16x128xf32>
    %22 = tpu.matmul %9, %15, %cst_19 {dimension_numbers = #tpu.dot_dimension_numbers<[1], [0], [0], [1], [0, 0, 1, 1], [], []>} : vector<16x96xbf16>, vector<96x128xbf16>, vector<16x128xf32> -> vector<16x128xf32>
    %cst_20 = arith.constant dense<0.000000e+00> : vector<16x128xf32>
    %23 = tpu.matmul %14, %16, %cst_20 {dimension_numbers = #tpu.dot_dimension_numbers<[1], [0], [0], [1], [0, 0, 1, 1], [], []>} : vector<16x96xbf16>, vector<96x128xbf16>, vector<16x128xf32> -> vector<16x128xf32>
    %24 = arith.addf %22, %23 : vector<16x128xf32>
    %25 = vector.broadcast %19 : vector<1x128xf32> to vector<16x128xf32>
    %26 = arith.addf %24, %25 : vector<16x128xf32>
    %cst_21 = arith.constant dense<0.000000e+00> : vector<16x128xf32>
    %27 = tpu.matmul %9, %17, %cst_21 {dimension_numbers = #tpu.dot_dimension_numbers<[1], [0], [0], [1], [0, 0, 1, 1], [], []>} : vector<16x96xbf16>, vector<96x128xbf16>, vector<16x128xf32> -> vector<16x128xf32>
    %cst_22 = arith.constant dense<0.000000e+00> : vector<16x128xf32>
    %28 = tpu.matmul %14, %18, %cst_22 {dimension_numbers = #tpu.dot_dimension_numbers<[1], [0], [0], [1], [0, 0, 1, 1], [], []>} : vector<16x96xbf16>, vector<96x128xbf16>, vector<16x128xf32> -> vector<16x128xf32>
    %29 = arith.addf %27, %28 : vector<16x128xf32>
    %30 = vector.broadcast %20 : vector<1x128xf32> to vector<16x128xf32>
    %31 = arith.addf %29, %30 : vector<16x128xf32>
    %32 = arith.extf %21 : vector<16x128xbf16> to vector<16x128xf32>
    %33 = math.absf %31 : vector<16x128xf32>
    %cst_23 = arith.constant 0.000000e+00 : f32
    %34 = vector.broadcast %cst_23 : f32 to vector<16x128xf32>
    %35 = arith.subf %34, %33 : vector<16x128xf32>
    %36 = math.exp %35 : vector<16x128xf32>
    %cst_24 = arith.constant 0.000000e+00 : f32
    %37 = vector.broadcast %cst_24 : f32 to vector<16x128xf32>
    %38 = arith.cmpf oge, %31, %37 : vector<16x128xf32>
    %cst_25 = arith.constant 1.000000e+00 : f32
    %39 = vector.broadcast %cst_25 : f32 to vector<16x128xf32>
    %40 = arith.select %38, %39, %36 : vector<16x128xi1>, vector<16x128xf32>
    %cst_26 = arith.constant 1.000000e+00 : f32
    %41 = vector.broadcast %cst_26 : f32 to vector<16x128xf32>
    %42 = arith.addf %41, %36 : vector<16x128xf32>
    %43 = tpu.reciprocal %42 {approx = true} : vector<16x128xf32> -> vector<16x128xf32>
    %44 = arith.mulf %40, %43 : vector<16x128xf32>
    %45 = arith.mulf %26, %44 : vector<16x128xf32>
    %46 = arith.addf %32, %45 : vector<16x128xf32>
    %47 = arith.truncf %46 : vector<16x128xf32> to vector<16x128xbf16>
    %c0_27 = arith.constant 0 : index
    %c0_28 = arith.constant 0 : index
    %48 = vector.load %arg9[%c0_27, %c0_28] : memref<16x128xbf16, #tpu.memory_space<vmem>>, vector<16x128xbf16>
    tpu.vector_store %arg9[%c0_27, %c0_28], %47 {strides = array<i32>} : memref<16x128xbf16, #tpu.memory_space<vmem>>, vector<16x128xbf16>,
    return
  }
  func.func @transform_0(%arg0: i32) -> (i32, i32) {
    %c0_i32 = arith.constant 0 : i32
    %c0_i32_0 = arith.constant 0 : i32
    return %arg0, %c0_i32 : i32, i32
  }
  func.func @transform_1(%arg0: i32) -> (i32, i32) {
    %c0_i32 = arith.constant 0 : i32
    %c0_i32_0 = arith.constant 0 : i32
    %c0_i32_1 = arith.constant 0 : i32
    return %c0_i32, %c0_i32_0 : i32, i32
  }
  func.func @transform_2(%arg0: i32) -> (i32, i32) {
    %c0_i32 = arith.constant 0 : i32
    %c0_i32_0 = arith.constant 0 : i32
    %c0_i32_1 = arith.constant 0 : i32
    return %c0_i32, %c0_i32_0 : i32, i32
  }
  func.func @transform_3(%arg0: i32) -> (i32, i32) {
    %c0_i32 = arith.constant 0 : i32
    %c0_i32_0 = arith.constant 0 : i32
    %c0_i32_1 = arith.constant 0 : i32
    return %c0_i32, %c0_i32_0 : i32, i32
  }
  func.func @transform_4(%arg0: i32) -> (i32, i32) {
    %c0_i32 = arith.constant 0 : i32
    %c0_i32_0 = arith.constant 0 : i32
    %c0_i32_1 = arith.constant 0 : i32
    return %c0_i32, %c0_i32_0 : i32, i32
  }
  func.func @transform_5(%arg0: i32) -> (i32, i32) {
    %c0_i32 = arith.constant 0 : i32
    %c0_i32_0 = arith.constant 0 : i32
    %c0_i32_1 = arith.constant 0 : i32
    return %c0_i32, %c0_i32_0 : i32, i32
  }
  func.func @transform_6(%arg0: i32) -> (i32, i32) {
    %c0_i32 = arith.constant 0 : i32
    %c0_i32_0 = arith.constant 0 : i32
    %c0_i32_1 = arith.constant 0 : i32
    return %c0_i32, %c0_i32_0 : i32, i32
  }
  func.func @transform_7(%arg0: i32) -> (i32, i32) {
    %c0_i32 = arith.constant 0 : i32
    %c0_i32_0 = arith.constant 0 : i32
    return %arg0, %c0_i32 : i32, i32
  }
  func.func @transform_8(%arg0: i32) -> (i32, i32) {
    %c0_i32 = arith.constant 0 : i32
    %c0_i32_0 = arith.constant 0 : i32
    return %arg0, %c0_i32 : i32, i32
  }
}

module attributes {stable_mosaic.version = 11 : i64} {
  func.func @kernel(%arg0: i32, %arg1: memref<8x96xbf16, #tpu.memory_space<vmem>>, %arg2: memref<96x128xbf16, #tpu.memory_space<vmem>>, %arg3: memref<1x128xf32, #tpu.memory_space<vmem>>, %arg4: memref<8x128xbf16, #tpu.memory_space<vmem>>) attributes {dimension_semantics = [#tpu.dimension_semantics<parallel>], iteration_bounds = array<i64: 1>, scalar_prefetch = 0 : i64, scratch_operands = 0 : i64, tpu.core_type = #tpu.core_type<tc>, window_params = [{transform_indices = @transform_0, window_bounds = array<i64: 8, 96>}, {pipeline_mode = #tpu.pipeline_mode<synchronous>, transform_indices = @transform_1, window_bounds = array<i64: 96, 128>}, {pipeline_mode = #tpu.pipeline_mode<synchronous>, transform_indices = @transform_2, window_bounds = array<i64: 1, 128>}, {transform_indices = @transform_3, window_bounds = array<i64: 8, 128>}]} {
    %c0 = arith.constant 0 : index
    %c0_0 = arith.constant 0 : index
    %0 = vector.load %arg1[%c0, %c0_0] : memref<8x96xbf16, #tpu.memory_space<vmem>>, vector<8x96xbf16>
    %c0_1 = arith.constant 0 : index
    %c0_2 = arith.constant 0 : index
    %1 = vector.load %arg2[%c0_1, %c0_2] : memref<96x128xbf16, #tpu.memory_space<vmem>>, vector<96x128xbf16>
    %cst = arith.constant dense<0.000000e+00> : vector<8x128xf32>
    %2 = tpu.matmul %0, %1, %cst {dimension_numbers = #tpu.dot_dimension_numbers<[1], [0], [0], [1], [0, 0, 1, 1], [], []>} : vector<8x96xbf16>, vector<96x128xbf16>, vector<8x128xf32> -> vector<8x128xf32>
    %c0_3 = arith.constant 0 : index
    %c0_4 = arith.constant 0 : index
    %3 = vector.load %arg3[%c0_3, %c0_4] : memref<1x128xf32, #tpu.memory_space<vmem>>, vector<1x128xf32>
    %4 = vector.broadcast %3 : vector<1x128xf32> to vector<8x128xf32>
    %5 = arith.addf %2, %4 : vector<8x128xf32>
    %6 = arith.truncf %5 : vector<8x128xf32> to vector<8x128xbf16>
    %c0_5 = arith.constant 0 : index
    %c0_6 = arith.constant 0 : index
    %7 = vector.load %arg4[%c0_5, %c0_6] : memref<8x128xbf16, #tpu.memory_space<vmem>>, vector<8x128xbf16>
    tpu.vector_store %arg4[%c0_5, %c0_6], %6 {strides = array<i32>} : memref<8x128xbf16, #tpu.memory_space<vmem>>, vector<8x128xbf16>,
    return
  }
  func.func @transform_0(%arg0: i32) -> (i32, i32) {
    %c0_i32 = arith.constant 0 : i32
    %c0_i32_0 = arith.constant 0 : i32
    return %arg0, %c0_i32 : i32, i32
  }
  func.func @transform_1(%arg0: i32) -> (i32, i32) {
    %c0_i32 = arith.constant 0 : i32
    %c0_i32_0 = arith.constant 0 : i32
    %c0_i32_1 = arith.constant 0 : i32
    return %c0_i32, %c0_i32_0 : i32, i32
  }
  func.func @transform_2(%arg0: i32) -> (i32, i32) {
    %c0_i32 = arith.constant 0 : i32
    %c0_i32_0 = arith.constant 0 : i32
    %c0_i32_1 = arith.constant 0 : i32
    return %c0_i32, %c0_i32_0 : i32, i32
  }
  func.func @transform_3(%arg0: i32) -> (i32, i32) {
    %c0_i32 = arith.constant 0 : i32
    %c0_i32_0 = arith.constant 0 : i32
    return %arg0, %c0_i32 : i32, i32
  }
}

module attributes {stable_mosaic.version = 11 : i64} {
  func.func @kernel(%arg0: i32, %arg1: memref<8x96xbf16, #tpu.memory_space<vmem>>, %arg2: memref<96x128xbf16, #tpu.memory_space<vmem>>, %arg3: memref<96x128xbf16, #tpu.memory_space<vmem>>, %arg4: memref<96x128xbf16, #tpu.memory_space<vmem>>, %arg5: memref<96x128xbf16, #tpu.memory_space<vmem>>, %arg6: memref<1x128xf32, #tpu.memory_space<vmem>>, %arg7: memref<1x128xf32, #tpu.memory_space<vmem>>, %arg8: memref<8x128xbf16, #tpu.memory_space<vmem>>, %arg9: memref<8x128xbf16, #tpu.memory_space<vmem>>) attributes {dimension_semantics = [#tpu.dimension_semantics<parallel>], iteration_bounds = array<i64: 1>, scalar_prefetch = 0 : i64, scratch_operands = 0 : i64, tpu.core_type = #tpu.core_type<tc>, window_params = [{transform_indices = @transform_0, window_bounds = array<i64: 8, 96>}, {pipeline_mode = #tpu.pipeline_mode<synchronous>, transform_indices = @transform_1, window_bounds = array<i64: 96, 128>}, {pipeline_mode = #tpu.pipeline_mode<synchronous>, transform_indices = @transform_2, window_bounds = array<i64: 96, 128>}, {pipeline_mode = #tpu.pipeline_mode<synchronous>, transform_indices = @transform_3, window_bounds = array<i64: 96, 128>}, {pipeline_mode = #tpu.pipeline_mode<synchronous>, transform_indices = @transform_4, window_bounds = array<i64: 96, 128>}, {pipeline_mode = #tpu.pipeline_mode<synchronous>, transform_indices = @transform_5, window_bounds = array<i64: 1, 128>}, {pipeline_mode = #tpu.pipeline_mode<synchronous>, transform_indices = @transform_6, window_bounds = array<i64: 1, 128>}, {transform_indices = @transform_7, window_bounds = array<i64: 8, 128>}, {transform_indices = @transform_8, window_bounds = array<i64: 8, 128>}]} {
    %c0 = arith.constant 0 : index
    %c0_0 = arith.constant 0 : index
    %0 = vector.load %arg1[%c0, %c0_0] : memref<8x96xbf16, #tpu.memory_space<vmem>>, vector<8x96xbf16>
    %1 = math.absf %0 : vector<8x96xbf16>
    %cst = arith.constant 0.000000e+00 : bf16
    %2 = vector.broadcast %cst : bf16 to vector<8x96xbf16>
    %3 = arith.subf %2, %1 : vector<8x96xbf16>
    %4 = math.exp %3 : vector<8x96xbf16>
    %cst_1 = arith.constant 1.000000e+00 : bf16
    %5 = vector.broadcast %cst_1 : bf16 to vector<8x96xbf16>
    %6 = arith.subf %4, %5 : vector<8x96xbf16>
    %cst_2 = arith.constant 0.000000e+00 : bf16
    %7 = vector.broadcast %cst_2 : bf16 to vector<8x96xbf16>
    %8 = arith.cmpf ogt, %0, %7 : vector<8x96xbf16>
    %9 = arith.select %8, %0, %6 : vector<8x96xi1>, vector<8x96xbf16>
    %cst_3 = arith.constant 0.000000e+00 : bf16
    %10 = vector.broadcast %cst_3 : bf16 to vector<8x96xbf16>
    %11 = arith.cmpf ogt, %0, %10 : vector<8x96xbf16>
    %cst_4 = arith.constant 0.000000e+00 : bf16
    %12 = vector.broadcast %cst_4 : bf16 to vector<8x96xbf16>
    %13 = arith.subf %12, %0 : vector<8x96xbf16>
    %14 = arith.select %11, %6, %13 : vector<8x96xi1>, vector<8x96xbf16>
    %c0_5 = arith.constant 0 : index
    %c0_6 = arith.constant 0 : index
    %15 = vector.load %arg2[%c0_5, %c0_6] : memref<96x128xbf16, #tpu.memory_space<vmem>>, vector<96x128xbf16>
    %c0_7 = arith.constant 0 : index
    %c0_8 = arith.constant 0 : index
    %16 = vector.load %arg3[%c0_7, %c0_8] : memref<96x128xbf16, #tpu.memory_space<vmem>>, vector<96x128xbf16>
    %c0_9 = arith.constant 0 : index
    %c0_10 = arith.constant 0 : index
    %17 = vector.load %arg4[%c0_9, %c0_10] : memref<96x128xbf16, #tpu.memory_space<vmem>>, vector<96x128xbf16>
    %c0_11 = arith.constant 0 : index
    %c0_12 = arith.constant 0 : index
    %18 = vector.load %arg5[%c0_11, %c0_12] : memref<96x128xbf16, #tpu.memory_space<vmem>>, vector<96x128xbf16>
    %c0_13 = arith.constant 0 : index
    %c0_14 = arith.constant 0 : index
    %19 = vector.load %arg6[%c0_13, %c0_14] : memref<1x128xf32, #tpu.memory_space<vmem>>, vector<1x128xf32>
    %c0_15 = arith.constant 0 : index
    %c0_16 = arith.constant 0 : index
    %20 = vector.load %arg7[%c0_15, %c0_16] : memref<1x128xf32, #tpu.memory_space<vmem>>, vector<1x128xf32>
    %c0_17 = arith.constant 0 : index
    %c0_18 = arith.constant 0 : index
    %21 = vector.load %arg8[%c0_17, %c0_18] : memref<8x128xbf16, #tpu.memory_space<vmem>>, vector<8x128xbf16>
    %cst_19 = arith.constant dense<0.000000e+00> : vector<8x128xf32>
    %22 = tpu.matmul %9, %15, %cst_19 {dimension_numbers = #tpu.dot_dimension_numbers<[1], [0], [0], [1], [0, 0, 1, 1], [], []>} : vector<8x96xbf16>, vector<96x128xbf16>, vector<8x128xf32> -> vector<8x128xf32>
    %cst_20 = arith.constant dense<0.000000e+00> : vector<8x128xf32>
    %23 = tpu.matmul %14, %16, %cst_20 {dimension_numbers = #tpu.dot_dimension_numbers<[1], [0], [0], [1], [0, 0, 1, 1], [], []>} : vector<8x96xbf16>, vector<96x128xbf16>, vector<8x128xf32> -> vector<8x128xf32>
    %24 = arith.addf %22, %23 : vector<8x128xf32>
    %25 = vector.broadcast %19 : vector<1x128xf32> to vector<8x128xf32>
    %26 = arith.addf %24, %25 : vector<8x128xf32>
    %cst_21 = arith.constant dense<0.000000e+00> : vector<8x128xf32>
    %27 = tpu.matmul %9, %17, %cst_21 {dimension_numbers = #tpu.dot_dimension_numbers<[1], [0], [0], [1], [0, 0, 1, 1], [], []>} : vector<8x96xbf16>, vector<96x128xbf16>, vector<8x128xf32> -> vector<8x128xf32>
    %cst_22 = arith.constant dense<0.000000e+00> : vector<8x128xf32>
    %28 = tpu.matmul %14, %18, %cst_22 {dimension_numbers = #tpu.dot_dimension_numbers<[1], [0], [0], [1], [0, 0, 1, 1], [], []>} : vector<8x96xbf16>, vector<96x128xbf16>, vector<8x128xf32> -> vector<8x128xf32>
    %29 = arith.addf %27, %28 : vector<8x128xf32>
    %30 = vector.broadcast %20 : vector<1x128xf32> to vector<8x128xf32>
    %31 = arith.addf %29, %30 : vector<8x128xf32>
    %32 = arith.extf %21 : vector<8x128xbf16> to vector<8x128xf32>
    %33 = math.absf %31 : vector<8x128xf32>
    %cst_23 = arith.constant 0.000000e+00 : f32
    %34 = vector.broadcast %cst_23 : f32 to vector<8x128xf32>
    %35 = arith.subf %34, %33 : vector<8x128xf32>
    %36 = math.exp %35 : vector<8x128xf32>
    %cst_24 = arith.constant 0.000000e+00 : f32
    %37 = vector.broadcast %cst_24 : f32 to vector<8x128xf32>
    %38 = arith.cmpf oge, %31, %37 : vector<8x128xf32>
    %cst_25 = arith.constant 1.000000e+00 : f32
    %39 = vector.broadcast %cst_25 : f32 to vector<8x128xf32>
    %40 = arith.select %38, %39, %36 : vector<8x128xi1>, vector<8x128xf32>
    %cst_26 = arith.constant 1.000000e+00 : f32
    %41 = vector.broadcast %cst_26 : f32 to vector<8x128xf32>
    %42 = arith.addf %41, %36 : vector<8x128xf32>
    %43 = tpu.reciprocal %42 {approx = true} : vector<8x128xf32> -> vector<8x128xf32>
    %44 = arith.mulf %40, %43 : vector<8x128xf32>
    %45 = arith.mulf %26, %44 : vector<8x128xf32>
    %46 = arith.addf %32, %45 : vector<8x128xf32>
    %47 = arith.truncf %46 : vector<8x128xf32> to vector<8x128xbf16>
    %c0_27 = arith.constant 0 : index
    %c0_28 = arith.constant 0 : index
    %48 = vector.load %arg9[%c0_27, %c0_28] : memref<8x128xbf16, #tpu.memory_space<vmem>>, vector<8x128xbf16>
    tpu.vector_store %arg9[%c0_27, %c0_28], %47 {strides = array<i32>} : memref<8x128xbf16, #tpu.memory_space<vmem>>, vector<8x128xbf16>,
    return
  }
  func.func @transform_0(%arg0: i32) -> (i32, i32) {
    %c0_i32 = arith.constant 0 : i32
    %c0_i32_0 = arith.constant 0 : i32
    return %arg0, %c0_i32 : i32, i32
  }
  func.func @transform_1(%arg0: i32) -> (i32, i32) {
    %c0_i32 = arith.constant 0 : i32
    %c0_i32_0 = arith.constant 0 : i32
    %c0_i32_1 = arith.constant 0 : i32
    return %c0_i32, %c0_i32_0 : i32, i32
  }
  func.func @transform_2(%arg0: i32) -> (i32, i32) {
    %c0_i32 = arith.constant 0 : i32
    %c0_i32_0 = arith.constant 0 : i32
    %c0_i32_1 = arith.constant 0 : i32
    return %c0_i32, %c0_i32_0 : i32, i32
  }
  func.func @transform_3(%arg0: i32) -> (i32, i32) {
    %c0_i32 = arith.constant 0 : i32
    %c0_i32_0 = arith.constant 0 : i32
    %c0_i32_1 = arith.constant 0 : i32
    return %c0_i32, %c0_i32_0 : i32, i32
  }
  func.func @transform_4(%arg0: i32) -> (i32, i32) {
    %c0_i32 = arith.constant 0 : i32
    %c0_i32_0 = arith.constant 0 : i32
    %c0_i32_1 = arith.constant 0 : i32
    return %c0_i32, %c0_i32_0 : i32, i32
  }
  func.func @transform_5(%arg0: i32) -> (i32, i32) {
    %c0_i32 = arith.constant 0 : i32
    %c0_i32_0 = arith.constant 0 : i32
    %c0_i32_1 = arith.constant 0 : i32
    return %c0_i32, %c0_i32_0 : i32, i32
  }
  func.func @transform_6(%arg0: i32) -> (i32, i32) {
    %c0_i32 = arith.constant 0 : i32
    %c0_i32_0 = arith.constant 0 : i32
    %c0_i32_1 = arith.constant 0 : i32
    return %c0_i32, %c0_i32_0 : i32, i32
  }
  func.func @transform_7(%arg0: i32) -> (i32, i32) {
    %c0_i32 = arith.constant 0 : i32
    %c0_i32_0 = arith.constant 0 : i32
    return %arg0, %c0_i32 : i32, i32
  }
  func.func @transform_8(%arg0: i32) -> (i32, i32) {
    %c0_i32 = arith.constant 0 : i32
    %c0_i32_0 = arith.constant 0 : i32
    return %arg0, %c0_i32 : i32, i32
  }
}

module attributes {stable_mosaic.version = 11 : i64} {
  func.func @kernel(%arg0: i32, %arg1: memref<8x96xbf16, #tpu.memory_space<vmem>>, %arg2: memref<96x128xbf16, #tpu.memory_space<vmem>>, %arg3: memref<96x128xbf16, #tpu.memory_space<vmem>>, %arg4: memref<1x128xf32, #tpu.memory_space<vmem>>, %arg5: memref<8x128xbf16, #tpu.memory_space<vmem>>) attributes {dimension_semantics = [#tpu.dimension_semantics<parallel>], iteration_bounds = array<i64: 1>, scalar_prefetch = 0 : i64, scratch_operands = 0 : i64, tpu.core_type = #tpu.core_type<tc>, window_params = [{transform_indices = @transform_0, window_bounds = array<i64: 8, 96>}, {pipeline_mode = #tpu.pipeline_mode<synchronous>, transform_indices = @transform_1, window_bounds = array<i64: 96, 128>}, {pipeline_mode = #tpu.pipeline_mode<synchronous>, transform_indices = @transform_2, window_bounds = array<i64: 96, 128>}, {pipeline_mode = #tpu.pipeline_mode<synchronous>, transform_indices = @transform_3, window_bounds = array<i64: 1, 128>}, {transform_indices = @transform_4, window_bounds = array<i64: 8, 128>}]} {
    %c0 = arith.constant 0 : index
    %c0_0 = arith.constant 0 : index
    %0 = vector.load %arg1[%c0, %c0_0] : memref<8x96xbf16, #tpu.memory_space<vmem>>, vector<8x96xbf16>
    %1 = math.absf %0 : vector<8x96xbf16>
    %cst = arith.constant 0.000000e+00 : bf16
    %2 = vector.broadcast %cst : bf16 to vector<8x96xbf16>
    %3 = arith.subf %2, %1 : vector<8x96xbf16>
    %4 = math.exp %3 : vector<8x96xbf16>
    %cst_1 = arith.constant 1.000000e+00 : bf16
    %5 = vector.broadcast %cst_1 : bf16 to vector<8x96xbf16>
    %6 = arith.subf %4, %5 : vector<8x96xbf16>
    %cst_2 = arith.constant 0.000000e+00 : bf16
    %7 = vector.broadcast %cst_2 : bf16 to vector<8x96xbf16>
    %8 = arith.cmpf ogt, %0, %7 : vector<8x96xbf16>
    %9 = arith.select %8, %0, %6 : vector<8x96xi1>, vector<8x96xbf16>
    %cst_3 = arith.constant 0.000000e+00 : bf16
    %10 = vector.broadcast %cst_3 : bf16 to vector<8x96xbf16>
    %11 = arith.cmpf ogt, %0, %10 : vector<8x96xbf16>
    %cst_4 = arith.constant 0.000000e+00 : bf16
    %12 = vector.broadcast %cst_4 : bf16 to vector<8x96xbf16>
    %13 = arith.subf %12, %0 : vector<8x96xbf16>
    %14 = arith.select %11, %6, %13 : vector<8x96xi1>, vector<8x96xbf16>
    %c0_5 = arith.constant 0 : index
    %c0_6 = arith.constant 0 : index
    %15 = vector.load %arg2[%c0_5, %c0_6] : memref<96x128xbf16, #tpu.memory_space<vmem>>, vector<96x128xbf16>
    %cst_7 = arith.constant dense<0.000000e+00> : vector<8x128xf32>
    %16 = tpu.matmul %9, %15, %cst_7 {dimension_numbers = #tpu.dot_dimension_numbers<[1], [0], [0], [1], [0, 0, 1, 1], [], []>} : vector<8x96xbf16>, vector<96x128xbf16>, vector<8x128xf32> -> vector<8x128xf32>
    %c0_8 = arith.constant 0 : index
    %c0_9 = arith.constant 0 : index
    %17 = vector.load %arg3[%c0_8, %c0_9] : memref<96x128xbf16, #tpu.memory_space<vmem>>, vector<96x128xbf16>
    %cst_10 = arith.constant dense<0.000000e+00> : vector<8x128xf32>
    %18 = tpu.matmul %14, %17, %cst_10 {dimension_numbers = #tpu.dot_dimension_numbers<[1], [0], [0], [1], [0, 0, 1, 1], [], []>} : vector<8x96xbf16>, vector<96x128xbf16>, vector<8x128xf32> -> vector<8x128xf32>
    %19 = arith.addf %16, %18 : vector<8x128xf32>
    %c0_11 = arith.constant 0 : index
    %c0_12 = arith.constant 0 : index
    %20 = vector.load %arg4[%c0_11, %c0_12] : memref<1x128xf32, #tpu.memory_space<vmem>>, vector<1x128xf32>
    %21 = vector.broadcast %20 : vector<1x128xf32> to vector<8x128xf32>
    %22 = arith.addf %19, %21 : vector<8x128xf32>
    %23 = arith.truncf %22 : vector<8x128xf32> to vector<8x128xbf16>
    %c0_13 = arith.constant 0 : index
    %c0_14 = arith.constant 0 : index
    %24 = vector.load %arg5[%c0_13, %c0_14] : memref<8x128xbf16, #tpu.memory_space<vmem>>, vector<8x128xbf16>
    tpu.vector_store %arg5[%c0_13, %c0_14], %23 {strides = array<i32>} : memref<8x128xbf16, #tpu.memory_space<vmem>>, vector<8x128xbf16>,
    return
  }
  func.func @transform_0(%arg0: i32) -> (i32, i32) {
    %c0_i32 = arith.constant 0 : i32
    %c0_i32_0 = arith.constant 0 : i32
    return %arg0, %c0_i32 : i32, i32
  }
  func.func @transform_1(%arg0: i32) -> (i32, i32) {
    %c0_i32 = arith.constant 0 : i32
    %c0_i32_0 = arith.constant 0 : i32
    %c0_i32_1 = arith.constant 0 : i32
    return %c0_i32, %c0_i32_0 : i32, i32
  }
  func.func @transform_2(%arg0: i32) -> (i32, i32) {
    %c0_i32 = arith.constant 0 : i32
    %c0_i32_0 = arith.constant 0 : i32
    %c0_i32_1 = arith.constant 0 : i32
    return %c0_i32, %c0_i32_0 : i32, i32
  }
  func.func @transform_3(%arg0: i32) -> (i32, i32) {
    %c0_i32 = arith.constant 0 : i32
    %c0_i32_0 = arith.constant 0 : i32
    %c0_i32_1 = arith.constant 0 : i32
    return %c0_i32, %c0_i32_0 : i32, i32
  }
  func.func @transform_4(%arg0: i32) -> (i32, i32) {
    %c0_i32 = arith.constant 0 : i32
    %c0_i32_0 = arith.constant 0 : i32
    return %arg0, %c0_i32 : i32, i32
  }
}

module attributes {stable_mosaic.version = 11 : i64} {
  func.func @kernel(%arg0: i32, %arg1: memref<8x96xbf16, #tpu.memory_space<vmem>>, %arg2: memref<96x128xbf16, #tpu.memory_space<vmem>>, %arg3: memref<96x128xbf16, #tpu.memory_space<vmem>>, %arg4: memref<8x16xbf16, #tpu.memory_space<vmem>>, %arg5: memref<16x128xbf16, #tpu.memory_space<vmem>>, %arg6: memref<16x128xbf16, #tpu.memory_space<vmem>>, %arg7: memref<1x128xf32, #tpu.memory_space<vmem>>, %arg8: memref<8x128xbf16, #tpu.memory_space<vmem>>) attributes {dimension_semantics = [#tpu.dimension_semantics<parallel>], iteration_bounds = array<i64: 1>, scalar_prefetch = 0 : i64, scratch_operands = 0 : i64, tpu.core_type = #tpu.core_type<tc>, window_params = [{transform_indices = @transform_0, window_bounds = array<i64: 8, 96>}, {pipeline_mode = #tpu.pipeline_mode<synchronous>, transform_indices = @transform_1, window_bounds = array<i64: 96, 128>}, {pipeline_mode = #tpu.pipeline_mode<synchronous>, transform_indices = @transform_2, window_bounds = array<i64: 96, 128>}, {transform_indices = @transform_3, window_bounds = array<i64: 8, 16>}, {pipeline_mode = #tpu.pipeline_mode<synchronous>, transform_indices = @transform_4, window_bounds = array<i64: 16, 128>}, {pipeline_mode = #tpu.pipeline_mode<synchronous>, transform_indices = @transform_5, window_bounds = array<i64: 16, 128>}, {pipeline_mode = #tpu.pipeline_mode<synchronous>, transform_indices = @transform_6, window_bounds = array<i64: 1, 128>}, {transform_indices = @transform_7, window_bounds = array<i64: 8, 128>}]} {
    %c0 = arith.constant 0 : index
    %c0_0 = arith.constant 0 : index
    %0 = vector.load %arg1[%c0, %c0_0] : memref<8x96xbf16, #tpu.memory_space<vmem>>, vector<8x96xbf16>
    %1 = math.absf %0 : vector<8x96xbf16>
    %cst = arith.constant 0.000000e+00 : bf16
    %2 = vector.broadcast %cst : bf16 to vector<8x96xbf16>
    %3 = arith.subf %2, %1 : vector<8x96xbf16>
    %4 = math.exp %3 : vector<8x96xbf16>
    %cst_1 = arith.constant 1.000000e+00 : bf16
    %5 = vector.broadcast %cst_1 : bf16 to vector<8x96xbf16>
    %6 = arith.subf %4, %5 : vector<8x96xbf16>
    %cst_2 = arith.constant 0.000000e+00 : bf16
    %7 = vector.broadcast %cst_2 : bf16 to vector<8x96xbf16>
    %8 = arith.cmpf ogt, %0, %7 : vector<8x96xbf16>
    %9 = arith.select %8, %0, %6 : vector<8x96xi1>, vector<8x96xbf16>
    %cst_3 = arith.constant 0.000000e+00 : bf16
    %10 = vector.broadcast %cst_3 : bf16 to vector<8x96xbf16>
    %11 = arith.cmpf ogt, %0, %10 : vector<8x96xbf16>
    %cst_4 = arith.constant 0.000000e+00 : bf16
    %12 = vector.broadcast %cst_4 : bf16 to vector<8x96xbf16>
    %13 = arith.subf %12, %0 : vector<8x96xbf16>
    %14 = arith.select %11, %6, %13 : vector<8x96xi1>, vector<8x96xbf16>
    %c0_5 = arith.constant 0 : index
    %c0_6 = arith.constant 0 : index
    %15 = vector.load %arg2[%c0_5, %c0_6] : memref<96x128xbf16, #tpu.memory_space<vmem>>, vector<96x128xbf16>
    %cst_7 = arith.constant dense<0.000000e+00> : vector<8x128xf32>
    %16 = tpu.matmul %9, %15, %cst_7 {dimension_numbers = #tpu.dot_dimension_numbers<[1], [0], [0], [1], [0, 0, 1, 1], [], []>} : vector<8x96xbf16>, vector<96x128xbf16>, vector<8x128xf32> -> vector<8x128xf32>
    %c0_8 = arith.constant 0 : index
    %c0_9 = arith.constant 0 : index
    %17 = vector.load %arg3[%c0_8, %c0_9] : memref<96x128xbf16, #tpu.memory_space<vmem>>, vector<96x128xbf16>
    %cst_10 = arith.constant dense<0.000000e+00> : vector<8x128xf32>
    %18 = tpu.matmul %14, %17, %cst_10 {dimension_numbers = #tpu.dot_dimension_numbers<[1], [0], [0], [1], [0, 0, 1, 1], [], []>} : vector<8x96xbf16>, vector<96x128xbf16>, vector<8x128xf32> -> vector<8x128xf32>
    %19 = arith.addf %16, %18 : vector<8x128xf32>
    %c0_11 = arith.constant 0 : index
    %c0_12 = arith.constant 0 : index
    %20 = vector.load %arg4[%c0_11, %c0_12] : memref<8x16xbf16, #tpu.memory_space<vmem>>, vector<8x16xbf16>
    %c0_13 = arith.constant 0 : index
    %c0_14 = arith.constant 0 : index
    %21 = vector.load %arg5[%c0_13, %c0_14] : memref<16x128xbf16, #tpu.memory_space<vmem>>, vector<16x128xbf16>
    %c0_15 = arith.constant 0 : index
    %c0_16 = arith.constant 0 : index
    %22 = vector.load %arg6[%c0_15, %c0_16] : memref<16x128xbf16, #tpu.memory_space<vmem>>, vector<16x128xbf16>
    %23 = math.absf %20 : vector<8x16xbf16>
    %cst_17 = arith.constant 0.000000e+00 : bf16
    %24 = vector.broadcast %cst_17 : bf16 to vector<8x16xbf16>
    %25 = arith.subf %24, %23 : vector<8x16xbf16>
    %26 = math.exp %25 : vector<8x16xbf16>
    %cst_18 = arith.constant 1.000000e+00 : bf16
    %27 = vector.broadcast %cst_18 : bf16 to vector<8x16xbf16>
    %28 = arith.subf %26, %27 : vector<8x16xbf16>
    %cst_19 = arith.constant 0.000000e+00 : bf16
    %29 = vector.broadcast %cst_19 : bf16 to vector<8x16xbf16>
    %30 = arith.cmpf ogt, %20, %29 : vector<8x16xbf16>
    %31 = arith.select %30, %20, %28 : vector<8x16xi1>, vector<8x16xbf16>
    %cst_20 = arith.constant 0.000000e+00 : bf16
    %32 = vector.broadcast %cst_20 : bf16 to vector<8x16xbf16>
    %33 = arith.cmpf ogt, %20, %32 : vector<8x16xbf16>
    %cst_21 = arith.constant 0.000000e+00 : bf16
    %34 = vector.broadcast %cst_21 : bf16 to vector<8x16xbf16>
    %35 = arith.subf %34, %20 : vector<8x16xbf16>
    %36 = arith.select %33, %28, %35 : vector<8x16xi1>, vector<8x16xbf16>
    %cst_22 = arith.constant dense<0.000000e+00> : vector<8x128xf32>
    %37 = tpu.matmul %31, %21, %cst_22 {dimension_numbers = #tpu.dot_dimension_numbers<[1], [0], [0], [1], [0, 0, 1, 1], [], []>} : vector<8x16xbf16>, vector<16x128xbf16>, vector<8x128xf32> -> vector<8x128xf32>
    %38 = arith.addf %19, %37 : vector<8x128xf32>
    %cst_23 = arith.constant dense<0.000000e+00> : vector<8x128xf32>
    %39 = tpu.matmul %36, %22, %cst_23 {dimension_numbers = #tpu.dot_dimension_numbers<[1], [0], [0], [1], [0, 0, 1, 1], [], []>} : vector<8x16xbf16>, vector<16x128xbf16>, vector<8x128xf32> -> vector<8x128xf32>
    %40 = arith.addf %38, %39 : vector<8x128xf32>
    %c0_24 = arith.constant 0 : index
    %c0_25 = arith.constant 0 : index
    %41 = vector.load %arg7[%c0_24, %c0_25] : memref<1x128xf32, #tpu.memory_space<vmem>>, vector<1x128xf32>
    %42 = vector.broadcast %41 : vector<1x128xf32> to vector<8x128xf32>
    %43 = arith.addf %40, %42 : vector<8x128xf32>
    %44 = arith.truncf %43 : vector<8x128xf32> to vector<8x128xbf16>
    %c0_26 = arith.constant 0 : index
    %c0_27 = arith.constant 0 : index
    %45 = vector.load %arg8[%c0_26, %c0_27] : memref<8x128xbf16, #tpu.memory_space<vmem>>, vector<8x128xbf16>
    tpu.vector_store %arg8[%c0_26, %c0_27], %44 {strides = array<i32>} : memref<8x128xbf16, #tpu.memory_space<vmem>>, vector<8x128xbf16>,
    return
  }
  func.func @transform_0(%arg0: i32) -> (i32, i32) {
    %c0_i32 = arith.constant 0 : i32
    %c0_i32_0 = arith.constant 0 : i32
    return %arg0, %c0_i32 : i32, i32
  }
  func.func @transform_1(%arg0: i32) -> (i32, i32) {
    %c0_i32 = arith.constant 0 : i32
    %c0_i32_0 = arith.constant 0 : i32
    %c0_i32_1 = arith.constant 0 : i32
    return %c0_i32, %c0_i32_0 : i32, i32
  }
  func.func @transform_2(%arg0: i32) -> (i32, i32) {
    %c0_i32 = arith.constant 0 : i32
    %c0_i32_0 = arith.constant 0 : i32
    %c0_i32_1 = arith.constant 0 : i32
    return %c0_i32, %c0_i32_0 : i32, i32
  }
  func.func @transform_3(%arg0: i32) -> (i32, i32) {
    %c0_i32 = arith.constant 0 : i32
    %c0_i32_0 = arith.constant 0 : i32
    return %arg0, %c0_i32 : i32, i32
  }
  func.func @transform_4(%arg0: i32) -> (i32, i32) {
    %c0_i32 = arith.constant 0 : i32
    %c0_i32_0 = arith.constant 0 : i32
    %c0_i32_1 = arith.constant 0 : i32
    return %c0_i32, %c0_i32_0 : i32, i32
  }
  func.func @transform_5(%arg0: i32) -> (i32, i32) {
    %c0_i32 = arith.constant 0 : i32
    %c0_i32_0 = arith.constant 0 : i32
    %c0_i32_1 = arith.constant 0 : i32
    return %c0_i32, %c0_i32_0 : i32, i32
  }
  func.func @transform_6(%arg0: i32) -> (i32, i32) {
    %c0_i32 = arith.constant 0 : i32
    %c0_i32_0 = arith.constant 0 : i32
    %c0_i32_1 = arith.constant 0 : i32
    return %c0_i32, %c0_i32_0 : i32, i32
  }
  func.func @transform_7(%arg0: i32) -> (i32, i32) {
    %c0_i32 = arith.constant 0 : i32
    %c0_i32_0 = arith.constant 0 : i32
    return %arg0, %c0_i32 : i32, i32
  }
}

module attributes {stable_mosaic.version = 11 : i64} {
  func.func @kernel(%arg0: i32, %arg1: memref<32x96xbf16, #tpu.memory_space<vmem>>, %arg2: memref<96x128xbf16, #tpu.memory_space<vmem>>, %arg3: memref<1x128xf32, #tpu.memory_space<vmem>>, %arg4: memref<32x128xbf16, #tpu.memory_space<vmem>>) attributes {dimension_semantics = [#tpu.dimension_semantics<parallel>], iteration_bounds = array<i64: 2>, scalar_prefetch = 0 : i64, scratch_operands = 0 : i64, tpu.core_type = #tpu.core_type<tc>, window_params = [{transform_indices = @transform_0, window_bounds = array<i64: 32, 96>}, {pipeline_mode = #tpu.pipeline_mode<synchronous>, transform_indices = @transform_1, window_bounds = array<i64: 96, 128>}, {pipeline_mode = #tpu.pipeline_mode<synchronous>, transform_indices = @transform_2, window_bounds = array<i64: 1, 128>}, {transform_indices = @transform_3, window_bounds = array<i64: 32, 128>}]} {
    %c0 = arith.constant 0 : index
    %c0_0 = arith.constant 0 : index
    %0 = vector.load %arg1[%c0, %c0_0] : memref<32x96xbf16, #tpu.memory_space<vmem>>, vector<32x96xbf16>
    %c0_1 = arith.constant 0 : index
    %c0_2 = arith.constant 0 : index
    %1 = vector.load %arg2[%c0_1, %c0_2] : memref<96x128xbf16, #tpu.memory_space<vmem>>, vector<96x128xbf16>
    %cst = arith.constant dense<0.000000e+00> : vector<32x128xf32>
    %2 = tpu.matmul %0, %1, %cst {dimension_numbers = #tpu.dot_dimension_numbers<[1], [0], [0], [1], [0, 0, 1, 1], [], []>} : vector<32x96xbf16>, vector<96x128xbf16>, vector<32x128xf32> -> vector<32x128xf32>
    %c0_3 = arith.constant 0 : index
    %c0_4 = arith.constant 0 : index
    %3 = vector.load %arg3[%c0_3, %c0_4] : memref<1x128xf32, #tpu.memory_space<vmem>>, vector<1x128xf32>
    %4 = vector.broadcast %3 : vector<1x128xf32> to vector<32x128xf32>
    %5 = arith.addf %2, %4 : vector<32x128xf32>
    %6 = arith.truncf %5 : vector<32x128xf32> to vector<32x128xbf16>
    %c0_5 = arith.constant 0 : index
    %c0_6 = arith.constant 0 : index
    %7 = vector.load %arg4[%c0_5, %c0_6] : memref<32x128xbf16, #tpu.memory_space<vmem>>, vector<32x128xbf16>
    tpu.vector_store %arg4[%c0_5, %c0_6], %6 {strides = array<i32>} : memref<32x128xbf16, #tpu.memory_space<vmem>>, vector<32x128xbf16>,
    return
  }
  func.func @transform_0(%arg0: i32) -> (i32, i32) {
    %c0_i32 = arith.constant 0 : i32
    %c0_i32_0 = arith.constant 0 : i32
    return %arg0, %c0_i32 : i32, i32
  }
  func.func @transform_1(%arg0: i32) -> (i32, i32) {
    %c0_i32 = arith.constant 0 : i32
    %c0_i32_0 = arith.constant 0 : i32
    %c0_i32_1 = arith.constant 0 : i32
    return %c0_i32, %c0_i32_0 : i32, i32
  }
  func.func @transform_2(%arg0: i32) -> (i32, i32) {
    %c0_i32 = arith.constant 0 : i32
    %c0_i32_0 = arith.constant 0 : i32
    %c0_i32_1 = arith.constant 0 : i32
    return %c0_i32, %c0_i32_0 : i32, i32
  }
  func.func @transform_3(%arg0: i32) -> (i32, i32) {
    %c0_i32 = arith.constant 0 : i32
    %c0_i32_0 = arith.constant 0 : i32
    return %arg0, %c0_i32 : i32, i32
  }
}

module attributes {stable_mosaic.version = 11 : i64} {
  func.func @kernel(%arg0: i32, %arg1: memref<16x96xbf16, #tpu.memory_space<vmem>>, %arg2: memref<96x128xbf16, #tpu.memory_space<vmem>>, %arg3: memref<96x128xbf16, #tpu.memory_space<vmem>>, %arg4: memref<16x16xbf16, #tpu.memory_space<vmem>>, %arg5: memref<16x128xbf16, #tpu.memory_space<vmem>>, %arg6: memref<16x128xbf16, #tpu.memory_space<vmem>>, %arg7: memref<1x128xf32, #tpu.memory_space<vmem>>, %arg8: memref<16x128xbf16, #tpu.memory_space<vmem>>) attributes {dimension_semantics = [#tpu.dimension_semantics<parallel>], iteration_bounds = array<i64: 2>, scalar_prefetch = 0 : i64, scratch_operands = 0 : i64, tpu.core_type = #tpu.core_type<tc>, window_params = [{transform_indices = @transform_0, window_bounds = array<i64: 16, 96>}, {pipeline_mode = #tpu.pipeline_mode<synchronous>, transform_indices = @transform_1, window_bounds = array<i64: 96, 128>}, {pipeline_mode = #tpu.pipeline_mode<synchronous>, transform_indices = @transform_2, window_bounds = array<i64: 96, 128>}, {transform_indices = @transform_3, window_bounds = array<i64: 16, 16>}, {pipeline_mode = #tpu.pipeline_mode<synchronous>, transform_indices = @transform_4, window_bounds = array<i64: 16, 128>}, {pipeline_mode = #tpu.pipeline_mode<synchronous>, transform_indices = @transform_5, window_bounds = array<i64: 16, 128>}, {pipeline_mode = #tpu.pipeline_mode<synchronous>, transform_indices = @transform_6, window_bounds = array<i64: 1, 128>}, {transform_indices = @transform_7, window_bounds = array<i64: 16, 128>}]} {
    %c0 = arith.constant 0 : index
    %c0_0 = arith.constant 0 : index
    %0 = vector.load %arg1[%c0, %c0_0] : memref<16x96xbf16, #tpu.memory_space<vmem>>, vector<16x96xbf16>
    %1 = math.absf %0 : vector<16x96xbf16>
    %cst = arith.constant 0.000000e+00 : bf16
    %2 = vector.broadcast %cst : bf16 to vector<16x96xbf16>
    %3 = arith.subf %2, %1 : vector<16x96xbf16>
    %4 = math.exp %3 : vector<16x96xbf16>
    %cst_1 = arith.constant 1.000000e+00 : bf16
    %5 = vector.broadcast %cst_1 : bf16 to vector<16x96xbf16>
    %6 = arith.subf %4, %5 : vector<16x96xbf16>
    %cst_2 = arith.constant 0.000000e+00 : bf16
    %7 = vector.broadcast %cst_2 : bf16 to vector<16x96xbf16>
    %8 = arith.cmpf ogt, %0, %7 : vector<16x96xbf16>
    %9 = arith.select %8, %0, %6 : vector<16x96xi1>, vector<16x96xbf16>
    %cst_3 = arith.constant 0.000000e+00 : bf16
    %10 = vector.broadcast %cst_3 : bf16 to vector<16x96xbf16>
    %11 = arith.cmpf ogt, %0, %10 : vector<16x96xbf16>
    %cst_4 = arith.constant 0.000000e+00 : bf16
    %12 = vector.broadcast %cst_4 : bf16 to vector<16x96xbf16>
    %13 = arith.subf %12, %0 : vector<16x96xbf16>
    %14 = arith.select %11, %6, %13 : vector<16x96xi1>, vector<16x96xbf16>
    %c0_5 = arith.constant 0 : index
    %c0_6 = arith.constant 0 : index
    %15 = vector.load %arg2[%c0_5, %c0_6] : memref<96x128xbf16, #tpu.memory_space<vmem>>, vector<96x128xbf16>
    %cst_7 = arith.constant dense<0.000000e+00> : vector<16x128xf32>
    %16 = tpu.matmul %9, %15, %cst_7 {dimension_numbers = #tpu.dot_dimension_numbers<[1], [0], [0], [1], [0, 0, 1, 1], [], []>} : vector<16x96xbf16>, vector<96x128xbf16>, vector<16x128xf32> -> vector<16x128xf32>
    %c0_8 = arith.constant 0 : index
    %c0_9 = arith.constant 0 : index
    %17 = vector.load %arg3[%c0_8, %c0_9] : memref<96x128xbf16, #tpu.memory_space<vmem>>, vector<96x128xbf16>
    %cst_10 = arith.constant dense<0.000000e+00> : vector<16x128xf32>
    %18 = tpu.matmul %14, %17, %cst_10 {dimension_numbers = #tpu.dot_dimension_numbers<[1], [0], [0], [1], [0, 0, 1, 1], [], []>} : vector<16x96xbf16>, vector<96x128xbf16>, vector<16x128xf32> -> vector<16x128xf32>
    %19 = arith.addf %16, %18 : vector<16x128xf32>
    %c0_11 = arith.constant 0 : index
    %c0_12 = arith.constant 0 : index
    %20 = vector.load %arg4[%c0_11, %c0_12] : memref<16x16xbf16, #tpu.memory_space<vmem>>, vector<16x16xbf16>
    %c0_13 = arith.constant 0 : index
    %c0_14 = arith.constant 0 : index
    %21 = vector.load %arg5[%c0_13, %c0_14] : memref<16x128xbf16, #tpu.memory_space<vmem>>, vector<16x128xbf16>
    %c0_15 = arith.constant 0 : index
    %c0_16 = arith.constant 0 : index
    %22 = vector.load %arg6[%c0_15, %c0_16] : memref<16x128xbf16, #tpu.memory_space<vmem>>, vector<16x128xbf16>
    %23 = math.absf %20 : vector<16x16xbf16>
    %cst_17 = arith.constant 0.000000e+00 : bf16
    %24 = vector.broadcast %cst_17 : bf16 to vector<16x16xbf16>
    %25 = arith.subf %24, %23 : vector<16x16xbf16>
    %26 = math.exp %25 : vector<16x16xbf16>
    %cst_18 = arith.constant 1.000000e+00 : bf16
    %27 = vector.broadcast %cst_18 : bf16 to vector<16x16xbf16>
    %28 = arith.subf %26, %27 : vector<16x16xbf16>
    %cst_19 = arith.constant 0.000000e+00 : bf16
    %29 = vector.broadcast %cst_19 : bf16 to vector<16x16xbf16>
    %30 = arith.cmpf ogt, %20, %29 : vector<16x16xbf16>
    %31 = arith.select %30, %20, %28 : vector<16x16xi1>, vector<16x16xbf16>
    %cst_20 = arith.constant 0.000000e+00 : bf16
    %32 = vector.broadcast %cst_20 : bf16 to vector<16x16xbf16>
    %33 = arith.cmpf ogt, %20, %32 : vector<16x16xbf16>
    %cst_21 = arith.constant 0.000000e+00 : bf16
    %34 = vector.broadcast %cst_21 : bf16 to vector<16x16xbf16>
    %35 = arith.subf %34, %20 : vector<16x16xbf16>
    %36 = arith.select %33, %28, %35 : vector<16x16xi1>, vector<16x16xbf16>
    %cst_22 = arith.constant dense<0.000000e+00> : vector<16x128xf32>
    %37 = tpu.matmul %31, %21, %cst_22 {dimension_numbers = #tpu.dot_dimension_numbers<[1], [0], [0], [1], [0, 0, 1, 1], [], []>} : vector<16x16xbf16>, vector<16x128xbf16>, vector<16x128xf32> -> vector<16x128xf32>
    %38 = arith.addf %19, %37 : vector<16x128xf32>
    %cst_23 = arith.constant dense<0.000000e+00> : vector<16x128xf32>
    %39 = tpu.matmul %36, %22, %cst_23 {dimension_numbers = #tpu.dot_dimension_numbers<[1], [0], [0], [1], [0, 0, 1, 1], [], []>} : vector<16x16xbf16>, vector<16x128xbf16>, vector<16x128xf32> -> vector<16x128xf32>
    %40 = arith.addf %38, %39 : vector<16x128xf32>
    %c0_24 = arith.constant 0 : index
    %c0_25 = arith.constant 0 : index
    %41 = vector.load %arg7[%c0_24, %c0_25] : memref<1x128xf32, #tpu.memory_space<vmem>>, vector<1x128xf32>
    %42 = vector.broadcast %41 : vector<1x128xf32> to vector<16x128xf32>
    %43 = arith.addf %40, %42 : vector<16x128xf32>
    %44 = arith.truncf %43 : vector<16x128xf32> to vector<16x128xbf16>
    %c0_26 = arith.constant 0 : index
    %c0_27 = arith.constant 0 : index
    %45 = vector.load %arg8[%c0_26, %c0_27] : memref<16x128xbf16, #tpu.memory_space<vmem>>, vector<16x128xbf16>
    tpu.vector_store %arg8[%c0_26, %c0_27], %44 {strides = array<i32>} : memref<16x128xbf16, #tpu.memory_space<vmem>>, vector<16x128xbf16>,
    return
  }
  func.func @transform_0(%arg0: i32) -> (i32, i32) {
    %c0_i32 = arith.constant 0 : i32
    %c0_i32_0 = arith.constant 0 : i32
    return %arg0, %c0_i32 : i32, i32
  }
  func.func @transform_1(%arg0: i32) -> (i32, i32) {
    %c0_i32 = arith.constant 0 : i32
    %c0_i32_0 = arith.constant 0 : i32
    %c0_i32_1 = arith.constant 0 : i32
    return %c0_i32, %c0_i32_0 : i32, i32
  }
  func.func @transform_2(%arg0: i32) -> (i32, i32) {
    %c0_i32 = arith.constant 0 : i32
    %c0_i32_0 = arith.constant 0 : i32
    %c0_i32_1 = arith.constant 0 : i32
    return %c0_i32, %c0_i32_0 : i32, i32
  }
  func.func @transform_3(%arg0: i32) -> (i32, i32) {
    %c0_i32 = arith.constant 0 : i32
    %c0_i32_0 = arith.constant 0 : i32
    return %arg0, %c0_i32 : i32, i32
  }
  func.func @transform_4(%arg0: i32) -> (i32, i32) {
    %c0_i32 = arith.constant 0 : i32
    %c0_i32_0 = arith.constant 0 : i32
    %c0_i32_1 = arith.constant 0 : i32
    return %c0_i32, %c0_i32_0 : i32, i32
  }
  func.func @transform_5(%arg0: i32) -> (i32, i32) {
    %c0_i32 = arith.constant 0 : i32
    %c0_i32_0 = arith.constant 0 : i32
    %c0_i32_1 = arith.constant 0 : i32
    return %c0_i32, %c0_i32_0 : i32, i32
  }
  func.func @transform_6(%arg0: i32) -> (i32, i32) {
    %c0_i32 = arith.constant 0 : i32
    %c0_i32_0 = arith.constant 0 : i32
    %c0_i32_1 = arith.constant 0 : i32
    return %c0_i32, %c0_i32_0 : i32, i32
  }
  func.func @transform_7(%arg0: i32) -> (i32, i32) {
    %c0_i32 = arith.constant 0 : i32
    %c0_i32_0 = arith.constant 0 : i32
    return %arg0, %c0_i32 : i32, i32
  }
}

module attributes {stable_mosaic.version = 11 : i64} {
  func.func @kernel(%arg0: i32, %arg1: memref<96x96xbf16, #tpu.memory_space<vmem>>, %arg2: memref<96x128xbf16, #tpu.memory_space<vmem>>, %arg3: memref<1x128xf32, #tpu.memory_space<vmem>>, %arg4: memref<96x128xbf16, #tpu.memory_space<vmem>>) attributes {dimension_semantics = [#tpu.dimension_semantics<parallel>], iteration_bounds = array<i64: 2>, scalar_prefetch = 0 : i64, scratch_operands = 0 : i64, tpu.core_type = #tpu.core_type<tc>, window_params = [{transform_indices = @transform_0, window_bounds = array<i64: 96, 96>}, {pipeline_mode = #tpu.pipeline_mode<synchronous>, transform_indices = @transform_1, window_bounds = array<i64: 96, 128>}, {pipeline_mode = #tpu.pipeline_mode<synchronous>, transform_indices = @transform_2, window_bounds = array<i64: 1, 128>}, {transform_indices = @transform_3, window_bounds = array<i64: 96, 128>}]} {
    %c0 = arith.constant 0 : index
    %c0_0 = arith.constant 0 : index
    %0 = vector.load %arg1[%c0, %c0_0] : memref<96x96xbf16, #tpu.memory_space<vmem>>, vector<96x96xbf16>
    %c0_1 = arith.constant 0 : index
    %c0_2 = arith.constant 0 : index
    %1 = vector.load %arg2[%c0_1, %c0_2] : memref<96x128xbf16, #tpu.memory_space<vmem>>, vector<96x128xbf16>
    %cst = arith.constant dense<0.000000e+00> : vector<96x128xf32>
    %2 = tpu.matmul %0, %1, %cst {dimension_numbers = #tpu.dot_dimension_numbers<[1], [0], [0], [1], [0, 0, 1, 1], [], []>} : vector<96x96xbf16>, vector<96x128xbf16>, vector<96x128xf32> -> vector<96x128xf32>
    %c0_3 = arith.constant 0 : index
    %c0_4 = arith.constant 0 : index
    %3 = vector.load %arg3[%c0_3, %c0_4] : memref<1x128xf32, #tpu.memory_space<vmem>>, vector<1x128xf32>
    %4 = vector.broadcast %3 : vector<1x128xf32> to vector<96x128xf32>
    %5 = arith.addf %2, %4 : vector<96x128xf32>
    %6 = arith.truncf %5 : vector<96x128xf32> to vector<96x128xbf16>
    %c0_5 = arith.constant 0 : index
    %c0_6 = arith.constant 0 : index
    %7 = vector.load %arg4[%c0_5, %c0_6] : memref<96x128xbf16, #tpu.memory_space<vmem>>, vector<96x128xbf16>
    tpu.vector_store %arg4[%c0_5, %c0_6], %6 {strides = array<i32>} : memref<96x128xbf16, #tpu.memory_space<vmem>>, vector<96x128xbf16>,
    return
  }
  func.func @transform_0(%arg0: i32) -> (i32, i32) {
    %c0_i32 = arith.constant 0 : i32
    %c0_i32_0 = arith.constant 0 : i32
    return %arg0, %c0_i32 : i32, i32
  }
  func.func @transform_1(%arg0: i32) -> (i32, i32) {
    %c0_i32 = arith.constant 0 : i32
    %c0_i32_0 = arith.constant 0 : i32
    %c0_i32_1 = arith.constant 0 : i32
    return %c0_i32, %c0_i32_0 : i32, i32
  }
  func.func @transform_2(%arg0: i32) -> (i32, i32) {
    %c0_i32 = arith.constant 0 : i32
    %c0_i32_0 = arith.constant 0 : i32
    %c0_i32_1 = arith.constant 0 : i32
    return %c0_i32, %c0_i32_0 : i32, i32
  }
  func.func @transform_3(%arg0: i32) -> (i32, i32) {
    %c0_i32 = arith.constant 0 : i32
    %c0_i32_0 = arith.constant 0 : i32
    return %arg0, %c0_i32 : i32, i32
  }
}

module attributes {stable_mosaic.version = 11 : i64} {
  func.func @kernel(%arg0: i32, %arg1: memref<64x96xbf16, #tpu.memory_space<vmem>>, %arg2: memref<96x128xbf16, #tpu.memory_space<vmem>>, %arg3: memref<96x128xbf16, #tpu.memory_space<vmem>>, %arg4: memref<64x16xbf16, #tpu.memory_space<vmem>>, %arg5: memref<16x128xbf16, #tpu.memory_space<vmem>>, %arg6: memref<16x128xbf16, #tpu.memory_space<vmem>>, %arg7: memref<1x128xf32, #tpu.memory_space<vmem>>, %arg8: memref<64x128xbf16, #tpu.memory_space<vmem>>) attributes {dimension_semantics = [#tpu.dimension_semantics<parallel>], iteration_bounds = array<i64: 2>, scalar_prefetch = 0 : i64, scratch_operands = 0 : i64, tpu.core_type = #tpu.core_type<tc>, window_params = [{transform_indices = @transform_0, window_bounds = array<i64: 64, 96>}, {pipeline_mode = #tpu.pipeline_mode<synchronous>, transform_indices = @transform_1, window_bounds = array<i64: 96, 128>}, {pipeline_mode = #tpu.pipeline_mode<synchronous>, transform_indices = @transform_2, window_bounds = array<i64: 96, 128>}, {transform_indices = @transform_3, window_bounds = array<i64: 64, 16>}, {pipeline_mode = #tpu.pipeline_mode<synchronous>, transform_indices = @transform_4, window_bounds = array<i64: 16, 128>}, {pipeline_mode = #tpu.pipeline_mode<synchronous>, transform_indices = @transform_5, window_bounds = array<i64: 16, 128>}, {pipeline_mode = #tpu.pipeline_mode<synchronous>, transform_indices = @transform_6, window_bounds = array<i64: 1, 128>}, {transform_indices = @transform_7, window_bounds = array<i64: 64, 128>}]} {
    %c0 = arith.constant 0 : index
    %c0_0 = arith.constant 0 : index
    %0 = vector.load %arg1[%c0, %c0_0] : memref<64x96xbf16, #tpu.memory_space<vmem>>, vector<64x96xbf16>
    %1 = math.absf %0 : vector<64x96xbf16>
    %cst = arith.constant 0.000000e+00 : bf16
    %2 = vector.broadcast %cst : bf16 to vector<64x96xbf16>
    %3 = arith.subf %2, %1 : vector<64x96xbf16>
    %4 = math.exp %3 : vector<64x96xbf16>
    %cst_1 = arith.constant 1.000000e+00 : bf16
    %5 = vector.broadcast %cst_1 : bf16 to vector<64x96xbf16>
    %6 = arith.subf %4, %5 : vector<64x96xbf16>
    %cst_2 = arith.constant 0.000000e+00 : bf16
    %7 = vector.broadcast %cst_2 : bf16 to vector<64x96xbf16>
    %8 = arith.cmpf ogt, %0, %7 : vector<64x96xbf16>
    %9 = arith.select %8, %0, %6 : vector<64x96xi1>, vector<64x96xbf16>
    %cst_3 = arith.constant 0.000000e+00 : bf16
    %10 = vector.broadcast %cst_3 : bf16 to vector<64x96xbf16>
    %11 = arith.cmpf ogt, %0, %10 : vector<64x96xbf16>
    %cst_4 = arith.constant 0.000000e+00 : bf16
    %12 = vector.broadcast %cst_4 : bf16 to vector<64x96xbf16>
    %13 = arith.subf %12, %0 : vector<64x96xbf16>
    %14 = arith.select %11, %6, %13 : vector<64x96xi1>, vector<64x96xbf16>
    %c0_5 = arith.constant 0 : index
    %c0_6 = arith.constant 0 : index
    %15 = vector.load %arg2[%c0_5, %c0_6] : memref<96x128xbf16, #tpu.memory_space<vmem>>, vector<96x128xbf16>
    %cst_7 = arith.constant dense<0.000000e+00> : vector<64x128xf32>
    %16 = tpu.matmul %9, %15, %cst_7 {dimension_numbers = #tpu.dot_dimension_numbers<[1], [0], [0], [1], [0, 0, 1, 1], [], []>} : vector<64x96xbf16>, vector<96x128xbf16>, vector<64x128xf32> -> vector<64x128xf32>
    %c0_8 = arith.constant 0 : index
    %c0_9 = arith.constant 0 : index
    %17 = vector.load %arg3[%c0_8, %c0_9] : memref<96x128xbf16, #tpu.memory_space<vmem>>, vector<96x128xbf16>
    %cst_10 = arith.constant dense<0.000000e+00> : vector<64x128xf32>
    %18 = tpu.matmul %14, %17, %cst_10 {dimension_numbers = #tpu.dot_dimension_numbers<[1], [0], [0], [1], [0, 0, 1, 1], [], []>} : vector<64x96xbf16>, vector<96x128xbf16>, vector<64x128xf32> -> vector<64x128xf32>
    %19 = arith.addf %16, %18 : vector<64x128xf32>
    %c0_11 = arith.constant 0 : index
    %c0_12 = arith.constant 0 : index
    %20 = vector.load %arg4[%c0_11, %c0_12] : memref<64x16xbf16, #tpu.memory_space<vmem>>, vector<64x16xbf16>
    %c0_13 = arith.constant 0 : index
    %c0_14 = arith.constant 0 : index
    %21 = vector.load %arg5[%c0_13, %c0_14] : memref<16x128xbf16, #tpu.memory_space<vmem>>, vector<16x128xbf16>
    %c0_15 = arith.constant 0 : index
    %c0_16 = arith.constant 0 : index
    %22 = vector.load %arg6[%c0_15, %c0_16] : memref<16x128xbf16, #tpu.memory_space<vmem>>, vector<16x128xbf16>
    %23 = math.absf %20 : vector<64x16xbf16>
    %cst_17 = arith.constant 0.000000e+00 : bf16
    %24 = vector.broadcast %cst_17 : bf16 to vector<64x16xbf16>
    %25 = arith.subf %24, %23 : vector<64x16xbf16>
    %26 = math.exp %25 : vector<64x16xbf16>
    %cst_18 = arith.constant 1.000000e+00 : bf16
    %27 = vector.broadcast %cst_18 : bf16 to vector<64x16xbf16>
    %28 = arith.subf %26, %27 : vector<64x16xbf16>
    %cst_19 = arith.constant 0.000000e+00 : bf16
    %29 = vector.broadcast %cst_19 : bf16 to vector<64x16xbf16>
    %30 = arith.cmpf ogt, %20, %29 : vector<64x16xbf16>
    %31 = arith.select %30, %20, %28 : vector<64x16xi1>, vector<64x16xbf16>
    %cst_20 = arith.constant 0.000000e+00 : bf16
    %32 = vector.broadcast %cst_20 : bf16 to vector<64x16xbf16>
    %33 = arith.cmpf ogt, %20, %32 : vector<64x16xbf16>
    %cst_21 = arith.constant 0.000000e+00 : bf16
    %34 = vector.broadcast %cst_21 : bf16 to vector<64x16xbf16>
    %35 = arith.subf %34, %20 : vector<64x16xbf16>
    %36 = arith.select %33, %28, %35 : vector<64x16xi1>, vector<64x16xbf16>
    %cst_22 = arith.constant dense<0.000000e+00> : vector<64x128xf32>
    %37 = tpu.matmul %31, %21, %cst_22 {dimension_numbers = #tpu.dot_dimension_numbers<[1], [0], [0], [1], [0, 0, 1, 1], [], []>} : vector<64x16xbf16>, vector<16x128xbf16>, vector<64x128xf32> -> vector<64x128xf32>
    %38 = arith.addf %19, %37 : vector<64x128xf32>
    %cst_23 = arith.constant dense<0.000000e+00> : vector<64x128xf32>
    %39 = tpu.matmul %36, %22, %cst_23 {dimension_numbers = #tpu.dot_dimension_numbers<[1], [0], [0], [1], [0, 0, 1, 1], [], []>} : vector<64x16xbf16>, vector<16x128xbf16>, vector<64x128xf32> -> vector<64x128xf32>
    %40 = arith.addf %38, %39 : vector<64x128xf32>
    %c0_24 = arith.constant 0 : index
    %c0_25 = arith.constant 0 : index
    %41 = vector.load %arg7[%c0_24, %c0_25] : memref<1x128xf32, #tpu.memory_space<vmem>>, vector<1x128xf32>
    %42 = vector.broadcast %41 : vector<1x128xf32> to vector<64x128xf32>
    %43 = arith.addf %40, %42 : vector<64x128xf32>
    %44 = arith.truncf %43 : vector<64x128xf32> to vector<64x128xbf16>
    %c0_26 = arith.constant 0 : index
    %c0_27 = arith.constant 0 : index
    %45 = vector.load %arg8[%c0_26, %c0_27] : memref<64x128xbf16, #tpu.memory_space<vmem>>, vector<64x128xbf16>
    tpu.vector_store %arg8[%c0_26, %c0_27], %44 {strides = array<i32>} : memref<64x128xbf16, #tpu.memory_space<vmem>>, vector<64x128xbf16>,
    return
  }
  func.func @transform_0(%arg0: i32) -> (i32, i32) {
    %c0_i32 = arith.constant 0 : i32
    %c0_i32_0 = arith.constant 0 : i32
    return %arg0, %c0_i32 : i32, i32
  }
  func.func @transform_1(%arg0: i32) -> (i32, i32) {
    %c0_i32 = arith.constant 0 : i32
    %c0_i32_0 = arith.constant 0 : i32
    %c0_i32_1 = arith.constant 0 : i32
    return %c0_i32, %c0_i32_0 : i32, i32
  }
  func.func @transform_2(%arg0: i32) -> (i32, i32) {
    %c0_i32 = arith.constant 0 : i32
    %c0_i32_0 = arith.constant 0 : i32
    %c0_i32_1 = arith.constant 0 : i32
    return %c0_i32, %c0_i32_0 : i32, i32
  }
  func.func @transform_3(%arg0: i32) -> (i32, i32) {
    %c0_i32 = arith.constant 0 : i32
    %c0_i32_0 = arith.constant 0 : i32
    return %arg0, %c0_i32 : i32, i32
  }
  func.func @transform_4(%arg0: i32) -> (i32, i32) {
    %c0_i32 = arith.constant 0 : i32
    %c0_i32_0 = arith.constant 0 : i32
    %c0_i32_1 = arith.constant 0 : i32
    return %c0_i32, %c0_i32_0 : i32, i32
  }
  func.func @transform_5(%arg0: i32) -> (i32, i32) {
    %c0_i32 = arith.constant 0 : i32
    %c0_i32_0 = arith.constant 0 : i32
    %c0_i32_1 = arith.constant 0 : i32
    return %c0_i32, %c0_i32_0 : i32, i32
  }
  func.func @transform_6(%arg0: i32) -> (i32, i32) {
    %c0_i32 = arith.constant 0 : i32
    %c0_i32_0 = arith.constant 0 : i32
    %c0_i32_1 = arith.constant 0 : i32
    return %c0_i32, %c0_i32_0 : i32, i32
  }
  func.func @transform_7(%arg0: i32) -> (i32, i32) {
    %c0_i32 = arith.constant 0 : i32
    %c0_i32_0 = arith.constant 0 : i32
    return %arg0, %c0_i32 : i32, i32
  }
}

module attributes {stable_mosaic.version = 11 : i64} {
  func.func @kernel(%arg0: i32, %arg1: memref<64x12xbf16, #tpu.memory_space<vmem>>, %arg2: memref<12x128xbf16, #tpu.memory_space<vmem>>, %arg3: memref<1x128xf32, #tpu.memory_space<vmem>>, %arg4: memref<64x128xbf16, #tpu.memory_space<vmem>>) attributes {dimension_semantics = [#tpu.dimension_semantics<parallel>], iteration_bounds = array<i64: 2>, scalar_prefetch = 0 : i64, scratch_operands = 0 : i64, tpu.core_type = #tpu.core_type<tc>, window_params = [{transform_indices = @transform_0, window_bounds = array<i64: 64, 12>}, {pipeline_mode = #tpu.pipeline_mode<synchronous>, transform_indices = @transform_1, window_bounds = array<i64: 12, 128>}, {pipeline_mode = #tpu.pipeline_mode<synchronous>, transform_indices = @transform_2, window_bounds = array<i64: 1, 128>}, {transform_indices = @transform_3, window_bounds = array<i64: 64, 128>}]} {
    %c0 = arith.constant 0 : index
    %c0_0 = arith.constant 0 : index
    %0 = vector.load %arg1[%c0, %c0_0] : memref<64x12xbf16, #tpu.memory_space<vmem>>, vector<64x12xbf16>
    %c0_1 = arith.constant 0 : index
    %c0_2 = arith.constant 0 : index
    %1 = vector.load %arg2[%c0_1, %c0_2] : memref<12x128xbf16, #tpu.memory_space<vmem>>, vector<12x128xbf16>
    %cst = arith.constant dense<0.000000e+00> : vector<64x128xf32>
    %2 = tpu.matmul %0, %1, %cst {dimension_numbers = #tpu.dot_dimension_numbers<[1], [0], [0], [1], [0, 0, 1, 1], [], []>} : vector<64x12xbf16>, vector<12x128xbf16>, vector<64x128xf32> -> vector<64x128xf32>
    %c0_3 = arith.constant 0 : index
    %c0_4 = arith.constant 0 : index
    %3 = vector.load %arg3[%c0_3, %c0_4] : memref<1x128xf32, #tpu.memory_space<vmem>>, vector<1x128xf32>
    %4 = vector.broadcast %3 : vector<1x128xf32> to vector<64x128xf32>
    %5 = arith.addf %2, %4 : vector<64x128xf32>
    %6 = arith.truncf %5 : vector<64x128xf32> to vector<64x128xbf16>
    %c0_5 = arith.constant 0 : index
    %c0_6 = arith.constant 0 : index
    %7 = vector.load %arg4[%c0_5, %c0_6] : memref<64x128xbf16, #tpu.memory_space<vmem>>, vector<64x128xbf16>
    tpu.vector_store %arg4[%c0_5, %c0_6], %6 {strides = array<i32>} : memref<64x128xbf16, #tpu.memory_space<vmem>>, vector<64x128xbf16>,
    return
  }
  func.func @transform_0(%arg0: i32) -> (i32, i32) {
    %c0_i32 = arith.constant 0 : i32
    %c0_i32_0 = arith.constant 0 : i32
    return %arg0, %c0_i32 : i32, i32
  }
  func.func @transform_1(%arg0: i32) -> (i32, i32) {
    %c0_i32 = arith.constant 0 : i32
    %c0_i32_0 = arith.constant 0 : i32
    %c0_i32_1 = arith.constant 0 : i32
    return %c0_i32, %c0_i32_0 : i32, i32
  }
  func.func @transform_2(%arg0: i32) -> (i32, i32) {
    %c0_i32 = arith.constant 0 : i32
    %c0_i32_0 = arith.constant 0 : i32
    %c0_i32_1 = arith.constant 0 : i32
    return %c0_i32, %c0_i32_0 : i32, i32
  }
  func.func @transform_3(%arg0: i32) -> (i32, i32) {
    %c0_i32 = arith.constant 0 : i32
    %c0_i32_0 = arith.constant 0 : i32
    return %arg0, %c0_i32 : i32, i32
  }
}

module attributes {stable_mosaic.version = 11 : i64} {
  func.func @kernel(%arg0: i32, %arg1: memref<64x8xbf16, #tpu.memory_space<vmem>>, %arg2: memref<8x128xbf16, #tpu.memory_space<vmem>>, %arg3: memref<1x128xf32, #tpu.memory_space<vmem>>, %arg4: memref<64x128xbf16, #tpu.memory_space<vmem>>) attributes {dimension_semantics = [#tpu.dimension_semantics<parallel>], iteration_bounds = array<i64: 2>, scalar_prefetch = 0 : i64, scratch_operands = 0 : i64, tpu.core_type = #tpu.core_type<tc>, window_params = [{transform_indices = @transform_0, window_bounds = array<i64: 64, 8>}, {pipeline_mode = #tpu.pipeline_mode<synchronous>, transform_indices = @transform_1, window_bounds = array<i64: 8, 128>}, {pipeline_mode = #tpu.pipeline_mode<synchronous>, transform_indices = @transform_2, window_bounds = array<i64: 1, 128>}, {transform_indices = @transform_3, window_bounds = array<i64: 64, 128>}]} {
    %c0 = arith.constant 0 : index
    %c0_0 = arith.constant 0 : index
    %0 = vector.load %arg1[%c0, %c0_0] : memref<64x8xbf16, #tpu.memory_space<vmem>>, vector<64x8xbf16>
    %c0_1 = arith.constant 0 : index
    %c0_2 = arith.constant 0 : index
    %1 = vector.load %arg2[%c0_1, %c0_2] : memref<8x128xbf16, #tpu.memory_space<vmem>>, vector<8x128xbf16>
    %cst = arith.constant dense<0.000000e+00> : vector<64x128xf32>
    %2 = tpu.matmul %0, %1, %cst {dimension_numbers = #tpu.dot_dimension_numbers<[1], [0], [0], [1], [0, 0, 1, 1], [], []>} : vector<64x8xbf16>, vector<8x128xbf16>, vector<64x128xf32> -> vector<64x128xf32>
    %c0_3 = arith.constant 0 : index
    %c0_4 = arith.constant 0 : index
    %3 = vector.load %arg3[%c0_3, %c0_4] : memref<1x128xf32, #tpu.memory_space<vmem>>, vector<1x128xf32>
    %4 = vector.broadcast %3 : vector<1x128xf32> to vector<64x128xf32>
    %5 = arith.addf %2, %4 : vector<64x128xf32>
    %6 = arith.truncf %5 : vector<64x128xf32> to vector<64x128xbf16>
    %c0_5 = arith.constant 0 : index
    %c0_6 = arith.constant 0 : index
    %7 = vector.load %arg4[%c0_5, %c0_6] : memref<64x128xbf16, #tpu.memory_space<vmem>>, vector<64x128xbf16>
    tpu.vector_store %arg4[%c0_5, %c0_6], %6 {strides = array<i32>} : memref<64x128xbf16, #tpu.memory_space<vmem>>, vector<64x128xbf16>,
    return
  }
  func.func @transform_0(%arg0: i32) -> (i32, i32) {
    %c0_i32 = arith.constant 0 : i32
    %c0_i32_0 = arith.constant 0 : i32
    return %arg0, %c0_i32 : i32, i32
  }
  func.func @transform_1(%arg0: i32) -> (i32, i32) {
    %c0_i32 = arith.constant 0 : i32
    %c0_i32_0 = arith.constant 0 : i32
    %c0_i32_1 = arith.constant 0 : i32
    return %c0_i32, %c0_i32_0 : i32, i32
  }
  func.func @transform_2(%arg0: i32) -> (i32, i32) {
    %c0_i32 = arith.constant 0 : i32
    %c0_i32_0 = arith.constant 0 : i32
    %c0_i32_1 = arith.constant 0 : i32
    return %c0_i32, %c0_i32_0 : i32, i32
  }
  func.func @transform_3(%arg0: i32) -> (i32, i32) {
    %c0_i32 = arith.constant 0 : i32
    %c0_i32_0 = arith.constant 0 : i32
    return %arg0, %c0_i32 : i32, i32
  }
}

module attributes {stable_mosaic.version = 11 : i64} {
  func.func @kernel(%arg0: i32, %arg1: memref<64x64xbf16, #tpu.memory_space<vmem>>, %arg2: memref<64x128xbf16, #tpu.memory_space<vmem>>, %arg3: memref<64x128xbf16, #tpu.memory_space<vmem>>, %arg4: memref<64x16xbf16, #tpu.memory_space<vmem>>, %arg5: memref<16x128xbf16, #tpu.memory_space<vmem>>, %arg6: memref<16x128xbf16, #tpu.memory_space<vmem>>, %arg7: memref<1x128xf32, #tpu.memory_space<vmem>>, %arg8: memref<64x128xbf16, #tpu.memory_space<vmem>>) attributes {dimension_semantics = [#tpu.dimension_semantics<parallel>], iteration_bounds = array<i64: 2>, scalar_prefetch = 0 : i64, scratch_operands = 0 : i64, tpu.core_type = #tpu.core_type<tc>, window_params = [{transform_indices = @transform_0, window_bounds = array<i64: 64, 64>}, {pipeline_mode = #tpu.pipeline_mode<synchronous>, transform_indices = @transform_1, window_bounds = array<i64: 64, 128>}, {pipeline_mode = #tpu.pipeline_mode<synchronous>, transform_indices = @transform_2, window_bounds = array<i64: 64, 128>}, {transform_indices = @transform_3, window_bounds = array<i64: 64, 16>}, {pipeline_mode = #tpu.pipeline_mode<synchronous>, transform_indices = @transform_4, window_bounds = array<i64: 16, 128>}, {pipeline_mode = #tpu.pipeline_mode<synchronous>, transform_indices = @transform_5, window_bounds = array<i64: 16, 128>}, {pipeline_mode = #tpu.pipeline_mode<synchronous>, transform_indices = @transform_6, window_bounds = array<i64: 1, 128>}, {transform_indices = @transform_7, window_bounds = array<i64: 64, 128>}]} {
    %c0 = arith.constant 0 : index
    %c0_0 = arith.constant 0 : index
    %0 = vector.load %arg1[%c0, %c0_0] : memref<64x64xbf16, #tpu.memory_space<vmem>>, vector<64x64xbf16>
    %1 = math.absf %0 : vector<64x64xbf16>
    %cst = arith.constant 0.000000e+00 : bf16
    %2 = vector.broadcast %cst : bf16 to vector<64x64xbf16>
    %3 = arith.subf %2, %1 : vector<64x64xbf16>
    %4 = math.exp %3 : vector<64x64xbf16>
    %cst_1 = arith.constant 1.000000e+00 : bf16
    %5 = vector.broadcast %cst_1 : bf16 to vector<64x64xbf16>
    %6 = arith.subf %4, %5 : vector<64x64xbf16>
    %cst_2 = arith.constant 0.000000e+00 : bf16
    %7 = vector.broadcast %cst_2 : bf16 to vector<64x64xbf16>
    %8 = arith.cmpf ogt, %0, %7 : vector<64x64xbf16>
    %9 = arith.select %8, %0, %6 : vector<64x64xi1>, vector<64x64xbf16>
    %cst_3 = arith.constant 0.000000e+00 : bf16
    %10 = vector.broadcast %cst_3 : bf16 to vector<64x64xbf16>
    %11 = arith.cmpf ogt, %0, %10 : vector<64x64xbf16>
    %cst_4 = arith.constant 0.000000e+00 : bf16
    %12 = vector.broadcast %cst_4 : bf16 to vector<64x64xbf16>
    %13 = arith.subf %12, %0 : vector<64x64xbf16>
    %14 = arith.select %11, %6, %13 : vector<64x64xi1>, vector<64x64xbf16>
    %c0_5 = arith.constant 0 : index
    %c0_6 = arith.constant 0 : index
    %15 = vector.load %arg2[%c0_5, %c0_6] : memref<64x128xbf16, #tpu.memory_space<vmem>>, vector<64x128xbf16>
    %cst_7 = arith.constant dense<0.000000e+00> : vector<64x128xf32>
    %16 = tpu.matmul %9, %15, %cst_7 {dimension_numbers = #tpu.dot_dimension_numbers<[1], [0], [0], [1], [0, 0, 1, 1], [], []>} : vector<64x64xbf16>, vector<64x128xbf16>, vector<64x128xf32> -> vector<64x128xf32>
    %c0_8 = arith.constant 0 : index
    %c0_9 = arith.constant 0 : index
    %17 = vector.load %arg3[%c0_8, %c0_9] : memref<64x128xbf16, #tpu.memory_space<vmem>>, vector<64x128xbf16>
    %cst_10 = arith.constant dense<0.000000e+00> : vector<64x128xf32>
    %18 = tpu.matmul %14, %17, %cst_10 {dimension_numbers = #tpu.dot_dimension_numbers<[1], [0], [0], [1], [0, 0, 1, 1], [], []>} : vector<64x64xbf16>, vector<64x128xbf16>, vector<64x128xf32> -> vector<64x128xf32>
    %19 = arith.addf %16, %18 : vector<64x128xf32>
    %c0_11 = arith.constant 0 : index
    %c0_12 = arith.constant 0 : index
    %20 = vector.load %arg4[%c0_11, %c0_12] : memref<64x16xbf16, #tpu.memory_space<vmem>>, vector<64x16xbf16>
    %c0_13 = arith.constant 0 : index
    %c0_14 = arith.constant 0 : index
    %21 = vector.load %arg5[%c0_13, %c0_14] : memref<16x128xbf16, #tpu.memory_space<vmem>>, vector<16x128xbf16>
    %c0_15 = arith.constant 0 : index
    %c0_16 = arith.constant 0 : index
    %22 = vector.load %arg6[%c0_15, %c0_16] : memref<16x128xbf16, #tpu.memory_space<vmem>>, vector<16x128xbf16>
    %23 = math.absf %20 : vector<64x16xbf16>
    %cst_17 = arith.constant 0.000000e+00 : bf16
    %24 = vector.broadcast %cst_17 : bf16 to vector<64x16xbf16>
    %25 = arith.subf %24, %23 : vector<64x16xbf16>
    %26 = math.exp %25 : vector<64x16xbf16>
    %cst_18 = arith.constant 1.000000e+00 : bf16
    %27 = vector.broadcast %cst_18 : bf16 to vector<64x16xbf16>
    %28 = arith.subf %26, %27 : vector<64x16xbf16>
    %cst_19 = arith.constant 0.000000e+00 : bf16
    %29 = vector.broadcast %cst_19 : bf16 to vector<64x16xbf16>
    %30 = arith.cmpf ogt, %20, %29 : vector<64x16xbf16>
    %31 = arith.select %30, %20, %28 : vector<64x16xi1>, vector<64x16xbf16>
    %cst_20 = arith.constant 0.000000e+00 : bf16
    %32 = vector.broadcast %cst_20 : bf16 to vector<64x16xbf16>
    %33 = arith.cmpf ogt, %20, %32 : vector<64x16xbf16>
    %cst_21 = arith.constant 0.000000e+00 : bf16
    %34 = vector.broadcast %cst_21 : bf16 to vector<64x16xbf16>
    %35 = arith.subf %34, %20 : vector<64x16xbf16>
    %36 = arith.select %33, %28, %35 : vector<64x16xi1>, vector<64x16xbf16>
    %cst_22 = arith.constant dense<0.000000e+00> : vector<64x128xf32>
    %37 = tpu.matmul %31, %21, %cst_22 {dimension_numbers = #tpu.dot_dimension_numbers<[1], [0], [0], [1], [0, 0, 1, 1], [], []>} : vector<64x16xbf16>, vector<16x128xbf16>, vector<64x128xf32> -> vector<64x128xf32>
    %38 = arith.addf %19, %37 : vector<64x128xf32>
    %cst_23 = arith.constant dense<0.000000e+00> : vector<64x128xf32>
    %39 = tpu.matmul %36, %22, %cst_23 {dimension_numbers = #tpu.dot_dimension_numbers<[1], [0], [0], [1], [0, 0, 1, 1], [], []>} : vector<64x16xbf16>, vector<16x128xbf16>, vector<64x128xf32> -> vector<64x128xf32>
    %40 = arith.addf %38, %39 : vector<64x128xf32>
    %c0_24 = arith.constant 0 : index
    %c0_25 = arith.constant 0 : index
    %41 = vector.load %arg7[%c0_24, %c0_25] : memref<1x128xf32, #tpu.memory_space<vmem>>, vector<1x128xf32>
    %42 = vector.broadcast %41 : vector<1x128xf32> to vector<64x128xf32>
    %43 = arith.addf %40, %42 : vector<64x128xf32>
    %44 = arith.truncf %43 : vector<64x128xf32> to vector<64x128xbf16>
    %c0_26 = arith.constant 0 : index
    %c0_27 = arith.constant 0 : index
    %45 = vector.load %arg8[%c0_26, %c0_27] : memref<64x128xbf16, #tpu.memory_space<vmem>>, vector<64x128xbf16>
    tpu.vector_store %arg8[%c0_26, %c0_27], %44 {strides = array<i32>} : memref<64x128xbf16, #tpu.memory_space<vmem>>, vector<64x128xbf16>,
    return
  }
  func.func @transform_0(%arg0: i32) -> (i32, i32) {
    %c0_i32 = arith.constant 0 : i32
    %c0_i32_0 = arith.constant 0 : i32
    return %arg0, %c0_i32 : i32, i32
  }
  func.func @transform_1(%arg0: i32) -> (i32, i32) {
    %c0_i32 = arith.constant 0 : i32
    %c0_i32_0 = arith.constant 0 : i32
    %c0_i32_1 = arith.constant 0 : i32
    return %c0_i32, %c0_i32_0 : i32, i32
  }
  func.func @transform_2(%arg0: i32) -> (i32, i32) {
    %c0_i32 = arith.constant 0 : i32
    %c0_i32_0 = arith.constant 0 : i32
    %c0_i32_1 = arith.constant 0 : i32
    return %c0_i32, %c0_i32_0 : i32, i32
  }
  func.func @transform_3(%arg0: i32) -> (i32, i32) {
    %c0_i32 = arith.constant 0 : i32
    %c0_i32_0 = arith.constant 0 : i32
    return %arg0, %c0_i32 : i32, i32
  }
  func.func @transform_4(%arg0: i32) -> (i32, i32) {
    %c0_i32 = arith.constant 0 : i32
    %c0_i32_0 = arith.constant 0 : i32
    %c0_i32_1 = arith.constant 0 : i32
    return %c0_i32, %c0_i32_0 : i32, i32
  }
  func.func @transform_5(%arg0: i32) -> (i32, i32) {
    %c0_i32 = arith.constant 0 : i32
    %c0_i32_0 = arith.constant 0 : i32
    %c0_i32_1 = arith.constant 0 : i32
    return %c0_i32, %c0_i32_0 : i32, i32
  }
  func.func @transform_6(%arg0: i32) -> (i32, i32) {
    %c0_i32 = arith.constant 0 : i32
    %c0_i32_0 = arith.constant 0 : i32
    %c0_i32_1 = arith.constant 0 : i32
    return %c0_i32, %c0_i32_0 : i32, i32
  }
  func.func @transform_7(%arg0: i32) -> (i32, i32) {
    %c0_i32 = arith.constant 0 : i32
    %c0_i32_0 = arith.constant 0 : i32
    return %arg0, %c0_i32 : i32, i32
  }
}

module attributes {stable_mosaic.version = 11 : i64} {
  func.func @kernel(%arg0: i32, %arg1: memref<64x64xbf16, #tpu.memory_space<vmem>>, %arg2: memref<64x128xbf16, #tpu.memory_space<vmem>>, %arg3: memref<64x128xbf16, #tpu.memory_space<vmem>>, %arg4: memref<64x128xbf16, #tpu.memory_space<vmem>>, %arg5: memref<64x128xbf16, #tpu.memory_space<vmem>>, %arg6: memref<1x128xf32, #tpu.memory_space<vmem>>, %arg7: memref<1x128xf32, #tpu.memory_space<vmem>>, %arg8: memref<64x128xbf16, #tpu.memory_space<vmem>>, %arg9: memref<64x128xbf16, #tpu.memory_space<vmem>>) attributes {dimension_semantics = [#tpu.dimension_semantics<parallel>], iteration_bounds = array<i64: 2>, scalar_prefetch = 0 : i64, scratch_operands = 0 : i64, tpu.core_type = #tpu.core_type<tc>, window_params = [{transform_indices = @transform_0, window_bounds = array<i64: 64, 64>}, {pipeline_mode = #tpu.pipeline_mode<synchronous>, transform_indices = @transform_1, window_bounds = array<i64: 64, 128>}, {pipeline_mode = #tpu.pipeline_mode<synchronous>, transform_indices = @transform_2, window_bounds = array<i64: 64, 128>}, {pipeline_mode = #tpu.pipeline_mode<synchronous>, transform_indices = @transform_3, window_bounds = array<i64: 64, 128>}, {pipeline_mode = #tpu.pipeline_mode<synchronous>, transform_indices = @transform_4, window_bounds = array<i64: 64, 128>}, {pipeline_mode = #tpu.pipeline_mode<synchronous>, transform_indices = @transform_5, window_bounds = array<i64: 1, 128>}, {pipeline_mode = #tpu.pipeline_mode<synchronous>, transform_indices = @transform_6, window_bounds = array<i64: 1, 128>}, {transform_indices = @transform_7, window_bounds = array<i64: 64, 128>}, {transform_indices = @transform_8, window_bounds = array<i64: 64, 128>}]} {
    %c0 = arith.constant 0 : index
    %c0_0 = arith.constant 0 : index
    %0 = vector.load %arg1[%c0, %c0_0] : memref<64x64xbf16, #tpu.memory_space<vmem>>, vector<64x64xbf16>
    %1 = math.absf %0 : vector<64x64xbf16>
    %cst = arith.constant 0.000000e+00 : bf16
    %2 = vector.broadcast %cst : bf16 to vector<64x64xbf16>
    %3 = arith.subf %2, %1 : vector<64x64xbf16>
    %4 = math.exp %3 : vector<64x64xbf16>
    %cst_1 = arith.constant 1.000000e+00 : bf16
    %5 = vector.broadcast %cst_1 : bf16 to vector<64x64xbf16>
    %6 = arith.subf %4, %5 : vector<64x64xbf16>
    %cst_2 = arith.constant 0.000000e+00 : bf16
    %7 = vector.broadcast %cst_2 : bf16 to vector<64x64xbf16>
    %8 = arith.cmpf ogt, %0, %7 : vector<64x64xbf16>
    %9 = arith.select %8, %0, %6 : vector<64x64xi1>, vector<64x64xbf16>
    %cst_3 = arith.constant 0.000000e+00 : bf16
    %10 = vector.broadcast %cst_3 : bf16 to vector<64x64xbf16>
    %11 = arith.cmpf ogt, %0, %10 : vector<64x64xbf16>
    %cst_4 = arith.constant 0.000000e+00 : bf16
    %12 = vector.broadcast %cst_4 : bf16 to vector<64x64xbf16>
    %13 = arith.subf %12, %0 : vector<64x64xbf16>
    %14 = arith.select %11, %6, %13 : vector<64x64xi1>, vector<64x64xbf16>
    %c0_5 = arith.constant 0 : index
    %c0_6 = arith.constant 0 : index
    %15 = vector.load %arg2[%c0_5, %c0_6] : memref<64x128xbf16, #tpu.memory_space<vmem>>, vector<64x128xbf16>
    %c0_7 = arith.constant 0 : index
    %c0_8 = arith.constant 0 : index
    %16 = vector.load %arg3[%c0_7, %c0_8] : memref<64x128xbf16, #tpu.memory_space<vmem>>, vector<64x128xbf16>
    %c0_9 = arith.constant 0 : index
    %c0_10 = arith.constant 0 : index
    %17 = vector.load %arg4[%c0_9, %c0_10] : memref<64x128xbf16, #tpu.memory_space<vmem>>, vector<64x128xbf16>
    %c0_11 = arith.constant 0 : index
    %c0_12 = arith.constant 0 : index
    %18 = vector.load %arg5[%c0_11, %c0_12] : memref<64x128xbf16, #tpu.memory_space<vmem>>, vector<64x128xbf16>
    %c0_13 = arith.constant 0 : index
    %c0_14 = arith.constant 0 : index
    %19 = vector.load %arg6[%c0_13, %c0_14] : memref<1x128xf32, #tpu.memory_space<vmem>>, vector<1x128xf32>
    %c0_15 = arith.constant 0 : index
    %c0_16 = arith.constant 0 : index
    %20 = vector.load %arg7[%c0_15, %c0_16] : memref<1x128xf32, #tpu.memory_space<vmem>>, vector<1x128xf32>
    %c0_17 = arith.constant 0 : index
    %c0_18 = arith.constant 0 : index
    %21 = vector.load %arg8[%c0_17, %c0_18] : memref<64x128xbf16, #tpu.memory_space<vmem>>, vector<64x128xbf16>
    %cst_19 = arith.constant dense<0.000000e+00> : vector<64x128xf32>
    %22 = tpu.matmul %9, %15, %cst_19 {dimension_numbers = #tpu.dot_dimension_numbers<[1], [0], [0], [1], [0, 0, 1, 1], [], []>} : vector<64x64xbf16>, vector<64x128xbf16>, vector<64x128xf32> -> vector<64x128xf32>
    %cst_20 = arith.constant dense<0.000000e+00> : vector<64x128xf32>
    %23 = tpu.matmul %14, %16, %cst_20 {dimension_numbers = #tpu.dot_dimension_numbers<[1], [0], [0], [1], [0, 0, 1, 1], [], []>} : vector<64x64xbf16>, vector<64x128xbf16>, vector<64x128xf32> -> vector<64x128xf32>
    %24 = arith.addf %22, %23 : vector<64x128xf32>
    %25 = vector.broadcast %19 : vector<1x128xf32> to vector<64x128xf32>
    %26 = arith.addf %24, %25 : vector<64x128xf32>
    %cst_21 = arith.constant dense<0.000000e+00> : vector<64x128xf32>
    %27 = tpu.matmul %9, %17, %cst_21 {dimension_numbers = #tpu.dot_dimension_numbers<[1], [0], [0], [1], [0, 0, 1, 1], [], []>} : vector<64x64xbf16>, vector<64x128xbf16>, vector<64x128xf32> -> vector<64x128xf32>
    %cst_22 = arith.constant dense<0.000000e+00> : vector<64x128xf32>
    %28 = tpu.matmul %14, %18, %cst_22 {dimension_numbers = #tpu.dot_dimension_numbers<[1], [0], [0], [1], [0, 0, 1, 1], [], []>} : vector<64x64xbf16>, vector<64x128xbf16>, vector<64x128xf32> -> vector<64x128xf32>
    %29 = arith.addf %27, %28 : vector<64x128xf32>
    %30 = vector.broadcast %20 : vector<1x128xf32> to vector<64x128xf32>
    %31 = arith.addf %29, %30 : vector<64x128xf32>
    %32 = arith.extf %21 : vector<64x128xbf16> to vector<64x128xf32>
    %33 = math.absf %31 : vector<64x128xf32>
    %cst_23 = arith.constant 0.000000e+00 : f32
    %34 = vector.broadcast %cst_23 : f32 to vector<64x128xf32>
    %35 = arith.subf %34, %33 : vector<64x128xf32>
    %36 = math.exp %35 : vector<64x128xf32>
    %cst_24 = arith.constant 0.000000e+00 : f32
    %37 = vector.broadcast %cst_24 : f32 to vector<64x128xf32>
    %38 = arith.cmpf oge, %31, %37 : vector<64x128xf32>
    %cst_25 = arith.constant 1.000000e+00 : f32
    %39 = vector.broadcast %cst_25 : f32 to vector<64x128xf32>
    %40 = arith.select %38, %39, %36 : vector<64x128xi1>, vector<64x128xf32>
    %cst_26 = arith.constant 1.000000e+00 : f32
    %41 = vector.broadcast %cst_26 : f32 to vector<64x128xf32>
    %42 = arith.addf %41, %36 : vector<64x128xf32>
    %43 = tpu.reciprocal %42 {approx = true} : vector<64x128xf32> -> vector<64x128xf32>
    %44 = arith.mulf %40, %43 : vector<64x128xf32>
    %45 = arith.mulf %26, %44 : vector<64x128xf32>
    %46 = arith.addf %32, %45 : vector<64x128xf32>
    %47 = arith.truncf %46 : vector<64x128xf32> to vector<64x128xbf16>
    %c0_27 = arith.constant 0 : index
    %c0_28 = arith.constant 0 : index
    %48 = vector.load %arg9[%c0_27, %c0_28] : memref<64x128xbf16, #tpu.memory_space<vmem>>, vector<64x128xbf16>
    tpu.vector_store %arg9[%c0_27, %c0_28], %47 {strides = array<i32>} : memref<64x128xbf16, #tpu.memory_space<vmem>>, vector<64x128xbf16>,
    return
  }
  func.func @transform_0(%arg0: i32) -> (i32, i32) {
    %c0_i32 = arith.constant 0 : i32
    %c0_i32_0 = arith.constant 0 : i32
    return %arg0, %c0_i32 : i32, i32
  }
  func.func @transform_1(%arg0: i32) -> (i32, i32) {
    %c0_i32 = arith.constant 0 : i32
    %c0_i32_0 = arith.constant 0 : i32
    %c0_i32_1 = arith.constant 0 : i32
    return %c0_i32, %c0_i32_0 : i32, i32
  }
  func.func @transform_2(%arg0: i32) -> (i32, i32) {
    %c0_i32 = arith.constant 0 : i32
    %c0_i32_0 = arith.constant 0 : i32
    %c0_i32_1 = arith.constant 0 : i32
    return %c0_i32, %c0_i32_0 : i32, i32
  }
  func.func @transform_3(%arg0: i32) -> (i32, i32) {
    %c0_i32 = arith.constant 0 : i32
    %c0_i32_0 = arith.constant 0 : i32
    %c0_i32_1 = arith.constant 0 : i32
    return %c0_i32, %c0_i32_0 : i32, i32
  }
  func.func @transform_4(%arg0: i32) -> (i32, i32) {
    %c0_i32 = arith.constant 0 : i32
    %c0_i32_0 = arith.constant 0 : i32
    %c0_i32_1 = arith.constant 0 : i32
    return %c0_i32, %c0_i32_0 : i32, i32
  }
  func.func @transform_5(%arg0: i32) -> (i32, i32) {
    %c0_i32 = arith.constant 0 : i32
    %c0_i32_0 = arith.constant 0 : i32
    %c0_i32_1 = arith.constant 0 : i32
    return %c0_i32, %c0_i32_0 : i32, i32
  }
  func.func @transform_6(%arg0: i32) -> (i32, i32) {
    %c0_i32 = arith.constant 0 : i32
    %c0_i32_0 = arith.constant 0 : i32
    %c0_i32_1 = arith.constant 0 : i32
    return %c0_i32, %c0_i32_0 : i32, i32
  }
  func.func @transform_7(%arg0: i32) -> (i32, i32) {
    %c0_i32 = arith.constant 0 : i32
    %c0_i32_0 = arith.constant 0 : i32
    return %arg0, %c0_i32 : i32, i32
  }
  func.func @transform_8(%arg0: i32) -> (i32, i32) {
    %c0_i32 = arith.constant 0 : i32
    %c0_i32_0 = arith.constant 0 : i32
    return %arg0, %c0_i32 : i32, i32
  }
}

module attributes {stable_mosaic.version = 11 : i64} {
  func.func @kernel(%arg0: i32, %arg1: memref<16x64xbf16, #tpu.memory_space<vmem>>, %arg2: memref<64x128xbf16, #tpu.memory_space<vmem>>, %arg3: memref<1x128xf32, #tpu.memory_space<vmem>>, %arg4: memref<16x128xbf16, #tpu.memory_space<vmem>>) attributes {dimension_semantics = [#tpu.dimension_semantics<parallel>], iteration_bounds = array<i64: 2>, scalar_prefetch = 0 : i64, scratch_operands = 0 : i64, tpu.core_type = #tpu.core_type<tc>, window_params = [{transform_indices = @transform_0, window_bounds = array<i64: 16, 64>}, {pipeline_mode = #tpu.pipeline_mode<synchronous>, transform_indices = @transform_1, window_bounds = array<i64: 64, 128>}, {pipeline_mode = #tpu.pipeline_mode<synchronous>, transform_indices = @transform_2, window_bounds = array<i64: 1, 128>}, {transform_indices = @transform_3, window_bounds = array<i64: 16, 128>}]} {
    %c0 = arith.constant 0 : index
    %c0_0 = arith.constant 0 : index
    %0 = vector.load %arg1[%c0, %c0_0] : memref<16x64xbf16, #tpu.memory_space<vmem>>, vector<16x64xbf16>
    %c0_1 = arith.constant 0 : index
    %c0_2 = arith.constant 0 : index
    %1 = vector.load %arg2[%c0_1, %c0_2] : memref<64x128xbf16, #tpu.memory_space<vmem>>, vector<64x128xbf16>
    %cst = arith.constant dense<0.000000e+00> : vector<16x128xf32>
    %2 = tpu.matmul %0, %1, %cst {dimension_numbers = #tpu.dot_dimension_numbers<[1], [0], [0], [1], [0, 0, 1, 1], [], []>} : vector<16x64xbf16>, vector<64x128xbf16>, vector<16x128xf32> -> vector<16x128xf32>
    %c0_3 = arith.constant 0 : index
    %c0_4 = arith.constant 0 : index
    %3 = vector.load %arg3[%c0_3, %c0_4] : memref<1x128xf32, #tpu.memory_space<vmem>>, vector<1x128xf32>
    %4 = vector.broadcast %3 : vector<1x128xf32> to vector<16x128xf32>
    %5 = arith.addf %2, %4 : vector<16x128xf32>
    %6 = arith.truncf %5 : vector<16x128xf32> to vector<16x128xbf16>
    %c0_5 = arith.constant 0 : index
    %c0_6 = arith.constant 0 : index
    %7 = vector.load %arg4[%c0_5, %c0_6] : memref<16x128xbf16, #tpu.memory_space<vmem>>, vector<16x128xbf16>
    tpu.vector_store %arg4[%c0_5, %c0_6], %6 {strides = array<i32>} : memref<16x128xbf16, #tpu.memory_space<vmem>>, vector<16x128xbf16>,
    return
  }
  func.func @transform_0(%arg0: i32) -> (i32, i32) {
    %c0_i32 = arith.constant 0 : i32
    %c0_i32_0 = arith.constant 0 : i32
    return %arg0, %c0_i32 : i32, i32
  }
  func.func @transform_1(%arg0: i32) -> (i32, i32) {
    %c0_i32 = arith.constant 0 : i32
    %c0_i32_0 = arith.constant 0 : i32
    %c0_i32_1 = arith.constant 0 : i32
    return %c0_i32, %c0_i32_0 : i32, i32
  }
  func.func @transform_2(%arg0: i32) -> (i32, i32) {
    %c0_i32 = arith.constant 0 : i32
    %c0_i32_0 = arith.constant 0 : i32
    %c0_i32_1 = arith.constant 0 : i32
    return %c0_i32, %c0_i32_0 : i32, i32
  }
  func.func @transform_3(%arg0: i32) -> (i32, i32) {
    %c0_i32 = arith.constant 0 : i32
    %c0_i32_0 = arith.constant 0 : i32
    return %arg0, %c0_i32 : i32, i32
  }
}

module attributes {stable_mosaic.version = 11 : i64} {
  func.func @kernel(%arg0: i32, %arg1: memref<16x64xbf16, #tpu.memory_space<vmem>>, %arg2: memref<64x128xbf16, #tpu.memory_space<vmem>>, %arg3: memref<64x128xbf16, #tpu.memory_space<vmem>>, %arg4: memref<16x16xbf16, #tpu.memory_space<vmem>>, %arg5: memref<16x128xbf16, #tpu.memory_space<vmem>>, %arg6: memref<16x128xbf16, #tpu.memory_space<vmem>>, %arg7: memref<1x128xf32, #tpu.memory_space<vmem>>, %arg8: memref<16x128xbf16, #tpu.memory_space<vmem>>) attributes {dimension_semantics = [#tpu.dimension_semantics<parallel>], iteration_bounds = array<i64: 2>, scalar_prefetch = 0 : i64, scratch_operands = 0 : i64, tpu.core_type = #tpu.core_type<tc>, window_params = [{transform_indices = @transform_0, window_bounds = array<i64: 16, 64>}, {pipeline_mode = #tpu.pipeline_mode<synchronous>, transform_indices = @transform_1, window_bounds = array<i64: 64, 128>}, {pipeline_mode = #tpu.pipeline_mode<synchronous>, transform_indices = @transform_2, window_bounds = array<i64: 64, 128>}, {transform_indices = @transform_3, window_bounds = array<i64: 16, 16>}, {pipeline_mode = #tpu.pipeline_mode<synchronous>, transform_indices = @transform_4, window_bounds = array<i64: 16, 128>}, {pipeline_mode = #tpu.pipeline_mode<synchronous>, transform_indices = @transform_5, window_bounds = array<i64: 16, 128>}, {pipeline_mode = #tpu.pipeline_mode<synchronous>, transform_indices = @transform_6, window_bounds = array<i64: 1, 128>}, {transform_indices = @transform_7, window_bounds = array<i64: 16, 128>}]} {
    %c0 = arith.constant 0 : index
    %c0_0 = arith.constant 0 : index
    %0 = vector.load %arg1[%c0, %c0_0] : memref<16x64xbf16, #tpu.memory_space<vmem>>, vector<16x64xbf16>
    %1 = math.absf %0 : vector<16x64xbf16>
    %cst = arith.constant 0.000000e+00 : bf16
    %2 = vector.broadcast %cst : bf16 to vector<16x64xbf16>
    %3 = arith.subf %2, %1 : vector<16x64xbf16>
    %4 = math.exp %3 : vector<16x64xbf16>
    %cst_1 = arith.constant 1.000000e+00 : bf16
    %5 = vector.broadcast %cst_1 : bf16 to vector<16x64xbf16>
    %6 = arith.subf %4, %5 : vector<16x64xbf16>
    %cst_2 = arith.constant 0.000000e+00 : bf16
    %7 = vector.broadcast %cst_2 : bf16 to vector<16x64xbf16>
    %8 = arith.cmpf ogt, %0, %7 : vector<16x64xbf16>
    %9 = arith.select %8, %0, %6 : vector<16x64xi1>, vector<16x64xbf16>
    %cst_3 = arith.constant 0.000000e+00 : bf16
    %10 = vector.broadcast %cst_3 : bf16 to vector<16x64xbf16>
    %11 = arith.cmpf ogt, %0, %10 : vector<16x64xbf16>
    %cst_4 = arith.constant 0.000000e+00 : bf16
    %12 = vector.broadcast %cst_4 : bf16 to vector<16x64xbf16>
    %13 = arith.subf %12, %0 : vector<16x64xbf16>
    %14 = arith.select %11, %6, %13 : vector<16x64xi1>, vector<16x64xbf16>
    %c0_5 = arith.constant 0 : index
    %c0_6 = arith.constant 0 : index
    %15 = vector.load %arg2[%c0_5, %c0_6] : memref<64x128xbf16, #tpu.memory_space<vmem>>, vector<64x128xbf16>
    %cst_7 = arith.constant dense<0.000000e+00> : vector<16x128xf32>
    %16 = tpu.matmul %9, %15, %cst_7 {dimension_numbers = #tpu.dot_dimension_numbers<[1], [0], [0], [1], [0, 0, 1, 1], [], []>} : vector<16x64xbf16>, vector<64x128xbf16>, vector<16x128xf32> -> vector<16x128xf32>
    %c0_8 = arith.constant 0 : index
    %c0_9 = arith.constant 0 : index
    %17 = vector.load %arg3[%c0_8, %c0_9] : memref<64x128xbf16, #tpu.memory_space<vmem>>, vector<64x128xbf16>
    %cst_10 = arith.constant dense<0.000000e+00> : vector<16x128xf32>
    %18 = tpu.matmul %14, %17, %cst_10 {dimension_numbers = #tpu.dot_dimension_numbers<[1], [0], [0], [1], [0, 0, 1, 1], [], []>} : vector<16x64xbf16>, vector<64x128xbf16>, vector<16x128xf32> -> vector<16x128xf32>
    %19 = arith.addf %16, %18 : vector<16x128xf32>
    %c0_11 = arith.constant 0 : index
    %c0_12 = arith.constant 0 : index
    %20 = vector.load %arg4[%c0_11, %c0_12] : memref<16x16xbf16, #tpu.memory_space<vmem>>, vector<16x16xbf16>
    %c0_13 = arith.constant 0 : index
    %c0_14 = arith.constant 0 : index
    %21 = vector.load %arg5[%c0_13, %c0_14] : memref<16x128xbf16, #tpu.memory_space<vmem>>, vector<16x128xbf16>
    %c0_15 = arith.constant 0 : index
    %c0_16 = arith.constant 0 : index
    %22 = vector.load %arg6[%c0_15, %c0_16] : memref<16x128xbf16, #tpu.memory_space<vmem>>, vector<16x128xbf16>
    %23 = math.absf %20 : vector<16x16xbf16>
    %cst_17 = arith.constant 0.000000e+00 : bf16
    %24 = vector.broadcast %cst_17 : bf16 to vector<16x16xbf16>
    %25 = arith.subf %24, %23 : vector<16x16xbf16>
    %26 = math.exp %25 : vector<16x16xbf16>
    %cst_18 = arith.constant 1.000000e+00 : bf16
    %27 = vector.broadcast %cst_18 : bf16 to vector<16x16xbf16>
    %28 = arith.subf %26, %27 : vector<16x16xbf16>
    %cst_19 = arith.constant 0.000000e+00 : bf16
    %29 = vector.broadcast %cst_19 : bf16 to vector<16x16xbf16>
    %30 = arith.cmpf ogt, %20, %29 : vector<16x16xbf16>
    %31 = arith.select %30, %20, %28 : vector<16x16xi1>, vector<16x16xbf16>
    %cst_20 = arith.constant 0.000000e+00 : bf16
    %32 = vector.broadcast %cst_20 : bf16 to vector<16x16xbf16>
    %33 = arith.cmpf ogt, %20, %32 : vector<16x16xbf16>
    %cst_21 = arith.constant 0.000000e+00 : bf16
    %34 = vector.broadcast %cst_21 : bf16 to vector<16x16xbf16>
    %35 = arith.subf %34, %20 : vector<16x16xbf16>
    %36 = arith.select %33, %28, %35 : vector<16x16xi1>, vector<16x16xbf16>
    %cst_22 = arith.constant dense<0.000000e+00> : vector<16x128xf32>
    %37 = tpu.matmul %31, %21, %cst_22 {dimension_numbers = #tpu.dot_dimension_numbers<[1], [0], [0], [1], [0, 0, 1, 1], [], []>} : vector<16x16xbf16>, vector<16x128xbf16>, vector<16x128xf32> -> vector<16x128xf32>
    %38 = arith.addf %19, %37 : vector<16x128xf32>
    %cst_23 = arith.constant dense<0.000000e+00> : vector<16x128xf32>
    %39 = tpu.matmul %36, %22, %cst_23 {dimension_numbers = #tpu.dot_dimension_numbers<[1], [0], [0], [1], [0, 0, 1, 1], [], []>} : vector<16x16xbf16>, vector<16x128xbf16>, vector<16x128xf32> -> vector<16x128xf32>
    %40 = arith.addf %38, %39 : vector<16x128xf32>
    %c0_24 = arith.constant 0 : index
    %c0_25 = arith.constant 0 : index
    %41 = vector.load %arg7[%c0_24, %c0_25] : memref<1x128xf32, #tpu.memory_space<vmem>>, vector<1x128xf32>
    %42 = vector.broadcast %41 : vector<1x128xf32> to vector<16x128xf32>
    %43 = arith.addf %40, %42 : vector<16x128xf32>
    %44 = arith.truncf %43 : vector<16x128xf32> to vector<16x128xbf16>
    %c0_26 = arith.constant 0 : index
    %c0_27 = arith.constant 0 : index
    %45 = vector.load %arg8[%c0_26, %c0_27] : memref<16x128xbf16, #tpu.memory_space<vmem>>, vector<16x128xbf16>
    tpu.vector_store %arg8[%c0_26, %c0_27], %44 {strides = array<i32>} : memref<16x128xbf16, #tpu.memory_space<vmem>>, vector<16x128xbf16>,
    return
  }
  func.func @transform_0(%arg0: i32) -> (i32, i32) {
    %c0_i32 = arith.constant 0 : i32
    %c0_i32_0 = arith.constant 0 : i32
    return %arg0, %c0_i32 : i32, i32
  }
  func.func @transform_1(%arg0: i32) -> (i32, i32) {
    %c0_i32 = arith.constant 0 : i32
    %c0_i32_0 = arith.constant 0 : i32
    %c0_i32_1 = arith.constant 0 : i32
    return %c0_i32, %c0_i32_0 : i32, i32
  }
  func.func @transform_2(%arg0: i32) -> (i32, i32) {
    %c0_i32 = arith.constant 0 : i32
    %c0_i32_0 = arith.constant 0 : i32
    %c0_i32_1 = arith.constant 0 : i32
    return %c0_i32, %c0_i32_0 : i32, i32
  }
  func.func @transform_3(%arg0: i32) -> (i32, i32) {
    %c0_i32 = arith.constant 0 : i32
    %c0_i32_0 = arith.constant 0 : i32
    return %arg0, %c0_i32 : i32, i32
  }
  func.func @transform_4(%arg0: i32) -> (i32, i32) {
    %c0_i32 = arith.constant 0 : i32
    %c0_i32_0 = arith.constant 0 : i32
    %c0_i32_1 = arith.constant 0 : i32
    return %c0_i32, %c0_i32_0 : i32, i32
  }
  func.func @transform_5(%arg0: i32) -> (i32, i32) {
    %c0_i32 = arith.constant 0 : i32
    %c0_i32_0 = arith.constant 0 : i32
    %c0_i32_1 = arith.constant 0 : i32
    return %c0_i32, %c0_i32_0 : i32, i32
  }
  func.func @transform_6(%arg0: i32) -> (i32, i32) {
    %c0_i32 = arith.constant 0 : i32
    %c0_i32_0 = arith.constant 0 : i32
    %c0_i32_1 = arith.constant 0 : i32
    return %c0_i32, %c0_i32_0 : i32, i32
  }
  func.func @transform_7(%arg0: i32) -> (i32, i32) {
    %c0_i32 = arith.constant 0 : i32
    %c0_i32_0 = arith.constant 0 : i32
    return %arg0, %c0_i32 : i32, i32
  }
}

module attributes {stable_mosaic.version = 11 : i64} {
  func.func @kernel(%arg0: i32, %arg1: memref<16x64xbf16, #tpu.memory_space<vmem>>, %arg2: memref<64x128xbf16, #tpu.memory_space<vmem>>, %arg3: memref<64x128xbf16, #tpu.memory_space<vmem>>, %arg4: memref<64x128xbf16, #tpu.memory_space<vmem>>, %arg5: memref<64x128xbf16, #tpu.memory_space<vmem>>, %arg6: memref<1x128xf32, #tpu.memory_space<vmem>>, %arg7: memref<1x128xf32, #tpu.memory_space<vmem>>, %arg8: memref<16x128xbf16, #tpu.memory_space<vmem>>, %arg9: memref<16x128xbf16, #tpu.memory_space<vmem>>) attributes {dimension_semantics = [#tpu.dimension_semantics<parallel>], iteration_bounds = array<i64: 2>, scalar_prefetch = 0 : i64, scratch_operands = 0 : i64, tpu.core_type = #tpu.core_type<tc>, window_params = [{transform_indices = @transform_0, window_bounds = array<i64: 16, 64>}, {pipeline_mode = #tpu.pipeline_mode<synchronous>, transform_indices = @transform_1, window_bounds = array<i64: 64, 128>}, {pipeline_mode = #tpu.pipeline_mode<synchronous>, transform_indices = @transform_2, window_bounds = array<i64: 64, 128>}, {pipeline_mode = #tpu.pipeline_mode<synchronous>, transform_indices = @transform_3, window_bounds = array<i64: 64, 128>}, {pipeline_mode = #tpu.pipeline_mode<synchronous>, transform_indices = @transform_4, window_bounds = array<i64: 64, 128>}, {pipeline_mode = #tpu.pipeline_mode<synchronous>, transform_indices = @transform_5, window_bounds = array<i64: 1, 128>}, {pipeline_mode = #tpu.pipeline_mode<synchronous>, transform_indices = @transform_6, window_bounds = array<i64: 1, 128>}, {transform_indices = @transform_7, window_bounds = array<i64: 16, 128>}, {transform_indices = @transform_8, window_bounds = array<i64: 16, 128>}]} {
    %c0 = arith.constant 0 : index
    %c0_0 = arith.constant 0 : index
    %0 = vector.load %arg1[%c0, %c0_0] : memref<16x64xbf16, #tpu.memory_space<vmem>>, vector<16x64xbf16>
    %1 = math.absf %0 : vector<16x64xbf16>
    %cst = arith.constant 0.000000e+00 : bf16
    %2 = vector.broadcast %cst : bf16 to vector<16x64xbf16>
    %3 = arith.subf %2, %1 : vector<16x64xbf16>
    %4 = math.exp %3 : vector<16x64xbf16>
    %cst_1 = arith.constant 1.000000e+00 : bf16
    %5 = vector.broadcast %cst_1 : bf16 to vector<16x64xbf16>
    %6 = arith.subf %4, %5 : vector<16x64xbf16>
    %cst_2 = arith.constant 0.000000e+00 : bf16
    %7 = vector.broadcast %cst_2 : bf16 to vector<16x64xbf16>
    %8 = arith.cmpf ogt, %0, %7 : vector<16x64xbf16>
    %9 = arith.select %8, %0, %6 : vector<16x64xi1>, vector<16x64xbf16>
    %cst_3 = arith.constant 0.000000e+00 : bf16
    %10 = vector.broadcast %cst_3 : bf16 to vector<16x64xbf16>
    %11 = arith.cmpf ogt, %0, %10 : vector<16x64xbf16>
    %cst_4 = arith.constant 0.000000e+00 : bf16
    %12 = vector.broadcast %cst_4 : bf16 to vector<16x64xbf16>
    %13 = arith.subf %12, %0 : vector<16x64xbf16>
    %14 = arith.select %11, %6, %13 : vector<16x64xi1>, vector<16x64xbf16>
    %c0_5 = arith.constant 0 : index
    %c0_6 = arith.constant 0 : index
    %15 = vector.load %arg2[%c0_5, %c0_6] : memref<64x128xbf16, #tpu.memory_space<vmem>>, vector<64x128xbf16>
    %c0_7 = arith.constant 0 : index
    %c0_8 = arith.constant 0 : index
    %16 = vector.load %arg3[%c0_7, %c0_8] : memref<64x128xbf16, #tpu.memory_space<vmem>>, vector<64x128xbf16>
    %c0_9 = arith.constant 0 : index
    %c0_10 = arith.constant 0 : index
    %17 = vector.load %arg4[%c0_9, %c0_10] : memref<64x128xbf16, #tpu.memory_space<vmem>>, vector<64x128xbf16>
    %c0_11 = arith.constant 0 : index
    %c0_12 = arith.constant 0 : index
    %18 = vector.load %arg5[%c0_11, %c0_12] : memref<64x128xbf16, #tpu.memory_space<vmem>>, vector<64x128xbf16>
    %c0_13 = arith.constant 0 : index
    %c0_14 = arith.constant 0 : index
    %19 = vector.load %arg6[%c0_13, %c0_14] : memref<1x128xf32, #tpu.memory_space<vmem>>, vector<1x128xf32>
    %c0_15 = arith.constant 0 : index
    %c0_16 = arith.constant 0 : index
    %20 = vector.load %arg7[%c0_15, %c0_16] : memref<1x128xf32, #tpu.memory_space<vmem>>, vector<1x128xf32>
    %c0_17 = arith.constant 0 : index
    %c0_18 = arith.constant 0 : index
    %21 = vector.load %arg8[%c0_17, %c0_18] : memref<16x128xbf16, #tpu.memory_space<vmem>>, vector<16x128xbf16>
    %cst_19 = arith.constant dense<0.000000e+00> : vector<16x128xf32>
    %22 = tpu.matmul %9, %15, %cst_19 {dimension_numbers = #tpu.dot_dimension_numbers<[1], [0], [0], [1], [0, 0, 1, 1], [], []>} : vector<16x64xbf16>, vector<64x128xbf16>, vector<16x128xf32> -> vector<16x128xf32>
    %cst_20 = arith.constant dense<0.000000e+00> : vector<16x128xf32>
    %23 = tpu.matmul %14, %16, %cst_20 {dimension_numbers = #tpu.dot_dimension_numbers<[1], [0], [0], [1], [0, 0, 1, 1], [], []>} : vector<16x64xbf16>, vector<64x128xbf16>, vector<16x128xf32> -> vector<16x128xf32>
    %24 = arith.addf %22, %23 : vector<16x128xf32>
    %25 = vector.broadcast %19 : vector<1x128xf32> to vector<16x128xf32>
    %26 = arith.addf %24, %25 : vector<16x128xf32>
    %cst_21 = arith.constant dense<0.000000e+00> : vector<16x128xf32>
    %27 = tpu.matmul %9, %17, %cst_21 {dimension_numbers = #tpu.dot_dimension_numbers<[1], [0], [0], [1], [0, 0, 1, 1], [], []>} : vector<16x64xbf16>, vector<64x128xbf16>, vector<16x128xf32> -> vector<16x128xf32>
    %cst_22 = arith.constant dense<0.000000e+00> : vector<16x128xf32>
    %28 = tpu.matmul %14, %18, %cst_22 {dimension_numbers = #tpu.dot_dimension_numbers<[1], [0], [0], [1], [0, 0, 1, 1], [], []>} : vector<16x64xbf16>, vector<64x128xbf16>, vector<16x128xf32> -> vector<16x128xf32>
    %29 = arith.addf %27, %28 : vector<16x128xf32>
    %30 = vector.broadcast %20 : vector<1x128xf32> to vector<16x128xf32>
    %31 = arith.addf %29, %30 : vector<16x128xf32>
    %32 = arith.extf %21 : vector<16x128xbf16> to vector<16x128xf32>
    %33 = math.absf %31 : vector<16x128xf32>
    %cst_23 = arith.constant 0.000000e+00 : f32
    %34 = vector.broadcast %cst_23 : f32 to vector<16x128xf32>
    %35 = arith.subf %34, %33 : vector<16x128xf32>
    %36 = math.exp %35 : vector<16x128xf32>
    %cst_24 = arith.constant 0.000000e+00 : f32
    %37 = vector.broadcast %cst_24 : f32 to vector<16x128xf32>
    %38 = arith.cmpf oge, %31, %37 : vector<16x128xf32>
    %cst_25 = arith.constant 1.000000e+00 : f32
    %39 = vector.broadcast %cst_25 : f32 to vector<16x128xf32>
    %40 = arith.select %38, %39, %36 : vector<16x128xi1>, vector<16x128xf32>
    %cst_26 = arith.constant 1.000000e+00 : f32
    %41 = vector.broadcast %cst_26 : f32 to vector<16x128xf32>
    %42 = arith.addf %41, %36 : vector<16x128xf32>
    %43 = tpu.reciprocal %42 {approx = true} : vector<16x128xf32> -> vector<16x128xf32>
    %44 = arith.mulf %40, %43 : vector<16x128xf32>
    %45 = arith.mulf %26, %44 : vector<16x128xf32>
    %46 = arith.addf %32, %45 : vector<16x128xf32>
    %47 = arith.truncf %46 : vector<16x128xf32> to vector<16x128xbf16>
    %c0_27 = arith.constant 0 : index
    %c0_28 = arith.constant 0 : index
    %48 = vector.load %arg9[%c0_27, %c0_28] : memref<16x128xbf16, #tpu.memory_space<vmem>>, vector<16x128xbf16>
    tpu.vector_store %arg9[%c0_27, %c0_28], %47 {strides = array<i32>} : memref<16x128xbf16, #tpu.memory_space<vmem>>, vector<16x128xbf16>,
    return
  }
  func.func @transform_0(%arg0: i32) -> (i32, i32) {
    %c0_i32 = arith.constant 0 : i32
    %c0_i32_0 = arith.constant 0 : i32
    return %arg0, %c0_i32 : i32, i32
  }
  func.func @transform_1(%arg0: i32) -> (i32, i32) {
    %c0_i32 = arith.constant 0 : i32
    %c0_i32_0 = arith.constant 0 : i32
    %c0_i32_1 = arith.constant 0 : i32
    return %c0_i32, %c0_i32_0 : i32, i32
  }
  func.func @transform_2(%arg0: i32) -> (i32, i32) {
    %c0_i32 = arith.constant 0 : i32
    %c0_i32_0 = arith.constant 0 : i32
    %c0_i32_1 = arith.constant 0 : i32
    return %c0_i32, %c0_i32_0 : i32, i32
  }
  func.func @transform_3(%arg0: i32) -> (i32, i32) {
    %c0_i32 = arith.constant 0 : i32
    %c0_i32_0 = arith.constant 0 : i32
    %c0_i32_1 = arith.constant 0 : i32
    return %c0_i32, %c0_i32_0 : i32, i32
  }
  func.func @transform_4(%arg0: i32) -> (i32, i32) {
    %c0_i32 = arith.constant 0 : i32
    %c0_i32_0 = arith.constant 0 : i32
    %c0_i32_1 = arith.constant 0 : i32
    return %c0_i32, %c0_i32_0 : i32, i32
  }
  func.func @transform_5(%arg0: i32) -> (i32, i32) {
    %c0_i32 = arith.constant 0 : i32
    %c0_i32_0 = arith.constant 0 : i32
    %c0_i32_1 = arith.constant 0 : i32
    return %c0_i32, %c0_i32_0 : i32, i32
  }
  func.func @transform_6(%arg0: i32) -> (i32, i32) {
    %c0_i32 = arith.constant 0 : i32
    %c0_i32_0 = arith.constant 0 : i32
    %c0_i32_1 = arith.constant 0 : i32
    return %c0_i32, %c0_i32_0 : i32, i32
  }
  func.func @transform_7(%arg0: i32) -> (i32, i32) {
    %c0_i32 = arith.constant 0 : i32
    %c0_i32_0 = arith.constant 0 : i32
    return %arg0, %c0_i32 : i32, i32
  }
  func.func @transform_8(%arg0: i32) -> (i32, i32) {
    %c0_i32 = arith.constant 0 : i32
    %c0_i32_0 = arith.constant 0 : i32
    return %arg0, %c0_i32 : i32, i32
  }
}

module attributes {stable_mosaic.version = 11 : i64} {
  func.func @kernel(%arg0: i32, %arg1: memref<8x64xbf16, #tpu.memory_space<vmem>>, %arg2: memref<64x128xbf16, #tpu.memory_space<vmem>>, %arg3: memref<1x128xf32, #tpu.memory_space<vmem>>, %arg4: memref<8x128xbf16, #tpu.memory_space<vmem>>) attributes {dimension_semantics = [#tpu.dimension_semantics<parallel>], iteration_bounds = array<i64: 1>, scalar_prefetch = 0 : i64, scratch_operands = 0 : i64, tpu.core_type = #tpu.core_type<tc>, window_params = [{transform_indices = @transform_0, window_bounds = array<i64: 8, 64>}, {pipeline_mode = #tpu.pipeline_mode<synchronous>, transform_indices = @transform_1, window_bounds = array<i64: 64, 128>}, {pipeline_mode = #tpu.pipeline_mode<synchronous>, transform_indices = @transform_2, window_bounds = array<i64: 1, 128>}, {transform_indices = @transform_3, window_bounds = array<i64: 8, 128>}]} {
    %c0 = arith.constant 0 : index
    %c0_0 = arith.constant 0 : index
    %0 = vector.load %arg1[%c0, %c0_0] : memref<8x64xbf16, #tpu.memory_space<vmem>>, vector<8x64xbf16>
    %c0_1 = arith.constant 0 : index
    %c0_2 = arith.constant 0 : index
    %1 = vector.load %arg2[%c0_1, %c0_2] : memref<64x128xbf16, #tpu.memory_space<vmem>>, vector<64x128xbf16>
    %cst = arith.constant dense<0.000000e+00> : vector<8x128xf32>
    %2 = tpu.matmul %0, %1, %cst {dimension_numbers = #tpu.dot_dimension_numbers<[1], [0], [0], [1], [0, 0, 1, 1], [], []>} : vector<8x64xbf16>, vector<64x128xbf16>, vector<8x128xf32> -> vector<8x128xf32>
    %c0_3 = arith.constant 0 : index
    %c0_4 = arith.constant 0 : index
    %3 = vector.load %arg3[%c0_3, %c0_4] : memref<1x128xf32, #tpu.memory_space<vmem>>, vector<1x128xf32>
    %4 = vector.broadcast %3 : vector<1x128xf32> to vector<8x128xf32>
    %5 = arith.addf %2, %4 : vector<8x128xf32>
    %6 = arith.truncf %5 : vector<8x128xf32> to vector<8x128xbf16>
    %c0_5 = arith.constant 0 : index
    %c0_6 = arith.constant 0 : index
    %7 = vector.load %arg4[%c0_5, %c0_6] : memref<8x128xbf16, #tpu.memory_space<vmem>>, vector<8x128xbf16>
    tpu.vector_store %arg4[%c0_5, %c0_6], %6 {strides = array<i32>} : memref<8x128xbf16, #tpu.memory_space<vmem>>, vector<8x128xbf16>,
    return
  }
  func.func @transform_0(%arg0: i32) -> (i32, i32) {
    %c0_i32 = arith.constant 0 : i32
    %c0_i32_0 = arith.constant 0 : i32
    return %arg0, %c0_i32 : i32, i32
  }
  func.func @transform_1(%arg0: i32) -> (i32, i32) {
    %c0_i32 = arith.constant 0 : i32
    %c0_i32_0 = arith.constant 0 : i32
    %c0_i32_1 = arith.constant 0 : i32
    return %c0_i32, %c0_i32_0 : i32, i32
  }
  func.func @transform_2(%arg0: i32) -> (i32, i32) {
    %c0_i32 = arith.constant 0 : i32
    %c0_i32_0 = arith.constant 0 : i32
    %c0_i32_1 = arith.constant 0 : i32
    return %c0_i32, %c0_i32_0 : i32, i32
  }
  func.func @transform_3(%arg0: i32) -> (i32, i32) {
    %c0_i32 = arith.constant 0 : i32
    %c0_i32_0 = arith.constant 0 : i32
    return %arg0, %c0_i32 : i32, i32
  }
}

module attributes {stable_mosaic.version = 11 : i64} {
  func.func @kernel(%arg0: i32, %arg1: memref<8x64xbf16, #tpu.memory_space<vmem>>, %arg2: memref<64x128xbf16, #tpu.memory_space<vmem>>, %arg3: memref<64x128xbf16, #tpu.memory_space<vmem>>, %arg4: memref<64x128xbf16, #tpu.memory_space<vmem>>, %arg5: memref<64x128xbf16, #tpu.memory_space<vmem>>, %arg6: memref<1x128xf32, #tpu.memory_space<vmem>>, %arg7: memref<1x128xf32, #tpu.memory_space<vmem>>, %arg8: memref<8x128xbf16, #tpu.memory_space<vmem>>, %arg9: memref<8x128xbf16, #tpu.memory_space<vmem>>) attributes {dimension_semantics = [#tpu.dimension_semantics<parallel>], iteration_bounds = array<i64: 1>, scalar_prefetch = 0 : i64, scratch_operands = 0 : i64, tpu.core_type = #tpu.core_type<tc>, window_params = [{transform_indices = @transform_0, window_bounds = array<i64: 8, 64>}, {pipeline_mode = #tpu.pipeline_mode<synchronous>, transform_indices = @transform_1, window_bounds = array<i64: 64, 128>}, {pipeline_mode = #tpu.pipeline_mode<synchronous>, transform_indices = @transform_2, window_bounds = array<i64: 64, 128>}, {pipeline_mode = #tpu.pipeline_mode<synchronous>, transform_indices = @transform_3, window_bounds = array<i64: 64, 128>}, {pipeline_mode = #tpu.pipeline_mode<synchronous>, transform_indices = @transform_4, window_bounds = array<i64: 64, 128>}, {pipeline_mode = #tpu.pipeline_mode<synchronous>, transform_indices = @transform_5, window_bounds = array<i64: 1, 128>}, {pipeline_mode = #tpu.pipeline_mode<synchronous>, transform_indices = @transform_6, window_bounds = array<i64: 1, 128>}, {transform_indices = @transform_7, window_bounds = array<i64: 8, 128>}, {transform_indices = @transform_8, window_bounds = array<i64: 8, 128>}]} {
    %c0 = arith.constant 0 : index
    %c0_0 = arith.constant 0 : index
    %0 = vector.load %arg1[%c0, %c0_0] : memref<8x64xbf16, #tpu.memory_space<vmem>>, vector<8x64xbf16>
    %1 = math.absf %0 : vector<8x64xbf16>
    %cst = arith.constant 0.000000e+00 : bf16
    %2 = vector.broadcast %cst : bf16 to vector<8x64xbf16>
    %3 = arith.subf %2, %1 : vector<8x64xbf16>
    %4 = math.exp %3 : vector<8x64xbf16>
    %cst_1 = arith.constant 1.000000e+00 : bf16
    %5 = vector.broadcast %cst_1 : bf16 to vector<8x64xbf16>
    %6 = arith.subf %4, %5 : vector<8x64xbf16>
    %cst_2 = arith.constant 0.000000e+00 : bf16
    %7 = vector.broadcast %cst_2 : bf16 to vector<8x64xbf16>
    %8 = arith.cmpf ogt, %0, %7 : vector<8x64xbf16>
    %9 = arith.select %8, %0, %6 : vector<8x64xi1>, vector<8x64xbf16>
    %cst_3 = arith.constant 0.000000e+00 : bf16
    %10 = vector.broadcast %cst_3 : bf16 to vector<8x64xbf16>
    %11 = arith.cmpf ogt, %0, %10 : vector<8x64xbf16>
    %cst_4 = arith.constant 0.000000e+00 : bf16
    %12 = vector.broadcast %cst_4 : bf16 to vector<8x64xbf16>
    %13 = arith.subf %12, %0 : vector<8x64xbf16>
    %14 = arith.select %11, %6, %13 : vector<8x64xi1>, vector<8x64xbf16>
    %c0_5 = arith.constant 0 : index
    %c0_6 = arith.constant 0 : index
    %15 = vector.load %arg2[%c0_5, %c0_6] : memref<64x128xbf16, #tpu.memory_space<vmem>>, vector<64x128xbf16>
    %c0_7 = arith.constant 0 : index
    %c0_8 = arith.constant 0 : index
    %16 = vector.load %arg3[%c0_7, %c0_8] : memref<64x128xbf16, #tpu.memory_space<vmem>>, vector<64x128xbf16>
    %c0_9 = arith.constant 0 : index
    %c0_10 = arith.constant 0 : index
    %17 = vector.load %arg4[%c0_9, %c0_10] : memref<64x128xbf16, #tpu.memory_space<vmem>>, vector<64x128xbf16>
    %c0_11 = arith.constant 0 : index
    %c0_12 = arith.constant 0 : index
    %18 = vector.load %arg5[%c0_11, %c0_12] : memref<64x128xbf16, #tpu.memory_space<vmem>>, vector<64x128xbf16>
    %c0_13 = arith.constant 0 : index
    %c0_14 = arith.constant 0 : index
    %19 = vector.load %arg6[%c0_13, %c0_14] : memref<1x128xf32, #tpu.memory_space<vmem>>, vector<1x128xf32>
    %c0_15 = arith.constant 0 : index
    %c0_16 = arith.constant 0 : index
    %20 = vector.load %arg7[%c0_15, %c0_16] : memref<1x128xf32, #tpu.memory_space<vmem>>, vector<1x128xf32>
    %c0_17 = arith.constant 0 : index
    %c0_18 = arith.constant 0 : index
    %21 = vector.load %arg8[%c0_17, %c0_18] : memref<8x128xbf16, #tpu.memory_space<vmem>>, vector<8x128xbf16>
    %cst_19 = arith.constant dense<0.000000e+00> : vector<8x128xf32>
    %22 = tpu.matmul %9, %15, %cst_19 {dimension_numbers = #tpu.dot_dimension_numbers<[1], [0], [0], [1], [0, 0, 1, 1], [], []>} : vector<8x64xbf16>, vector<64x128xbf16>, vector<8x128xf32> -> vector<8x128xf32>
    %cst_20 = arith.constant dense<0.000000e+00> : vector<8x128xf32>
    %23 = tpu.matmul %14, %16, %cst_20 {dimension_numbers = #tpu.dot_dimension_numbers<[1], [0], [0], [1], [0, 0, 1, 1], [], []>} : vector<8x64xbf16>, vector<64x128xbf16>, vector<8x128xf32> -> vector<8x128xf32>
    %24 = arith.addf %22, %23 : vector<8x128xf32>
    %25 = vector.broadcast %19 : vector<1x128xf32> to vector<8x128xf32>
    %26 = arith.addf %24, %25 : vector<8x128xf32>
    %cst_21 = arith.constant dense<0.000000e+00> : vector<8x128xf32>
    %27 = tpu.matmul %9, %17, %cst_21 {dimension_numbers = #tpu.dot_dimension_numbers<[1], [0], [0], [1], [0, 0, 1, 1], [], []>} : vector<8x64xbf16>, vector<64x128xbf16>, vector<8x128xf32> -> vector<8x128xf32>
    %cst_22 = arith.constant dense<0.000000e+00> : vector<8x128xf32>
    %28 = tpu.matmul %14, %18, %cst_22 {dimension_numbers = #tpu.dot_dimension_numbers<[1], [0], [0], [1], [0, 0, 1, 1], [], []>} : vector<8x64xbf16>, vector<64x128xbf16>, vector<8x128xf32> -> vector<8x128xf32>
    %29 = arith.addf %27, %28 : vector<8x128xf32>
    %30 = vector.broadcast %20 : vector<1x128xf32> to vector<8x128xf32>
    %31 = arith.addf %29, %30 : vector<8x128xf32>
    %32 = arith.extf %21 : vector<8x128xbf16> to vector<8x128xf32>
    %33 = math.absf %31 : vector<8x128xf32>
    %cst_23 = arith.constant 0.000000e+00 : f32
    %34 = vector.broadcast %cst_23 : f32 to vector<8x128xf32>
    %35 = arith.subf %34, %33 : vector<8x128xf32>
    %36 = math.exp %35 : vector<8x128xf32>
    %cst_24 = arith.constant 0.000000e+00 : f32
    %37 = vector.broadcast %cst_24 : f32 to vector<8x128xf32>
    %38 = arith.cmpf oge, %31, %37 : vector<8x128xf32>
    %cst_25 = arith.constant 1.000000e+00 : f32
    %39 = vector.broadcast %cst_25 : f32 to vector<8x128xf32>
    %40 = arith.select %38, %39, %36 : vector<8x128xi1>, vector<8x128xf32>
    %cst_26 = arith.constant 1.000000e+00 : f32
    %41 = vector.broadcast %cst_26 : f32 to vector<8x128xf32>
    %42 = arith.addf %41, %36 : vector<8x128xf32>
    %43 = tpu.reciprocal %42 {approx = true} : vector<8x128xf32> -> vector<8x128xf32>
    %44 = arith.mulf %40, %43 : vector<8x128xf32>
    %45 = arith.mulf %26, %44 : vector<8x128xf32>
    %46 = arith.addf %32, %45 : vector<8x128xf32>
    %47 = arith.truncf %46 : vector<8x128xf32> to vector<8x128xbf16>
    %c0_27 = arith.constant 0 : index
    %c0_28 = arith.constant 0 : index
    %48 = vector.load %arg9[%c0_27, %c0_28] : memref<8x128xbf16, #tpu.memory_space<vmem>>, vector<8x128xbf16>
    tpu.vector_store %arg9[%c0_27, %c0_28], %47 {strides = array<i32>} : memref<8x128xbf16, #tpu.memory_space<vmem>>, vector<8x128xbf16>,
    return
  }
  func.func @transform_0(%arg0: i32) -> (i32, i32) {
    %c0_i32 = arith.constant 0 : i32
    %c0_i32_0 = arith.constant 0 : i32
    return %arg0, %c0_i32 : i32, i32
  }
  func.func @transform_1(%arg0: i32) -> (i32, i32) {
    %c0_i32 = arith.constant 0 : i32
    %c0_i32_0 = arith.constant 0 : i32
    %c0_i32_1 = arith.constant 0 : i32
    return %c0_i32, %c0_i32_0 : i32, i32
  }
  func.func @transform_2(%arg0: i32) -> (i32, i32) {
    %c0_i32 = arith.constant 0 : i32
    %c0_i32_0 = arith.constant 0 : i32
    %c0_i32_1 = arith.constant 0 : i32
    return %c0_i32, %c0_i32_0 : i32, i32
  }
  func.func @transform_3(%arg0: i32) -> (i32, i32) {
    %c0_i32 = arith.constant 0 : i32
    %c0_i32_0 = arith.constant 0 : i32
    %c0_i32_1 = arith.constant 0 : i32
    return %c0_i32, %c0_i32_0 : i32, i32
  }
  func.func @transform_4(%arg0: i32) -> (i32, i32) {
    %c0_i32 = arith.constant 0 : i32
    %c0_i32_0 = arith.constant 0 : i32
    %c0_i32_1 = arith.constant 0 : i32
    return %c0_i32, %c0_i32_0 : i32, i32
  }
  func.func @transform_5(%arg0: i32) -> (i32, i32) {
    %c0_i32 = arith.constant 0 : i32
    %c0_i32_0 = arith.constant 0 : i32
    %c0_i32_1 = arith.constant 0 : i32
    return %c0_i32, %c0_i32_0 : i32, i32
  }
  func.func @transform_6(%arg0: i32) -> (i32, i32) {
    %c0_i32 = arith.constant 0 : i32
    %c0_i32_0 = arith.constant 0 : i32
    %c0_i32_1 = arith.constant 0 : i32
    return %c0_i32, %c0_i32_0 : i32, i32
  }
  func.func @transform_7(%arg0: i32) -> (i32, i32) {
    %c0_i32 = arith.constant 0 : i32
    %c0_i32_0 = arith.constant 0 : i32
    return %arg0, %c0_i32 : i32, i32
  }
  func.func @transform_8(%arg0: i32) -> (i32, i32) {
    %c0_i32 = arith.constant 0 : i32
    %c0_i32_0 = arith.constant 0 : i32
    return %arg0, %c0_i32 : i32, i32
  }
}

module attributes {stable_mosaic.version = 11 : i64} {
  func.func @kernel(%arg0: i32, %arg1: memref<8x64xbf16, #tpu.memory_space<vmem>>, %arg2: memref<64x128xbf16, #tpu.memory_space<vmem>>, %arg3: memref<64x128xbf16, #tpu.memory_space<vmem>>, %arg4: memref<8x16xbf16, #tpu.memory_space<vmem>>, %arg5: memref<16x128xbf16, #tpu.memory_space<vmem>>, %arg6: memref<16x128xbf16, #tpu.memory_space<vmem>>, %arg7: memref<1x128xf32, #tpu.memory_space<vmem>>, %arg8: memref<8x128xbf16, #tpu.memory_space<vmem>>) attributes {dimension_semantics = [#tpu.dimension_semantics<parallel>], iteration_bounds = array<i64: 1>, scalar_prefetch = 0 : i64, scratch_operands = 0 : i64, tpu.core_type = #tpu.core_type<tc>, window_params = [{transform_indices = @transform_0, window_bounds = array<i64: 8, 64>}, {pipeline_mode = #tpu.pipeline_mode<synchronous>, transform_indices = @transform_1, window_bounds = array<i64: 64, 128>}, {pipeline_mode = #tpu.pipeline_mode<synchronous>, transform_indices = @transform_2, window_bounds = array<i64: 64, 128>}, {transform_indices = @transform_3, window_bounds = array<i64: 8, 16>}, {pipeline_mode = #tpu.pipeline_mode<synchronous>, transform_indices = @transform_4, window_bounds = array<i64: 16, 128>}, {pipeline_mode = #tpu.pipeline_mode<synchronous>, transform_indices = @transform_5, window_bounds = array<i64: 16, 128>}, {pipeline_mode = #tpu.pipeline_mode<synchronous>, transform_indices = @transform_6, window_bounds = array<i64: 1, 128>}, {transform_indices = @transform_7, window_bounds = array<i64: 8, 128>}]} {
    %c0 = arith.constant 0 : index
    %c0_0 = arith.constant 0 : index
    %0 = vector.load %arg1[%c0, %c0_0] : memref<8x64xbf16, #tpu.memory_space<vmem>>, vector<8x64xbf16>
    %1 = math.absf %0 : vector<8x64xbf16>
    %cst = arith.constant 0.000000e+00 : bf16
    %2 = vector.broadcast %cst : bf16 to vector<8x64xbf16>
    %3 = arith.subf %2, %1 : vector<8x64xbf16>
    %4 = math.exp %3 : vector<8x64xbf16>
    %cst_1 = arith.constant 1.000000e+00 : bf16
    %5 = vector.broadcast %cst_1 : bf16 to vector<8x64xbf16>
    %6 = arith.subf %4, %5 : vector<8x64xbf16>
    %cst_2 = arith.constant 0.000000e+00 : bf16
    %7 = vector.broadcast %cst_2 : bf16 to vector<8x64xbf16>
    %8 = arith.cmpf ogt, %0, %7 : vector<8x64xbf16>
    %9 = arith.select %8, %0, %6 : vector<8x64xi1>, vector<8x64xbf16>
    %cst_3 = arith.constant 0.000000e+00 : bf16
    %10 = vector.broadcast %cst_3 : bf16 to vector<8x64xbf16>
    %11 = arith.cmpf ogt, %0, %10 : vector<8x64xbf16>
    %cst_4 = arith.constant 0.000000e+00 : bf16
    %12 = vector.broadcast %cst_4 : bf16 to vector<8x64xbf16>
    %13 = arith.subf %12, %0 : vector<8x64xbf16>
    %14 = arith.select %11, %6, %13 : vector<8x64xi1>, vector<8x64xbf16>
    %c0_5 = arith.constant 0 : index
    %c0_6 = arith.constant 0 : index
    %15 = vector.load %arg2[%c0_5, %c0_6] : memref<64x128xbf16, #tpu.memory_space<vmem>>, vector<64x128xbf16>
    %cst_7 = arith.constant dense<0.000000e+00> : vector<8x128xf32>
    %16 = tpu.matmul %9, %15, %cst_7 {dimension_numbers = #tpu.dot_dimension_numbers<[1], [0], [0], [1], [0, 0, 1, 1], [], []>} : vector<8x64xbf16>, vector<64x128xbf16>, vector<8x128xf32> -> vector<8x128xf32>
    %c0_8 = arith.constant 0 : index
    %c0_9 = arith.constant 0 : index
    %17 = vector.load %arg3[%c0_8, %c0_9] : memref<64x128xbf16, #tpu.memory_space<vmem>>, vector<64x128xbf16>
    %cst_10 = arith.constant dense<0.000000e+00> : vector<8x128xf32>
    %18 = tpu.matmul %14, %17, %cst_10 {dimension_numbers = #tpu.dot_dimension_numbers<[1], [0], [0], [1], [0, 0, 1, 1], [], []>} : vector<8x64xbf16>, vector<64x128xbf16>, vector<8x128xf32> -> vector<8x128xf32>
    %19 = arith.addf %16, %18 : vector<8x128xf32>
    %c0_11 = arith.constant 0 : index
    %c0_12 = arith.constant 0 : index
    %20 = vector.load %arg4[%c0_11, %c0_12] : memref<8x16xbf16, #tpu.memory_space<vmem>>, vector<8x16xbf16>
    %c0_13 = arith.constant 0 : index
    %c0_14 = arith.constant 0 : index
    %21 = vector.load %arg5[%c0_13, %c0_14] : memref<16x128xbf16, #tpu.memory_space<vmem>>, vector<16x128xbf16>
    %c0_15 = arith.constant 0 : index
    %c0_16 = arith.constant 0 : index
    %22 = vector.load %arg6[%c0_15, %c0_16] : memref<16x128xbf16, #tpu.memory_space<vmem>>, vector<16x128xbf16>
    %23 = math.absf %20 : vector<8x16xbf16>
    %cst_17 = arith.constant 0.000000e+00 : bf16
    %24 = vector.broadcast %cst_17 : bf16 to vector<8x16xbf16>
    %25 = arith.subf %24, %23 : vector<8x16xbf16>
    %26 = math.exp %25 : vector<8x16xbf16>
    %cst_18 = arith.constant 1.000000e+00 : bf16
    %27 = vector.broadcast %cst_18 : bf16 to vector<8x16xbf16>
    %28 = arith.subf %26, %27 : vector<8x16xbf16>
    %cst_19 = arith.constant 0.000000e+00 : bf16
    %29 = vector.broadcast %cst_19 : bf16 to vector<8x16xbf16>
    %30 = arith.cmpf ogt, %20, %29 : vector<8x16xbf16>
    %31 = arith.select %30, %20, %28 : vector<8x16xi1>, vector<8x16xbf16>
    %cst_20 = arith.constant 0.000000e+00 : bf16
    %32 = vector.broadcast %cst_20 : bf16 to vector<8x16xbf16>
    %33 = arith.cmpf ogt, %20, %32 : vector<8x16xbf16>
    %cst_21 = arith.constant 0.000000e+00 : bf16
    %34 = vector.broadcast %cst_21 : bf16 to vector<8x16xbf16>
    %35 = arith.subf %34, %20 : vector<8x16xbf16>
    %36 = arith.select %33, %28, %35 : vector<8x16xi1>, vector<8x16xbf16>
    %cst_22 = arith.constant dense<0.000000e+00> : vector<8x128xf32>
    %37 = tpu.matmul %31, %21, %cst_22 {dimension_numbers = #tpu.dot_dimension_numbers<[1], [0], [0], [1], [0, 0, 1, 1], [], []>} : vector<8x16xbf16>, vector<16x128xbf16>, vector<8x128xf32> -> vector<8x128xf32>
    %38 = arith.addf %19, %37 : vector<8x128xf32>
    %cst_23 = arith.constant dense<0.000000e+00> : vector<8x128xf32>
    %39 = tpu.matmul %36, %22, %cst_23 {dimension_numbers = #tpu.dot_dimension_numbers<[1], [0], [0], [1], [0, 0, 1, 1], [], []>} : vector<8x16xbf16>, vector<16x128xbf16>, vector<8x128xf32> -> vector<8x128xf32>
    %40 = arith.addf %38, %39 : vector<8x128xf32>
    %c0_24 = arith.constant 0 : index
    %c0_25 = arith.constant 0 : index
    %41 = vector.load %arg7[%c0_24, %c0_25] : memref<1x128xf32, #tpu.memory_space<vmem>>, vector<1x128xf32>
    %42 = vector.broadcast %41 : vector<1x128xf32> to vector<8x128xf32>
    %43 = arith.addf %40, %42 : vector<8x128xf32>
    %44 = arith.truncf %43 : vector<8x128xf32> to vector<8x128xbf16>
    %c0_26 = arith.constant 0 : index
    %c0_27 = arith.constant 0 : index
    %45 = vector.load %arg8[%c0_26, %c0_27] : memref<8x128xbf16, #tpu.memory_space<vmem>>, vector<8x128xbf16>
    tpu.vector_store %arg8[%c0_26, %c0_27], %44 {strides = array<i32>} : memref<8x128xbf16, #tpu.memory_space<vmem>>, vector<8x128xbf16>,
    return
  }
  func.func @transform_0(%arg0: i32) -> (i32, i32) {
    %c0_i32 = arith.constant 0 : i32
    %c0_i32_0 = arith.constant 0 : i32
    return %arg0, %c0_i32 : i32, i32
  }
  func.func @transform_1(%arg0: i32) -> (i32, i32) {
    %c0_i32 = arith.constant 0 : i32
    %c0_i32_0 = arith.constant 0 : i32
    %c0_i32_1 = arith.constant 0 : i32
    return %c0_i32, %c0_i32_0 : i32, i32
  }
  func.func @transform_2(%arg0: i32) -> (i32, i32) {
    %c0_i32 = arith.constant 0 : i32
    %c0_i32_0 = arith.constant 0 : i32
    %c0_i32_1 = arith.constant 0 : i32
    return %c0_i32, %c0_i32_0 : i32, i32
  }
  func.func @transform_3(%arg0: i32) -> (i32, i32) {
    %c0_i32 = arith.constant 0 : i32
    %c0_i32_0 = arith.constant 0 : i32
    return %arg0, %c0_i32 : i32, i32
  }
  func.func @transform_4(%arg0: i32) -> (i32, i32) {
    %c0_i32 = arith.constant 0 : i32
    %c0_i32_0 = arith.constant 0 : i32
    %c0_i32_1 = arith.constant 0 : i32
    return %c0_i32, %c0_i32_0 : i32, i32
  }
  func.func @transform_5(%arg0: i32) -> (i32, i32) {
    %c0_i32 = arith.constant 0 : i32
    %c0_i32_0 = arith.constant 0 : i32
    %c0_i32_1 = arith.constant 0 : i32
    return %c0_i32, %c0_i32_0 : i32, i32
  }
  func.func @transform_6(%arg0: i32) -> (i32, i32) {
    %c0_i32 = arith.constant 0 : i32
    %c0_i32_0 = arith.constant 0 : i32
    %c0_i32_1 = arith.constant 0 : i32
    return %c0_i32, %c0_i32_0 : i32, i32
  }
  func.func @transform_7(%arg0: i32) -> (i32, i32) {
    %c0_i32 = arith.constant 0 : i32
    %c0_i32_0 = arith.constant 0 : i32
    return %arg0, %c0_i32 : i32, i32
  }
}

module attributes {stable_mosaic.version = 11 : i64} {
  func.func @kernel(%arg0: i32, %arg1: memref<8x64xbf16, #tpu.memory_space<vmem>>, %arg2: memref<64x128xbf16, #tpu.memory_space<vmem>>, %arg3: memref<64x128xbf16, #tpu.memory_space<vmem>>, %arg4: memref<8x32xbf16, #tpu.memory_space<vmem>>, %arg5: memref<32x128xbf16, #tpu.memory_space<vmem>>, %arg6: memref<32x128xbf16, #tpu.memory_space<vmem>>, %arg7: memref<1x128xf32, #tpu.memory_space<vmem>>, %arg8: memref<8x128xbf16, #tpu.memory_space<vmem>>) attributes {dimension_semantics = [#tpu.dimension_semantics<parallel>], iteration_bounds = array<i64: 1>, scalar_prefetch = 0 : i64, scratch_operands = 0 : i64, tpu.core_type = #tpu.core_type<tc>, window_params = [{transform_indices = @transform_0, window_bounds = array<i64: 8, 64>}, {pipeline_mode = #tpu.pipeline_mode<synchronous>, transform_indices = @transform_1, window_bounds = array<i64: 64, 128>}, {pipeline_mode = #tpu.pipeline_mode<synchronous>, transform_indices = @transform_2, window_bounds = array<i64: 64, 128>}, {transform_indices = @transform_3, window_bounds = array<i64: 8, 32>}, {pipeline_mode = #tpu.pipeline_mode<synchronous>, transform_indices = @transform_4, window_bounds = array<i64: 32, 128>}, {pipeline_mode = #tpu.pipeline_mode<synchronous>, transform_indices = @transform_5, window_bounds = array<i64: 32, 128>}, {pipeline_mode = #tpu.pipeline_mode<synchronous>, transform_indices = @transform_6, window_bounds = array<i64: 1, 128>}, {transform_indices = @transform_7, window_bounds = array<i64: 8, 128>}]} {
    %c0 = arith.constant 0 : index
    %c0_0 = arith.constant 0 : index
    %0 = vector.load %arg1[%c0, %c0_0] : memref<8x64xbf16, #tpu.memory_space<vmem>>, vector<8x64xbf16>
    %1 = math.absf %0 : vector<8x64xbf16>
    %cst = arith.constant 0.000000e+00 : bf16
    %2 = vector.broadcast %cst : bf16 to vector<8x64xbf16>
    %3 = arith.subf %2, %1 : vector<8x64xbf16>
    %4 = math.exp %3 : vector<8x64xbf16>
    %cst_1 = arith.constant 1.000000e+00 : bf16
    %5 = vector.broadcast %cst_1 : bf16 to vector<8x64xbf16>
    %6 = arith.subf %4, %5 : vector<8x64xbf16>
    %cst_2 = arith.constant 0.000000e+00 : bf16
    %7 = vector.broadcast %cst_2 : bf16 to vector<8x64xbf16>
    %8 = arith.cmpf ogt, %0, %7 : vector<8x64xbf16>
    %9 = arith.select %8, %0, %6 : vector<8x64xi1>, vector<8x64xbf16>
    %cst_3 = arith.constant 0.000000e+00 : bf16
    %10 = vector.broadcast %cst_3 : bf16 to vector<8x64xbf16>
    %11 = arith.cmpf ogt, %0, %10 : vector<8x64xbf16>
    %cst_4 = arith.constant 0.000000e+00 : bf16
    %12 = vector.broadcast %cst_4 : bf16 to vector<8x64xbf16>
    %13 = arith.subf %12, %0 : vector<8x64xbf16>
    %14 = arith.select %11, %6, %13 : vector<8x64xi1>, vector<8x64xbf16>
    %c0_5 = arith.constant 0 : index
    %c0_6 = arith.constant 0 : index
    %15 = vector.load %arg2[%c0_5, %c0_6] : memref<64x128xbf16, #tpu.memory_space<vmem>>, vector<64x128xbf16>
    %cst_7 = arith.constant dense<0.000000e+00> : vector<8x128xf32>
    %16 = tpu.matmul %9, %15, %cst_7 {dimension_numbers = #tpu.dot_dimension_numbers<[1], [0], [0], [1], [0, 0, 1, 1], [], []>} : vector<8x64xbf16>, vector<64x128xbf16>, vector<8x128xf32> -> vector<8x128xf32>
    %c0_8 = arith.constant 0 : index
    %c0_9 = arith.constant 0 : index
    %17 = vector.load %arg3[%c0_8, %c0_9] : memref<64x128xbf16, #tpu.memory_space<vmem>>, vector<64x128xbf16>
    %cst_10 = arith.constant dense<0.000000e+00> : vector<8x128xf32>
    %18 = tpu.matmul %14, %17, %cst_10 {dimension_numbers = #tpu.dot_dimension_numbers<[1], [0], [0], [1], [0, 0, 1, 1], [], []>} : vector<8x64xbf16>, vector<64x128xbf16>, vector<8x128xf32> -> vector<8x128xf32>
    %19 = arith.addf %16, %18 : vector<8x128xf32>
    %c0_11 = arith.constant 0 : index
    %c0_12 = arith.constant 0 : index
    %20 = vector.load %arg4[%c0_11, %c0_12] : memref<8x32xbf16, #tpu.memory_space<vmem>>, vector<8x32xbf16>
    %c0_13 = arith.constant 0 : index
    %c0_14 = arith.constant 0 : index
    %21 = vector.load %arg5[%c0_13, %c0_14] : memref<32x128xbf16, #tpu.memory_space<vmem>>, vector<32x128xbf16>
    %c0_15 = arith.constant 0 : index
    %c0_16 = arith.constant 0 : index
    %22 = vector.load %arg6[%c0_15, %c0_16] : memref<32x128xbf16, #tpu.memory_space<vmem>>, vector<32x128xbf16>
    %23 = math.absf %20 : vector<8x32xbf16>
    %cst_17 = arith.constant 0.000000e+00 : bf16
    %24 = vector.broadcast %cst_17 : bf16 to vector<8x32xbf16>
    %25 = arith.subf %24, %23 : vector<8x32xbf16>
    %26 = math.exp %25 : vector<8x32xbf16>
    %cst_18 = arith.constant 1.000000e+00 : bf16
    %27 = vector.broadcast %cst_18 : bf16 to vector<8x32xbf16>
    %28 = arith.subf %26, %27 : vector<8x32xbf16>
    %cst_19 = arith.constant 0.000000e+00 : bf16
    %29 = vector.broadcast %cst_19 : bf16 to vector<8x32xbf16>
    %30 = arith.cmpf ogt, %20, %29 : vector<8x32xbf16>
    %31 = arith.select %30, %20, %28 : vector<8x32xi1>, vector<8x32xbf16>
    %cst_20 = arith.constant 0.000000e+00 : bf16
    %32 = vector.broadcast %cst_20 : bf16 to vector<8x32xbf16>
    %33 = arith.cmpf ogt, %20, %32 : vector<8x32xbf16>
    %cst_21 = arith.constant 0.000000e+00 : bf16
    %34 = vector.broadcast %cst_21 : bf16 to vector<8x32xbf16>
    %35 = arith.subf %34, %20 : vector<8x32xbf16>
    %36 = arith.select %33, %28, %35 : vector<8x32xi1>, vector<8x32xbf16>
    %cst_22 = arith.constant dense<0.000000e+00> : vector<8x128xf32>
    %37 = tpu.matmul %31, %21, %cst_22 {dimension_numbers = #tpu.dot_dimension_numbers<[1], [0], [0], [1], [0, 0, 1, 1], [], []>} : vector<8x32xbf16>, vector<32x128xbf16>, vector<8x128xf32> -> vector<8x128xf32>
    %38 = arith.addf %19, %37 : vector<8x128xf32>
    %cst_23 = arith.constant dense<0.000000e+00> : vector<8x128xf32>
    %39 = tpu.matmul %36, %22, %cst_23 {dimension_numbers = #tpu.dot_dimension_numbers<[1], [0], [0], [1], [0, 0, 1, 1], [], []>} : vector<8x32xbf16>, vector<32x128xbf16>, vector<8x128xf32> -> vector<8x128xf32>
    %40 = arith.addf %38, %39 : vector<8x128xf32>
    %c0_24 = arith.constant 0 : index
    %c0_25 = arith.constant 0 : index
    %41 = vector.load %arg7[%c0_24, %c0_25] : memref<1x128xf32, #tpu.memory_space<vmem>>, vector<1x128xf32>
    %42 = vector.broadcast %41 : vector<1x128xf32> to vector<8x128xf32>
    %43 = arith.addf %40, %42 : vector<8x128xf32>
    %44 = arith.truncf %43 : vector<8x128xf32> to vector<8x128xbf16>
    %c0_26 = arith.constant 0 : index
    %c0_27 = arith.constant 0 : index
    %45 = vector.load %arg8[%c0_26, %c0_27] : memref<8x128xbf16, #tpu.memory_space<vmem>>, vector<8x128xbf16>
    tpu.vector_store %arg8[%c0_26, %c0_27], %44 {strides = array<i32>} : memref<8x128xbf16, #tpu.memory_space<vmem>>, vector<8x128xbf16>,
    return
  }
  func.func @transform_0(%arg0: i32) -> (i32, i32) {
    %c0_i32 = arith.constant 0 : i32
    %c0_i32_0 = arith.constant 0 : i32
    return %arg0, %c0_i32 : i32, i32
  }
  func.func @transform_1(%arg0: i32) -> (i32, i32) {
    %c0_i32 = arith.constant 0 : i32
    %c0_i32_0 = arith.constant 0 : i32
    %c0_i32_1 = arith.constant 0 : i32
    return %c0_i32, %c0_i32_0 : i32, i32
  }
  func.func @transform_2(%arg0: i32) -> (i32, i32) {
    %c0_i32 = arith.constant 0 : i32
    %c0_i32_0 = arith.constant 0 : i32
    %c0_i32_1 = arith.constant 0 : i32
    return %c0_i32, %c0_i32_0 : i32, i32
  }
  func.func @transform_3(%arg0: i32) -> (i32, i32) {
    %c0_i32 = arith.constant 0 : i32
    %c0_i32_0 = arith.constant 0 : i32
    return %arg0, %c0_i32 : i32, i32
  }
  func.func @transform_4(%arg0: i32) -> (i32, i32) {
    %c0_i32 = arith.constant 0 : i32
    %c0_i32_0 = arith.constant 0 : i32
    %c0_i32_1 = arith.constant 0 : i32
    return %c0_i32, %c0_i32_0 : i32, i32
  }
  func.func @transform_5(%arg0: i32) -> (i32, i32) {
    %c0_i32 = arith.constant 0 : i32
    %c0_i32_0 = arith.constant 0 : i32
    %c0_i32_1 = arith.constant 0 : i32
    return %c0_i32, %c0_i32_0 : i32, i32
  }
  func.func @transform_6(%arg0: i32) -> (i32, i32) {
    %c0_i32 = arith.constant 0 : i32
    %c0_i32_0 = arith.constant 0 : i32
    %c0_i32_1 = arith.constant 0 : i32
    return %c0_i32, %c0_i32_0 : i32, i32
  }
  func.func @transform_7(%arg0: i32) -> (i32, i32) {
    %c0_i32 = arith.constant 0 : i32
    %c0_i32_0 = arith.constant 0 : i32
    return %arg0, %c0_i32 : i32, i32
  }
}

module attributes {stable_mosaic.version = 11 : i64} {
  func.func @kernel(%arg0: i32, %arg1: memref<32x64xbf16, #tpu.memory_space<vmem>>, %arg2: memref<64x128xbf16, #tpu.memory_space<vmem>>, %arg3: memref<1x128xf32, #tpu.memory_space<vmem>>, %arg4: memref<32x128xbf16, #tpu.memory_space<vmem>>) attributes {dimension_semantics = [#tpu.dimension_semantics<parallel>], iteration_bounds = array<i64: 2>, scalar_prefetch = 0 : i64, scratch_operands = 0 : i64, tpu.core_type = #tpu.core_type<tc>, window_params = [{transform_indices = @transform_0, window_bounds = array<i64: 32, 64>}, {pipeline_mode = #tpu.pipeline_mode<synchronous>, transform_indices = @transform_1, window_bounds = array<i64: 64, 128>}, {pipeline_mode = #tpu.pipeline_mode<synchronous>, transform_indices = @transform_2, window_bounds = array<i64: 1, 128>}, {transform_indices = @transform_3, window_bounds = array<i64: 32, 128>}]} {
    %c0 = arith.constant 0 : index
    %c0_0 = arith.constant 0 : index
    %0 = vector.load %arg1[%c0, %c0_0] : memref<32x64xbf16, #tpu.memory_space<vmem>>, vector<32x64xbf16>
    %c0_1 = arith.constant 0 : index
    %c0_2 = arith.constant 0 : index
    %1 = vector.load %arg2[%c0_1, %c0_2] : memref<64x128xbf16, #tpu.memory_space<vmem>>, vector<64x128xbf16>
    %cst = arith.constant dense<0.000000e+00> : vector<32x128xf32>
    %2 = tpu.matmul %0, %1, %cst {dimension_numbers = #tpu.dot_dimension_numbers<[1], [0], [0], [1], [0, 0, 1, 1], [], []>} : vector<32x64xbf16>, vector<64x128xbf16>, vector<32x128xf32> -> vector<32x128xf32>
    %c0_3 = arith.constant 0 : index
    %c0_4 = arith.constant 0 : index
    %3 = vector.load %arg3[%c0_3, %c0_4] : memref<1x128xf32, #tpu.memory_space<vmem>>, vector<1x128xf32>
    %4 = vector.broadcast %3 : vector<1x128xf32> to vector<32x128xf32>
    %5 = arith.addf %2, %4 : vector<32x128xf32>
    %6 = arith.truncf %5 : vector<32x128xf32> to vector<32x128xbf16>
    %c0_5 = arith.constant 0 : index
    %c0_6 = arith.constant 0 : index
    %7 = vector.load %arg4[%c0_5, %c0_6] : memref<32x128xbf16, #tpu.memory_space<vmem>>, vector<32x128xbf16>
    tpu.vector_store %arg4[%c0_5, %c0_6], %6 {strides = array<i32>} : memref<32x128xbf16, #tpu.memory_space<vmem>>, vector<32x128xbf16>,
    return
  }
  func.func @transform_0(%arg0: i32) -> (i32, i32) {
    %c0_i32 = arith.constant 0 : i32
    %c0_i32_0 = arith.constant 0 : i32
    return %arg0, %c0_i32 : i32, i32
  }
  func.func @transform_1(%arg0: i32) -> (i32, i32) {
    %c0_i32 = arith.constant 0 : i32
    %c0_i32_0 = arith.constant 0 : i32
    %c0_i32_1 = arith.constant 0 : i32
    return %c0_i32, %c0_i32_0 : i32, i32
  }
  func.func @transform_2(%arg0: i32) -> (i32, i32) {
    %c0_i32 = arith.constant 0 : i32
    %c0_i32_0 = arith.constant 0 : i32
    %c0_i32_1 = arith.constant 0 : i32
    return %c0_i32, %c0_i32_0 : i32, i32
  }
  func.func @transform_3(%arg0: i32) -> (i32, i32) {
    %c0_i32 = arith.constant 0 : i32
    %c0_i32_0 = arith.constant 0 : i32
    return %arg0, %c0_i32 : i32, i32
  }
}

module attributes {stable_mosaic.version = 11 : i64} {
  func.func @kernel(%arg0: i32, %arg1: memref<16x64xbf16, #tpu.memory_space<vmem>>, %arg2: memref<64x128xbf16, #tpu.memory_space<vmem>>, %arg3: memref<64x128xbf16, #tpu.memory_space<vmem>>, %arg4: memref<16x32xbf16, #tpu.memory_space<vmem>>, %arg5: memref<32x128xbf16, #tpu.memory_space<vmem>>, %arg6: memref<32x128xbf16, #tpu.memory_space<vmem>>, %arg7: memref<1x128xf32, #tpu.memory_space<vmem>>, %arg8: memref<16x128xbf16, #tpu.memory_space<vmem>>) attributes {dimension_semantics = [#tpu.dimension_semantics<parallel>], iteration_bounds = array<i64: 2>, scalar_prefetch = 0 : i64, scratch_operands = 0 : i64, tpu.core_type = #tpu.core_type<tc>, window_params = [{transform_indices = @transform_0, window_bounds = array<i64: 16, 64>}, {pipeline_mode = #tpu.pipeline_mode<synchronous>, transform_indices = @transform_1, window_bounds = array<i64: 64, 128>}, {pipeline_mode = #tpu.pipeline_mode<synchronous>, transform_indices = @transform_2, window_bounds = array<i64: 64, 128>}, {transform_indices = @transform_3, window_bounds = array<i64: 16, 32>}, {pipeline_mode = #tpu.pipeline_mode<synchronous>, transform_indices = @transform_4, window_bounds = array<i64: 32, 128>}, {pipeline_mode = #tpu.pipeline_mode<synchronous>, transform_indices = @transform_5, window_bounds = array<i64: 32, 128>}, {pipeline_mode = #tpu.pipeline_mode<synchronous>, transform_indices = @transform_6, window_bounds = array<i64: 1, 128>}, {transform_indices = @transform_7, window_bounds = array<i64: 16, 128>}]} {
    %c0 = arith.constant 0 : index
    %c0_0 = arith.constant 0 : index
    %0 = vector.load %arg1[%c0, %c0_0] : memref<16x64xbf16, #tpu.memory_space<vmem>>, vector<16x64xbf16>
    %1 = math.absf %0 : vector<16x64xbf16>
    %cst = arith.constant 0.000000e+00 : bf16
    %2 = vector.broadcast %cst : bf16 to vector<16x64xbf16>
    %3 = arith.subf %2, %1 : vector<16x64xbf16>
    %4 = math.exp %3 : vector<16x64xbf16>
    %cst_1 = arith.constant 1.000000e+00 : bf16
    %5 = vector.broadcast %cst_1 : bf16 to vector<16x64xbf16>
    %6 = arith.subf %4, %5 : vector<16x64xbf16>
    %cst_2 = arith.constant 0.000000e+00 : bf16
    %7 = vector.broadcast %cst_2 : bf16 to vector<16x64xbf16>
    %8 = arith.cmpf ogt, %0, %7 : vector<16x64xbf16>
    %9 = arith.select %8, %0, %6 : vector<16x64xi1>, vector<16x64xbf16>
    %cst_3 = arith.constant 0.000000e+00 : bf16
    %10 = vector.broadcast %cst_3 : bf16 to vector<16x64xbf16>
    %11 = arith.cmpf ogt, %0, %10 : vector<16x64xbf16>
    %cst_4 = arith.constant 0.000000e+00 : bf16
    %12 = vector.broadcast %cst_4 : bf16 to vector<16x64xbf16>
    %13 = arith.subf %12, %0 : vector<16x64xbf16>
    %14 = arith.select %11, %6, %13 : vector<16x64xi1>, vector<16x64xbf16>
    %c0_5 = arith.constant 0 : index
    %c0_6 = arith.constant 0 : index
    %15 = vector.load %arg2[%c0_5, %c0_6] : memref<64x128xbf16, #tpu.memory_space<vmem>>, vector<64x128xbf16>
    %cst_7 = arith.constant dense<0.000000e+00> : vector<16x128xf32>
    %16 = tpu.matmul %9, %15, %cst_7 {dimension_numbers = #tpu.dot_dimension_numbers<[1], [0], [0], [1], [0, 0, 1, 1], [], []>} : vector<16x64xbf16>, vector<64x128xbf16>, vector<16x128xf32> -> vector<16x128xf32>
    %c0_8 = arith.constant 0 : index
    %c0_9 = arith.constant 0 : index
    %17 = vector.load %arg3[%c0_8, %c0_9] : memref<64x128xbf16, #tpu.memory_space<vmem>>, vector<64x128xbf16>
    %cst_10 = arith.constant dense<0.000000e+00> : vector<16x128xf32>
    %18 = tpu.matmul %14, %17, %cst_10 {dimension_numbers = #tpu.dot_dimension_numbers<[1], [0], [0], [1], [0, 0, 1, 1], [], []>} : vector<16x64xbf16>, vector<64x128xbf16>, vector<16x128xf32> -> vector<16x128xf32>
    %19 = arith.addf %16, %18 : vector<16x128xf32>
    %c0_11 = arith.constant 0 : index
    %c0_12 = arith.constant 0 : index
    %20 = vector.load %arg4[%c0_11, %c0_12] : memref<16x32xbf16, #tpu.memory_space<vmem>>, vector<16x32xbf16>
    %c0_13 = arith.constant 0 : index
    %c0_14 = arith.constant 0 : index
    %21 = vector.load %arg5[%c0_13, %c0_14] : memref<32x128xbf16, #tpu.memory_space<vmem>>, vector<32x128xbf16>
    %c0_15 = arith.constant 0 : index
    %c0_16 = arith.constant 0 : index
    %22 = vector.load %arg6[%c0_15, %c0_16] : memref<32x128xbf16, #tpu.memory_space<vmem>>, vector<32x128xbf16>
    %23 = math.absf %20 : vector<16x32xbf16>
    %cst_17 = arith.constant 0.000000e+00 : bf16
    %24 = vector.broadcast %cst_17 : bf16 to vector<16x32xbf16>
    %25 = arith.subf %24, %23 : vector<16x32xbf16>
    %26 = math.exp %25 : vector<16x32xbf16>
    %cst_18 = arith.constant 1.000000e+00 : bf16
    %27 = vector.broadcast %cst_18 : bf16 to vector<16x32xbf16>
    %28 = arith.subf %26, %27 : vector<16x32xbf16>
    %cst_19 = arith.constant 0.000000e+00 : bf16
    %29 = vector.broadcast %cst_19 : bf16 to vector<16x32xbf16>
    %30 = arith.cmpf ogt, %20, %29 : vector<16x32xbf16>
    %31 = arith.select %30, %20, %28 : vector<16x32xi1>, vector<16x32xbf16>
    %cst_20 = arith.constant 0.000000e+00 : bf16
    %32 = vector.broadcast %cst_20 : bf16 to vector<16x32xbf16>
    %33 = arith.cmpf ogt, %20, %32 : vector<16x32xbf16>
    %cst_21 = arith.constant 0.000000e+00 : bf16
    %34 = vector.broadcast %cst_21 : bf16 to vector<16x32xbf16>
    %35 = arith.subf %34, %20 : vector<16x32xbf16>
    %36 = arith.select %33, %28, %35 : vector<16x32xi1>, vector<16x32xbf16>
    %cst_22 = arith.constant dense<0.000000e+00> : vector<16x128xf32>
    %37 = tpu.matmul %31, %21, %cst_22 {dimension_numbers = #tpu.dot_dimension_numbers<[1], [0], [0], [1], [0, 0, 1, 1], [], []>} : vector<16x32xbf16>, vector<32x128xbf16>, vector<16x128xf32> -> vector<16x128xf32>
    %38 = arith.addf %19, %37 : vector<16x128xf32>
    %cst_23 = arith.constant dense<0.000000e+00> : vector<16x128xf32>
    %39 = tpu.matmul %36, %22, %cst_23 {dimension_numbers = #tpu.dot_dimension_numbers<[1], [0], [0], [1], [0, 0, 1, 1], [], []>} : vector<16x32xbf16>, vector<32x128xbf16>, vector<16x128xf32> -> vector<16x128xf32>
    %40 = arith.addf %38, %39 : vector<16x128xf32>
    %c0_24 = arith.constant 0 : index
    %c0_25 = arith.constant 0 : index
    %41 = vector.load %arg7[%c0_24, %c0_25] : memref<1x128xf32, #tpu.memory_space<vmem>>, vector<1x128xf32>
    %42 = vector.broadcast %41 : vector<1x128xf32> to vector<16x128xf32>
    %43 = arith.addf %40, %42 : vector<16x128xf32>
    %44 = arith.truncf %43 : vector<16x128xf32> to vector<16x128xbf16>
    %c0_26 = arith.constant 0 : index
    %c0_27 = arith.constant 0 : index
    %45 = vector.load %arg8[%c0_26, %c0_27] : memref<16x128xbf16, #tpu.memory_space<vmem>>, vector<16x128xbf16>
    tpu.vector_store %arg8[%c0_26, %c0_27], %44 {strides = array<i32>} : memref<16x128xbf16, #tpu.memory_space<vmem>>, vector<16x128xbf16>,
    return
  }
  func.func @transform_0(%arg0: i32) -> (i32, i32) {
    %c0_i32 = arith.constant 0 : i32
    %c0_i32_0 = arith.constant 0 : i32
    return %arg0, %c0_i32 : i32, i32
  }
  func.func @transform_1(%arg0: i32) -> (i32, i32) {
    %c0_i32 = arith.constant 0 : i32
    %c0_i32_0 = arith.constant 0 : i32
    %c0_i32_1 = arith.constant 0 : i32
    return %c0_i32, %c0_i32_0 : i32, i32
  }
  func.func @transform_2(%arg0: i32) -> (i32, i32) {
    %c0_i32 = arith.constant 0 : i32
    %c0_i32_0 = arith.constant 0 : i32
    %c0_i32_1 = arith.constant 0 : i32
    return %c0_i32, %c0_i32_0 : i32, i32
  }
  func.func @transform_3(%arg0: i32) -> (i32, i32) {
    %c0_i32 = arith.constant 0 : i32
    %c0_i32_0 = arith.constant 0 : i32
    return %arg0, %c0_i32 : i32, i32
  }
  func.func @transform_4(%arg0: i32) -> (i32, i32) {
    %c0_i32 = arith.constant 0 : i32
    %c0_i32_0 = arith.constant 0 : i32
    %c0_i32_1 = arith.constant 0 : i32
    return %c0_i32, %c0_i32_0 : i32, i32
  }
  func.func @transform_5(%arg0: i32) -> (i32, i32) {
    %c0_i32 = arith.constant 0 : i32
    %c0_i32_0 = arith.constant 0 : i32
    %c0_i32_1 = arith.constant 0 : i32
    return %c0_i32, %c0_i32_0 : i32, i32
  }
  func.func @transform_6(%arg0: i32) -> (i32, i32) {
    %c0_i32 = arith.constant 0 : i32
    %c0_i32_0 = arith.constant 0 : i32
    %c0_i32_1 = arith.constant 0 : i32
    return %c0_i32, %c0_i32_0 : i32, i32
  }
  func.func @transform_7(%arg0: i32) -> (i32, i32) {
    %c0_i32 = arith.constant 0 : i32
    %c0_i32_0 = arith.constant 0 : i32
    return %arg0, %c0_i32 : i32, i32
  }
}

module attributes {stable_mosaic.version = 11 : i64} {
  func.func @kernel(%arg0: i32, %arg1: memref<64x64xbf16, #tpu.memory_space<vmem>>, %arg2: memref<64x128xbf16, #tpu.memory_space<vmem>>, %arg3: memref<64x128xbf16, #tpu.memory_space<vmem>>, %arg4: memref<64x32xbf16, #tpu.memory_space<vmem>>, %arg5: memref<32x128xbf16, #tpu.memory_space<vmem>>, %arg6: memref<32x128xbf16, #tpu.memory_space<vmem>>, %arg7: memref<1x128xf32, #tpu.memory_space<vmem>>, %arg8: memref<64x128xbf16, #tpu.memory_space<vmem>>) attributes {dimension_semantics = [#tpu.dimension_semantics<parallel>], iteration_bounds = array<i64: 2>, scalar_prefetch = 0 : i64, scratch_operands = 0 : i64, tpu.core_type = #tpu.core_type<tc>, window_params = [{transform_indices = @transform_0, window_bounds = array<i64: 64, 64>}, {pipeline_mode = #tpu.pipeline_mode<synchronous>, transform_indices = @transform_1, window_bounds = array<i64: 64, 128>}, {pipeline_mode = #tpu.pipeline_mode<synchronous>, transform_indices = @transform_2, window_bounds = array<i64: 64, 128>}, {transform_indices = @transform_3, window_bounds = array<i64: 64, 32>}, {pipeline_mode = #tpu.pipeline_mode<synchronous>, transform_indices = @transform_4, window_bounds = array<i64: 32, 128>}, {pipeline_mode = #tpu.pipeline_mode<synchronous>, transform_indices = @transform_5, window_bounds = array<i64: 32, 128>}, {pipeline_mode = #tpu.pipeline_mode<synchronous>, transform_indices = @transform_6, window_bounds = array<i64: 1, 128>}, {transform_indices = @transform_7, window_bounds = array<i64: 64, 128>}]} {
    %c0 = arith.constant 0 : index
    %c0_0 = arith.constant 0 : index
    %0 = vector.load %arg1[%c0, %c0_0] : memref<64x64xbf16, #tpu.memory_space<vmem>>, vector<64x64xbf16>
    %1 = math.absf %0 : vector<64x64xbf16>
    %cst = arith.constant 0.000000e+00 : bf16
    %2 = vector.broadcast %cst : bf16 to vector<64x64xbf16>
    %3 = arith.subf %2, %1 : vector<64x64xbf16>
    %4 = math.exp %3 : vector<64x64xbf16>
    %cst_1 = arith.constant 1.000000e+00 : bf16
    %5 = vector.broadcast %cst_1 : bf16 to vector<64x64xbf16>
    %6 = arith.subf %4, %5 : vector<64x64xbf16>
    %cst_2 = arith.constant 0.000000e+00 : bf16
    %7 = vector.broadcast %cst_2 : bf16 to vector<64x64xbf16>
    %8 = arith.cmpf ogt, %0, %7 : vector<64x64xbf16>
    %9 = arith.select %8, %0, %6 : vector<64x64xi1>, vector<64x64xbf16>
    %cst_3 = arith.constant 0.000000e+00 : bf16
    %10 = vector.broadcast %cst_3 : bf16 to vector<64x64xbf16>
    %11 = arith.cmpf ogt, %0, %10 : vector<64x64xbf16>
    %cst_4 = arith.constant 0.000000e+00 : bf16
    %12 = vector.broadcast %cst_4 : bf16 to vector<64x64xbf16>
    %13 = arith.subf %12, %0 : vector<64x64xbf16>
    %14 = arith.select %11, %6, %13 : vector<64x64xi1>, vector<64x64xbf16>
    %c0_5 = arith.constant 0 : index
    %c0_6 = arith.constant 0 : index
    %15 = vector.load %arg2[%c0_5, %c0_6] : memref<64x128xbf16, #tpu.memory_space<vmem>>, vector<64x128xbf16>
    %cst_7 = arith.constant dense<0.000000e+00> : vector<64x128xf32>
    %16 = tpu.matmul %9, %15, %cst_7 {dimension_numbers = #tpu.dot_dimension_numbers<[1], [0], [0], [1], [0, 0, 1, 1], [], []>} : vector<64x64xbf16>, vector<64x128xbf16>, vector<64x128xf32> -> vector<64x128xf32>
    %c0_8 = arith.constant 0 : index
    %c0_9 = arith.constant 0 : index
    %17 = vector.load %arg3[%c0_8, %c0_9] : memref<64x128xbf16, #tpu.memory_space<vmem>>, vector<64x128xbf16>
    %cst_10 = arith.constant dense<0.000000e+00> : vector<64x128xf32>
    %18 = tpu.matmul %14, %17, %cst_10 {dimension_numbers = #tpu.dot_dimension_numbers<[1], [0], [0], [1], [0, 0, 1, 1], [], []>} : vector<64x64xbf16>, vector<64x128xbf16>, vector<64x128xf32> -> vector<64x128xf32>
    %19 = arith.addf %16, %18 : vector<64x128xf32>
    %c0_11 = arith.constant 0 : index
    %c0_12 = arith.constant 0 : index
    %20 = vector.load %arg4[%c0_11, %c0_12] : memref<64x32xbf16, #tpu.memory_space<vmem>>, vector<64x32xbf16>
    %c0_13 = arith.constant 0 : index
    %c0_14 = arith.constant 0 : index
    %21 = vector.load %arg5[%c0_13, %c0_14] : memref<32x128xbf16, #tpu.memory_space<vmem>>, vector<32x128xbf16>
    %c0_15 = arith.constant 0 : index
    %c0_16 = arith.constant 0 : index
    %22 = vector.load %arg6[%c0_15, %c0_16] : memref<32x128xbf16, #tpu.memory_space<vmem>>, vector<32x128xbf16>
    %23 = math.absf %20 : vector<64x32xbf16>
    %cst_17 = arith.constant 0.000000e+00 : bf16
    %24 = vector.broadcast %cst_17 : bf16 to vector<64x32xbf16>
    %25 = arith.subf %24, %23 : vector<64x32xbf16>
    %26 = math.exp %25 : vector<64x32xbf16>
    %cst_18 = arith.constant 1.000000e+00 : bf16
    %27 = vector.broadcast %cst_18 : bf16 to vector<64x32xbf16>
    %28 = arith.subf %26, %27 : vector<64x32xbf16>
    %cst_19 = arith.constant 0.000000e+00 : bf16
    %29 = vector.broadcast %cst_19 : bf16 to vector<64x32xbf16>
    %30 = arith.cmpf ogt, %20, %29 : vector<64x32xbf16>
    %31 = arith.select %30, %20, %28 : vector<64x32xi1>, vector<64x32xbf16>
    %cst_20 = arith.constant 0.000000e+00 : bf16
    %32 = vector.broadcast %cst_20 : bf16 to vector<64x32xbf16>
    %33 = arith.cmpf ogt, %20, %32 : vector<64x32xbf16>
    %cst_21 = arith.constant 0.000000e+00 : bf16
    %34 = vector.broadcast %cst_21 : bf16 to vector<64x32xbf16>
    %35 = arith.subf %34, %20 : vector<64x32xbf16>
    %36 = arith.select %33, %28, %35 : vector<64x32xi1>, vector<64x32xbf16>
    %cst_22 = arith.constant dense<0.000000e+00> : vector<64x128xf32>
    %37 = tpu.matmul %31, %21, %cst_22 {dimension_numbers = #tpu.dot_dimension_numbers<[1], [0], [0], [1], [0, 0, 1, 1], [], []>} : vector<64x32xbf16>, vector<32x128xbf16>, vector<64x128xf32> -> vector<64x128xf32>
    %38 = arith.addf %19, %37 : vector<64x128xf32>
    %cst_23 = arith.constant dense<0.000000e+00> : vector<64x128xf32>
    %39 = tpu.matmul %36, %22, %cst_23 {dimension_numbers = #tpu.dot_dimension_numbers<[1], [0], [0], [1], [0, 0, 1, 1], [], []>} : vector<64x32xbf16>, vector<32x128xbf16>, vector<64x128xf32> -> vector<64x128xf32>
    %40 = arith.addf %38, %39 : vector<64x128xf32>
    %c0_24 = arith.constant 0 : index
    %c0_25 = arith.constant 0 : index
    %41 = vector.load %arg7[%c0_24, %c0_25] : memref<1x128xf32, #tpu.memory_space<vmem>>, vector<1x128xf32>
    %42 = vector.broadcast %41 : vector<1x128xf32> to vector<64x128xf32>
    %43 = arith.addf %40, %42 : vector<64x128xf32>
    %44 = arith.truncf %43 : vector<64x128xf32> to vector<64x128xbf16>
    %c0_26 = arith.constant 0 : index
    %c0_27 = arith.constant 0 : index
    %45 = vector.load %arg8[%c0_26, %c0_27] : memref<64x128xbf16, #tpu.memory_space<vmem>>, vector<64x128xbf16>
    tpu.vector_store %arg8[%c0_26, %c0_27], %44 {strides = array<i32>} : memref<64x128xbf16, #tpu.memory_space<vmem>>, vector<64x128xbf16>,
    return
  }
  func.func @transform_0(%arg0: i32) -> (i32, i32) {
    %c0_i32 = arith.constant 0 : i32
    %c0_i32_0 = arith.constant 0 : i32
    return %arg0, %c0_i32 : i32, i32
  }
  func.func @transform_1(%arg0: i32) -> (i32, i32) {
    %c0_i32 = arith.constant 0 : i32
    %c0_i32_0 = arith.constant 0 : i32
    %c0_i32_1 = arith.constant 0 : i32
    return %c0_i32, %c0_i32_0 : i32, i32
  }
  func.func @transform_2(%arg0: i32) -> (i32, i32) {
    %c0_i32 = arith.constant 0 : i32
    %c0_i32_0 = arith.constant 0 : i32
    %c0_i32_1 = arith.constant 0 : i32
    return %c0_i32, %c0_i32_0 : i32, i32
  }
  func.func @transform_3(%arg0: i32) -> (i32, i32) {
    %c0_i32 = arith.constant 0 : i32
    %c0_i32_0 = arith.constant 0 : i32
    return %arg0, %c0_i32 : i32, i32
  }
  func.func @transform_4(%arg0: i32) -> (i32, i32) {
    %c0_i32 = arith.constant 0 : i32
    %c0_i32_0 = arith.constant 0 : i32
    %c0_i32_1 = arith.constant 0 : i32
    return %c0_i32, %c0_i32_0 : i32, i32
  }
  func.func @transform_5(%arg0: i32) -> (i32, i32) {
    %c0_i32 = arith.constant 0 : i32
    %c0_i32_0 = arith.constant 0 : i32
    %c0_i32_1 = arith.constant 0 : i32
    return %c0_i32, %c0_i32_0 : i32, i32
  }
  func.func @transform_6(%arg0: i32) -> (i32, i32) {
    %c0_i32 = arith.constant 0 : i32
    %c0_i32_0 = arith.constant 0 : i32
    %c0_i32_1 = arith.constant 0 : i32
    return %c0_i32, %c0_i32_0 : i32, i32
  }
  func.func @transform_7(%arg0: i32) -> (i32, i32) {
    %c0_i32 = arith.constant 0 : i32
    %c0_i32_0 = arith.constant 0 : i32
    return %arg0, %c0_i32 : i32, i32
  }
}

module attributes {stable_mosaic.version = 11 : i64} {
  func.func @kernel(%arg0: i32, %arg1: memref<96x64xbf16, #tpu.memory_space<vmem>>, %arg2: memref<64x128xbf16, #tpu.memory_space<vmem>>, %arg3: memref<1x128xf32, #tpu.memory_space<vmem>>, %arg4: memref<96x128xbf16, #tpu.memory_space<vmem>>) attributes {dimension_semantics = [#tpu.dimension_semantics<parallel>], iteration_bounds = array<i64: 2>, scalar_prefetch = 0 : i64, scratch_operands = 0 : i64, tpu.core_type = #tpu.core_type<tc>, window_params = [{transform_indices = @transform_0, window_bounds = array<i64: 96, 64>}, {pipeline_mode = #tpu.pipeline_mode<synchronous>, transform_indices = @transform_1, window_bounds = array<i64: 64, 128>}, {pipeline_mode = #tpu.pipeline_mode<synchronous>, transform_indices = @transform_2, window_bounds = array<i64: 1, 128>}, {transform_indices = @transform_3, window_bounds = array<i64: 96, 128>}]} {
    %c0 = arith.constant 0 : index
    %c0_0 = arith.constant 0 : index
    %0 = vector.load %arg1[%c0, %c0_0] : memref<96x64xbf16, #tpu.memory_space<vmem>>, vector<96x64xbf16>
    %c0_1 = arith.constant 0 : index
    %c0_2 = arith.constant 0 : index
    %1 = vector.load %arg2[%c0_1, %c0_2] : memref<64x128xbf16, #tpu.memory_space<vmem>>, vector<64x128xbf16>
    %cst = arith.constant dense<0.000000e+00> : vector<96x128xf32>
    %2 = tpu.matmul %0, %1, %cst {dimension_numbers = #tpu.dot_dimension_numbers<[1], [0], [0], [1], [0, 0, 1, 1], [], []>} : vector<96x64xbf16>, vector<64x128xbf16>, vector<96x128xf32> -> vector<96x128xf32>
    %c0_3 = arith.constant 0 : index
    %c0_4 = arith.constant 0 : index
    %3 = vector.load %arg3[%c0_3, %c0_4] : memref<1x128xf32, #tpu.memory_space<vmem>>, vector<1x128xf32>
    %4 = vector.broadcast %3 : vector<1x128xf32> to vector<96x128xf32>
    %5 = arith.addf %2, %4 : vector<96x128xf32>
    %6 = arith.truncf %5 : vector<96x128xf32> to vector<96x128xbf16>
    %c0_5 = arith.constant 0 : index
    %c0_6 = arith.constant 0 : index
    %7 = vector.load %arg4[%c0_5, %c0_6] : memref<96x128xbf16, #tpu.memory_space<vmem>>, vector<96x128xbf16>
    tpu.vector_store %arg4[%c0_5, %c0_6], %6 {strides = array<i32>} : memref<96x128xbf16, #tpu.memory_space<vmem>>, vector<96x128xbf16>,
    return
  }
  func.func @transform_0(%arg0: i32) -> (i32, i32) {
    %c0_i32 = arith.constant 0 : i32
    %c0_i32_0 = arith.constant 0 : i32
    return %arg0, %c0_i32 : i32, i32
  }
  func.func @transform_1(%arg0: i32) -> (i32, i32) {
    %c0_i32 = arith.constant 0 : i32
    %c0_i32_0 = arith.constant 0 : i32
    %c0_i32_1 = arith.constant 0 : i32
    return %c0_i32, %c0_i32_0 : i32, i32
  }
  func.func @transform_2(%arg0: i32) -> (i32, i32) {
    %c0_i32 = arith.constant 0 : i32
    %c0_i32_0 = arith.constant 0 : i32
    %c0_i32_1 = arith.constant 0 : i32
    return %c0_i32, %c0_i32_0 : i32, i32
  }
  func.func @transform_3(%arg0: i32) -> (i32, i32) {
    %c0_i32 = arith.constant 0 : i32
    %c0_i32_0 = arith.constant 0 : i32
    return %arg0, %c0_i32 : i32, i32
  }
}

module attributes {stable_mosaic.version = 11 : i64} {
  func.func @kernel(%arg0: i32, %arg1: memref<64x16xbf16, #tpu.memory_space<vmem>>, %arg2: memref<16x128xbf16, #tpu.memory_space<vmem>>, %arg3: memref<1x128xf32, #tpu.memory_space<vmem>>, %arg4: memref<64x128xf32, #tpu.memory_space<vmem>>) attributes {dimension_semantics = [#tpu.dimension_semantics<parallel>], iteration_bounds = array<i64: 2>, scalar_prefetch = 0 : i64, scratch_operands = 0 : i64, tpu.core_type = #tpu.core_type<tc>, window_params = [{transform_indices = @transform_0, window_bounds = array<i64: 64, 16>}, {pipeline_mode = #tpu.pipeline_mode<synchronous>, transform_indices = @transform_1, window_bounds = array<i64: 16, 128>}, {pipeline_mode = #tpu.pipeline_mode<synchronous>, transform_indices = @transform_2, window_bounds = array<i64: 1, 128>}, {transform_indices = @transform_3, window_bounds = array<i64: 64, 128>}]} {
    %c0 = arith.constant 0 : index
    %c0_0 = arith.constant 0 : index
    %0 = vector.load %arg1[%c0, %c0_0] : memref<64x16xbf16, #tpu.memory_space<vmem>>, vector<64x16xbf16>
    %cst = arith.constant 0.000000e+00 : bf16
    %1 = vector.broadcast %cst : bf16 to vector<64x16xbf16>
    %2 = arith.cmpf ogt, %0, %1 : vector<64x16xbf16>
    %3 = math.absf %0 : vector<64x16xbf16>
    %cst_1 = arith.constant 0.000000e+00 : bf16
    %4 = vector.broadcast %cst_1 : bf16 to vector<64x16xbf16>
    %5 = arith.subf %4, %3 : vector<64x16xbf16>
    %6 = math.exp %5 : vector<64x16xbf16>
    %cst_2 = arith.constant 1.000000e+00 : bf16
    %7 = vector.broadcast %cst_2 : bf16 to vector<64x16xbf16>
    %8 = arith.subf %6, %7 : vector<64x16xbf16>
    %9 = arith.select %2, %0, %8 : vector<64x16xi1>, vector<64x16xbf16>
    %c0_3 = arith.constant 0 : index
    %c0_4 = arith.constant 0 : index
    %10 = vector.load %arg2[%c0_3, %c0_4] : memref<16x128xbf16, #tpu.memory_space<vmem>>, vector<16x128xbf16>
    %cst_5 = arith.constant dense<0.000000e+00> : vector<64x128xf32>
    %11 = tpu.matmul %9, %10, %cst_5 {dimension_numbers = #tpu.dot_dimension_numbers<[1], [0], [0], [1], [0, 0, 1, 1], [], []>} : vector<64x16xbf16>, vector<16x128xbf16>, vector<64x128xf32> -> vector<64x128xf32>
    %c0_6 = arith.constant 0 : index
    %c0_7 = arith.constant 0 : index
    %12 = vector.load %arg3[%c0_6, %c0_7] : memref<1x128xf32, #tpu.memory_space<vmem>>, vector<1x128xf32>
    %13 = vector.broadcast %12 : vector<1x128xf32> to vector<64x128xf32>
    %14 = arith.addf %11, %13 : vector<64x128xf32>
    %c0_8 = arith.constant 0 : index
    %c0_9 = arith.constant 0 : index
    %15 = vector.load %arg4[%c0_8, %c0_9] : memref<64x128xf32, #tpu.memory_space<vmem>>, vector<64x128xf32>
    tpu.vector_store %arg4[%c0_8, %c0_9], %14 {strides = array<i32>} : memref<64x128xf32, #tpu.memory_space<vmem>>, vector<64x128xf32>,
    return
  }
  func.func @transform_0(%arg0: i32) -> (i32, i32) {
    %c0_i32 = arith.constant 0 : i32
    %c0_i32_0 = arith.constant 0 : i32
    return %arg0, %c0_i32 : i32, i32
  }
  func.func @transform_1(%arg0: i32) -> (i32, i32) {
    %c0_i32 = arith.constant 0 : i32
    %c0_i32_0 = arith.constant 0 : i32
    %c0_i32_1 = arith.constant 0 : i32
    return %c0_i32, %c0_i32_0 : i32, i32
  }
  func.func @transform_2(%arg0: i32) -> (i32, i32) {
    %c0_i32 = arith.constant 0 : i32
    %c0_i32_0 = arith.constant 0 : i32
    %c0_i32_1 = arith.constant 0 : i32
    return %c0_i32, %c0_i32_0 : i32, i32
  }
  func.func @transform_3(%arg0: i32) -> (i32, i32) {
    %c0_i32 = arith.constant 0 : i32
    %c0_i32_0 = arith.constant 0 : i32
    return %arg0, %c0_i32 : i32, i32
  }
}

</mosaic_0001>

<bundles_post_ra>
// kernel: pixelcnn_forward.44
= control target key start
LH: loop header
LB: loop body
LE: loop exit
PB: predicated region body
PF: predicated region fallthrough
CT: control target
= control target key end

     0   :  { %s527_s12 = smov 0   ;;  %s553_s0 = inlined_call_operand.vmem [shape: bf16[128,24], index: 0, kind: input, shape index: {}]   ;;  %s554_s1 = inlined_call_operand.vmem [shape: bf16[24,128], index: 1, kind: input, shape index: {}]   ;;  %s555_s2 = inlined_call_operand.vmem [shape: f32[1,128], index: 2, kind: input, shape index: {}]   ;;  %s556_s3 = inlined_call_operand.vmem [shape: bf16[128,128], index: 3, kind: output, shape index: {}]  }
   0x1 LB: > { %s400_s13 = sadd.s32 4294967295, %s505_s12   ;;  %p404_p0 = scmp.ge.s32.totalorder %s505_s12, 1  ;;  %s505_s12 = sphi %s527_s12, %s13_s12  }
   0x2   : > { %p138_p1 = scmp.lt.s32.totalorder %s505_s12, 3 }
   0x4   : > { %p139_p2 = pnand %p404_p0, %p138_p1 }
   0x5   : > { %v493_v0 = vld [vmem:[%s554_s1] sm:$0xff] (!%p139_p2)   ;;  %v494_v1 = vld [vmem:[%s554_s1 + $0x8] ss:$0 sps:$4 sm:$0xff] (!%p139_p2)   ;;  %vm235_vm0 = vcmask (!%p139_p2), 1043456   ;;  %s405_s18 = sshll.u32 (!%p139_p2), %s400_s13, 3  ;;  %vm222_vm1 = vcmask (!%p139_p2), 195584  }
   0x6   : > { %142 = sbr.rel (%p139_p2) target bundleno = 238 (0xee), region = 32  ;;  %467 = vmatprep.subr.bf16.mxu0 (!%p139_p2), %v493_v0  ;;  %479 = vmatprep.subr.bf16.mxu1 (!%p139_p2), %v493_v0  ;;  %p163_p3 = scmp.lt.s32.totalorder (!%p139_p2), %s405_s18, 15  ;;  %v237_v2 = vsel (!%p139_p2), %vm235_vm0, %v494_v1, 0  ;;  %v409_v8 = vld [vmem:[%s555_s2] ss:$0 sm:$0xff] (!%p139_p2) }
   0x7   : > { %468 = vmatpush3.bf16.msra.mxu0 (!%p139_p2), %v493_v0  ;;  %481 = vmatpush3.bf16.msra.mxu1 (!%p139_p2), %v493_v0 }
   0x8   : > { %483 = vmatprep.subr.msk.bf16.mxu0 (!%p139_p2), %vm235_vm0, %v494_v1  ;;  %484 = vmatprep.subr.msk.bf16.mxu1 (!%p139_p2), %vm235_vm0, %v494_v1 }
   0xb   : > { %470 = vmatpush3.bf16.msra.mxu0 (!%p139_p2), %v237_v2  ;;  %482 = vmatpush3.bf16.msra.mxu1 (!%p139_p2), %v237_v2 }
   0xd   : > { %s558_s18 = smov (!%p163_p3, %s405_s18), 15 }
   0xe   : > { %s406_s19 = sshll.u32 %s558_s18, 2 }
   0xf   : > { %s166_s22 = scalar_lea.vmem %s553_s0, %s406_s19  ;;  %s172_s27 = scalar_lea.vmem %s556_s3, %s406_s19 }
  0x10   : > { %v495_v3 = vld [vmem:[%s166_s22] sm:$0xff]   ;;  %v496_v4 = vld [vmem:[%s166_s22 + $0x10] sm:$0xff]   ;;  %v497_v5 = vld [vmem:[%s166_s22 + $0x8] sm:$0xff]  }
  0x11   : > { %471 = vmatprep.mubr.msk.bf16.mxu0 %vm222_vm1, %v495_v3  ;;  %475 = vmatprep.mubr.msk.bf16.mxu1 %vm222_vm1, %v496_v4  ;;  %v498_v6 = vld [vmem:[%s166_s22 + $0x18] sm:$0xff]  }
  0x12   : > { %472 = vmatmul.mubr.msk.bf16.vlgmr.msra.gmra.mrb[0].mxu0 %vm222_vm1, %v497_v5  ;;  %476 = vmatmul.mubr.msk.bf16.vlgmr.msra.gmra.mrb[0].mxu1 %vm222_vm1, %v498_v6 }
  0xe5   : > { %v473_v7 = vpop.f32.mrb[0].mxu0  ;;  %v477_v9 = vpop.f32.mrb[0].mxu1 }
  0xe6   : > { %v273_v10 = vpop.f32.mrb[1].mxu0  ;;  %v289_v11 = vpop.f32.mrb[1].mxu1  ;;  %v282_v13 = vadd.f32 %v473_v7, %v409_v8  ;;  %v298_v17 = vadd.f32 %v477_v9, %v409_v8 }
  0xe7   : > { %v474_v12 = vpop.f32.mrb[2].mxu0  ;;  %v478_v15 = vpop.f32.mrb[2].mxu1  ;;  %v274_v18 = vadd.f32 %v409_v8, %v273_v10  ;;  %v290_v22 = vadd.f32 %v409_v8, %v289_v11 }
  0xe8   : > { %v285_v14 = vadd.f32 %v474_v12, %v409_v8  ;;  %v276_v16 = vpop.f32.mrb[3].mxu0  ;;  %v301_v19 = vadd.f32 %v478_v15, %v409_v8  ;;  %v292_v21 = vpop.f32.mrb[3].mxu1 }
  0xe9   : > { %v277_v20 = vadd.f32 %v409_v8, %v276_v16  ;;  %v293_v24 = vadd.f32 %v409_v8, %v292_v21 }
  0xea   : > { %v446_v23 = vpack.c.bf16 %v285_v14, %v282_v13  ;;  %v456_v25 = vpack.c.bf16 %v301_v19, %v298_v17 }
  0xeb   : > { %v441_v26 = vpack.c.bf16 %v277_v20, %v274_v18  ;;  %v451_v27 = vpack.c.bf16 %v293_v24, %v290_v22 }
  0xec   : > { %458 = vst [vmem:[%s172_s27 + $0x8] sm:$0xff] %v446_v23   ;;  %460 = vst [vmem:[%s172_s27 + $0x18] sm:$0xff] %v456_v25  }
  0xed   : > { %442 = vst [vmem:[%s172_s27] sm:$0xff] %v441_v26   ;;  %459 = vst [vmem:[%s172_s27 + $0x10] sm:$0xff] %v451_v27  }
  0xee PF: > { %s13_s12 = sadd.s32 1, %s505_s12  }
  0xef   : > { %p10_p4 = scmp.ge.s32.totalorder %s13_s12, 4  }
  0xf1   :  { %12 = sbr.rel (!%p10_p4) target bundleno = 1 (0x1), region = 62 }

// kernel: pixelcnn_forward.47
= control target key start
LH: loop header
LB: loop body
LE: loop exit
PB: predicated region body
PF: predicated region fallthrough
CT: control target
= control target key end

     0   :  { %s911_s15 = smov 0   ;;  %s1060_s0 = inlined_call_operand.vmem [shape: bf16[128,96], index: 0, kind: input, shape index: {}]   ;;  %s1061_s1 = inlined_call_operand.vmem [shape: bf16[96,128], index: 1, kind: input, shape index: {}]   ;;  %s1062_s2 = inlined_call_operand.vmem [shape: bf16[96,128], index: 2, kind: input, shape index: {}]   ;;  %s1063_s3 = inlined_call_operand.vmem [shape: f32[1,128], index: 3, kind: input, shape index: {}]   ;;  %s1064_s4 = inlined_call_operand.vmem [shape: bf16[128,128], index: 4, kind: output, shape index: {}]  }
   0x1 LB: > { %s693_s16 = sadd.s32 4294967295, %s883_s15   ;;  %p697_p0 = scmp.ge.s32.totalorder %s883_s15, 1  ;;  %s883_s15 = sphi %s911_s15, %s14_s15  }
   0x2   : > { %p163_p1 = scmp.lt.s32.totalorder %s883_s15, 3 }
   0x4   : > { %p164_p2 = pnand %p697_p0, %p163_p1 }
   0x5   : > { %v849_v0 = vld [vmem:[%s1062_s2] sm:$0xff] (!%p164_p2)   ;;  %s698_s19 = sshll.u32 (!%p164_p2), %s693_s16, 3  ;;  %v851_v2 = vld [vmem:[%s1062_s2 + $0x8] sm:$0xff] (!%p164_p2)   ;;  %v853_v4 = vld [vmem:[%s1062_s2 + $0x10] sm:$0xff] (!%p164_p2)   ;;  %vm371_vm1 = vcmask (!%p164_p2), 785408  }
   0x6   : > { %167 = sbr.rel (%p164_p2) target bundleno = 273 (0x111), region = 36  ;;  %v850_v1 = vld [vmem:[%s1061_s1] sm:$0xff] (!%p164_p2)   ;;  %p190_p3 = scmp.lt.s32.totalorder (!%p164_p2), %s698_s19, 15  ;;  %792 = vmatprep.subr.bf16.mxu1 (!%p164_p2), %v849_v0  ;;  %v852_v3 = vld [vmem:[%s1061_s1 + $0x8] sm:$0xff] (!%p164_p2)   ;;  %v854_v5 = vld [vmem:[%s1061_s1 + $0x10] sm:$0xff] (!%p164_p2)  }
   0x7   : > { %812 = vmatprep.subr.bf16.mxu0 (!%p164_p2), %v850_v1  ;;  %793 = vmatpush3.bf16.msra.mxu1 (!%p164_p2), %v849_v0  ;;  %v855_v6 = vld [vmem:[%s1062_s2 + $0x18] sm:$0xff] (!%p164_p2)   ;;  %v857_v8 = vld [vmem:[%s1062_s2 + $0x20] sm:$0xff] (!%p164_p2)   ;;  %v859_v20 = vld [vmem:[%s1062_s2 + $0x28] sm:$0xff] (!%p164_p2)   ;;  %v885_v48 = vmov (!%p164_p2), 1065369472  }
   0x8   : > { %813 = vmatpush3.bf16.msra.mxu0 (!%p164_p2), %v850_v1  ;;  %794 = vmatprep.subr.bf16.mxu1 (!%p164_p2), %v851_v2  ;;  %v856_v7 = vld [vmem:[%s1061_s1 + $0x18] sm:$0xff] (!%p164_p2)   ;;  %v858_v11 = vld [vmem:[%s1061_s1 + $0x20] sm:$0xff] (!%p164_p2)   ;;  %v860_v21 = vld [vmem:[%s1061_s1 + $0x28] sm:$0xff] (!%p164_p2)  }
   0x9   : > { %814 = vmatprep.subr.bf16.mxu0 (!%p164_p2), %v852_v3 }
   0xb   : > { %795 = vmatpush3.bf16.msra.mxu1 (!%p164_p2), %v851_v2 }
   0xc   : > { %815 = vmatpush3.bf16.msra.mxu0 (!%p164_p2), %v852_v3  ;;  %796 = vmatprep.subr.bf16.mxu1 (!%p164_p2), %v853_v4 }
   0xd   : > { %s1066_s19 = smov (!%p190_p3, %s698_s19), 15  ;;  %816 = vmatprep.subr.bf16.mxu0 %v854_v5 }
   0xe   : > { %s699_s30 = sshll.u32 %s1066_s19, 2 }
   0xf   : > { %s951_s11 = scalar_lea.vmem %s1060_s0, %s699_s30  ;;  %797 = vmatpush3.bf16.msra.mxu1 %v853_v4  ;;  %s199_s26 = scalar_lea.vmem %s1064_s4, %s699_s30 }
  0x10   : > { %817 = vmatpush3.bf16.msra.mxu0 %v854_v5  ;;  %798 = vmatprep.subr.bf16.mxu1 %v855_v6  ;;  %v957_v9 = vld [vmem:[%s951_s11] sm:$0xf]  ;;  %v960_v10 = vld [vmem:[%s951_s11 + $0x4] sm:$0xf]  ;;  %v968_v14 = vld [vmem:[%s951_s11 + $0x8] sm:$0xf] }
  0x11   : > { %818 = vmatprep.subr.bf16.mxu0 %v856_v7  ;;  %v211_v12 = vand.u32 2147450879, %v957_v9  ;;  %v212_v13 = vand.u32 2147450879, %v960_v10  ;;  %v971_v15 = vld [vmem:[%s951_s11 + $0xc] sm:$0xf] }
  0x12   : > { %v213_v18 = vand.u32 2147450879, %v968_v14  ;;  %v214_v19 = vand.u32 2147450879, %v971_v15  ;;  %v982_v22 = vld [vmem:[%s951_s11 + $0x10] sm:$0xf] }
  0x13   : > { %799 = vmatpush3.bf16.msra.mxu1 %v855_v6  ;;  %v219_v16 = vsub.bf16 0, %v211_v12  ;;  %v220_v17 = vsub.bf16 0, %v212_v13  ;;  %v985_v27 = vld [vmem:[%s951_s11 + $0x14] sm:$0xf]  ;;  %v215_v28 = vand.u32 2147450879, %v982_v22 }
  0x14   : > { %819 = vmatpush3.bf16.msra.mxu0 %v856_v7  ;;  %800 = vmatprep.subr.bf16.mxu1 %v857_v8  ;;  %v221_v25 = vsub.bf16 0, %v213_v18  ;;  %v222_v26 = vsub.bf16 0, %v214_v19  ;;  %v216_v31 = vand.u32 2147450879, %v985_v27  ;;  %v990_v33 = vld [vmem:[%s951_s11 + $0x18] sm:$0xf] }
  0x15   : > { %820 = vmatprep.subr.bf16.mxu0 %v858_v11  ;;  %v228_v23 = vmul.bf16 1069105081, %v219_v16  ;;  %v231_v24 = vmul.bf16 1069105081, %v220_v17  ;;  %v223_v32 = vsub.bf16 0, %v215_v28  ;;  %v275_v44 = vsub.bf16 0, %v957_v9 }
  0x16   : > { %v234_v29 = vmul.bf16 1069105081, %v221_v25  ;;  %v237_v30 = vmul.bf16 1069105081, %v222_v26  ;;  %v224_v34 = vsub.bf16 0, %v216_v31  ;;  %vm259_vm0 = vcmp.gt.bf16.partialorder %v957_v9, 0 }
  0x17   : > { %801 = vmatpush3.bf16.msra.mxu1 %v857_v8  ;;  %861 = vpow.bf16 %v228_v23  ;;  %v993_v35 = vld [vmem:[%s951_s11 + $0x1c] sm:$0xf]  ;;  %v217_v36 = vand.u32 2147450879, %v990_v33  ;;  %v240_v37 = vmul.bf16 1069105081, %v223_v32 }
  0x18   : > { %821 = vmatpush3.bf16.msra.mxu0 %v858_v11  ;;  %802 = vmatprep.subr.bf16.mxu1 %v859_v20  ;;  %863 = vpow.bf16 %v231_v24  ;;  %v218_v38 = vand.u32 2147450879, %v993_v35  ;;  %v243_v39 = vmul.bf16 1069105081, %v224_v34  ;;  %v276_v46 = vsub.bf16 0, %v960_v10 }
  0x19   : > { %822 = vmatprep.subr.bf16.mxu0 %v860_v21  ;;  %865 = vpow.bf16 %v234_v29  ;;  %v225_v40 = vsub.bf16 0, %v217_v36  ;;  %vm260_vm2 = vcmp.gt.bf16.partialorder %v960_v10, 0  ;;  %vm261_vm3 = vcmp.gt.bf16.partialorder %v968_v14, 0 }
  0x1a   : > { %867 = vpow.bf16 %v237_v30  ;;  %v226_v41 = vsub.bf16 0, %v218_v38  ;;  %v277_v50 = vsub.bf16 0, %v968_v14  ;;  %vm262_vm4 = vcmp.gt.bf16.partialorder %v971_v15, 0 }
  0x1b   : > { %803 = vmatpush3.bf16.msra.mxu1 %v859_v20  ;;  %869 = vpow.bf16 %v240_v37  ;;  %v246_v42 = vmul.bf16 1069105081, %v225_v40  ;;  %v278_v53 = vsub.bf16 0, %v971_v15  ;;  %vm263_vm5 = vcmp.gt.bf16.partialorder %v982_v22, 0 }
  0x1c   : > { %823 = vmatpush3.bf16.msra.mxu0 %v860_v21  ;;  %871 = vpow.bf16 %v243_v39  ;;  %v249_v43 = vmul.bf16 1069105081, %v226_v41  ;;  %v279_v58 = vsub.bf16 0, %v982_v22  ;;  %v280_v62 = vsub.bf16 0, %v985_v27 }
  0x1d   : > { %873 = vpow.bf16 %v246_v42  ;;  %vm264_vm6 = vcmp.gt.bf16.partialorder %v985_v27, 0  ;;  %v281_v11 = vsub.bf16 0, %v990_v33  ;;  %vm265_vm7 = vcmp.gt.bf16.partialorder %v990_v33, 0 }
  0x1e   : > { %875 = vpow.bf16 %v249_v43  ;;  %vm266_vm8 = vcmp.gt.bf16.partialorder %v993_v35, 0 }
  0x22   : > { %v862_v45 = vpop.eup %861 }
  0x23   : > { %v864_v47 = vpop.eup %863  ;;  %v251_v49 = vsub.bf16 %v862_v45, %v885_v48 }
  0x24   : > { %v866_v51 = vpop.eup %865  ;;  %v252_v52 = vsub.bf16 %v864_v47, %v885_v48 }
  0x25   : > { %v868_v54 = vpop.eup %867  ;;  %v283_v55 = vsel %vm259_vm0, %v251_v49, %v275_v44  ;;  %v267_v56 = vsel %vm259_vm0, %v957_v9, %v251_v49  ;;  %v253_v57 = vsub.bf16 %v866_v51, %v885_v48 }
  0x26   : > { %v284_v59 = vsel %vm260_vm2, %v252_v52, %v276_v46  ;;  %v268_v60 = vsel %vm260_vm2, %v960_v10, %v252_v52  ;;  %v254_v61 = vsub.bf16 %v868_v54, %v885_v48  ;;  %v870_v63 = vpop.eup %869 }
  0x27   : > { %v702_v0 = vcombine.low %v283_v55, %v284_v59  ;;  %v716_v1 = vcombine.low %v267_v56, %v268_v60  ;;  %v285_v2 = vsel %vm261_vm3, %v253_v57, %v277_v50  ;;  %v269_v3 = vsel %vm261_vm3, %v968_v14, %v253_v57  ;;  %v872_v4 = vpop.eup %871 }
  0x28   : > { %v286_v5 = vsel %vm262_vm4, %v254_v61, %v278_v53  ;;  %v270_v6 = vsel %vm262_vm4, %v971_v15, %v254_v61  ;;  %v255_v7 = vsub.bf16 %v870_v63, %v885_v48  ;;  %v256_v10 = vsub.bf16 %v872_v4, %v885_v48  ;;  %v874_v12 = vpop.eup %873 }
  0x29   : > { %804 = vmatprep.mubr.msk.bf16.mxu1 %vm371_vm1, %v702_v0  ;;  %824 = vmatprep.mubr.msk.bf16.mxu0 %vm371_vm1, %v716_v1  ;;  %v703_v8 = vcombine.low %v285_v2, %v286_v5  ;;  %v717_v9 = vcombine.low %v269_v3, %v270_v6  ;;  %v282_v15 = vsub.bf16 0, %v993_v35  ;;  %v876_v16 = vpop.eup %875  ;;  %v257_v19 = vsub.bf16 %v874_v12, %v885_v48 }
  0x2a   : > { %v287_v13 = vsel %vm263_vm5, %v255_v7, %v279_v58  ;;  %v271_v14 = vsel %vm263_vm5, %v982_v22, %v255_v7  ;;  %v288_v17 = vsel %vm264_vm6, %v256_v10, %v280_v62  ;;  %v272_v18 = vsel %vm264_vm6, %v985_v27, %v256_v10 }
  0x2b   : > { %805 = vmatmul.mubr.msk.bf16.vlgmr.msra.gmra.mrb[0].mxu1 %vm371_vm1, %v703_v8  ;;  %825 = vmatmul.mubr.msk.bf16.vlgmr.msra.gmra.mrb[0].mxu0 %vm371_vm1, %v717_v9  ;;  %v704_v20 = vcombine.low %v287_v13, %v288_v17  ;;  %v718_v21 = vcombine.low %v271_v14, %v272_v18  ;;  %v258_v22 = vsub.bf16 %v876_v16, %v885_v48 }
  0x2c   : > { %v289_v23 = vsel %vm265_vm7, %v257_v19, %v281_v11  ;;  %v273_v24 = vsel %vm265_vm7, %v990_v33, %v257_v19  ;;  %v730_v33 = vld [vmem:[%s1063_s3] ss:$0 sm:$0xff] }
  0x2d   : > { %808 = vmatprep.mubr.msk.bf16.mxu1 %vm371_vm1, %v704_v20  ;;  %828 = vmatprep.mubr.msk.bf16.mxu0 %vm371_vm1, %v718_v21  ;;  %v290_v25 = vsel %vm266_vm8, %v258_v22, %v282_v15  ;;  %v274_v26 = vsel %vm266_vm8, %v993_v35, %v258_v22 }
  0x2e   : > { %v705_v28 = vcombine.low %v289_v23, %v290_v25  ;;  %v719_v29 = vcombine.low %v273_v24, %v274_v26 }
  0x33   : > { %809 = vmatmul.mubr.msk.bf16.gmra.mrb[4].mxu1 %vm371_vm1, %v705_v28  ;;  %829 = vmatmul.mubr.msk.bf16.gmra.mrb[4].mxu0 %vm371_vm1, %v719_v29 }
  0xfe   : > { %v806_v27 = vpop.f32.mrb[0].mxu1  ;;  %v826_v30 = vpop.f32.mrb[0].mxu0 }
  0xff   : > { %v560_v31 = vadd.f32 %v826_v30, %v806_v27  ;;  %v418_v32 = vpop.f32.mrb[1].mxu1  ;;  %v551_v34 = vpop.f32.mrb[1].mxu0 }
 0x100   : > { %v552_v36 = vadd.f32 %v551_v34, %v418_v32  ;;  %v807_v37 = vpop.f32.mrb[2].mxu1  ;;  %v827_v38 = vpop.f32.mrb[2].mxu0 }
 0x101   : > { %v563_v35 = vadd.f32 %v827_v38, %v807_v37  ;;  %v421_v39 = vpop.f32.mrb[3].mxu1  ;;  %v554_v40 = vpop.f32.mrb[3].mxu0  ;;  %v591_v42 = vadd.f32 %v730_v33, %v560_v31 }
 0x102   : > { %v555_v41 = vadd.f32 %v554_v40, %v421_v39  ;;  %v589_v44 = vadd.f32 %v730_v33, %v552_v36 }
 0x103   : > { %v592_v43 = vadd.f32 %v730_v33, %v563_v35 }
 0x104   : > { %v590_v45 = vadd.f32 %v730_v33, %v555_v41 }
 0x105   : > { %v757_v46 = vpack.c.bf16 %v592_v43, %v591_v42 }
 0x106   : > { %v752_v47 = vpack.c.bf16 %v590_v45, %v589_v44  ;;  %v810_v48 = vpop.f32.mrb[4].mxu1  ;;  %v830_v49 = vpop.f32.mrb[4].mxu0 }
 0x107   : > { %769 = vst [vmem:[%s199_s26 + $0x8] sm:$0xff] %v757_v46   ;;  %v576_v50 = vadd.f32 %v830_v49, %v810_v48  ;;  %v434_v51 = vpop.f32.mrb[5].mxu1  ;;  %v567_v52 = vpop.f32.mrb[5].mxu0 }
 0x108   : > { %753 = vst [vmem:[%s199_s26] sm:$0xff] %v752_v47   ;;  %v568_v53 = vadd.f32 %v567_v52, %v434_v51  ;;  %v811_v54 = vpop.f32.mrb[6].mxu1  ;;  %v831_v55 = vpop.f32.mrb[6].mxu0 }
 0x109   : > { %v579_v56 = vadd.f32 %v831_v55, %v811_v54  ;;  %v437_v57 = vpop.f32.mrb[7].mxu1  ;;  %v570_v58 = vpop.f32.mrb[7].mxu0  ;;  %v595_v60 = vadd.f32 %v730_v33, %v576_v50 }
 0x10a   : > { %v571_v59 = vadd.f32 %v570_v58, %v437_v57  ;;  %v593_v62 = vadd.f32 %v730_v33, %v568_v53 }
 0x10b   : > { %v596_v61 = vadd.f32 %v730_v33, %v579_v56 }
 0x10c   : > { %v594_v63 = vadd.f32 %v730_v33, %v571_v59 }
 0x10d   : > { %v767_v0 = vpack.c.bf16 %v596_v61, %v595_v60 }
 0x10e   : > { %v762_v1 = vpack.c.bf16 %v594_v63, %v593_v62 }
 0x10f   : > { %771 = vst [vmem:[%s199_s26 + $0x18] sm:$0xff] %v767_v0  }
 0x110   : > { %770 = vst [vmem:[%s199_s26 + $0x10] sm:$0xff] %v762_v1  }
 0x111 PF: > { %s14_s15 = sadd.s32 1, %s883_s15  }
 0x112   : > { %p11_p4 = scmp.ge.s32.totalorder %s14_s15, 4  }
 0x114   :  { %13 = sbr.rel (!%p11_p4) target bundleno = 1 (0x1), region = 66 }

// kernel: pixelcnn_forward.48
= control target key start
LH: loop header
LB: loop body
LE: loop exit
PB: predicated region body
PF: predicated region fallthrough
CT: control target
= control target key end

     0   :  { %s1572_s27 = smov 0   ;;  %s1875_s0 = inlined_call_operand.vmem [shape: bf16[128,96], index: 0, kind: input, shape index: {}]   ;;  %s1876_s1 = inlined_call_operand.vmem [shape: bf16[96,128], index: 1, kind: input, shape index: {}]   ;;  %s1877_s2 = inlined_call_operand.vmem [shape: bf16[96,128], index: 2, kind: input, shape index: {}]   ;;  %s1878_s3 = inlined_call_operand.vmem [shape: bf16[96,128], index: 3, kind: input, shape index: {}]   ;;  %s1879_s4 = inlined_call_operand.vmem [shape: bf16[96,128], index: 4, kind: input, shape index: {}]   ;;  %s1880_s5 = inlined_call_operand.vmem [shape: f32[1,128], index: 5, kind: input, shape index: {}, may-alias: {5,6}]   ;;  %s1881_s6 = inlined_call_operand.vmem [shape: f32[1,128], index: 6, kind: input, shape index: {}, may-alias: {5,6}]   ;;  %s1882_s7 = inlined_call_operand.vmem [shape: bf16[128,128], index: 7, kind: input, shape index: {}]   ;;  %s1883_s8 = inlined_call_operand.vmem [shape: bf16[128,128], index: 8, kind: output, shape index: {}]  }
   0x1 LB: > { %s1180_s28 = sadd.s32 4294967295, %s1524_s27   ;;  %p1184_p0 = scmp.ge.s32.totalorder %s1524_s27, 1  ;;  %s1524_s27 = sphi %s1572_s27, %s18_s27  }
   0x2   : > { %p274_p1 = scmp.lt.s32.totalorder %s1524_s27, 3 }
   0x4   : > { %p275_p2 = pnand %p1184_p0, %p274_p1 }
   0x5   : > { %v1446_v0 = vld [vmem:[%s1879_s4] sm:$0xff] (!%p275_p2)   ;;  %s1185_s9 = sshll.u32 (!%p275_p2), %s1180_s28, 3  ;;  %v1447_v1 = vld [vmem:[%s1879_s4 + $0x8] sm:$0xff] (!%p275_p2)   ;;  %v1449_v3 = vld [vmem:[%s1879_s4 + $0x10] sm:$0xff] (!%p275_p2)   ;;  %vm535_vm0 = vcmask (!%p275_p2), 785408  }
   0x6   : > { %278 = sbr.rel (%p275_p2) target bundleno = 331 (0x14b), region = 52  ;;  %p314_p3 = scmp.lt.s32.totalorder (!%p275_p2), %s1185_s9, 15  ;;  %1381 = vmatprep.subr.bf16.mxu1 (!%p275_p2), %v1446_v0  ;;  %v1448_v2 = vld [vmem:[%s1877_s2] sm:$0xff] (!%p275_p2)   ;;  %v1450_v4 = vld [vmem:[%s1877_s2 + $0x8] sm:$0xff] (!%p275_p2)   ;;  %v1452_v5 = vld [vmem:[%s1877_s2 + $0x10] sm:$0xff] (!%p275_p2)  }
   0x7   : > { %1382 = vmatpush3.bf16.msra.mxu1 (!%p275_p2), %v1446_v0  ;;  %1341 = vmatprep.subr.bf16.mxu0 (!%p275_p2), %v1448_v2  ;;  %v1451_v6 = vld [vmem:[%s1879_s4 + $0x18] sm:$0xff] (!%p275_p2)   ;;  %v1453_v10 = vld [vmem:[%s1879_s4 + $0x20] sm:$0xff] (!%p275_p2)   ;;  %v1455_v17 = vld [vmem:[%s1879_s4 + $0x28] sm:$0xff] (!%p275_p2)   ;;  %v1526_v47 = vmov (!%p275_p2), 1065369472  }
   0x8   : > { %1383 = vmatprep.subr.bf16.mxu1 (!%p275_p2), %v1447_v1  ;;  %1342 = vmatpush3.bf16.msra.mxu0 (!%p275_p2), %v1448_v2  ;;  %v1454_v7 = vld [vmem:[%s1877_s2 + $0x18] sm:$0xff] (!%p275_p2)   ;;  %v1456_v13 = vld [vmem:[%s1877_s2 + $0x20] sm:$0xff] (!%p275_p2)   ;;  %v1458_v26 = vld [vmem:[%s1877_s2 + $0x28] sm:$0xff] (!%p275_p2)  }
   0x9   : > { %1343 = vmatprep.subr.bf16.mxu0 (!%p275_p2), %v1450_v4  ;;  %v1640_v24 = vld [vmem:[%s1878_s3] sm:$0xff] (!%p275_p2)   ;;  %v1462_v2 = vld [vmem:[%s1876_s1 + $0x8] sm:$0xff] (!%p275_p2)  }
   0xa   : > { %v1460_v29 = vld [vmem:[%s1876_s1] sm:$0xff] (!%p275_p2)  }
   0xb   : > { %1384 = vmatpush3.bf16.msra.mxu1 (!%p275_p2), %v1447_v1  ;;  %v1459_v1 = vld [vmem:[%s1878_s3 + $0x8] sm:$0xff] (!%p275_p2)  }
   0xc   : > { %1385 = vmatprep.subr.bf16.mxu1 (!%p275_p2), %v1449_v3  ;;  %1344 = vmatpush3.bf16.msra.mxu0 (!%p275_p2), %v1450_v4  ;;  %v1464_v4 = vld [vmem:[%s1876_s1 + $0x10] sm:$0xff] (!%p275_p2)  }
   0xd   : > { %s1885_s9 = smov (!%p314_p3, %s1185_s9), 15  ;;  %1345 = vmatprep.subr.bf16.mxu0 %v1452_v5 }
   0xe   : > { %s1595_s18 = sshll.u32 %s1885_s9, 2 }
   0xf   : > { %s1607_s25 = scalar_lea.vmem %s1875_s0, %s1595_s18  ;;  %1386 = vmatpush3.bf16.msra.mxu1 %v1449_v3  ;;  %v1461_v3 = vld [vmem:[%s1878_s3 + $0x10] sm:$0xff]   ;;  %s1823_s24 = scalar_lea.vmem %s1882_s7, %s1595_s18 }
  0x10   : > { %v1613_v8 = vld [vmem:[%s1607_s25] sm:$0xf]  ;;  %v1616_v9 = vld [vmem:[%s1607_s25 + $0x4] sm:$0xf]  ;;  %1387 = vmatprep.subr.bf16.mxu1 %v1451_v6  ;;  %1346 = vmatpush3.bf16.msra.mxu0 %v1452_v5  ;;  %v1627_v16 = vld [vmem:[%s1607_s25 + $0x8] sm:$0xf]  ;;  %s1858_s30 = scalar_lea.vmem %s1883_s8, %s1595_s18 }
  0x11   : > { %v341_v11 = vand.u32 2147450879, %v1613_v8  ;;  %v342_v12 = vand.u32 2147450879, %v1616_v9  ;;  %1347 = vmatprep.subr.bf16.mxu0 %v1454_v7  ;;  %v1633_v18 = vld [vmem:[%s1607_s25 + $0xc] sm:$0xf] }
  0x12   : > { %v343_v19 = vand.u32 2147450879, %v1627_v16  ;;  %v344_v22 = vand.u32 2147450879, %v1633_v18  ;;  %v1650_v30 = vld [vmem:[%s1607_s25 + $0x10] sm:$0xf] }
  0x13   : > { %v349_v14 = vsub.bf16 0, %v341_v11  ;;  %v350_v15 = vsub.bf16 0, %v342_v12  ;;  %1388 = vmatpush3.bf16.msra.mxu1 %v1451_v6  ;;  %v1653_v31 = vld [vmem:[%s1607_s25 + $0x14] sm:$0xf]  ;;  %v345_v32 = vand.u32 2147450879, %v1650_v30 }
  0x14   : > { %1389 = vmatprep.subr.bf16.mxu1 %v1453_v10  ;;  %1348 = vmatpush3.bf16.msra.mxu0 %v1454_v7  ;;  %v351_v23 = vsub.bf16 0, %v343_v19  ;;  %v352_v25 = vsub.bf16 0, %v344_v22  ;;  %vm389_vm1 = vcmp.gt.bf16.partialorder %v1613_v8, 0  ;;  %vm390_vm2 = vcmp.gt.bf16.partialorder %v1616_v9, 0  ;;  %v1660_v34 = vld [vmem:[%s1607_s25 + $0x18] sm:$0xf] }
  0x15   : > { %v358_v20 = vmul.bf16 1069105081, %v349_v14  ;;  %v361_v21 = vmul.bf16 1069105081, %v350_v15  ;;  %1349 = vmatprep.subr.bf16.mxu0 %v1456_v13  ;;  %v346_v33 = vand.u32 2147450879, %v1653_v31 }
  0x16   : > { %v364_v27 = vmul.bf16 1069105081, %v351_v23  ;;  %v367_v28 = vmul.bf16 1069105081, %v352_v25  ;;  %v405_v35 = vsub.bf16 0, %v1613_v8  ;;  %v353_v36 = vsub.bf16 0, %v345_v32 }
  0x17   : > { %1470 = vpow.bf16 %v358_v20  ;;  %1390 = vmatpush3.bf16.msra.mxu1 %v1453_v10  ;;  %v1664_v37 = vld [vmem:[%s1607_s25 + $0x1c] sm:$0xf]  ;;  %v347_v38 = vand.u32 2147450879, %v1660_v34  ;;  %v406_v39 = vsub.bf16 0, %v1616_v9  ;;  %vm391_vm3 = vcmp.gt.bf16.partialorder %v1627_v16, 0 }
  0x18   : > { %1472 = vpow.bf16 %v361_v21  ;;  %1391 = vmatprep.subr.bf16.mxu1 %v1455_v17  ;;  %1350 = vmatpush3.bf16.msra.mxu0 %v1456_v13  ;;  %v354_v40 = vsub.bf16 0, %v346_v33  ;;  %v348_v41 = vand.u32 2147450879, %v1664_v37  ;;  %v407_v43 = vsub.bf16 0, %v1627_v16  ;;  %v1463_v19 = vld [vmem:[%s1878_s3 + $0x18] sm:$0xff]  }
  0x19   : > { %1474 = vpow.bf16 %v364_v27  ;;  %1351 = vmatprep.subr.bf16.mxu0 %v1458_v26  ;;  %v370_v44 = vmul.bf16 1069105081, %v353_v36  ;;  %v355_v45 = vsub.bf16 0, %v347_v38  ;;  %v408_v49 = vsub.bf16 0, %v1633_v18  ;;  %v1469_v36 = vld [vmem:[%s1876_s1 + $0x28] sm:$0xff]  }
  0x1a   : > { %1476 = vpow.bf16 %v367_v28  ;;  %v373_v50 = vmul.bf16 1069105081, %v354_v40  ;;  %v356_v51 = vsub.bf16 0, %v348_v41  ;;  %vm392_vm4 = vcmp.gt.bf16.partialorder %v1633_v18, 0 }
  0x1b   : > { %1392 = vmatpush3.bf16.msra.mxu1 %v1455_v17  ;;  %1478 = vpow.bf16 %v370_v44  ;;  %v376_v53 = vmul.bf16 1069105081, %v355_v45  ;;  %v409_v5 = vsub.bf16 0, %v1650_v30  ;;  %vm393_vm5 = vcmp.gt.bf16.partialorder %v1650_v30, 0 }
  0x1c   : > { %1401 = vmatprep.subr.bf16.mxu1 %v1640_v24  ;;  %1352 = vmatpush3.bf16.msra.mxu0 %v1458_v26  ;;  %1480 = vpow.bf16 %v373_v50  ;;  %v379_v56 = vmul.bf16 1069105081, %v356_v51  ;;  %v410_v7 = vsub.bf16 0, %v1653_v31  ;;  %vm394_vm6 = vcmp.gt.bf16.partialorder %v1653_v31, 0 }
  0x1d   : > { %1361 = vmatprep.subr.bf16.mxu0 %v1460_v29  ;;  %1482 = vpow.bf16 %v376_v53  ;;  %v411_v12 = vsub.bf16 0, %v1660_v34  ;;  %vm395_vm7 = vcmp.gt.bf16.partialorder %v1660_v34, 0  ;;  %v412_v15 = vsub.bf16 0, %v1664_v37 }
  0x1e   : > { %1484 = vpow.bf16 %v379_v56  ;;  %vm396_vm8 = vcmp.gt.bf16.partialorder %v1664_v37, 0 }
  0x22   : > { %v1471_v42 = vpop.eup %1470 }
  0x23   : > { %v1473_v46 = vpop.eup %1472  ;;  %v381_v48 = vsub.bf16 %v1471_v42, %v1526_v47 }
  0x24   : > { %v382_v52 = vsub.bf16 %v1473_v46, %v1526_v47  ;;  %v1475_v54 = vpop.eup %1474 }
  0x25   : > { %v413_v55 = vsel %vm389_vm1, %v381_v48, %v405_v35  ;;  %v1477_v57 = vpop.eup %1476  ;;  %v1676_v59 = vsub.bf16 %v1475_v54, %v1526_v47  ;;  %v397_v25 = vsel %vm389_vm1, %v1613_v8, %v381_v48  ;;  %v1465_v8 = vld [vmem:[%s1878_s3 + $0x20] sm:$0xff]   ;;  %v1467_v35 = vld [vmem:[%s1878_s3 + $0x28] sm:$0xff]  }
  0x26   : > { %v414_v58 = vsel %vm390_vm2, %v382_v52, %v406_v39  ;;  %v1679_v61 = vsub.bf16 %v1477_v57, %v1526_v47  ;;  %v1479_v6 = vpop.eup %1478  ;;  %v398_v26 = vsel %vm390_vm2, %v1616_v9, %v382_v52  ;;  %v1468_v9 = vld [vmem:[%s1876_s1 + $0x20] sm:$0xff]  }
  0x27   : > { %v1191_v60 = vcombine.low %v413_v55, %v414_v58  ;;  %v415_v62 = vsel %vm391_vm3, %v1676_v59, %v407_v43  ;;  %v1481_v10 = vpop.eup %1480  ;;  %v385_v11 = vsub.bf16 %v1479_v6, %v1526_v47  ;;  %v1205_v33 = vcombine.low %v397_v25, %v398_v26  ;;  %v1240_v43 = vld [vmem:[%s1881_s6] ss:$0 sm:$0xff] }
  0x28   : > { %v416_v63 = vsel %vm392_vm4, %v1679_v61, %v408_v49  ;;  %v1483_v13 = vpop.eup %1482  ;;  %v386_v14 = vsub.bf16 %v1481_v10, %v1526_v47  ;;  %v399_v38 = vsel %vm391_vm3, %v1627_v16, %v1676_v59  ;;  %v400_v39 = vsel %vm392_vm4, %v1633_v18, %v1679_v61 }
  0x29   : > { %1393 = vmatprep.mubr.msk.bf16.mxu1 %vm535_vm0, %v1191_v60  ;;  %1353 = vmatprep.mubr.msk.bf16.mxu0 %vm535_vm0, %v1191_v60  ;;  %v1192_v0 = vcombine.low %v415_v62, %v416_v63  ;;  %v1485_v17 = vpop.eup %1484  ;;  %v417_v20 = vsel %vm393_vm5, %v385_v11, %v409_v5  ;;  %v387_v21 = vsub.bf16 %v1483_v13, %v1526_v47 }
  0x2a   : > { %v418_v22 = vsel %vm394_vm6, %v386_v14, %v410_v7  ;;  %v388_v23 = vsub.bf16 %v1485_v17, %v1526_v47  ;;  %v401_v40 = vsel %vm393_vm5, %v1650_v30, %v385_v11  ;;  %v402_v41 = vsel %vm394_vm6, %v1653_v31, %v386_v14 }
  0x2b   : > { %1394 = vmatmul.mubr.msk.bf16.vlgmr.msra.gmra.mrb[0].mxu1 %vm535_vm0, %v1192_v0  ;;  %1354 = vmatmul.mubr.msk.bf16.vlgmr.msra.gmra.mrb[0].mxu0 %vm535_vm0, %v1192_v0  ;;  %v1193_v27 = vcombine.low %v417_v20, %v418_v22  ;;  %v419_v28 = vsel %vm395_vm7, %v387_v21, %v411_v12  ;;  %v1206_v42 = vcombine.low %v399_v38, %v400_v39 }
  0x2c   : > { %1402 = vmatpush3.bf16.msra.mxu1 %v1640_v24  ;;  %1362 = vmatpush3.bf16.msra.mxu0 %v1460_v29  ;;  %v1466_v24 = vld [vmem:[%s1876_s1 + $0x18] sm:$0xff]   ;;  %v420_v29 = vsel %vm396_vm8, %v388_v23, %v412_v15  ;;  %v1207_v16 = vcombine.low %v401_v40, %v402_v41  ;;  %v403_v18 = vsel %vm395_vm7, %v1660_v34, %v387_v21  ;;  %v1295_v41 = vld [vmem:[%s1823_s24 + $0x8] sm:$0xff]  }
  0x2d   : > { %1403 = vmatprep.subr.bf16.mxu1 %v1459_v1  ;;  %1363 = vmatprep.subr.bf16.mxu0 %v1462_v2  ;;  %v1194_v32 = vcombine.low %v419_v28, %v420_v29  ;;  %v404_v30 = vsel %vm396_vm8, %v1664_v37, %v388_v23 }
  0x2e   : > { %1397 = vmatprep.mubr.msk.bf16.mxu1 %vm535_vm0, %v1193_v27  ;;  %1357 = vmatprep.mubr.msk.bf16.mxu0 %vm535_vm0, %v1193_v27  ;;  %v1208_v31 = vcombine.low %v403_v18, %v404_v30 }
  0x30   : > { %1404 = vmatpush3.bf16.msra.mxu1 %v1459_v1  ;;  %1364 = vmatpush3.bf16.msra.mxu0 %v1462_v2 }
  0x31   : > { %1405 = vmatprep.subr.bf16.mxu1 %v1461_v3  ;;  %1365 = vmatprep.subr.bf16.mxu0 %v1464_v4 }
  0x33   : > { %1398 = vmatmul.mubr.msk.bf16.gmra.mrb[4].mxu1 %vm535_vm0, %v1194_v32  ;;  %1358 = vmatmul.mubr.msk.bf16.gmra.mrb[4].mxu0 %vm535_vm0, %v1194_v32 }
  0x34   : > { %1406 = vmatpush3.bf16.msra.mxu1 %v1461_v3  ;;  %1366 = vmatpush3.bf16.msra.mxu0 %v1464_v4 }
  0x35   : > { %1407 = vmatprep.subr.bf16.mxu1 %v1463_v19  ;;  %1367 = vmatprep.subr.bf16.mxu0 %v1466_v24 }
  0x36   : > { %1413 = vmatprep.mubr.msk.bf16.mxu1 %vm535_vm0, %v1205_v33  ;;  %1373 = vmatprep.mubr.msk.bf16.mxu0 %vm535_vm0, %v1205_v33 }
  0x38   : > { %1408 = vmatpush3.bf16.msra.mxu1 %v1463_v19  ;;  %1368 = vmatpush3.bf16.msra.mxu0 %v1466_v24 }
  0x39   : > { %1409 = vmatprep.subr.bf16.mxu1 %v1465_v8  ;;  %1369 = vmatprep.subr.bf16.mxu0 %v1468_v9 }
  0x3c   : > { %1410 = vmatpush3.bf16.msra.mxu1 %v1465_v8  ;;  %1370 = vmatpush3.bf16.msra.mxu0 %v1468_v9 }
  0x3d   : > { %1411 = vmatprep.subr.bf16.mxu1 %v1467_v35  ;;  %1371 = vmatprep.subr.bf16.mxu0 %v1469_v36 }
  0x40   : > { %1412 = vmatpush3.bf16.msra.mxu1 %v1467_v35  ;;  %1372 = vmatpush3.bf16.msra.mxu0 %v1469_v36 }
  0x43   : > { %1414 = vmatmul.mubr.msk.bf16.vlgmr.msra.gmra.mrb[0].mxu1 %vm535_vm0, %v1206_v42  ;;  %1374 = vmatmul.mubr.msk.bf16.vlgmr.msra.gmra.mrb[0].mxu0 %vm535_vm0, %v1206_v42  ;;  %v1260_v42 = vld [vmem:[%s1823_s24] sm:$0xff]  }
  0x44   : > { %1417 = vmatprep.mubr.msk.bf16.mxu1 %vm535_vm0, %v1207_v16  ;;  %1377 = vmatprep.mubr.msk.bf16.mxu0 %vm535_vm0, %v1207_v16 }
  0x4b   : > { %1418 = vmatmul.mubr.msk.bf16.gmra.mrb[4].mxu1 %vm535_vm0, %v1208_v31  ;;  %1378 = vmatmul.mubr.msk.bf16.gmra.mrb[4].mxu0 %vm535_vm0, %v1208_v31  ;;  %v1830_v31 = vld [vmem:[%s1880_s5] ss:$0 sm:$0xff] }
 0x116   : > { %v1415_v44 = vpop.f32.mrb[0].mxu1  ;;  %v1779_v45 = vpop.f32.mrb[0].mxu0 }
 0x117   : > { %v1781_v46 = vadd.f32 %v1415_v44, %v1240_v43  ;;  %v931_v34 = vpop.f32.mrb[1].mxu1  ;;  %v1783_v47 = vpop.f32.mrb[1].mxu0 }
 0x118   : > { %v1785_v37 = vadd.f32 %v1240_v43, %v931_v34  ;;  %v1416_v48 = vpop.f32.mrb[2].mxu1  ;;  %v1787_v49 = vpop.f32.mrb[2].mxu0  ;;  %v1265_v34 = vunpack.c.l.bf16 %v1295_v41 }
 0x119   : > { %v986_v50 = vand.u32 2147483647, %v1781_v46  ;;  %v1790_v51 = vadd.f32 %v1416_v48, %v1240_v43  ;;  %v934_v52 = vpop.f32.mrb[3].mxu1  ;;  %v1792_v53 = vpop.f32.mrb[3].mxu0  ;;  %v1261_v48 = vunpack.c.l.bf16 %v1260_v42  ;;  %vm1018_vm9 = vcmp.ge.f32.partialorder %v1781_v46, 0.0 }
 0x11a   : > { %v984_v54 = vand.u32 2147483647, %v1785_v37  ;;  %v1795_v55 = vadd.f32 %v1240_v43, %v934_v52  ;;  %v1266_v52 = vunpack.c.h.bf16 %v1295_v41  ;;  %vm1016_vm10 = vcmp.ge.f32.partialorder %v1785_v37, 0.0  ;;  %v1297_v37 = vld [vmem:[%s1823_s24 + $0x18] sm:$0xff]  }
 0x11b   : > { %v994_v56 = vsub.f32 0.0, %v986_v50  ;;  %v987_v57 = vand.u32 2147483647, %v1790_v51  ;;  %vm1019_vm11 = vcmp.ge.f32.partialorder %v1790_v51, 0.0 }
 0x11c   : > { %v992_v58 = vsub.f32 0.0, %v984_v54  ;;  %v985_v59 = vand.u32 2147483647, %v1795_v55  ;;  %vm1017_vm12 = vcmp.ge.f32.partialorder %v1795_v55, 0.0 }
 0x11d   : > { %v1004_v60 = vmul.f32 1.442695, %v994_v56  ;;  %v995_v61 = vsub.f32 0.0, %v987_v57 }
 0x11e   : > { %v1000_v62 = vmul.f32 1.442695, %v992_v58  ;;  %v993_v63 = vsub.f32 0.0, %v985_v59  ;;  %v1419_v0 = vpop.f32.mrb[4].mxu1  ;;  %v1799_v1 = vpop.f32.mrb[4].mxu0  ;;  %v754_v58 = vadd.f32 %v1779_v45, %v1830_v31 }
 0x11f   : > { %1486 = vpow2.f32 %v1004_v60  ;;  %v1006_v2 = vmul.f32 1.442695, %v995_v61  ;;  %v1801_v3 = vadd.f32 %v1419_v0, %v1240_v43  ;;  %v947_v4 = vpop.f32.mrb[5].mxu1  ;;  %v1803_v5 = vpop.f32.mrb[5].mxu0 }
 0x120   : > { %1488 = vpow2.f32 %v1000_v62  ;;  %v1002_v6 = vmul.f32 1.442695, %v993_v63  ;;  %v1805_v7 = vadd.f32 %v1240_v43, %v947_v4  ;;  %v1420_v10 = vpop.f32.mrb[6].mxu1  ;;  %v1807_v11 = vpop.f32.mrb[6].mxu0  ;;  %v752_v63 = vadd.f32 %v1830_v31, %v1783_v47 }
 0x121   : > { %1490 = vpow2.f32 %v1006_v2  ;;  %v990_v12 = vand.u32 2147483647, %v1801_v3  ;;  %v1810_v13 = vadd.f32 %v1420_v10, %v1240_v43  ;;  %v950_v14 = vpop.f32.mrb[7].mxu1  ;;  %v1812_v15 = vpop.f32.mrb[7].mxu0  ;;  %vm1022_vm13 = vcmp.ge.f32.partialorder %v1801_v3, 0.0 }
 0x122   : > { %1492 = vpow2.f32 %v1002_v6  ;;  %v988_v17 = vand.u32 2147483647, %v1805_v7  ;;  %v1815_v19 = vadd.f32 %v1240_v43, %v950_v14  ;;  %v755_v6 = vadd.f32 %v1787_v49, %v1830_v31 }
 0x123   : > { %v998_v20 = vsub.f32 0.0, %v990_v12  ;;  %v991_v21 = vand.u32 2147483647, %v1810_v13  ;;  %v1296_v12 = vld [vmem:[%s1823_s24 + $0x10] sm:$0xff]   ;;  %v1262_v14 = vunpack.c.h.bf16 %v1260_v42  ;;  %v756_v49 = vadd.f32 %v1830_v31, %v1803_v5 }
 0x124   : > { %v996_v22 = vsub.f32 0.0, %v988_v17  ;;  %v989_v23 = vand.u32 2147483647, %v1815_v19  ;;  %v753_v17 = vadd.f32 %v1830_v31, %v1792_v53  ;;  %vm1020_vm14 = vcmp.ge.f32.partialorder %v1805_v7, 0.0 }
 0x125   : > { %v1012_v24 = vmul.f32 1.442695, %v998_v20  ;;  %v999_v25 = vsub.f32 0.0, %v991_v21  ;;  %v1273_v21 = vunpack.c.l.bf16 %v1297_v37  ;;  %vm1023_vm15 = vcmp.ge.f32.partialorder %v1810_v13, 0.0 }
 0x126   : > { %v1008_v26 = vmul.f32 1.442695, %v996_v22  ;;  %v997_v27 = vsub.f32 0.0, %v989_v23  ;;  %v758_v22 = vadd.f32 %v1799_v1, %v1830_v31  ;;  %v1269_v23 = vunpack.c.l.bf16 %v1296_v12 }
 0x127   : > { %1494 = vpow2.f32 %v1012_v24  ;;  %v1014_v28 = vmul.f32 1.442695, %v999_v25  ;;  %v1274_v24 = vunpack.c.h.bf16 %v1297_v37  ;;  %vm1021_vm0 = vcmp.ge.f32.partialorder %v1815_v19, 0.0 }
 0x128   : > { %1496 = vpow2.f32 %v1008_v26  ;;  %v1010_v29 = vmul.f32 1.442695, %v997_v27  ;;  %v759_v7 = vadd.f32 %v1807_v11, %v1830_v31  ;;  %v1270_v41 = vunpack.c.h.bf16 %v1296_v12 }
 0x129   : > { %v1487_v32 = vpop.eup %1486  ;;  %1498 = vpow2.f32 %v1014_v28  ;;  %v757_v42 = vadd.f32 %v1830_v31, %v1812_v15 }
 0x12a   : > { %v1489_v8 = vpop.eup %1488  ;;  %v1034_v9 = vadd.f32 1.0, %v1487_v32  ;;  %1500 = vpow2.f32 %v1010_v29  ;;  %v1026_v57 = vsel %vm1018_vm9, 1.0, %v1487_v32 }
 0x12b   : > { %v1491_v33 = vpop.eup %1490  ;;  %v1032_v35 = vadd.f32 1.0, %v1489_v8  ;;  %v1024_v60 = vsel %vm1016_vm10, 1.0, %v1489_v8 }
 0x12c   : > { %v1493_v36 = vpop.eup %1492  ;;  %v1035_v38 = vadd.f32 1.0, %v1491_v33  ;;  %1502 = vrcp.f32 %v1034_v9  ;;  %v1027_v62 = vsel %vm1019_vm11, 1.0, %v1491_v33 }
 0x12d   : > { %v1033_v39 = vadd.f32 1.0, %v1493_v36  ;;  %1504 = vrcp.f32 %v1032_v35  ;;  %v1025_v4 = vsel %vm1017_vm12, 1.0, %v1493_v36 }
 0x12e   : > { %1506 = vrcp.f32 %v1035_v38 }
 0x12f   : > { %1508 = vrcp.f32 %v1033_v39 }
 0x131   : > { %v1495_v40 = vpop.eup %1494 }
 0x132   : > { %v1497_v16 = vpop.eup %1496  ;;  %v1038_v18 = vadd.f32 1.0, %v1495_v40  ;;  %v1030_v53 = vsel %vm1022_vm13, 1.0, %v1495_v40 }
 0x133   : > { %v1499_v30 = vpop.eup %1498  ;;  %v1036_v43 = vadd.f32 1.0, %v1497_v16  ;;  %v1028_v8 = vsel %vm1020_vm14, 1.0, %v1497_v16 }
 0x134   : > { %v1832_v44 = vpop.eup %1500  ;;  %v1039_v50 = vadd.f32 1.0, %v1499_v30  ;;  %1510 = vrcp.f32 %v1038_v18  ;;  %v1031_v33 = vsel %vm1023_vm15, 1.0, %v1499_v30 }
 0x135   : > { %v1037_v54 = vadd.f32 1.0, %v1832_v44  ;;  %1512 = vrcp.f32 %v1036_v43  ;;  %v1029_v38 = vsel %vm1021_vm0, 1.0, %v1832_v44 }
 0x136   : > { %v1503_v56 = vpop.eup %1502  ;;  %1514 = vrcp.f32 %v1039_v50 }
 0x137   : > { %v1505_v59 = vpop.eup %1504  ;;  %v1050_v61 = vmul.f32 %v1503_v56, %v1026_v57  ;;  %1516 = vrcp.f32 %v1037_v54 }
 0x138   : > { %v1507_v46 = vpop.eup %1506  ;;  %v1048_v0 = vmul.f32 %v1505_v59, %v1024_v60 }
 0x139   : > { %v1509_v2 = vpop.eup %1508  ;;  %v1058_v45 = vmul.f32 %v1050_v61, %v754_v58  ;;  %v1051_v10 = vmul.f32 %v1507_v46, %v1027_v62 }
 0x13a   : > { %v1056_v51 = vmul.f32 %v1048_v0, %v752_v63  ;;  %v1049_v55 = vmul.f32 %v1509_v2, %v1025_v4 }
 0x13b   : > { %v1059_v20 = vmul.f32 %v1051_v10, %v755_v6  ;;  %v1066_v25 = vadd.f32 %v1265_v34, %v1058_v45 }
 0x13c   : > { %v1057_v47 = vmul.f32 %v1049_v55, %v753_v17  ;;  %v1064_v28 = vadd.f32 %v1261_v48, %v1056_v51 }
 0x13d   : > { %v1067_v26 = vadd.f32 %v1266_v52, %v1059_v20 }
 0x13e   : > { %v1511_v27 = vpop.eup %1510  ;;  %v1065_v29 = vadd.f32 %v1262_v14, %v1057_v47 }
 0x13f   : > { %v1513_v1 = vpop.eup %1512  ;;  %v1283_v32 = vpack.c.bf16 %v1067_v26, %v1066_v25  ;;  %v1054_v3 = vmul.f32 %v1511_v27, %v1030_v53 }
 0x140   : > { %v1515_v5 = vpop.eup %1514  ;;  %v1278_v9 = vpack.c.bf16 %v1065_v29, %v1064_v28  ;;  %v1052_v35 = vmul.f32 %v1513_v1, %v1028_v8 }
 0x141   : > { %v1517_v36 = vpop.eup %1516  ;;  %1298 = vst [vmem:[%s1858_s30 + $0x8] sm:$0xff] %v1283_v32   ;;  %v1062_v39 = vmul.f32 %v1054_v3, %v758_v22  ;;  %v1055_v40 = vmul.f32 %v1515_v5, %v1031_v33 }
 0x142   : > { %1279 = vst [vmem:[%s1858_s30] sm:$0xff] %v1278_v9   ;;  %v1060_v13 = vmul.f32 %v1052_v35, %v756_v49  ;;  %v1053_v16 = vmul.f32 %v1517_v36, %v1029_v38 }
 0x143   : > { %v1063_v19 = vmul.f32 %v1055_v40, %v759_v7  ;;  %v1070_v30 = vadd.f32 %v1273_v21, %v1062_v39 }
 0x144   : > { %v1061_v18 = vmul.f32 %v1053_v16, %v757_v42  ;;  %v1068_v34 = vadd.f32 %v1269_v23, %v1060_v13 }
 0x145   : > { %v1071_v43 = vadd.f32 %v1274_v24, %v1063_v19 }
 0x146   : > { %v1069_v44 = vadd.f32 %v1270_v41, %v1061_v18 }
 0x147   : > { %v1293_v48 = vpack.c.bf16 %v1071_v43, %v1070_v30 }
 0x148   : > { %v1288_v50 = vpack.c.bf16 %v1069_v44, %v1068_v34 }
 0x149   : > { %1300 = vst [vmem:[%s1858_s30 + $0x18] sm:$0xff] %v1293_v48  }
 0x14a   : > { %1299 = vst [vmem:[%s1858_s30 + $0x10] sm:$0xff] %v1288_v50  }
 0x14b PF: > { %s18_s27 = sadd.s32 1, %s1524_s27  }
 0x14c   : > { %p15_p4 = scmp.ge.s32.totalorder %s18_s27, 4  }
 0x14e   :  { %17 = sbr.rel (!%p15_p4) target bundleno = 1 (0x1), region = 85 }

// kernel: pixelcnn_forward.51
= control target key start
LH: loop header
LB: loop body
LE: loop exit
PB: predicated region body
PF: predicated region fallthrough
CT: control target
= control target key end

     0   :  { %s447_s12 = smov 0   ;;  %s485_s0 = inlined_call_operand.vmem [shape: bf16[32,96], index: 0, kind: input, shape index: {}]   ;;  %s486_s1 = inlined_call_operand.vmem [shape: bf16[96,128], index: 1, kind: input, shape index: {}]   ;;  %s487_s2 = inlined_call_operand.vmem [shape: f32[1,128], index: 2, kind: input, shape index: {}]   ;;  %s488_s3 = inlined_call_operand.vmem [shape: bf16[32,128], index: 3, kind: output, shape index: {}]  }
   0x1 LB: > { %s348_s13 = sadd.s32 4294967295, %s423_s12   ;;  %p352_p0 = scmp.ge.s32.totalorder %s423_s12, 1  ;;  %s423_s12 = sphi %s447_s12, %s13_s12  }
   0x2   : > { %p138_p1 = scmp.lt.s32.totalorder %s423_s12, 3 }
   0x4   : > { %p139_p2 = pnand %p352_p0, %p138_p1 }
   0x5   : > { %v410_v0 = vld [vmem:[%s486_s1] sm:$0xff] (!%p139_p2)   ;;  %v425_v1 = vmov (!%p139_p2), 0.0   ;;  %v411_v2 = vld [vmem:[%s486_s1 + $0x8] sm:$0xff] (!%p139_p2)   ;;  %vm426_vm0 = vmmov (!%p139_p2), 0   ;;  %s353_s18 = sshll.u32 (!%p139_p2), %s348_s13, 1  ;;  %v412_v3 = vld [vmem:[%s486_s1 + $0x10] sm:$0xff] (!%p139_p2)  }
   0x6   : > { %142 = sbr.rel (%p139_p2) target bundleno = 249 (0xf9), region = 32  ;;  %384 = vmatprep.subr.bf16.mxu0 (!%p139_p2), %v425_v1  ;;  %396 = vmatprep.mubr.msk.bf16.mxu0 (!%p139_p2), %vm426_vm0, %v425_v1  ;;  %p163_p3 = scmp.lt.s32.totalorder (!%p139_p2), %s353_s18, 3  ;;  %v413_v4 = vld [vmem:[%s486_s1 + $0x18] sm:$0xff] (!%p139_p2)   ;;  %v414_v5 = vld [vmem:[%s486_s1 + $0x20] sm:$0xff] (!%p139_p2)   ;;  %v415_v6 = vld [vmem:[%s486_s1 + $0x28] sm:$0xff] (!%p139_p2)   ;;  %vm237_vm1 = vcmask (!%p139_p2), 785408  }
   0x7   : > { %385 = vmatpush3.bf16.msra.mxu0 (!%p139_p2), %v410_v0  ;;  %v357_v8 = vld [vmem:[%s487_s2] ss:$0 sm:$0xff] (!%p139_p2) }
   0x8   : > { %386 = vmatprep.subr.bf16.mxu0 (!%p139_p2), %v425_v1 }
   0xb   : > { %387 = vmatpush3.bf16.msra.mxu0 (!%p139_p2), %v411_v2 }
   0xc   : > { %388 = vmatprep.subr.bf16.mxu0 (!%p139_p2), %v425_v1 }
   0xd   : > { %s490_s18 = smov (!%p163_p3, %s353_s18), 3 }
   0xe   : > { %s354_s21 = sshll.u32 %s490_s18, 2 }
   0xf   : > { %s166_s24 = scalar_lea.vmem %s485_s0, %s354_s21  ;;  %389 = vmatpush3.bf16.msra.mxu0 %v412_v3  ;;  %s172_s8 = scalar_lea.vmem %s488_s3, %s354_s21 }
  0x10   : > { %390 = vmatprep.subr.bf16.mxu0 %v425_v1  ;;  %v416_v7 = vld [vmem:[%s166_s24] sm:$0xff]  }
  0x13   : > { %391 = vmatpush3.bf16.msra.mxu0 %v413_v4 }
  0x14   : > { %392 = vmatprep.subr.bf16.mxu0 %v425_v1 }
  0x17   : > { %393 = vmatpush3.bf16.msra.mxu0 %v414_v5 }
  0x18   : > { %394 = vmatprep.subr.bf16.mxu0 %v425_v1 }
  0x1b   : > { %395 = vmatpush3.bf16.msra.mxu0 %v415_v6 }
  0x1e   : > { %397 = vmatmul.mubr.msk.bf16.vlgmr.msra.gmra.mrb[0].mxu0 %vm237_vm1, %v416_v7 }
  0xf1   : > { %v275_v9 = vpop.f32.mrb[0].mxu0 }
  0xf2   : > { %v398_v10 = vpop.f32.mrb[1].mxu0  ;;  %v276_v12 = vadd.f32 %v357_v8, %v275_v9 }
  0xf3   : > { %v278_v11 = vpop.f32.mrb[2].mxu0 }
  0xf4   : > { %v279_v13 = vadd.f32 %v357_v8, %v278_v11  ;;  %v399_v14 = vpop.f32.mrb[3].mxu0 }
  0xf6   : > { %v375_v15 = vpack.c.bf16 %v279_v13, %v276_v12 }
  0xf8   : > { %376 = vst [vmem:[%s172_s8] sm:$0xff] %v375_v15  }
  0xf9 PF: > { %s13_s12 = sadd.s32 1, %s423_s12  }
  0xfa   : > { %p10_p4 = scmp.ge.s32.totalorder %s13_s12, 4  }
  0xfc   :  { %12 = sbr.rel (!%p10_p4) target bundleno = 1 (0x1), region = 62 }

// kernel: pixelcnn_forward.53
= control target key start
LH: loop header
LB: loop body
LE: loop exit
PB: predicated region body
PF: predicated region fallthrough
CT: control target
= control target key end

     0   :  { %s641_s15 = smov 0   ;;  %s704_s0 = inlined_call_operand.vmem [shape: bf16[32,96], index: 0, kind: input, shape index: {}]   ;;  %s705_s1 = inlined_call_operand.vmem [shape: bf16[96,128], index: 1, kind: input, shape index: {}]   ;;  %s706_s2 = inlined_call_operand.vmem [shape: bf16[96,128], index: 2, kind: input, shape index: {}]   ;;  %s707_s3 = inlined_call_operand.vmem [shape: f32[1,128], index: 3, kind: input, shape index: {}]   ;;  %s708_s4 = inlined_call_operand.vmem [shape: bf16[32,128], index: 4, kind: output, shape index: {}]  }
   0x1 LB: > { %s495_s16 = sadd.s32 4294967295, %s611_s15   ;;  %p499_p0 = scmp.ge.s32.totalorder %s611_s15, 1  ;;  %s611_s15 = sphi %s641_s15, %s14_s15  }
   0x2   : > { %p163_p1 = scmp.lt.s32.totalorder %s611_s15, 3 }
   0x4   : > { %p164_p2 = pnand %p499_p0, %p163_p1 }
   0x5   : > { %v589_v0 = vld [vmem:[%s706_s2] sm:$0xff] (!%p164_p2)   ;;  %v613_v1 = vmov (!%p164_p2), 0.0   ;;  %v591_v3 = vld [vmem:[%s706_s2 + $0x8] sm:$0xff] (!%p164_p2)   ;;  %vm614_vm0 = vmmov (!%p164_p2), 0   ;;  %s500_s23 = sshll.u32 (!%p164_p2), %s495_s16, 1  ;;  %v593_v5 = vld [vmem:[%s706_s2 + $0x10] sm:$0xff] (!%p164_p2)  }
   0x6   : > { %167 = sbr.rel (%p164_p2) target bundleno = 262 (0x106), region = 36  ;;  %546 = vmatprep.subr.bf16.mxu0 (!%p164_p2), %v613_v1  ;;  %562 = vmatprep.subr.bf16.mxu1 (!%p164_p2), %v613_v1  ;;  %v590_v2 = vld [vmem:[%s705_s1] sm:$0xff] (!%p164_p2)   ;;  %v592_v4 = vld [vmem:[%s705_s1 + $0x8] sm:$0xff] (!%p164_p2)   ;;  %p190_p3 = scmp.lt.s32.totalorder (!%p164_p2), %s500_s23, 3  ;;  %v594_v6 = vld [vmem:[%s705_s1 + $0x10] sm:$0xff] (!%p164_p2)   ;;  %vm290_vm3 = vcmask (!%p164_p2), 785408  }
   0x7   : > { %547 = vmatpush3.bf16.msra.mxu0 (!%p164_p2), %v589_v0  ;;  %558 = vmatprep.mubr.msk.bf16.mxu0 (!%p164_p2), %vm614_vm0, %v613_v1  ;;  %v595_v7 = vld [vmem:[%s706_s2 + $0x18] sm:$0xff] (!%p164_p2)   ;;  %v597_v13 = vld [vmem:[%s706_s2 + $0x20] sm:$0xff] (!%p164_p2)   ;;  %v599_v19 = vld [vmem:[%s706_s2 + $0x28] sm:$0xff] (!%p164_p2)   ;;  %v615_v25 = vmov (!%p164_p2), 1065369472  }
   0x8   : > { %563 = vmatpush3.bf16.msra.mxu1 (!%p164_p2), %v590_v2  ;;  %548 = vmatprep.subr.bf16.mxu0 (!%p164_p2), %v613_v1  ;;  %v596_v8 = vld [vmem:[%s705_s1 + $0x18] sm:$0xff] (!%p164_p2)   ;;  %v598_v14 = vld [vmem:[%s705_s1 + $0x20] sm:$0xff] (!%p164_p2)   ;;  %v600_v20 = vld [vmem:[%s705_s1 + $0x28] sm:$0xff] (!%p164_p2)  }
   0x9   : > { %564 = vmatprep.subr.bf16.mxu1 (!%p164_p2), %v613_v1  ;;  %574 = vmatprep.mubr.msk.bf16.mxu1 (!%p164_p2), %vm614_vm0, %v613_v1  ;;  %v520_v39 = vld [vmem:[%s707_s3] ss:$0 sm:$0xff] (!%p164_p2) }
   0xb   : > { %549 = vmatpush3.bf16.msra.mxu0 (!%p164_p2), %v591_v3 }
   0xc   : > { %565 = vmatpush3.bf16.msra.mxu1 (!%p164_p2), %v592_v4  ;;  %550 = vmatprep.subr.bf16.mxu0 (!%p164_p2), %v613_v1 }
   0xd   : > { %s710_s23 = smov (!%p190_p3, %s500_s23), 3  ;;  %566 = vmatprep.subr.bf16.mxu1 %v613_v1 }
   0xe   : > { %s501_s30 = sshll.u32 %s710_s23, 2 }
   0xf   : > { %s193_s7 = scalar_lea.vmem %s704_s0, %s501_s30  ;;  %551 = vmatpush3.bf16.msra.mxu0 %v593_v5  ;;  %s199_s26 = scalar_lea.vmem %s708_s4, %s501_s30 }
  0x10   : > { %567 = vmatpush3.bf16.msra.mxu1 %v594_v6  ;;  %552 = vmatprep.subr.bf16.mxu0 %v613_v1  ;;  %v203_v9 = vld [vmem:[%s193_s7] sm:$0xf]  ;;  %v204_v10 = vld [vmem:[%s193_s7 + $0x4] sm:$0xf] }
  0x11   : > { %568 = vmatprep.subr.bf16.mxu1 %v613_v1  ;;  %v205_v11 = vand.u32 2147450879, %v203_v9  ;;  %v206_v12 = vand.u32 2147450879, %v204_v10  ;;  %v221_v21 = vsub.bf16 0, %v203_v9  ;;  %vm217_vm1 = vcmp.gt.bf16.partialorder %v203_v9, 0 }
  0x12   : > { %v222_v23 = vsub.bf16 0, %v204_v10  ;;  %vm218_vm2 = vcmp.gt.bf16.partialorder %v204_v10, 0 }
  0x13   : > { %553 = vmatpush3.bf16.msra.mxu0 %v595_v7  ;;  %v207_v15 = vsub.bf16 0, %v205_v11  ;;  %v208_v16 = vsub.bf16 0, %v206_v12 }
  0x14   : > { %569 = vmatpush3.bf16.msra.mxu1 %v596_v8  ;;  %554 = vmatprep.subr.bf16.mxu0 %v613_v1 }
  0x15   : > { %570 = vmatprep.subr.bf16.mxu1 %v613_v1  ;;  %v210_v17 = vmul.bf16 1069105081, %v207_v15  ;;  %v213_v18 = vmul.bf16 1069105081, %v208_v16 }
  0x17   : > { %555 = vmatpush3.bf16.msra.mxu0 %v597_v13  ;;  %601 = vpow.bf16 %v210_v17 }
  0x18   : > { %571 = vmatpush3.bf16.msra.mxu1 %v598_v14  ;;  %556 = vmatprep.subr.bf16.mxu0 %v613_v1  ;;  %603 = vpow.bf16 %v213_v18 }
  0x19   : > { %572 = vmatprep.subr.bf16.mxu1 %v613_v1 }
  0x1b   : > { %557 = vmatpush3.bf16.msra.mxu0 %v599_v19 }
  0x1c   : > { %573 = vmatpush3.bf16.msra.mxu1 %v600_v20 }
  0x22   : > { %v602_v22 = vpop.eup %601 }
  0x23   : > { %v604_v24 = vpop.eup %603  ;;  %v215_v26 = vsub.bf16 %v602_v22, %v615_v25 }
  0x24   : > { %v216_v27 = vsub.bf16 %v604_v24, %v615_v25 }
  0x25   : > { %v223_v28 = vsel %vm217_vm1, %v215_v26, %v221_v21  ;;  %v219_v29 = vsel %vm217_vm1, %v203_v9, %v215_v26 }
  0x26   : > { %v224_v30 = vsel %vm218_vm2, %v216_v27, %v222_v23  ;;  %v220_v31 = vsel %vm218_vm2, %v204_v10, %v216_v27 }
  0x27   : > { %v504_v32 = vcombine.low %v223_v28, %v224_v30  ;;  %v512_v33 = vcombine.low %v219_v29, %v220_v31 }
  0x29   : > { %559 = vmatmul.mubr.msk.bf16.vlgmr.msra.gmra.mrb[0].mxu0 %vm290_vm3, %v504_v32  ;;  %575 = vmatmul.mubr.msk.bf16.vlgmr.msra.gmra.mrb[0].mxu1 %vm290_vm3, %v512_v33 }
  0xfc   : > { %v328_v34 = vpop.f32.mrb[0].mxu0  ;;  %v413_v35 = vpop.f32.mrb[0].mxu1 }
  0xfd   : > { %v414_v36 = vadd.f32 %v413_v35, %v328_v34  ;;  %v560_v37 = vpop.f32.mrb[1].mxu0  ;;  %v576_v38 = vpop.f32.mrb[1].mxu1 }
  0xfe   : > { %v331_v40 = vpop.f32.mrb[2].mxu0  ;;  %v416_v41 = vpop.f32.mrb[2].mxu1 }
  0xff   : > { %v417_v42 = vadd.f32 %v416_v41, %v331_v40  ;;  %v561_v43 = vpop.f32.mrb[3].mxu0  ;;  %v577_v44 = vpop.f32.mrb[3].mxu1  ;;  %v427_v45 = vadd.f32 %v520_v39, %v414_v36 }
 0x101   : > { %v428_v46 = vadd.f32 %v520_v39, %v417_v42 }
 0x103   : > { %v530_v47 = vpack.c.bf16 %v428_v46, %v427_v45 }
 0x105   : > { %531 = vst [vmem:[%s199_s26] sm:$0xff] %v530_v47  }
 0x106 PF: > { %s14_s15 = sadd.s32 1, %s611_s15  }
 0x107   : > { %p11_p4 = scmp.ge.s32.totalorder %s14_s15, 4  }
 0x109   :  { %13 = sbr.rel (!%p11_p4) target bundleno = 1 (0x1), region = 66 }

// kernel: pixelcnn_forward.57
= control target key start
LH: loop header
LB: loop body
LE: loop exit
PB: predicated region body
PF: predicated region fallthrough
CT: control target
= control target key end

     0   :  { %v160_v0 = vmov 0.0   ;;  %vm161_vm0 = vmmov 0   ;;  %vm71_vm1 = vcmask 785408   ;;  %s209_s1 = inlined_call_operand.vmem [shape: bf16[96,128], index: 1, kind: input, shape index: {}]   ;;  %s210_s0 = inlined_call_operand.vmem [shape: bf16[8,96], index: 0, kind: input, shape index: {}]   ;;  %s211_s2 = inlined_call_operand.vmem [shape: f32[1,128], index: 2, kind: input, shape index: {}]   ;;  %s212_s3 = inlined_call_operand.vmem [shape: bf16[8,128], index: 3, kind: output, shape index: {}]  }
   0x1   :  { %136 = vmatprep.subr.bf16.mxu0 %v160_v0  ;;  %v154_v1 = vld [vmem:[%s209_s1] sm:$0xff]   ;;  %148 = vmatprep.mubr.msk.bf16.mxu0 %vm161_vm0, %v160_v0  ;;  %v155_v2 = vld [vmem:[%s209_s1 + $0x8] sm:$0xff]   ;;  %v156_v3 = vld [vmem:[%s209_s1 + $0x10] sm:$0xff]  }
   0x2   :  { %137 = vmatpush3.bf16.msra.mxu0 %v154_v1  ;;  %v157_v4 = vld [vmem:[%s209_s1 + $0x18] sm:$0xff]   ;;  %v158_v5 = vld [vmem:[%s209_s1 + $0x20] sm:$0xff]   ;;  %v159_v6 = vld [vmem:[%s209_s1 + $0x28] sm:$0xff]  }
   0x3   :  { %138 = vmatprep.subr.bf16.mxu0 %v160_v0  ;;  %v15_v7 = vld [vmem:[%s210_s0] sm:$0xf] }
   0x4   :  { %v121_v8 = vld [vmem:[%s211_s2] ss:$0 sm:$0xff] }
   0x6   :  { %139 = vmatpush3.bf16.msra.mxu0 %v155_v2 }
   0x7   :  { %140 = vmatprep.subr.bf16.mxu0 %v160_v0 }
   0xa   :  { %141 = vmatpush3.bf16.msra.mxu0 %v156_v3 }
   0xb   :  { %142 = vmatprep.subr.bf16.mxu0 %v160_v0 }
   0xe   :  { %143 = vmatpush3.bf16.msra.mxu0 %v157_v4 }
   0xf   :  { %144 = vmatprep.subr.bf16.mxu0 %v160_v0 }
  0x12   :  { %145 = vmatpush3.bf16.msra.mxu0 %v158_v5 }
  0x13   :  { %146 = vmatprep.subr.bf16.mxu0 %v160_v0 }
  0x16   :  { %147 = vmatpush3.bf16.msra.mxu0 %v159_v6 }
  0x19   :  { %149 = vmatmul.mubr.msk.bf16.vlgmr.msra.gmra.mrb[0].mxu0 %vm71_vm1, %v15_v7 }
  0xec   :  { %v109_v9 = vpop.f32.mrb[0].mxu0 }
  0xed   :  { %v110_v10 = vadd.f32 %v121_v8, %v109_v9  ;;  %v150_v11 = vpop.f32.mrb[1].mxu0 }
  0xee   :  { %v112_v12 = vpop.f32.mrb[2].mxu0 }
  0xef   :  { %v115_v13 = vpack.c.bf16 %v110_v10, %v110_v10  ;;  %v151_v14 = vpop.f32.mrb[3].mxu0 }
  0xf1   :  { %116 = vst [vmem:[%s212_s3] sm:$0xf] %v115_v13 }

// kernel: pixelcnn_forward.54
= control target key start
LH: loop header
LB: loop body
LE: loop exit
PB: predicated region body
PF: predicated region fallthrough
CT: control target
= control target key end

     0   :  { %s1103_s27 = smov 0   ;;  %s1242_s0 = inlined_call_operand.vmem [shape: bf16[32,96], index: 0, kind: input, shape index: {}]   ;;  %s1243_s1 = inlined_call_operand.vmem [shape: bf16[96,128], index: 1, kind: input, shape index: {}]   ;;  %s1244_s2 = inlined_call_operand.vmem [shape: bf16[96,128], index: 2, kind: input, shape index: {}]   ;;  %s1245_s3 = inlined_call_operand.vmem [shape: bf16[96,128], index: 3, kind: input, shape index: {}]   ;;  %s1246_s4 = inlined_call_operand.vmem [shape: bf16[96,128], index: 4, kind: input, shape index: {}]   ;;  %s1247_s5 = inlined_call_operand.vmem [shape: f32[1,128], index: 5, kind: input, shape index: {}, may-alias: {5,6}]   ;;  %s1248_s6 = inlined_call_operand.vmem [shape: f32[1,128], index: 6, kind: input, shape index: {}, may-alias: {5,6}]   ;;  %s1249_s7 = inlined_call_operand.vmem [shape: bf16[32,128], index: 7, kind: input, shape index: {}]   ;;  %s1250_s8 = inlined_call_operand.vmem [shape: bf16[32,128], index: 8, kind: output, shape index: {}]  }
   0x1 LB: > { %s850_s28 = sadd.s32 4294967295, %s1053_s27   ;;  %p854_p0 = scmp.ge.s32.totalorder %s1053_s27, 1  ;;  %s1053_s27 = sphi %s1103_s27, %s18_s27  }
   0x2   : > { %p274_p1 = scmp.lt.s32.totalorder %s1053_s27, 3 }
   0x4   : > { %p275_p2 = pnand %p854_p0, %p274_p1 }
   0x5   : > { %v1011_v0 = vld [vmem:[%s1244_s2] sm:$0xff] (!%p275_p2)   ;;  %v1055_v1 = vmov (!%p275_p2), 0.0   ;;  %v1013_v3 = vld [vmem:[%s1244_s2 + $0x8] sm:$0xff] (!%p275_p2)   ;;  %vm1056_vm0 = vmmov (!%p275_p2), 0   ;;  %s855_s13 = sshll.u32 (!%p275_p2), %s850_s28, 1  ;;  %v1015_v5 = vld [vmem:[%s1244_s2 + $0x10] sm:$0xff] (!%p275_p2)  }
   0x6   : > { %278 = sbr.rel (%p275_p2) target bundleno = 322 (0x142), region = 52  ;;  %936 = vmatprep.subr.bf16.mxu0 (!%p275_p2), %v1055_v1  ;;  %952 = vmatprep.subr.bf16.mxu1 (!%p275_p2), %v1055_v1  ;;  %v1012_v2 = vld [vmem:[%s1243_s1] sm:$0xff] (!%p275_p2)   ;;  %v1014_v4 = vld [vmem:[%s1243_s1 + $0x8] sm:$0xff] (!%p275_p2)   ;;  %p314_p3 = scmp.lt.s32.totalorder (!%p275_p2), %s855_s13, 3  ;;  %v1016_v6 = vld [vmem:[%s1243_s1 + $0x10] sm:$0xff] (!%p275_p2)   ;;  %vm448_vm3 = vcmask (!%p275_p2), 785408  }
   0x7   : > { %937 = vmatpush3.bf16.msra.mxu0 (!%p275_p2), %v1011_v0  ;;  %948 = vmatprep.mubr.msk.bf16.mxu0 (!%p275_p2), %vm1056_vm0, %v1055_v1  ;;  %v1017_v7 = vld [vmem:[%s1244_s2 + $0x18] sm:$0xff] (!%p275_p2)   ;;  %v1019_v13 = vld [vmem:[%s1244_s2 + $0x20] sm:$0xff] (!%p275_p2)   ;;  %v1021_v17 = vld [vmem:[%s1244_s2 + $0x28] sm:$0xff] (!%p275_p2)   ;;  %v1057_v25 = vmov (!%p275_p2), 1065369472  }
   0x8   : > { %953 = vmatpush3.bf16.msra.mxu1 (!%p275_p2), %v1012_v2  ;;  %938 = vmatprep.subr.bf16.mxu0 (!%p275_p2), %v1055_v1  ;;  %v1018_v8 = vld [vmem:[%s1243_s1 + $0x18] sm:$0xff] (!%p275_p2)   ;;  %v1020_v14 = vld [vmem:[%s1243_s1 + $0x20] sm:$0xff] (!%p275_p2)   ;;  %v1022_v20 = vld [vmem:[%s1243_s1 + $0x28] sm:$0xff] (!%p275_p2)  }
   0x9   : > { %954 = vmatprep.subr.bf16.mxu1 (!%p275_p2), %v1055_v1  ;;  %964 = vmatprep.mubr.msk.bf16.mxu1 (!%p275_p2), %vm1056_vm0, %v1055_v1  ;;  %v1023_v32 = vld [vmem:[%s1246_s4] sm:$0xff] (!%p275_p2)   ;;  %v1025_v36 = vld [vmem:[%s1246_s4 + $0x8] sm:$0xff] (!%p275_p2)   ;;  %v1027_v38 = vld [vmem:[%s1246_s4 + $0x10] sm:$0xff] (!%p275_p2)  }
   0xa   : > { %v1024_v33 = vld [vmem:[%s1245_s3] sm:$0xff] (!%p275_p2)   ;;  %v1026_v37 = vld [vmem:[%s1245_s3 + $0x8] sm:$0xff] (!%p275_p2)   ;;  %v1028_v39 = vld [vmem:[%s1245_s3 + $0x10] sm:$0xff] (!%p275_p2)  }
   0xb   : > { %939 = vmatpush3.bf16.msra.mxu0 (!%p275_p2), %v1013_v3  ;;  %v1029_v40 = vld [vmem:[%s1246_s4 + $0x18] sm:$0xff] (!%p275_p2)   ;;  %v1031_v42 = vld [vmem:[%s1246_s4 + $0x20] sm:$0xff] (!%p275_p2)   ;;  %v1033_v44 = vld [vmem:[%s1246_s4 + $0x28] sm:$0xff] (!%p275_p2)  }
   0xc   : > { %955 = vmatpush3.bf16.msra.mxu1 (!%p275_p2), %v1014_v4  ;;  %940 = vmatprep.subr.bf16.mxu0 (!%p275_p2), %v1055_v1  ;;  %v1030_v41 = vld [vmem:[%s1245_s3 + $0x18] sm:$0xff] (!%p275_p2)   ;;  %v1032_v43 = vld [vmem:[%s1245_s3 + $0x20] sm:$0xff] (!%p275_p2)   ;;  %v1034_v45 = vld [vmem:[%s1245_s3 + $0x28] sm:$0xff] (!%p275_p2)  }
   0xd   : > { %s1252_s13 = smov (!%p314_p3, %s855_s13), 3  ;;  %956 = vmatprep.subr.bf16.mxu1 %v1055_v1  ;;  %v892_v57 = vld [vmem:[%s1248_s6] ss:$0 sm:$0xff] }
   0xe   : > { %s1138_s20 = sshll.u32 %s1252_s13, 2 }
   0xf   : > { %s317_s23 = scalar_lea.vmem %s1242_s0, %s1138_s20  ;;  %941 = vmatpush3.bf16.msra.mxu0 %v1015_v5  ;;  %s323_s24 = scalar_lea.vmem %s1249_s7, %s1138_s20 }
  0x10   : > { %957 = vmatpush3.bf16.msra.mxu1 %v1016_v6  ;;  %942 = vmatprep.subr.bf16.mxu0 %v1055_v1  ;;  %v333_v9 = vld [vmem:[%s317_s23] sm:$0xf]  ;;  %v334_v10 = vld [vmem:[%s317_s23 + $0x4] sm:$0xf]  ;;  %s329_s30 = scalar_lea.vmem %s1250_s8, %s1138_s20 }
  0x11   : > { %958 = vmatprep.subr.bf16.mxu1 %v1055_v1  ;;  %v335_v11 = vand.u32 2147450879, %v333_v9  ;;  %v336_v12 = vand.u32 2147450879, %v334_v10  ;;  %v351_v21 = vsub.bf16 0, %v333_v9  ;;  %vm347_vm1 = vcmp.gt.bf16.partialorder %v333_v9, 0 }
  0x12   : > { %v352_v23 = vsub.bf16 0, %v334_v10  ;;  %vm348_vm2 = vcmp.gt.bf16.partialorder %v334_v10, 0 }
  0x13   : > { %943 = vmatpush3.bf16.msra.mxu0 %v1017_v7  ;;  %v337_v15 = vsub.bf16 0, %v335_v11  ;;  %v338_v16 = vsub.bf16 0, %v336_v12 }
  0x14   : > { %959 = vmatpush3.bf16.msra.mxu1 %v1018_v8  ;;  %944 = vmatprep.subr.bf16.mxu0 %v1055_v1 }
  0x15   : > { %960 = vmatprep.subr.bf16.mxu1 %v1055_v1  ;;  %v340_v18 = vmul.bf16 1069105081, %v337_v15  ;;  %v343_v19 = vmul.bf16 1069105081, %v338_v16  ;;  %v877_v15 = vld [vmem:[%s1247_s5] ss:$0 sm:$0xff] }
  0x16   : > { %v900_v16 = vld [vmem:[%s323_s24] sm:$0xff]  }
  0x17   : > { %945 = vmatpush3.bf16.msra.mxu0 %v1019_v13  ;;  %1035 = vpow.bf16 %v340_v18 }
  0x18   : > { %961 = vmatpush3.bf16.msra.mxu1 %v1020_v14  ;;  %946 = vmatprep.subr.bf16.mxu0 %v1055_v1  ;;  %1037 = vpow.bf16 %v343_v19 }
  0x19   : > { %962 = vmatprep.subr.bf16.mxu1 %v1055_v1 }
  0x1b   : > { %947 = vmatpush3.bf16.msra.mxu0 %v1021_v17 }
  0x1c   : > { %963 = vmatpush3.bf16.msra.mxu1 %v1022_v20  ;;  %968 = vmatprep.subr.bf16.mxu0 %v1055_v1 }
  0x1d   : > { %984 = vmatprep.subr.bf16.mxu1 %v1055_v1 }
  0x22   : > { %v1036_v22 = vpop.eup %1035 }
  0x23   : > { %v1038_v24 = vpop.eup %1037  ;;  %v345_v26 = vsub.bf16 %v1036_v22, %v1057_v25  ;;  %v901_v22 = vunpack.c.l.bf16 %v900_v16 }
  0x24   : > { %v346_v27 = vsub.bf16 %v1038_v24, %v1057_v25 }
  0x25   : > { %v353_v28 = vsel %vm347_vm1, %v345_v26, %v351_v21  ;;  %v349_v29 = vsel %vm347_vm1, %v333_v9, %v345_v26  ;;  %v902_v26 = vunpack.c.h.bf16 %v900_v16 }
  0x26   : > { %v354_v30 = vsel %vm348_vm2, %v346_v27, %v352_v23  ;;  %v350_v31 = vsel %vm348_vm2, %v334_v10, %v346_v27 }
  0x27   : > { %v861_v34 = vcombine.low %v353_v28, %v354_v30  ;;  %v869_v35 = vcombine.low %v349_v29, %v350_v31 }
  0x29   : > { %949 = vmatmul.mubr.msk.bf16.vlgmr.msra.gmra.mrb[0].mxu0 %vm448_vm3, %v861_v34  ;;  %965 = vmatmul.mubr.msk.bf16.vlgmr.msra.gmra.mrb[0].mxu1 %vm448_vm3, %v869_v35 }
  0x2a   : > { %969 = vmatpush3.bf16.msra.mxu0 %v1023_v32  ;;  %985 = vmatpush3.bf16.msra.mxu1 %v1024_v33 }
  0x2b   : > { %970 = vmatprep.subr.bf16.mxu0 %v1055_v1  ;;  %986 = vmatprep.subr.bf16.mxu1 %v1055_v1 }
  0x2c   : > { %980 = vmatprep.mubr.msk.bf16.mxu0 %vm1056_vm0, %v1055_v1  ;;  %996 = vmatprep.mubr.msk.bf16.mxu1 %vm1056_vm0, %v1055_v1 }
  0x2e   : > { %971 = vmatpush3.bf16.msra.mxu0 %v1025_v36  ;;  %987 = vmatpush3.bf16.msra.mxu1 %v1026_v37 }
  0x2f   : > { %972 = vmatprep.subr.bf16.mxu0 %v1055_v1  ;;  %988 = vmatprep.subr.bf16.mxu1 %v1055_v1 }
  0x32   : > { %973 = vmatpush3.bf16.msra.mxu0 %v1027_v38  ;;  %989 = vmatpush3.bf16.msra.mxu1 %v1028_v39 }
  0x33   : > { %974 = vmatprep.subr.bf16.mxu0 %v1055_v1  ;;  %990 = vmatprep.subr.bf16.mxu1 %v1055_v1 }
  0x36   : > { %975 = vmatpush3.bf16.msra.mxu0 %v1029_v40  ;;  %991 = vmatpush3.bf16.msra.mxu1 %v1030_v41 }
  0x37   : > { %976 = vmatprep.subr.bf16.mxu0 %v1055_v1  ;;  %992 = vmatprep.subr.bf16.mxu1 %v1055_v1 }
  0x3a   : > { %977 = vmatpush3.bf16.msra.mxu0 %v1031_v42  ;;  %993 = vmatpush3.bf16.msra.mxu1 %v1032_v43 }
  0x3b   : > { %978 = vmatprep.subr.bf16.mxu0 %v1055_v1  ;;  %994 = vmatprep.subr.bf16.mxu1 %v1055_v1 }
  0x3e   : > { %979 = vmatpush3.bf16.msra.mxu0 %v1033_v44  ;;  %995 = vmatpush3.bf16.msra.mxu1 %v1034_v45 }
  0x41   : > { %981 = vmatmul.mubr.msk.bf16.vlgmr.msra.gmra.mrb[4].mxu0 %vm448_vm3, %v861_v34  ;;  %997 = vmatmul.mubr.msk.bf16.vlgmr.msra.gmra.mrb[4].mxu1 %vm448_vm3, %v869_v35 }
  0xfc   : > { %v486_v46 = vpop.f32.mrb[0].mxu0  ;;  %v571_v47 = vpop.f32.mrb[0].mxu1 }
  0xfd   : > { %v572_v48 = vadd.f32 %v571_v47, %v486_v46  ;;  %v950_v49 = vpop.f32.mrb[1].mxu0  ;;  %v966_v50 = vpop.f32.mrb[1].mxu1 }
  0xfe   : > { %v489_v51 = vpop.f32.mrb[2].mxu0  ;;  %v574_v52 = vpop.f32.mrb[2].mxu1 }
  0xff   : > { %v575_v53 = vadd.f32 %v574_v52, %v489_v51  ;;  %v951_v54 = vpop.f32.mrb[3].mxu0  ;;  %v967_v55 = vpop.f32.mrb[3].mxu1  ;;  %v584_v19 = vadd.f32 %v877_v15, %v572_v48 }
 0x101   : > { %v585_v24 = vadd.f32 %v877_v15, %v575_v53 }
 0x114   : > { %v656_v56 = vpop.f32.mrb[4].mxu0  ;;  %v733_v58 = vpop.f32.mrb[4].mxu1 }
 0x115   : > { %v734_v59 = vadd.f32 %v733_v58, %v656_v56  ;;  %v982_v60 = vpop.f32.mrb[5].mxu0  ;;  %v998_v61 = vpop.f32.mrb[5].mxu1 }
 0x116   : > { %v659_v62 = vpop.f32.mrb[6].mxu0  ;;  %v736_v63 = vpop.f32.mrb[6].mxu1 }
 0x117   : > { %v746_v0 = vadd.f32 %v892_v57, %v734_v59  ;;  %v737_v1 = vadd.f32 %v736_v63, %v659_v62  ;;  %v983_v2 = vpop.f32.mrb[7].mxu0  ;;  %v999_v3 = vpop.f32.mrb[7].mxu1 }
 0x119   : > { %v750_v4 = vand.u32 2147483647, %v746_v0  ;;  %v747_v5 = vadd.f32 %v892_v57, %v737_v1  ;;  %vm758_vm4 = vcmp.ge.f32.partialorder %v746_v0, 0.0 }
 0x11b   : > { %v752_v6 = vsub.f32 0.0, %v750_v4  ;;  %v751_v7 = vand.u32 2147483647, %v747_v5  ;;  %vm759_vm5 = vcmp.ge.f32.partialorder %v747_v5, 0.0 }
 0x11d   : > { %v754_v8 = vmul.f32 1.442695, %v752_v6  ;;  %v753_v9 = vsub.f32 0.0, %v751_v7 }
 0x11f   : > { %1039 = vpow2.f32 %v754_v8  ;;  %v756_v10 = vmul.f32 1.442695, %v753_v9 }
 0x121   : > { %1041 = vpow2.f32 %v756_v10 }
 0x129   : > { %v1040_v11 = vpop.eup %1039 }
 0x12a   : > { %v762_v12 = vadd.f32 1.0, %v1040_v11  ;;  %v760_v18 = vsel %vm758_vm4, 1.0, %v1040_v11 }
 0x12b   : > { %v1042_v13 = vpop.eup %1041 }
 0x12c   : > { %1043 = vrcp.f32 %v762_v12  ;;  %v763_v14 = vadd.f32 1.0, %v1042_v13  ;;  %v761_v23 = vsel %vm759_vm5, 1.0, %v1042_v13 }
 0x12e   : > { %1045 = vrcp.f32 %v763_v14 }
 0x136   : > { %v1044_v17 = vpop.eup %1043 }
 0x137   : > { %v766_v20 = vmul.f32 %v1044_v17, %v760_v18 }
 0x138   : > { %v1046_v21 = vpop.eup %1045 }
 0x139   : > { %v768_v25 = vmul.f32 %v766_v20, %v584_v19  ;;  %v767_v27 = vmul.f32 %v1046_v21, %v761_v23 }
 0x13b   : > { %v769_v28 = vmul.f32 %v767_v27, %v585_v24  ;;  %v770_v29 = vadd.f32 %v901_v22, %v768_v25 }
 0x13d   : > { %v771_v30 = vadd.f32 %v902_v26, %v769_v28 }
 0x13f   : > { %v906_v31 = vpack.c.bf16 %v771_v30, %v770_v29 }
 0x141   : > { %907 = vst [vmem:[%s329_s30] sm:$0xff] %v906_v31  }
 0x142 PF: > { %s18_s27 = sadd.s32 1, %s1053_s27  }
 0x143   : > { %p15_p4 = scmp.ge.s32.totalorder %s18_s27, 4  }
 0x145   :  { %17 = sbr.rel (!%p15_p4) target bundleno = 1 (0x1), region = 85 }

// kernel: pixelcnn_forward.60
= control target key start
LH: loop header
LB: loop body
LE: loop exit
PB: predicated region body
PF: predicated region fallthrough
CT: control target
= control target key end

     0   :  { %v591_v0 = vmov 0.0   ;;  %vm592_vm0 = vmmov 0   ;;  %v593_v19 = vmov 1065369472   ;;  %vm129_vm2 = vcmask 785408   ;;  %s762_s2 = inlined_call_operand.vmem [shape: bf16[96,128], index: 2, kind: input, shape index: {}]   ;;  %s763_s1 = inlined_call_operand.vmem [shape: bf16[96,128], index: 1, kind: input, shape index: {}]   ;;  %s764_s0 = inlined_call_operand.vmem [shape: bf16[8,96], index: 0, kind: input, shape index: {}]   ;;  %s765_s4 = inlined_call_operand.vmem [shape: bf16[96,128], index: 4, kind: input, shape index: {}]   ;;  %s766_s3 = inlined_call_operand.vmem [shape: bf16[96,128], index: 3, kind: input, shape index: {}]   ;;  %s767_s6 = inlined_call_operand.vmem [shape: f32[1,128], index: 6, kind: input, shape index: {}, may-alias: {5,6}]   ;;  %s768_s5 = inlined_call_operand.vmem [shape: f32[1,128], index: 5, kind: input, shape index: {}, may-alias: {5,6}]   ;;  %s769_s7 = inlined_call_operand.vmem [shape: bf16[8,128], index: 7, kind: input, shape index: {}]   ;;  %s770_s8 = inlined_call_operand.vmem [shape: bf16[8,128], index: 8, kind: output, shape index: {}]  }
   0x1   :  { %494 = vmatprep.subr.bf16.mxu0 %v591_v0  ;;  %510 = vmatprep.subr.bf16.mxu1 %v591_v0  ;;  %v561_v1 = vld [vmem:[%s762_s2] sm:$0xff]   ;;  %v563_v3 = vld [vmem:[%s762_s2 + $0x8] sm:$0xff]   ;;  %v565_v5 = vld [vmem:[%s762_s2 + $0x10] sm:$0xff]  }
   0x2   :  { %v562_v2 = vld [vmem:[%s763_s1] sm:$0xff]   ;;  %506 = vmatprep.mubr.msk.bf16.mxu0 %vm592_vm0, %v591_v0  ;;  %522 = vmatprep.mubr.msk.bf16.mxu1 %vm592_vm0, %v591_v0  ;;  %v564_v4 = vld [vmem:[%s763_s1 + $0x8] sm:$0xff]   ;;  %v566_v6 = vld [vmem:[%s763_s1 + $0x10] sm:$0xff]  }
   0x3   :  { %495 = vmatpush3.bf16.msra.mxu0 %v561_v1  ;;  %511 = vmatpush3.bf16.msra.mxu1 %v562_v2  ;;  %v567_v7 = vld [vmem:[%s762_s2 + $0x18] sm:$0xff]   ;;  %v31_v9 = vld [vmem:[%s764_s0] sm:$0xf]  ;;  %v571_v14 = vld [vmem:[%s762_s2 + $0x28] sm:$0xff]  }
   0x4   :  { %496 = vmatprep.subr.bf16.mxu0 %v591_v0  ;;  %512 = vmatprep.subr.bf16.mxu1 %v591_v0  ;;  %v568_v8 = vld [vmem:[%s763_s1 + $0x18] sm:$0xff]   ;;  %v569_v10 = vld [vmem:[%s762_s2 + $0x20] sm:$0xff]   ;;  %v32_v11 = vand.u32 2147450879, %v31_v9  ;;  %v572_v16 = vld [vmem:[%s763_s1 + $0x28] sm:$0xff]   ;;  %v40_v17 = vsub.bf16 0, %v31_v9 }
   0x5   :  { %v570_v12 = vld [vmem:[%s763_s1 + $0x20] sm:$0xff]   ;;  %vm38_vm1 = vcmp.gt.bf16.partialorder %v31_v9, 0  ;;  %v575_v25 = vld [vmem:[%s765_s4 + $0x8] sm:$0xff]   ;;  %v577_v27 = vld [vmem:[%s765_s4 + $0x10] sm:$0xff]  }
   0x6   :  { %v33_v13 = vsub.bf16 0, %v32_v11  ;;  %v573_v21 = vld [vmem:[%s765_s4] sm:$0xff]   ;;  %v576_v26 = vld [vmem:[%s766_s3 + $0x8] sm:$0xff]   ;;  %v578_v28 = vld [vmem:[%s766_s3 + $0x10] sm:$0xff]  }
   0x7   :  { %497 = vmatpush3.bf16.msra.mxu0 %v563_v3  ;;  %513 = vmatpush3.bf16.msra.mxu1 %v564_v4  ;;  %v574_v22 = vld [vmem:[%s766_s3] sm:$0xff]   ;;  %v579_v29 = vld [vmem:[%s765_s4 + $0x18] sm:$0xff]   ;;  %v583_v33 = vld [vmem:[%s765_s4 + $0x28] sm:$0xff]  }
   0x8   :  { %498 = vmatprep.subr.bf16.mxu0 %v591_v0  ;;  %514 = vmatprep.subr.bf16.mxu1 %v591_v0  ;;  %v35_v15 = vmul.bf16 1069105081, %v33_v13  ;;  %v580_v30 = vld [vmem:[%s766_s3 + $0x18] sm:$0xff]   ;;  %v581_v31 = vld [vmem:[%s765_s4 + $0x20] sm:$0xff]   ;;  %v584_v34 = vld [vmem:[%s766_s3 + $0x28] sm:$0xff]  }
   0x9   :  { %v582_v32 = vld [vmem:[%s766_s3 + $0x20] sm:$0xff]  }
   0xa   :  { %585 = vpow.bf16 %v35_v15  ;;  %v465_v45 = vld [vmem:[%s767_s6] ss:$0 sm:$0xff] }
   0xb   :  { %499 = vmatpush3.bf16.msra.mxu0 %v565_v5  ;;  %515 = vmatpush3.bf16.msra.mxu1 %v566_v6  ;;  %v450_v60 = vld [vmem:[%s768_s5] ss:$0 sm:$0xff] }
   0xc   :  { %500 = vmatprep.subr.bf16.mxu0 %v591_v0  ;;  %516 = vmatprep.subr.bf16.mxu1 %v591_v0  ;;  %v92_v61 = vld [vmem:[%s769_s7] sm:$0xf] }
   0xd   :  { %v418_v1 = vunpack.c.l.bf16 %v92_v61 }
   0xf   :  { %501 = vmatpush3.bf16.msra.mxu0 %v567_v7  ;;  %517 = vmatpush3.bf16.msra.mxu1 %v568_v8 }
  0x10   :  { %502 = vmatprep.subr.bf16.mxu0 %v591_v0  ;;  %518 = vmatprep.subr.bf16.mxu1 %v591_v0 }
  0x13   :  { %503 = vmatpush3.bf16.msra.mxu0 %v569_v10  ;;  %519 = vmatpush3.bf16.msra.mxu1 %v570_v12 }
  0x14   :  { %504 = vmatprep.subr.bf16.mxu0 %v591_v0  ;;  %520 = vmatprep.subr.bf16.mxu1 %v591_v0 }
  0x15   :  { %v586_v18 = vpop.eup %585 }
  0x16   :  { %v37_v20 = vsub.bf16 %v586_v18, %v593_v19 }
  0x17   :  { %505 = vmatpush3.bf16.msra.mxu0 %v571_v14  ;;  %521 = vmatpush3.bf16.msra.mxu1 %v572_v16 }
  0x18   :  { %526 = vmatprep.subr.bf16.mxu0 %v591_v0  ;;  %542 = vmatprep.subr.bf16.mxu1 %v591_v0  ;;  %v41_v23 = vsel %vm38_vm1, %v37_v20, %v40_v17  ;;  %v39_v24 = vsel %vm38_vm1, %v31_v9, %v37_v20 }
  0x1a   :  { %507 = vmatmul.mubr.msk.bf16.vlgmr.msra.gmra.mrb[0].mxu0 %vm129_vm2, %v41_v23  ;;  %523 = vmatmul.mubr.msk.bf16.vlgmr.msra.gmra.mrb[0].mxu1 %vm129_vm2, %v39_v24 }
  0x1b   :  { %527 = vmatpush3.bf16.msra.mxu0 %v573_v21  ;;  %543 = vmatpush3.bf16.msra.mxu1 %v574_v22 }
  0x1c   :  { %528 = vmatprep.subr.bf16.mxu0 %v591_v0  ;;  %544 = vmatprep.subr.bf16.mxu1 %v591_v0 }
  0x1d   :  { %538 = vmatprep.mubr.msk.bf16.mxu0 %vm592_vm0, %v591_v0  ;;  %554 = vmatprep.mubr.msk.bf16.mxu1 %vm592_vm0, %v591_v0 }
  0x1f   :  { %529 = vmatpush3.bf16.msra.mxu0 %v575_v25  ;;  %545 = vmatpush3.bf16.msra.mxu1 %v576_v26 }
  0x20   :  { %530 = vmatprep.subr.bf16.mxu0 %v591_v0  ;;  %546 = vmatprep.subr.bf16.mxu1 %v591_v0 }
  0x23   :  { %531 = vmatpush3.bf16.msra.mxu0 %v577_v27  ;;  %547 = vmatpush3.bf16.msra.mxu1 %v578_v28 }
  0x24   :  { %532 = vmatprep.subr.bf16.mxu0 %v591_v0  ;;  %548 = vmatprep.subr.bf16.mxu1 %v591_v0 }
  0x27   :  { %533 = vmatpush3.bf16.msra.mxu0 %v579_v29  ;;  %549 = vmatpush3.bf16.msra.mxu1 %v580_v30 }
  0x28   :  { %534 = vmatprep.subr.bf16.mxu0 %v591_v0  ;;  %550 = vmatprep.subr.bf16.mxu1 %v591_v0 }
  0x2b   :  { %535 = vmatpush3.bf16.msra.mxu0 %v581_v31  ;;  %551 = vmatpush3.bf16.msra.mxu1 %v582_v32 }
  0x2c   :  { %536 = vmatprep.subr.bf16.mxu0 %v591_v0  ;;  %552 = vmatprep.subr.bf16.mxu1 %v591_v0 }
  0x2f   :  { %537 = vmatpush3.bf16.msra.mxu0 %v583_v33  ;;  %553 = vmatpush3.bf16.msra.mxu1 %v584_v34 }
  0x32   :  { %539 = vmatmul.mubr.msk.bf16.vlgmr.msra.gmra.mrb[4].mxu0 %vm129_vm2, %v41_v23  ;;  %555 = vmatmul.mubr.msk.bf16.vlgmr.msra.gmra.mrb[4].mxu1 %vm129_vm2, %v39_v24 }
  0xed   :  { %v167_v35 = vpop.f32.mrb[0].mxu0  ;;  %v246_v36 = vpop.f32.mrb[0].mxu1 }
  0xee   :  { %v247_v37 = vadd.f32 %v246_v36, %v167_v35  ;;  %v508_v38 = vpop.f32.mrb[1].mxu0  ;;  %v524_v39 = vpop.f32.mrb[1].mxu1 }
  0xef   :  { %v170_v40 = vpop.f32.mrb[2].mxu0  ;;  %v249_v41 = vpop.f32.mrb[2].mxu1 }
  0xf0   :  { %v509_v42 = vpop.f32.mrb[3].mxu0  ;;  %v525_v43 = vpop.f32.mrb[3].mxu1  ;;  %v258_v0 = vadd.f32 %v450_v60, %v247_v37 }
 0x105   :  { %v329_v44 = vpop.f32.mrb[4].mxu0  ;;  %v405_v46 = vpop.f32.mrb[4].mxu1 }
 0x106   :  { %v406_v47 = vadd.f32 %v405_v46, %v329_v44  ;;  %v540_v48 = vpop.f32.mrb[5].mxu0  ;;  %v556_v49 = vpop.f32.mrb[5].mxu1 }
 0x107   :  { %v332_v50 = vpop.f32.mrb[6].mxu0  ;;  %v408_v51 = vpop.f32.mrb[6].mxu1 }
 0x108   :  { %v417_v52 = vadd.f32 %v465_v45, %v406_v47  ;;  %v541_v53 = vpop.f32.mrb[7].mxu0  ;;  %v557_v54 = vpop.f32.mrb[7].mxu1 }
 0x10a   :  { %v419_v55 = vand.u32 2147483647, %v417_v52  ;;  %vm423_vm3 = vcmp.ge.f32.partialorder %v417_v52, 0.0 }
 0x10c   :  { %v420_v56 = vsub.f32 0.0, %v419_v55 }
 0x10e   :  { %v421_v57 = vmul.f32 1.442695, %v420_v56 }
 0x110   :  { %587 = vpow2.f32 %v421_v57 }
 0x11a   :  { %v588_v58 = vpop.eup %587 }
 0x11b   :  { %v425_v59 = vadd.f32 1.0, %v588_v58  ;;  %v424_v63 = vsel %vm423_vm3, 1.0, %v588_v58 }
 0x11d   :  { %589 = vrcp.f32 %v425_v59 }
 0x127   :  { %v590_v62 = vpop.eup %589 }
 0x128   :  { %v427_v2 = vmul.f32 %v590_v62, %v424_v63 }
 0x12a   :  { %v428_v3 = vmul.f32 %v427_v2, %v258_v0 }
 0x12c   :  { %v429_v4 = vadd.f32 %v428_v3, %v418_v1 }
 0x12e   :  { %v430_v5 = vpack.c.bf16 %v429_v4, %v429_v4 }
 0x130   :  { %431 = vst [vmem:[%s770_s8] sm:$0xf] %v430_v5 }

// kernel: pixelcnn_forward.59
= control target key start
LH: loop header
LB: loop body
LE: loop exit
PB: predicated region body
PF: predicated region fallthrough
CT: control target
= control target key end

     0   :  { %v305_v0 = vmov 0.0   ;;  %vm306_vm0 = vmmov 0   ;;  %v307_v19 = vmov 1065369472   ;;  %vm90_vm2 = vcmask 785408   ;;  %s378_s2 = inlined_call_operand.vmem [shape: bf16[96,128], index: 2, kind: input, shape index: {}]   ;;  %s379_s1 = inlined_call_operand.vmem [shape: bf16[96,128], index: 1, kind: input, shape index: {}]   ;;  %s380_s0 = inlined_call_operand.vmem [shape: bf16[8,96], index: 0, kind: input, shape index: {}]   ;;  %s381_s3 = inlined_call_operand.vmem [shape: f32[1,128], index: 3, kind: input, shape index: {}]   ;;  %s382_s4 = inlined_call_operand.vmem [shape: bf16[8,128], index: 4, kind: output, shape index: {}]  }
   0x1   :  { %256 = vmatprep.subr.bf16.mxu0 %v305_v0  ;;  %272 = vmatprep.subr.bf16.mxu1 %v305_v0  ;;  %v291_v1 = vld [vmem:[%s378_s2] sm:$0xff]   ;;  %v293_v3 = vld [vmem:[%s378_s2 + $0x8] sm:$0xff]   ;;  %v295_v5 = vld [vmem:[%s378_s2 + $0x10] sm:$0xff]  }
   0x2   :  { %v292_v2 = vld [vmem:[%s379_s1] sm:$0xff]   ;;  %268 = vmatprep.mubr.msk.bf16.mxu0 %vm306_vm0, %v305_v0  ;;  %284 = vmatprep.mubr.msk.bf16.mxu1 %vm306_vm0, %v305_v0  ;;  %v294_v4 = vld [vmem:[%s379_s1 + $0x8] sm:$0xff]   ;;  %v296_v6 = vld [vmem:[%s379_s1 + $0x10] sm:$0xff]  }
   0x3   :  { %257 = vmatpush3.bf16.msra.mxu0 %v291_v1  ;;  %273 = vmatpush3.bf16.msra.mxu1 %v292_v2  ;;  %v297_v7 = vld [vmem:[%s378_s2 + $0x18] sm:$0xff]   ;;  %v19_v9 = vld [vmem:[%s380_s0] sm:$0xf]  ;;  %v301_v15 = vld [vmem:[%s378_s2 + $0x28] sm:$0xff]  }
   0x4   :  { %258 = vmatprep.subr.bf16.mxu0 %v305_v0  ;;  %274 = vmatprep.subr.bf16.mxu1 %v305_v0  ;;  %v298_v8 = vld [vmem:[%s379_s1 + $0x18] sm:$0xff]   ;;  %v20_v10 = vand.u32 2147450879, %v19_v9  ;;  %v299_v11 = vld [vmem:[%s378_s2 + $0x20] sm:$0xff]   ;;  %v302_v16 = vld [vmem:[%s379_s1 + $0x28] sm:$0xff]   ;;  %v28_v17 = vsub.bf16 0, %v19_v9 }
   0x5   :  { %v300_v12 = vld [vmem:[%s379_s1 + $0x20] sm:$0xff]   ;;  %vm26_vm1 = vcmp.gt.bf16.partialorder %v19_v9, 0 }
   0x6   :  { %v21_v13 = vsub.bf16 0, %v20_v10  ;;  %v241_v25 = vld [vmem:[%s381_s3] ss:$0 sm:$0xff] }
   0x7   :  { %259 = vmatpush3.bf16.msra.mxu0 %v293_v3  ;;  %275 = vmatpush3.bf16.msra.mxu1 %v294_v4 }
   0x8   :  { %260 = vmatprep.subr.bf16.mxu0 %v305_v0  ;;  %276 = vmatprep.subr.bf16.mxu1 %v305_v0  ;;  %v23_v14 = vmul.bf16 1069105081, %v21_v13 }
   0xa   :  { %303 = vpow.bf16 %v23_v14 }
   0xb   :  { %261 = vmatpush3.bf16.msra.mxu0 %v295_v5  ;;  %277 = vmatpush3.bf16.msra.mxu1 %v296_v6 }
   0xc   :  { %262 = vmatprep.subr.bf16.mxu0 %v305_v0  ;;  %278 = vmatprep.subr.bf16.mxu1 %v305_v0 }
   0xf   :  { %263 = vmatpush3.bf16.msra.mxu0 %v297_v7  ;;  %279 = vmatpush3.bf16.msra.mxu1 %v298_v8 }
  0x10   :  { %264 = vmatprep.subr.bf16.mxu0 %v305_v0  ;;  %280 = vmatprep.subr.bf16.mxu1 %v305_v0 }
  0x13   :  { %265 = vmatpush3.bf16.msra.mxu0 %v299_v11  ;;  %281 = vmatpush3.bf16.msra.mxu1 %v300_v12 }
  0x14   :  { %266 = vmatprep.subr.bf16.mxu0 %v305_v0  ;;  %282 = vmatprep.subr.bf16.mxu1 %v305_v0 }
  0x15   :  { %v304_v18 = vpop.eup %303 }
  0x16   :  { %v25_v20 = vsub.bf16 %v304_v18, %v307_v19 }
  0x17   :  { %267 = vmatpush3.bf16.msra.mxu0 %v301_v15  ;;  %283 = vmatpush3.bf16.msra.mxu1 %v302_v16 }
  0x18   :  { %v29_v21 = vsel %vm26_vm1, %v25_v20, %v28_v17  ;;  %v27_v22 = vsel %vm26_vm1, %v19_v9, %v25_v20 }
  0x1a   :  { %269 = vmatmul.mubr.msk.bf16.vlgmr.msra.gmra.mrb[0].mxu0 %vm90_vm2, %v29_v21  ;;  %285 = vmatmul.mubr.msk.bf16.vlgmr.msra.gmra.mrb[0].mxu1 %vm90_vm2, %v27_v22 }
  0xed   :  { %v128_v23 = vpop.f32.mrb[0].mxu0  ;;  %v207_v24 = vpop.f32.mrb[0].mxu1 }
  0xee   :  { %v208_v26 = vadd.f32 %v207_v24, %v128_v23  ;;  %v270_v27 = vpop.f32.mrb[1].mxu0  ;;  %v286_v28 = vpop.f32.mrb[1].mxu1 }
  0xef   :  { %v131_v29 = vpop.f32.mrb[2].mxu0  ;;  %v210_v30 = vpop.f32.mrb[2].mxu1 }
  0xf0   :  { %v220_v31 = vadd.f32 %v241_v25, %v208_v26  ;;  %v271_v32 = vpop.f32.mrb[3].mxu0  ;;  %v287_v33 = vpop.f32.mrb[3].mxu1 }
  0xf2   :  { %v221_v34 = vpack.c.bf16 %v220_v31, %v220_v31 }
  0xf4   :  { %222 = vst [vmem:[%s382_s4] sm:$0xf] %v221_v34 }

// kernel: pixelcnn_forward.63
= control target key start
LH: loop header
LB: loop body
LE: loop exit
PB: predicated region body
PF: predicated region fallthrough
CT: control target
= control target key end

     0   :  { %v454_v0 = vmov 0.0   ;;  %vm455_vm0 = vmmov 0   ;;  %v456_v23 = vmov 1065369472   ;;  %vm99_vm2 = vcmask 785408   ;;  %s573_s2 = inlined_call_operand.vmem [shape: bf16[96,128], index: 2, kind: input, shape index: {}]   ;;  %s574_s1 = inlined_call_operand.vmem [shape: bf16[96,128], index: 1, kind: input, shape index: {}]   ;;  %s575_s0 = inlined_call_operand.vmem [shape: bf16[8,96], index: 0, kind: input, shape index: {}]   ;;  %s576_s4 = inlined_call_operand.vmem [shape: bf16[16,128], index: 4, kind: input, shape index: {}]   ;;  %s577_s3 = inlined_call_operand.vmem [shape: bf16[8,16], index: 3, kind: input, shape index: {}]   ;;  %s578_s5 = inlined_call_operand.vmem [shape: bf16[16,128], index: 5, kind: input, shape index: {}]   ;;  %s579_s6 = inlined_call_operand.vmem [shape: f32[1,128], index: 6, kind: input, shape index: {}]   ;;  %s580_s7 = inlined_call_operand.vmem [shape: bf16[8,128], index: 7, kind: output, shape index: {}]  }
   0x1   :  { %389 = vmatprep.subr.bf16.mxu0 %v454_v0  ;;  %405 = vmatprep.subr.bf16.mxu1 %v454_v0  ;;  %v436_v1 = vld [vmem:[%s573_s2] sm:$0xff]   ;;  %v438_v3 = vld [vmem:[%s573_s2 + $0x8] sm:$0xff]   ;;  %v440_v5 = vld [vmem:[%s573_s2 + $0x10] sm:$0xff]   ;;  %vm243_vm4 = vcmask 130048  }
   0x2   :  { %v437_v2 = vld [vmem:[%s574_s1] sm:$0xff]   ;;  %401 = vmatprep.mubr.msk.bf16.mxu0 %vm455_vm0, %v454_v0  ;;  %417 = vmatprep.mubr.msk.bf16.mxu1 %vm455_vm0, %v454_v0  ;;  %v439_v4 = vld [vmem:[%s574_s1 + $0x8] sm:$0xff]   ;;  %v441_v6 = vld [vmem:[%s574_s1 + $0x10] sm:$0xff]  }
   0x3   :  { %390 = vmatpush3.bf16.msra.mxu0 %v436_v1  ;;  %406 = vmatpush3.bf16.msra.mxu1 %v437_v2  ;;  %v442_v7 = vld [vmem:[%s573_s2 + $0x18] sm:$0xff]   ;;  %v28_v9 = vld [vmem:[%s575_s0] sm:$0xf]  ;;  %v446_v18 = vld [vmem:[%s573_s2 + $0x28] sm:$0xff]  }
   0x4   :  { %391 = vmatprep.subr.bf16.mxu0 %v454_v0  ;;  %407 = vmatprep.subr.bf16.mxu1 %v454_v0  ;;  %v443_v8 = vld [vmem:[%s574_s1 + $0x18] sm:$0xff]   ;;  %v444_v10 = vld [vmem:[%s573_s2 + $0x20] sm:$0xff]   ;;  %v29_v11 = vand.u32 2147450879, %v28_v9  ;;  %v447_v19 = vld [vmem:[%s574_s1 + $0x28] sm:$0xff]   ;;  %v37_v21 = vsub.bf16 0, %v28_v9 }
   0x5   :  { %v222_v12 = vld [vmem:[%s577_s3] sm:$0xf]  ;;  %vm35_vm1 = vcmp.gt.bf16.partialorder %v28_v9, 0 }
   0x6   :  { %v445_v13 = vld [vmem:[%s574_s1 + $0x20] sm:$0xff]   ;;  %v30_v14 = vsub.bf16 0, %v29_v11  ;;  %v227_v15 = vand.u32 2147450879, %v222_v12  ;;  %v235_v31 = vsub.bf16 0, %v222_v12  ;;  %vm233_vm3 = vcmp.gt.bf16.partialorder %v222_v12, 0 }
   0x7   :  { %392 = vmatpush3.bf16.msra.mxu0 %v438_v3  ;;  %408 = vmatpush3.bf16.msra.mxu1 %v439_v4  ;;  %v448_v25 = vld [vmem:[%s576_s4] sm:$0xff]  }
   0x8   :  { %393 = vmatprep.subr.bf16.mxu0 %v454_v0  ;;  %409 = vmatprep.subr.bf16.mxu1 %v454_v0  ;;  %v32_v16 = vmul.bf16 1069105081, %v30_v14  ;;  %v228_v17 = vsub.bf16 0, %v227_v15  ;;  %v449_v26 = vld [vmem:[%s578_s5] sm:$0xff]  }
   0x9   :  { %v370_v48 = vld [vmem:[%s579_s6] ss:$0 sm:$0xff] }
   0xa   :  { %450 = vpow.bf16 %v32_v16  ;;  %v230_v20 = vmul.bf16 1069105081, %v228_v17 }
   0xb   :  { %394 = vmatpush3.bf16.msra.mxu0 %v440_v5  ;;  %410 = vmatpush3.bf16.msra.mxu1 %v441_v6 }
   0xc   :  { %395 = vmatprep.subr.bf16.mxu0 %v454_v0  ;;  %411 = vmatprep.subr.bf16.mxu1 %v454_v0  ;;  %452 = vpow.bf16 %v230_v20 }
   0xf   :  { %396 = vmatpush3.bf16.msra.mxu0 %v442_v7  ;;  %412 = vmatpush3.bf16.msra.mxu1 %v443_v8 }
  0x10   :  { %397 = vmatprep.subr.bf16.mxu0 %v454_v0  ;;  %413 = vmatprep.subr.bf16.mxu1 %v454_v0 }
  0x13   :  { %398 = vmatpush3.bf16.msra.mxu0 %v444_v10  ;;  %414 = vmatpush3.bf16.msra.mxu1 %v445_v13 }
  0x14   :  { %399 = vmatprep.subr.bf16.mxu0 %v454_v0  ;;  %415 = vmatprep.subr.bf16.mxu1 %v454_v0 }
  0x15   :  { %v451_v22 = vpop.eup %450 }
  0x16   :  { %v34_v24 = vsub.bf16 %v451_v22, %v456_v23 }
  0x17   :  { %400 = vmatpush3.bf16.msra.mxu0 %v446_v18  ;;  %416 = vmatpush3.bf16.msra.mxu1 %v447_v19  ;;  %v453_v27 = vpop.eup %452 }
  0x18   :  { %421 = vmatprep.subr.bf16.mxu0 %v454_v0  ;;  %427 = vmatprep.subr.bf16.mxu1 %v454_v0  ;;  %v38_v28 = vsel %vm35_vm1, %v34_v24, %v37_v21  ;;  %v36_v29 = vsel %vm35_vm1, %v28_v9, %v34_v24  ;;  %v232_v30 = vsub.bf16 %v453_v27, %v456_v23 }
  0x1a   :  { %402 = vmatmul.mubr.msk.bf16.vlgmr.msra.gmra.mrb[0].mxu0 %vm99_vm2, %v38_v28  ;;  %418 = vmatmul.mubr.msk.bf16.vlgmr.msra.gmra.mrb[0].mxu1 %vm99_vm2, %v36_v29  ;;  %v234_v32 = vsel %vm233_vm3, %v222_v12, %v232_v30  ;;  %v236_v33 = vsel %vm233_vm3, %v232_v30, %v235_v31 }
  0x1b   :  { %422 = vmatpush3.bf16.msra.mxu0 %v448_v25  ;;  %428 = vmatpush3.bf16.msra.mxu1 %v449_v26 }
  0x1c   :  { %423 = vmatprep.mubr.msk.bf16.mxu0 %vm455_vm0, %v454_v0  ;;  %429 = vmatprep.mubr.msk.bf16.mxu1 %vm455_vm0, %v454_v0 }
  0x22   :  { %424 = vmatmul.mubr.msk.bf16.vlgmr.msra.gmra.mrb[4].mxu0 %vm243_vm4, %v234_v32  ;;  %430 = vmatmul.mubr.msk.bf16.vlgmr.msra.gmra.mrb[4].mxu1 %vm243_vm4, %v236_v33 }
  0xed   :  { %v137_v34 = vpop.f32.mrb[0].mxu0  ;;  %v216_v35 = vpop.f32.mrb[0].mxu1 }
  0xee   :  { %v217_v36 = vadd.f32 %v216_v35, %v137_v34  ;;  %v403_v37 = vpop.f32.mrb[1].mxu0  ;;  %v419_v38 = vpop.f32.mrb[1].mxu1 }
  0xef   :  { %v140_v39 = vpop.f32.mrb[2].mxu0  ;;  %v219_v40 = vpop.f32.mrb[2].mxu1 }
  0xf0   :  { %v404_v41 = vpop.f32.mrb[3].mxu0  ;;  %v420_v42 = vpop.f32.mrb[3].mxu1 }
  0xf5   :  { %v281_v43 = vpop.f32.mrb[4].mxu0  ;;  %v331_v44 = vpop.f32.mrb[4].mxu1 }
  0xf6   :  { %v287_v45 = vadd.f32 %v281_v43, %v217_v36  ;;  %v425_v46 = vpop.f32.mrb[5].mxu0  ;;  %v431_v47 = vpop.f32.mrb[5].mxu1 }
  0xf7   :  { %v284_v49 = vpop.f32.mrb[6].mxu0  ;;  %v334_v50 = vpop.f32.mrb[6].mxu1 }
  0xf8   :  { %v337_v51 = vadd.f32 %v331_v44, %v287_v45  ;;  %v426_v52 = vpop.f32.mrb[7].mxu0  ;;  %v432_v53 = vpop.f32.mrb[7].mxu1 }
  0xfa   :  { %v345_v54 = vadd.f32 %v370_v48, %v337_v51 }
  0xfc   :  { %v346_v55 = vpack.c.bf16 %v345_v54, %v345_v54 }
  0xfe   :  { %347 = vst [vmem:[%s580_s7] sm:$0xf] %v346_v55 }

// kernel: pixelcnn_forward.67
= control target key start
LH: loop header
LB: loop body
LE: loop exit
PB: predicated region body
PF: predicated region fallthrough
CT: control target
= control target key end

     0   :  { %s485_s12 = smov 0   ;;  %s532_s0 = inlined_call_operand.vmem [shape: bf16[64,96], index: 0, kind: input, shape index: {}]   ;;  %s533_s1 = inlined_call_operand.vmem [shape: bf16[96,128], index: 1, kind: input, shape index: {}]   ;;  %s534_s2 = inlined_call_operand.vmem [shape: f32[1,128], index: 2, kind: input, shape index: {}]   ;;  %s535_s3 = inlined_call_operand.vmem [shape: bf16[64,128], index: 3, kind: output, shape index: {}]  }
   0x1 LB: > { %s376_s13 = sadd.s32 4294967295, %s463_s12   ;;  %p380_p0 = scmp.ge.s32.totalorder %s463_s12, 1  ;;  %s463_s12 = sphi %s485_s12, %s13_s12  }
   0x2   : > { %p138_p1 = scmp.lt.s32.totalorder %s463_s12, 3 }
   0x4   : > { %p139_p2 = pnand %p380_p0, %p138_p1 }
   0x5   : > { %v449_v0 = vld [vmem:[%s533_s1] sm:$0xff] (!%p139_p2)   ;;  %s381_s16 = sshll.u32 (!%p139_p2), %s376_s13, 2  ;;  %v450_v1 = vld [vmem:[%s533_s1 + $0x8] sm:$0xff] (!%p139_p2)   ;;  %v451_v2 = vld [vmem:[%s533_s1 + $0x10] sm:$0xff] (!%p139_p2)   ;;  %vm244_vm0 = vcmask (!%p139_p2), 785408  }
   0x6   : > { %142 = sbr.rel (%p139_p2) target bundleno = 250 (0xfa), region = 32  ;;  %p163_p3 = scmp.lt.s32.totalorder (!%p139_p2), %s381_s16, 7  ;;  %425 = vmatprep.subr.bf16.mxu0 (!%p139_p2), %v449_v0  ;;  %v452_v4 = vld [vmem:[%s533_s1 + $0x18] sm:$0xff] (!%p139_p2)   ;;  %v453_v5 = vld [vmem:[%s533_s1 + $0x20] sm:$0xff] (!%p139_p2)   ;;  %v454_v6 = vld [vmem:[%s533_s1 + $0x28] sm:$0xff] (!%p139_p2)  }
   0x7   : > { %426 = vmatpush3.bf16.msra.mxu0 (!%p139_p2), %v449_v0  ;;  %v385_v9 = vld [vmem:[%s534_s2] ss:$0 sm:$0xff] (!%p139_p2) }
   0x8   : > { %427 = vmatprep.subr.bf16.mxu0 (!%p139_p2), %v450_v1 }
   0xb   : > { %428 = vmatpush3.bf16.msra.mxu0 (!%p139_p2), %v450_v1 }
   0xc   : > { %429 = vmatprep.subr.bf16.mxu0 (!%p139_p2), %v451_v2 }
   0xd   : > { %s537_s16 = smov (!%p163_p3, %s381_s16), 7 }
   0xe   : > { %s382_s21 = sshll.u32 %s537_s16, 2 }
   0xf   : > { %s166_s24 = scalar_lea.vmem %s532_s0, %s382_s21  ;;  %430 = vmatpush3.bf16.msra.mxu0 %v451_v2  ;;  %s172_s8 = scalar_lea.vmem %s535_s3, %s382_s21 }
  0x10   : > { %v455_v3 = vld [vmem:[%s166_s24] sm:$0xff]   ;;  %431 = vmatprep.subr.bf16.mxu0 %v452_v4  ;;  %v456_v7 = vld [vmem:[%s166_s24 + $0x8] sm:$0xff]  }
  0x11   : > { %437 = vmatprep.mubr.msk.bf16.mxu0 %vm244_vm0, %v455_v3 }
  0x13   : > { %432 = vmatpush3.bf16.msra.mxu0 %v452_v4 }
  0x14   : > { %433 = vmatprep.subr.bf16.mxu0 %v453_v5 }
  0x17   : > { %434 = vmatpush3.bf16.msra.mxu0 %v453_v5 }
  0x18   : > { %435 = vmatprep.subr.bf16.mxu0 %v454_v6 }
  0x1b   : > { %436 = vmatpush3.bf16.msra.mxu0 %v454_v6 }
  0x1e   : > { %438 = vmatmul.mubr.msk.bf16.vlgmr.msra.gmra.mrb[0].mxu0 %vm244_vm0, %v456_v7 }
  0xf1   : > { %v439_v8 = vpop.f32.mrb[0].mxu0 }
  0xf2   : > { %v285_v10 = vpop.f32.mrb[1].mxu0  ;;  %v294_v12 = vadd.f32 %v439_v8, %v385_v9 }
  0xf3   : > { %v440_v11 = vpop.f32.mrb[2].mxu0  ;;  %v286_v15 = vadd.f32 %v385_v9, %v285_v10 }
  0xf4   : > { %v297_v13 = vadd.f32 %v440_v11, %v385_v9  ;;  %v288_v14 = vpop.f32.mrb[3].mxu0 }
  0xf5   : > { %v289_v16 = vadd.f32 %v385_v9, %v288_v14 }
  0xf6   : > { %v414_v17 = vpack.c.bf16 %v297_v13, %v294_v12 }
  0xf7   : > { %v409_v18 = vpack.c.bf16 %v289_v16, %v286_v15 }
  0xf8   : > { %416 = vst [vmem:[%s172_s8 + $0x8] sm:$0xff] %v414_v17  }
  0xf9   : > { %410 = vst [vmem:[%s172_s8] sm:$0xff] %v409_v18  }
  0xfa PF: > { %s13_s12 = sadd.s32 1, %s463_s12  }
  0xfb   : > { %p10_p4 = scmp.ge.s32.totalorder %s13_s12, 4  }
  0xfd   :  { %12 = sbr.rel (!%p10_p4) target bundleno = 1 (0x1), region = 62 }

// kernel: pixelcnn_forward.69
= control target key start
LH: loop header
LB: loop body
LE: loop exit
PB: predicated region body
PF: predicated region fallthrough
CT: control target
= control target key end

     0   :  { %s942_s24 = smov 0   ;;  %s1038_s0 = inlined_call_operand.vmem [shape: bf16[32,96], index: 0, kind: input, shape index: {}]   ;;  %s1039_s1 = inlined_call_operand.vmem [shape: bf16[96,128], index: 1, kind: input, shape index: {}]   ;;  %s1040_s2 = inlined_call_operand.vmem [shape: bf16[96,128], index: 2, kind: input, shape index: {}]   ;;  %s1041_s3 = inlined_call_operand.vmem [shape: bf16[32,16], index: 3, kind: input, shape index: {}]   ;;  %s1042_s4 = inlined_call_operand.vmem [shape: bf16[16,128], index: 4, kind: input, shape index: {}]   ;;  %s1043_s5 = inlined_call_operand.vmem [shape: bf16[16,128], index: 5, kind: input, shape index: {}]   ;;  %s1044_s6 = inlined_call_operand.vmem [shape: f32[1,128], index: 6, kind: input, shape index: {}]   ;;  %s1045_s7 = inlined_call_operand.vmem [shape: bf16[32,128], index: 7, kind: output, shape index: {}]  }
   0x1 LB: > { %s751_s25 = sadd.s32 4294967295, %s897_s24   ;;  %p755_p0 = scmp.ge.s32.totalorder %s897_s24, 1  ;;  %s897_s24 = sphi %s942_s24, %s17_s24  }
   0x2   : > { %p249_p1 = scmp.lt.s32.totalorder %s897_s24, 3 }
   0x4   : > { %p250_p2 = pnand %p755_p0, %p249_p1 }
   0x5   : > { %v869_v0 = vld [vmem:[%s1040_s2] sm:$0xff] (!%p250_p2)   ;;  %v899_v1 = vmov (!%p250_p2), 0.0   ;;  %v871_v3 = vld [vmem:[%s1040_s2 + $0x8] sm:$0xff] (!%p250_p2)   ;;  %vm900_vm0 = vmmov (!%p250_p2), 0   ;;  %s756_s9 = sshll.u32 (!%p250_p2), %s751_s25, 1  ;;  %v873_v5 = vld [vmem:[%s1040_s2 + $0x10] sm:$0xff] (!%p250_p2)  }
   0x6   : > { %253 = sbr.rel (%p250_p2) target bundleno = 272 (0x110), region = 48  ;;  %814 = vmatprep.subr.bf16.mxu0 (!%p250_p2), %v899_v1  ;;  %830 = vmatprep.subr.bf16.mxu1 (!%p250_p2), %v899_v1  ;;  %v870_v2 = vld [vmem:[%s1039_s1] sm:$0xff] (!%p250_p2)   ;;  %v872_v4 = vld [vmem:[%s1039_s1 + $0x8] sm:$0xff] (!%p250_p2)   ;;  %p287_p3 = scmp.lt.s32.totalorder (!%p250_p2), %s756_s9, 3  ;;  %v874_v6 = vld [vmem:[%s1039_s1 + $0x10] sm:$0xff] (!%p250_p2)   ;;  %vm393_vm3 = vcmask (!%p250_p2), 785408  }
   0x7   : > { %815 = vmatpush3.bf16.msra.mxu0 (!%p250_p2), %v869_v0  ;;  %826 = vmatprep.mubr.msk.bf16.mxu0 (!%p250_p2), %vm900_vm0, %v899_v1  ;;  %v875_v7 = vld [vmem:[%s1040_s2 + $0x18] sm:$0xff] (!%p250_p2)   ;;  %v877_v13 = vld [vmem:[%s1040_s2 + $0x20] sm:$0xff] (!%p250_p2)   ;;  %v879_v22 = vld [vmem:[%s1040_s2 + $0x28] sm:$0xff] (!%p250_p2)   ;;  %v901_v33 = vmov (!%p250_p2), 1065369472   ;;  %vm560_vm6 = vcmask (!%p250_p2), 130048  }
   0x8   : > { %831 = vmatpush3.bf16.msra.mxu1 (!%p250_p2), %v870_v2  ;;  %816 = vmatprep.subr.bf16.mxu0 (!%p250_p2), %v899_v1  ;;  %v876_v8 = vld [vmem:[%s1039_s1 + $0x18] sm:$0xff] (!%p250_p2)   ;;  %v878_v14 = vld [vmem:[%s1039_s1 + $0x20] sm:$0xff] (!%p250_p2)   ;;  %v880_v24 = vld [vmem:[%s1039_s1 + $0x28] sm:$0xff] (!%p250_p2)  }
   0x9   : > { %832 = vmatprep.subr.bf16.mxu1 (!%p250_p2), %v899_v1  ;;  %842 = vmatprep.mubr.msk.bf16.mxu1 (!%p250_p2), %vm900_vm0, %v899_v1  ;;  %v881_v41 = vld [vmem:[%s1042_s4] sm:$0xff] (!%p250_p2)  }
   0xa   : > { %v882_v42 = vld [vmem:[%s1043_s5] sm:$0xff] (!%p250_p2)  }
   0xb   : > { %817 = vmatpush3.bf16.msra.mxu0 (!%p250_p2), %v871_v3 }
   0xc   : > { %833 = vmatpush3.bf16.msra.mxu1 (!%p250_p2), %v872_v4  ;;  %818 = vmatprep.subr.bf16.mxu0 (!%p250_p2), %v899_v1 }
   0xd   : > { %s1047_s9 = smov (!%p287_p3, %s756_s9), 3  ;;  %834 = vmatprep.subr.bf16.mxu1 %v899_v1 }
   0xe   : > { %s977_s16 = sshll.u32 %s1047_s9, 2 }
   0xf   : > { %s290_s19 = scalar_lea.vmem %s1038_s0, %s977_s16  ;;  %819 = vmatpush3.bf16.msra.mxu0 %v873_v5  ;;  %s296_s27 = scalar_lea.vmem %s1041_s3, %s977_s16 }
  0x10   : > { %835 = vmatpush3.bf16.msra.mxu1 %v874_v6  ;;  %820 = vmatprep.subr.bf16.mxu0 %v899_v1  ;;  %v306_v9 = vld [vmem:[%s290_s19] sm:$0xf]  ;;  %v307_v10 = vld [vmem:[%s290_s19 + $0x4] sm:$0xf]  ;;  %s302_s22 = scalar_lea.vmem %s1045_s7, %s977_s16 }
  0x11   : > { %836 = vmatprep.subr.bf16.mxu1 %v899_v1  ;;  %v308_v11 = vand.u32 2147450879, %v306_v9  ;;  %v309_v12 = vand.u32 2147450879, %v307_v10  ;;  %v523_v17 = vld [vmem:[%s296_s27] sm:$0xf] }
  0x12   : > { %v524_v18 = vld [vmem:[%s296_s27 + $0x4] sm:$0xf]  ;;  %v529_v21 = vand.u32 2147450879, %v523_v17  ;;  %v324_v29 = vsub.bf16 0, %v306_v9  ;;  %vm320_vm1 = vcmp.gt.bf16.partialorder %v306_v9, 0 }
  0x13   : > { %821 = vmatpush3.bf16.msra.mxu0 %v875_v7  ;;  %v310_v15 = vsub.bf16 0, %v308_v11  ;;  %v311_v16 = vsub.bf16 0, %v309_v12  ;;  %v530_v23 = vand.u32 2147450879, %v524_v18  ;;  %v325_v31 = vsub.bf16 0, %v307_v10 }
  0x14   : > { %837 = vmatpush3.bf16.msra.mxu1 %v876_v8  ;;  %822 = vmatprep.subr.bf16.mxu0 %v899_v1  ;;  %v531_v25 = vsub.bf16 0, %v529_v21  ;;  %vm321_vm2 = vcmp.gt.bf16.partialorder %v307_v10, 0  ;;  %vm541_vm4 = vcmp.gt.bf16.partialorder %v523_v17, 0  ;;  %v545_v43 = vsub.bf16 0, %v523_v17 }
  0x15   : > { %838 = vmatprep.subr.bf16.mxu1 %v899_v1  ;;  %v313_v19 = vmul.bf16 1069105081, %v310_v15  ;;  %v316_v20 = vmul.bf16 1069105081, %v311_v16  ;;  %v532_v26 = vsub.bf16 0, %v530_v23  ;;  %v546_v44 = vsub.bf16 0, %v524_v18 }
  0x16   : > { %v534_v27 = vmul.bf16 1069105081, %v531_v25  ;;  %vm542_vm5 = vcmp.gt.bf16.partialorder %v524_v18, 0 }
  0x17   : > { %823 = vmatpush3.bf16.msra.mxu0 %v877_v13  ;;  %883 = vpow.bf16 %v313_v19  ;;  %v537_v28 = vmul.bf16 1069105081, %v532_v26  ;;  %v784_v13 = vld [vmem:[%s1044_s6] ss:$0 sm:$0xff] }
  0x18   : > { %839 = vmatpush3.bf16.msra.mxu1 %v878_v14  ;;  %824 = vmatprep.subr.bf16.mxu0 %v899_v1  ;;  %885 = vpow.bf16 %v316_v20 }
  0x19   : > { %840 = vmatprep.subr.bf16.mxu1 %v899_v1  ;;  %887 = vpow.bf16 %v534_v27 }
  0x1a   : > { %889 = vpow.bf16 %v537_v28 }
  0x1b   : > { %825 = vmatpush3.bf16.msra.mxu0 %v879_v22 }
  0x1c   : > { %841 = vmatpush3.bf16.msra.mxu1 %v880_v24  ;;  %846 = vmatprep.subr.bf16.mxu0 %v899_v1 }
  0x1d   : > { %852 = vmatprep.subr.bf16.mxu1 %v899_v1 }
  0x22   : > { %v884_v30 = vpop.eup %883 }
  0x23   : > { %v886_v32 = vpop.eup %885  ;;  %v318_v34 = vsub.bf16 %v884_v30, %v901_v33 }
  0x24   : > { %v319_v35 = vsub.bf16 %v886_v32, %v901_v33  ;;  %v888_v38 = vpop.eup %887 }
  0x25   : > { %v326_v36 = vsel %vm320_vm1, %v318_v34, %v324_v29  ;;  %v322_v37 = vsel %vm320_vm1, %v306_v9, %v318_v34  ;;  %v890_v45 = vpop.eup %889  ;;  %v539_v48 = vsub.bf16 %v888_v38, %v901_v33 }
  0x26   : > { %v327_v39 = vsel %vm321_vm2, %v319_v35, %v325_v31  ;;  %v323_v40 = vsel %vm321_vm2, %v307_v10, %v319_v35  ;;  %v540_v49 = vsub.bf16 %v890_v45, %v901_v33 }
  0x27   : > { %v762_v46 = vcombine.low %v326_v36, %v327_v39  ;;  %v770_v47 = vcombine.low %v322_v37, %v323_v40  ;;  %v543_v50 = vsel %vm541_vm4, %v523_v17, %v539_v48  ;;  %v547_v52 = vsel %vm541_vm4, %v539_v48, %v545_v43 }
  0x28   : > { %v544_v51 = vsel %vm542_vm5, %v524_v18, %v540_v49  ;;  %v548_v53 = vsel %vm542_vm5, %v540_v49, %v546_v44 }
  0x29   : > { %827 = vmatmul.mubr.msk.bf16.vlgmr.msra.gmra.mrb[0].mxu0 %vm393_vm3, %v762_v46  ;;  %843 = vmatmul.mubr.msk.bf16.vlgmr.msra.gmra.mrb[0].mxu1 %vm393_vm3, %v770_v47  ;;  %v778_v54 = vcombine.low %v543_v50, %v544_v51  ;;  %v781_v55 = vcombine.low %v547_v52, %v548_v53 }
  0x2a   : > { %847 = vmatpush3.bf16.msra.mxu0 %v881_v41  ;;  %853 = vmatpush3.bf16.msra.mxu1 %v882_v42 }
  0x2b   : > { %848 = vmatprep.mubr.msk.bf16.mxu0 %vm900_vm0, %v899_v1  ;;  %854 = vmatprep.mubr.msk.bf16.mxu1 %vm900_vm0, %v899_v1 }
  0x31   : > { %849 = vmatmul.mubr.msk.bf16.vlgmr.msra.gmra.mrb[4].mxu0 %vm560_vm6, %v778_v54  ;;  %855 = vmatmul.mubr.msk.bf16.vlgmr.msra.gmra.mrb[4].mxu1 %vm560_vm6, %v781_v55 }
  0xfc   : > { %v431_v56 = vpop.f32.mrb[0].mxu0  ;;  %v516_v57 = vpop.f32.mrb[0].mxu1 }
  0xfd   : > { %v517_v58 = vadd.f32 %v516_v57, %v431_v56  ;;  %v828_v59 = vpop.f32.mrb[1].mxu0  ;;  %v844_v60 = vpop.f32.mrb[1].mxu1 }
  0xfe   : > { %v434_v61 = vpop.f32.mrb[2].mxu0  ;;  %v519_v62 = vpop.f32.mrb[2].mxu1 }
  0xff   : > { %v520_v63 = vadd.f32 %v519_v62, %v434_v61  ;;  %v829_v0 = vpop.f32.mrb[3].mxu0  ;;  %v845_v2 = vpop.f32.mrb[3].mxu1 }
 0x104   : > { %v598_v3 = vpop.f32.mrb[4].mxu0  ;;  %v655_v4 = vpop.f32.mrb[4].mxu1 }
 0x105   : > { %v605_v5 = vadd.f32 %v598_v3, %v517_v58  ;;  %v850_v1 = vpop.f32.mrb[5].mxu0  ;;  %v856_v6 = vpop.f32.mrb[5].mxu1 }
 0x106   : > { %v601_v7 = vpop.f32.mrb[6].mxu0  ;;  %v658_v8 = vpop.f32.mrb[6].mxu1 }
 0x107   : > { %v662_v9 = vadd.f32 %v655_v4, %v605_v5  ;;  %v606_v10 = vadd.f32 %v601_v7, %v520_v63  ;;  %v851_v11 = vpop.f32.mrb[7].mxu0  ;;  %v857_v12 = vpop.f32.mrb[7].mxu1 }
 0x109   : > { %v663_v14 = vadd.f32 %v658_v8, %v606_v10  ;;  %v671_v15 = vadd.f32 %v784_v13, %v662_v9 }
 0x10b   : > { %v672_v16 = vadd.f32 %v784_v13, %v663_v14 }
 0x10d   : > { %v794_v17 = vpack.c.bf16 %v672_v16, %v671_v15 }
 0x10f   : > { %795 = vst [vmem:[%s302_s22] sm:$0xff] %v794_v17  }
 0x110 PF: > { %s17_s24 = sadd.s32 1, %s897_s24  }
 0x111   : > { %p14_p4 = scmp.ge.s32.totalorder %s17_s24, 4  }
 0x113   :  { %16 = sbr.rel (!%p14_p4) target bundleno = 1 (0x1), region = 81 }

// kernel: pixelcnn_forward.77
= control target key start
LH: loop header
LB: loop body
LE: loop exit
PB: predicated region body
PF: predicated region fallthrough
CT: control target
= control target key end

     0   :  { %s671_s12 = smov 0   ;;  %s722_s0 = inlined_call_operand.vmem [shape: bf16[192,96], index: 0, kind: input, shape index: {}]   ;;  %s723_s1 = inlined_call_operand.vmem [shape: bf16[96,128], index: 1, kind: input, shape index: {}]   ;;  %s724_s2 = inlined_call_operand.vmem [shape: f32[1,128], index: 2, kind: input, shape index: {}]   ;;  %s725_s3 = inlined_call_operand.vmem [shape: bf16[192,128], index: 3, kind: output, shape index: {}]  }
   0x1 LB: > { %s488_s13 = sadd.s32 4294967295, %s649_s12   ;;  %p492_p0 = scmp.ge.s32.totalorder %s649_s12, 1  ;;  %s649_s12 = sphi %s671_s12, %s13_s12  }
   0x2   : > { %p138_p1 = scmp.lt.s32.totalorder %s649_s12, 3 }
   0x4   : > { %p139_p2 = pnand %p492_p0, %p138_p1 }
   0x5   : > { %v631_v0 = vld [vmem:[%s723_s1] sm:$0xff] (!%p139_p2)   ;;  %s162_s16 = smul.u32 (!%p139_p2), 12, %s488_s13  ;;  %v632_v1 = vld [vmem:[%s723_s1 + $0x8] sm:$0xff] (!%p139_p2)   ;;  %v633_v2 = vld [vmem:[%s723_s1 + $0x10] sm:$0xff] (!%p139_p2)   ;;  %vm272_vm0 = vcmask (!%p139_p2), 785408  }
   0x6   : > { %142 = sbr.rel (%p139_p2) target bundleno = 258 (0x102), region = 32  ;;  %611 = vmatprep.subr.bf16.mxu1 (!%p139_p2), %v631_v0  ;;  %587 = vmatprep.subr.bf16.mxu0 (!%p139_p2), %v631_v0  ;;  %v634_v3 = vld [vmem:[%s723_s1 + $0x18] sm:$0xff] (!%p139_p2)   ;;  %v635_v6 = vld [vmem:[%s723_s1 + $0x20] sm:$0xff] (!%p139_p2)   ;;  %v636_v7 = vld [vmem:[%s723_s1 + $0x28] sm:$0xff] (!%p139_p2)  }
   0x7   : > { %p163_p3 = scmp.lt.s32.totalorder (!%p139_p2), %s162_s16, 23  ;;  %617 = vmatpush3.bf16.msra.mxu1 (!%p139_p2), %v631_v0  ;;  %588 = vmatpush3.bf16.msra.mxu0 (!%p139_p2), %v631_v0  ;;  %v495_v12 = vld [vmem:[%s724_s2] ss:$0 sm:$0xff] (!%p139_p2) }
   0x8   : > { %612 = vmatprep.subr.bf16.mxu1 (!%p139_p2), %v632_v1  ;;  %589 = vmatprep.subr.bf16.mxu0 (!%p139_p2), %v632_v1 }
   0xb   : > { %618 = vmatpush3.bf16.msra.mxu1 (!%p139_p2), %v632_v1  ;;  %590 = vmatpush3.bf16.msra.mxu0 (!%p139_p2), %v632_v1 }
   0xc   : > { %613 = vmatprep.subr.bf16.mxu1 (!%p139_p2), %v633_v2  ;;  %591 = vmatprep.subr.bf16.mxu0 (!%p139_p2), %v633_v2 }
   0xd   : > { %s727_s16 = smov (!%p163_p3, %s162_s16), 23 }
   0xe   : > { %s493_s21 = sshll.u32 %s727_s16, 2 }
   0xf   : > { %s166_s26 = scalar_lea.vmem %s722_s0, %s493_s21  ;;  %619 = vmatpush3.bf16.msra.mxu1 %v633_v2  ;;  %592 = vmatpush3.bf16.msra.mxu0 %v633_v2  ;;  %s172_s8 = scalar_lea.vmem %s725_s3, %s493_s21 }
  0x10   : > { %v637_v4 = vld [vmem:[%s166_s26 + $0x10] sm:$0xff]   ;;  %v639_v5 = vld [vmem:[%s166_s26] sm:$0xff]   ;;  %614 = vmatprep.subr.bf16.mxu1 %v634_v3  ;;  %593 = vmatprep.subr.bf16.mxu0 %v634_v3  ;;  %v638_v8 = vld [vmem:[%s166_s26 + $0x18] sm:$0xff]  }
  0x11   : > { %603 = vmatprep.mubr.msk.bf16.mxu1 %vm272_vm0, %v637_v4  ;;  %599 = vmatprep.mubr.msk.bf16.mxu0 %vm272_vm0, %v639_v5  ;;  %v640_v9 = vld [vmem:[%s166_s26 + $0x8] sm:$0xff]   ;;  %v641_v10 = vld [vmem:[%s166_s26 + $0x20] sm:$0xff]  }
  0x12   : > { %v642_v11 = vld [vmem:[%s166_s26 + $0x28] sm:$0xff]  }
  0x13   : > { %620 = vmatpush3.bf16.msra.mxu1 %v634_v3  ;;  %594 = vmatpush3.bf16.msra.mxu0 %v634_v3 }
  0x14   : > { %615 = vmatprep.subr.bf16.mxu1 %v635_v6  ;;  %595 = vmatprep.subr.bf16.mxu0 %v635_v6 }
  0x17   : > { %621 = vmatpush3.bf16.msra.mxu1 %v635_v6  ;;  %596 = vmatpush3.bf16.msra.mxu0 %v635_v6 }
  0x18   : > { %616 = vmatprep.subr.bf16.mxu1 %v636_v7  ;;  %597 = vmatprep.subr.bf16.mxu0 %v636_v7 }
  0x1b   : > { %622 = vmatpush3.bf16.msra.mxu1 %v636_v7  ;;  %598 = vmatpush3.bf16.msra.mxu0 %v636_v7 }
  0x1e   : > { %604 = vmatmul.mubr.msk.bf16.vlgmr.msra.gmra.mrb[0].mxu1 %vm272_vm0, %v638_v8  ;;  %600 = vmatmul.mubr.msk.bf16.vlgmr.msra.gmra.mrb[0].mxu0 %vm272_vm0, %v640_v9 }
  0x1f   : > { %607 = vmatprep.mubr.msk.bf16.mxu1 %vm272_vm0, %v641_v10 }
  0x26   : > { %608 = vmatmul.mubr.msk.bf16.gmra.mrb[4].mxu1 %vm272_vm0, %v642_v11 }
  0xf1   : > { %v605_v13 = vpop.f32.mrb[0].mxu1  ;;  %v601_v14 = vpop.f32.mrb[0].mxu0 }
  0xf2   : > { %v341_v15 = vpop.f32.mrb[1].mxu1  ;;  %v334_v16 = vadd.f32 %v601_v14, %v495_v12  ;;  %v325_v17 = vpop.f32.mrb[1].mxu0  ;;  %v350_v21 = vadd.f32 %v605_v13, %v495_v12 }
  0xf3   : > { %v606_v18 = vpop.f32.mrb[2].mxu1  ;;  %v326_v19 = vadd.f32 %v495_v12, %v325_v17  ;;  %v602_v20 = vpop.f32.mrb[2].mxu0  ;;  %v342_v26 = vadd.f32 %v495_v12, %v341_v15 }
  0xf4   : > { %v353_v22 = vadd.f32 %v606_v18, %v495_v12  ;;  %v344_v23 = vpop.f32.mrb[3].mxu1  ;;  %v337_v24 = vadd.f32 %v602_v20, %v495_v12  ;;  %v328_v25 = vpop.f32.mrb[3].mxu0 }
  0xf5   : > { %v345_v27 = vadd.f32 %v495_v12, %v344_v23  ;;  %v329_v28 = vadd.f32 %v495_v12, %v328_v25 }
  0xf6   : > { %v558_v29 = vpack.c.bf16 %v353_v22, %v350_v21  ;;  %v548_v30 = vpack.c.bf16 %v337_v24, %v334_v16 }
  0xf7   : > { %v553_v31 = vpack.c.bf16 %v345_v27, %v342_v26  ;;  %v543_v32 = vpack.c.bf16 %v329_v28, %v326_v19 }
  0xf8   : > { %572 = vst [vmem:[%s172_s8 + $0x18] sm:$0xff] %v558_v29   ;;  %570 = vst [vmem:[%s172_s8 + $0x8] sm:$0xff] %v548_v30  }
  0xf9   : > { %571 = vst [vmem:[%s172_s8 + $0x10] sm:$0xff] %v553_v31   ;;  %544 = vst [vmem:[%s172_s8] sm:$0xff] %v543_v32   ;;  %v609_v33 = vpop.f32.mrb[4].mxu1 }
  0xfa   : > { %v357_v34 = vpop.f32.mrb[5].mxu1  ;;  %v366_v36 = vadd.f32 %v609_v33, %v495_v12 }
  0xfb   : > { %v610_v35 = vpop.f32.mrb[6].mxu1  ;;  %v358_v39 = vadd.f32 %v495_v12, %v357_v34 }
  0xfc   : > { %v369_v37 = vadd.f32 %v610_v35, %v495_v12  ;;  %v360_v38 = vpop.f32.mrb[7].mxu1 }
  0xfd   : > { %v361_v40 = vadd.f32 %v495_v12, %v360_v38 }
  0xfe   : > { %v568_v41 = vpack.c.bf16 %v369_v37, %v366_v36 }
  0xff   : > { %v563_v42 = vpack.c.bf16 %v361_v40, %v358_v39 }
 0x100   : > { %574 = vst [vmem:[%s172_s8 + $0x28] sm:$0xff] %v568_v41  }
 0x101   : > { %573 = vst [vmem:[%s172_s8 + $0x20] sm:$0xff] %v563_v42  }
 0x102 PF: > { %s13_s12 = sadd.s32 1, %s649_s12  }
 0x103   : > { %p10_p4 = scmp.ge.s32.totalorder %s13_s12, 4  }
 0x105   :  { %12 = sbr.rel (!%p10_p4) target bundleno = 1 (0x1), region = 62 }

// kernel: pixelcnn_forward.79
= control target key start
LH: loop header
LB: loop body
LE: loop exit
PB: predicated region body
PF: predicated region fallthrough
CT: control target
= control target key end

     0   :  { %s1440_s24 = smov 0   ;;  %s1720_s0 = inlined_call_operand.vmem [shape: bf16[128,96], index: 0, kind: input, shape index: {}]   ;;  %s1721_s1 = inlined_call_operand.vmem [shape: bf16[96,128], index: 1, kind: input, shape index: {}]   ;;  %s1722_s2 = inlined_call_operand.vmem [shape: bf16[96,128], index: 2, kind: input, shape index: {}]   ;;  %s1723_s3 = inlined_call_operand.vmem [shape: bf16[128,16], index: 3, kind: input, shape index: {}]   ;;  %s1724_s4 = inlined_call_operand.vmem [shape: bf16[16,128], index: 4, kind: input, shape index: {}]   ;;  %s1725_s5 = inlined_call_operand.vmem [shape: bf16[16,128], index: 5, kind: input, shape index: {}]   ;;  %s1726_s6 = inlined_call_operand.vmem [shape: f32[1,128], index: 6, kind: input, shape index: {}]   ;;  %s1727_s7 = inlined_call_operand.vmem [shape: bf16[128,128], index: 7, kind: output, shape index: {}]  }
   0x1 LB: > { %s1123_s25 = sadd.s32 4294967295, %s1397_s24   ;;  %p1127_p0 = scmp.ge.s32.totalorder %s1397_s24, 1  ;;  %s1397_s24 = sphi %s1440_s24, %s17_s24  }
   0x2   : > { %p249_p1 = scmp.lt.s32.totalorder %s1397_s24, 3 }
   0x4   : > { %p250_p2 = pnand %p1127_p0, %p249_p1 }
   0x5   : > { %v1345_v0 = vld [vmem:[%s1722_s2] sm:$0xff] (!%p250_p2)   ;;  %s1128_s28 = sshll.u32 (!%p250_p2), %s1123_s25, 3  ;;  %v1347_v2 = vld [vmem:[%s1722_s2 + $0x8] sm:$0xff] (!%p250_p2)   ;;  %v1349_v4 = vld [vmem:[%s1722_s2 + $0x10] sm:$0xff] (!%p250_p2)   ;;  %vm474_vm2 = vcmask (!%p250_p2), 785408   ;;  %vm803_vm11 = vcmask (!%p250_p2), 130048  }
   0x6   : > { %253 = sbr.rel (%p250_p2) target bundleno = 294 (0x126), region = 48  ;;  %v1346_v1 = vld [vmem:[%s1721_s1] sm:$0xff] (!%p250_p2)   ;;  %p287_p3 = scmp.lt.s32.totalorder (!%p250_p2), %s1128_s28, 15  ;;  %1252 = vmatprep.subr.bf16.mxu1 (!%p250_p2), %v1345_v0  ;;  %v1348_v3 = vld [vmem:[%s1721_s1 + $0x8] sm:$0xff] (!%p250_p2)   ;;  %v1350_v5 = vld [vmem:[%s1721_s1 + $0x10] sm:$0xff] (!%p250_p2)  }
   0x7   : > { %1253 = vmatpush3.bf16.msra.mxu1 (!%p250_p2), %v1345_v0  ;;  %1272 = vmatprep.subr.bf16.mxu0 (!%p250_p2), %v1346_v1  ;;  %v1351_v6 = vld [vmem:[%s1722_s2 + $0x18] sm:$0xff] (!%p250_p2)   ;;  %v1353_v8 = vld [vmem:[%s1722_s2 + $0x20] sm:$0xff] (!%p250_p2)   ;;  %v1355_v17 = vld [vmem:[%s1722_s2 + $0x28] sm:$0xff] (!%p250_p2)   ;;  %v1399_v0 = vmov (!%p250_p2), 1065369472  }
   0x8   : > { %1273 = vmatpush3.bf16.msra.mxu0 (!%p250_p2), %v1346_v1  ;;  %1254 = vmatprep.subr.bf16.mxu1 (!%p250_p2), %v1347_v2  ;;  %v1352_v7 = vld [vmem:[%s1721_s1 + $0x18] sm:$0xff] (!%p250_p2)   ;;  %v1354_v11 = vld [vmem:[%s1721_s1 + $0x20] sm:$0xff] (!%p250_p2)   ;;  %v1356_v18 = vld [vmem:[%s1721_s1 + $0x28] sm:$0xff] (!%p250_p2)  }
   0x9   : > { %1274 = vmatprep.subr.bf16.mxu0 (!%p250_p2), %v1348_v3  ;;  %v1511_v25 = vld [vmem:[%s1724_s4] sm:$0xff] (!%p250_p2)  }
   0xa   : > { %v1523_v32 = vld [vmem:[%s1725_s5] sm:$0xff] (!%p250_p2)  }
   0xb   : > { %1255 = vmatpush3.bf16.msra.mxu1 (!%p250_p2), %v1347_v2 }
   0xc   : > { %1275 = vmatpush3.bf16.msra.mxu0 (!%p250_p2), %v1348_v3  ;;  %1256 = vmatprep.subr.bf16.mxu1 (!%p250_p2), %v1349_v4 }
   0xd   : > { %s1729_s28 = smov (!%p287_p3, %s1128_s28), 15  ;;  %1276 = vmatprep.subr.bf16.mxu0 %v1350_v5 }
   0xe   : > { %s1466_s16 = sshll.u32 %s1729_s28, 2 }
   0xf   : > { %s1478_s23 = scalar_lea.vmem %s1720_s0, %s1466_s16  ;;  %1257 = vmatpush3.bf16.msra.mxu1 %v1349_v4  ;;  %s1533_s17 = scalar_lea.vmem %s1723_s3, %s1466_s16 }
  0x10   : > { %1277 = vmatpush3.bf16.msra.mxu0 %v1350_v5  ;;  %1258 = vmatprep.subr.bf16.mxu1 %v1351_v6  ;;  %v1484_v9 = vld [vmem:[%s1478_s23] sm:$0xf]  ;;  %v1487_v10 = vld [vmem:[%s1478_s23 + $0x4] sm:$0xf]  ;;  %v1495_v16 = vld [vmem:[%s1478_s23 + $0x8] sm:$0xf]  ;;  %s302_s22 = scalar_lea.vmem %s1727_s7, %s1466_s16 }
  0x11   : > { %1278 = vmatprep.subr.bf16.mxu0 %v1352_v7  ;;  %v314_v12 = vand.u32 2147450879, %v1484_v9  ;;  %v315_v13 = vand.u32 2147450879, %v1487_v10  ;;  %v1504_v19 = vld [vmem:[%s1478_s23 + $0xc] sm:$0xf] }
  0x12   : > { %v316_v20 = vand.u32 2147450879, %v1495_v16  ;;  %v317_v23 = vand.u32 2147450879, %v1504_v19  ;;  %v1514_v27 = vld [vmem:[%s1478_s23 + $0x10] sm:$0xf] }
  0x13   : > { %1259 = vmatpush3.bf16.msra.mxu1 %v1351_v6  ;;  %v322_v14 = vsub.bf16 0, %v314_v12  ;;  %v323_v15 = vsub.bf16 0, %v315_v13  ;;  %v1517_v29 = vld [vmem:[%s1478_s23 + $0x14] sm:$0xf]  ;;  %v318_v30 = vand.u32 2147450879, %v1514_v27 }
  0x14   : > { %1279 = vmatpush3.bf16.msra.mxu0 %v1352_v7  ;;  %1260 = vmatprep.subr.bf16.mxu1 %v1353_v8  ;;  %v324_v24 = vsub.bf16 0, %v316_v20  ;;  %v325_v26 = vsub.bf16 0, %v317_v23  ;;  %v319_v33 = vand.u32 2147450879, %v1517_v29  ;;  %v1527_v35 = vld [vmem:[%s1478_s23 + $0x18] sm:$0xf] }
  0x15   : > { %1280 = vmatprep.subr.bf16.mxu0 %v1354_v11  ;;  %v331_v21 = vmul.bf16 1069105081, %v322_v14  ;;  %v334_v22 = vmul.bf16 1069105081, %v323_v15  ;;  %v326_v34 = vsub.bf16 0, %v318_v30  ;;  %vm362_vm0 = vcmp.gt.bf16.partialorder %v1484_v9, 0 }
  0x16   : > { %v337_v28 = vmul.bf16 1069105081, %v324_v24  ;;  %v340_v31 = vmul.bf16 1069105081, %v325_v26  ;;  %v327_v36 = vsub.bf16 0, %v319_v33  ;;  %vm363_vm1 = vcmp.gt.bf16.partialorder %v1487_v10, 0 }
  0x17   : > { %1261 = vmatpush3.bf16.msra.mxu1 %v1353_v8  ;;  %1359 = vpow.bf16 %v331_v21  ;;  %v1537_v37 = vld [vmem:[%s1478_s23 + $0x1c] sm:$0xf]  ;;  %v320_v38 = vand.u32 2147450879, %v1527_v35  ;;  %v378_v39 = vsub.bf16 0, %v1484_v9  ;;  %v379_v42 = vsub.bf16 0, %v1487_v10 }
  0x18   : > { %1281 = vmatpush3.bf16.msra.mxu0 %v1354_v11  ;;  %1262 = vmatprep.subr.bf16.mxu1 %v1355_v17  ;;  %1361 = vpow.bf16 %v334_v22  ;;  %v343_v40 = vmul.bf16 1069105081, %v326_v34  ;;  %v321_v41 = vand.u32 2147450879, %v1537_v37  ;;  %v346_v43 = vmul.bf16 1069105081, %v327_v36 }
  0x19   : > { %1282 = vmatprep.subr.bf16.mxu0 %v1356_v18  ;;  %1363 = vpow.bf16 %v337_v28  ;;  %v328_v44 = vsub.bf16 0, %v320_v38  ;;  %v1547_v45 = vld [vmem:[%s1533_s17] sm:$0xf]  ;;  %vm364_vm3 = vcmp.gt.bf16.partialorder %v1495_v16, 0  ;;  %v1551_v47 = vld [vmem:[%s1533_s17 + $0x4] sm:$0xf] }
  0x1a   : > { %1365 = vpow.bf16 %v340_v31  ;;  %v329_v46 = vsub.bf16 0, %v321_v41  ;;  %v697_v48 = vand.u32 2147450879, %v1547_v45  ;;  %v380_v49 = vsub.bf16 0, %v1495_v16  ;;  %v1561_v57 = vld [vmem:[%s1533_s17 + $0x8] sm:$0xf] }
  0x1b   : > { %1263 = vmatpush3.bf16.msra.mxu1 %v1355_v17  ;;  %1367 = vpow.bf16 %v343_v40  ;;  %v349_v50 = vmul.bf16 1069105081, %v328_v44  ;;  %v698_v51 = vand.u32 2147450879, %v1551_v47  ;;  %vm365_vm4 = vcmp.gt.bf16.partialorder %v1504_v19, 0 }
  0x1c   : > { %1283 = vmatpush3.bf16.msra.mxu0 %v1356_v18  ;;  %1292 = vmatprep.subr.bf16.mxu1 %v1511_v25  ;;  %1369 = vpow.bf16 %v346_v43  ;;  %v381_v52 = vsub.bf16 0, %v1504_v19  ;;  %v352_v53 = vmul.bf16 1069105081, %v329_v46  ;;  %v705_v54 = vsub.bf16 0, %v697_v48  ;;  %v1564_v58 = vld [vmem:[%s1533_s17 + $0xc] sm:$0xf] }
  0x1d   : > { %1302 = vmatprep.subr.bf16.mxu0 %v1523_v32  ;;  %vm366_vm5 = vcmp.gt.bf16.partialorder %v1514_v27, 0  ;;  %v382_v55 = vsub.bf16 0, %v1514_v27  ;;  %1371 = vpow.bf16 %v349_v50  ;;  %v706_v56 = vsub.bf16 0, %v698_v51  ;;  %v1588_v21 = vld [vmem:[%s1533_s17 + $0x10] sm:$0xf] }
  0x1e   : > { %vm367_vm6 = vcmp.gt.bf16.partialorder %v1517_v29, 0  ;;  %1373 = vpow.bf16 %v352_v53  ;;  %v714_v60 = vmul.bf16 1069105081, %v705_v54  ;;  %v699_v61 = vand.u32 2147450879, %v1561_v57 }
  0x1f   : > { %v700_v62 = vand.u32 2147450879, %v1564_v58  ;;  %v383_v2 = vsub.bf16 0, %v1517_v29  ;;  %v384_v3 = vsub.bf16 0, %v1527_v35  ;;  %v717_v4 = vmul.bf16 1069105081, %v706_v56 }
  0x20   : > { %vm368_vm7 = vcmp.gt.bf16.partialorder %v1527_v35, 0  ;;  %1375 = vpow.bf16 %v714_v60  ;;  %v707_v6 = vsub.bf16 0, %v699_v61  ;;  %vm369_vm8 = vcmp.gt.bf16.partialorder %v1537_v37, 0  ;;  %v1593_v26 = vld [vmem:[%s1533_s17 + $0x14] sm:$0xf] }
  0x21   : > { %v708_v7 = vsub.bf16 0, %v700_v62  ;;  %v385_v13 = vsub.bf16 0, %v1537_v37  ;;  %1377 = vpow.bf16 %v717_v4  ;;  %vm745_vm9 = vcmp.gt.bf16.partialorder %v1547_v45, 0  ;;  %v1634_v60 = vld [vmem:[%s1533_s17 + $0x18] sm:$0xf] }
  0x22   : > { %v1360_v59 = vpop.eup %1359  ;;  %v720_v20 = vmul.bf16 1069105081, %v707_v6  ;;  %vm746_vm10 = vcmp.gt.bf16.partialorder %v1551_v47, 0  ;;  %v701_v34 = vand.u32 2147450879, %v1588_v21  ;;  %v762_v43 = vsub.bf16 0, %v1551_v47 }
  0x23   : > { %v1362_v63 = vpop.eup %1361  ;;  %v354_v1 = vsub.bf16 %v1360_v59, %v1399_v0  ;;  %v723_v24 = vmul.bf16 1069105081, %v708_v7  ;;  %v702_v40 = vand.u32 2147450879, %v1593_v26  ;;  %vm747_vm12 = vcmp.gt.bf16.partialorder %v1561_v57, 0 }
  0x24   : > { %v355_v5 = vsub.bf16 %v1362_v63, %v1399_v0  ;;  %v1364_v8 = vpop.eup %1363  ;;  %1379 = vpow.bf16 %v720_v20  ;;  %v709_v44 = vsub.bf16 0, %v701_v34  ;;  %vm748_vm13 = vcmp.gt.bf16.partialorder %v1564_v58, 0  ;;  %v1645_v61 = vld [vmem:[%s1533_s17 + $0x1c] sm:$0xf] }
  0x25   : > { %v386_v11 = vsel %vm362_vm0, %v354_v1, %v378_v39  ;;  %v370_v12 = vsel %vm362_vm0, %v1484_v9, %v354_v1  ;;  %v1366_v14 = vpop.eup %1365  ;;  %v356_v18 = vsub.bf16 %v1364_v8, %v1399_v0  ;;  %1381 = vpow.bf16 %v723_v24 }
  0x26   : > { %v387_v15 = vsel %vm363_vm1, %v355_v5, %v379_v42  ;;  %v371_v17 = vsel %vm363_vm1, %v1487_v10, %v355_v5  ;;  %v357_v23 = vsub.bf16 %v1366_v14, %v1399_v0  ;;  %v1368_v30 = vpop.eup %1367  ;;  %v761_v42 = vsub.bf16 0, %v1547_v45 }
  0x27   : > { %v1134_v22 = vcombine.low %v386_v11, %v387_v15  ;;  %v1148_v9 = vcombine.low %v370_v12, %v371_v17  ;;  %v388_v28 = vsel %vm364_vm3, %v356_v18, %v380_v49  ;;  %v372_v10 = vsel %vm364_vm3, %v1495_v16, %v356_v18  ;;  %v1370_v36 = vpop.eup %1369 }
  0x28   : > { %v389_v31 = vsel %vm365_vm4, %v357_v23, %v381_v52  ;;  %v373_v33 = vsel %vm365_vm4, %v1504_v19, %v357_v23  ;;  %v358_v39 = vsub.bf16 %v1368_v30, %v1399_v0  ;;  %v359_v41 = vsub.bf16 %v1370_v36, %v1399_v0  ;;  %v1372_v46 = vpop.eup %1371 }
  0x29   : > { %1264 = vmatprep.mubr.msk.bf16.mxu1 %vm474_vm2, %v1134_v22  ;;  %1284 = vmatprep.mubr.msk.bf16.mxu0 %vm474_vm2, %v1148_v9  ;;  %v1135_v16 = vcombine.low %v388_v28, %v389_v31  ;;  %v1149_v38 = vcombine.low %v372_v10, %v373_v33  ;;  %v710_v49 = vsub.bf16 0, %v702_v40  ;;  %v1374_v50 = vpop.eup %1373  ;;  %v360_v53 = vsub.bf16 %v1372_v46, %v1399_v0 }
  0x2a   : > { %v390_v19 = vsel %vm366_vm5, %v358_v39, %v382_v55  ;;  %v374_v48 = vsel %vm366_vm5, %v1514_v27, %v358_v39  ;;  %v391_v51 = vsel %vm367_vm6, %v359_v41, %v383_v2  ;;  %v375_v52 = vsel %vm367_vm6, %v1517_v29, %v359_v41 }
  0x2b   : > { %1265 = vmatmul.mubr.msk.bf16.vlgmr.msra.gmra.mrb[0].mxu1 %vm474_vm2, %v1135_v16  ;;  %1285 = vmatmul.mubr.msk.bf16.vlgmr.msra.gmra.mrb[0].mxu0 %vm474_vm2, %v1149_v38  ;;  %v726_v54 = vmul.bf16 1069105081, %v709_v44  ;;  %v1136_v27 = vcombine.low %v390_v19, %v391_v51  ;;  %v1150_v55 = vcombine.low %v374_v48, %v375_v52  ;;  %v361_v56 = vsub.bf16 %v1374_v50, %v1399_v0 }
  0x2c   : > { %1293 = vmatpush3.bf16.msra.mxu1 %v1511_v25  ;;  %1303 = vmatpush3.bf16.msra.mxu0 %v1523_v32  ;;  %v729_v59 = vmul.bf16 1069105081, %v710_v49  ;;  %v1376_v25 = vpop.eup %1375  ;;  %v392_v32 = vsel %vm368_vm7, %v360_v53, %v384_v3  ;;  %v376_v29 = vsel %vm368_vm7, %v1527_v35, %v360_v53  ;;  %v703_v5 = vand.u32 2147450879, %v1634_v60 }
  0x2d   : > { %1383 = vpow.bf16 %v726_v54  ;;  %v1378_v62 = vpop.eup %1377  ;;  %1268 = vmatprep.mubr.msk.bf16.mxu1 %vm474_vm2, %v1136_v27  ;;  %1288 = vmatprep.mubr.msk.bf16.mxu0 %vm474_vm2, %v1150_v55  ;;  %v393_v63 = vsel %vm369_vm8, %v361_v56, %v385_v13  ;;  %v377_v1 = vsel %vm369_vm8, %v1537_v37, %v361_v56  ;;  %v737_v35 = vsub.bf16 %v1376_v25, %v1399_v0 }
  0x2e   : > { %1385 = vpow.bf16 %v729_v59  ;;  %v1137_v2 = vcombine.low %v392_v32, %v393_v63  ;;  %v1151_v3 = vcombine.low %v376_v29, %v377_v1  ;;  %v738_v4 = vsub.bf16 %v1378_v62, %v1399_v0 }
  0x2f   : > { %v753_v6 = vsel %vm745_vm9, %v1547_v45, %v737_v35  ;;  %v769_v7 = vsel %vm745_vm9, %v737_v35, %v761_v42  ;;  %v763_v8 = vsub.bf16 0, %v1561_v57  ;;  %v704_v37 = vand.u32 2147450879, %v1645_v61  ;;  %v1380_v11 = vpop.eup %1379 }
  0x30   : > { %v754_v12 = vsel %vm746_vm10, %v1551_v47, %v738_v4  ;;  %v770_v13 = vsel %vm746_vm10, %v738_v4, %v762_v43  ;;  %v764_v14 = vsub.bf16 0, %v1564_v58  ;;  %v711_v15 = vsub.bf16 0, %v703_v5  ;;  %v1382_v17 = vpop.eup %1381 }
  0x31   : > { %v1162_v45 = vcombine.low %v753_v6, %v754_v12  ;;  %v1171_v18 = vcombine.low %v769_v7, %v770_v13  ;;  %v739_v20 = vsub.bf16 %v1380_v11, %v1399_v0  ;;  %v712_v22 = vsub.bf16 0, %v704_v37 }
  0x32   : > { %v740_v9 = vsub.bf16 %v1382_v17, %v1399_v0  ;;  %v732_v23 = vmul.bf16 1069105081, %v711_v15  ;;  %v765_v34 = vsub.bf16 0, %v1588_v21  ;;  %vm749_vm14 = vcmp.gt.bf16.partialorder %v1588_v21, 0 }
  0x33   : > { %1269 = vmatmul.mubr.msk.bf16.gmra.mrb[4].mxu1 %vm474_vm2, %v1137_v2  ;;  %1289 = vmatmul.mubr.msk.bf16.gmra.mrb[4].mxu0 %vm474_vm2, %v1151_v3  ;;  %v755_v47 = vsel %vm747_vm12, %v1561_v57, %v739_v20  ;;  %v771_v24 = vsel %vm747_vm12, %v739_v20, %v763_v8  ;;  %v735_v28 = vmul.bf16 1069105081, %v712_v22  ;;  %v766_v57 = vsub.bf16 0, %v1593_v26 }
  0x34   : > { %1294 = vmatprep.mubr.msk.bf16.mxu1 %vm803_vm11, %v1162_v45  ;;  %1304 = vmatprep.mubr.msk.bf16.mxu0 %vm803_vm11, %v1171_v18  ;;  %v756_v10 = vsel %vm748_vm13, %v1564_v58, %v740_v9  ;;  %v772_v30 = vsel %vm748_vm13, %v740_v9, %v764_v14  ;;  %1387 = vpow.bf16 %v732_v23  ;;  %vm750_vm15 = vcmp.gt.bf16.partialorder %v1593_v26, 0 }
  0x35   : > { %v1163_v31 = vcombine.low %v755_v47, %v756_v10  ;;  %v1172_v33 = vcombine.low %v771_v24, %v772_v30  ;;  %1389 = vpow.bf16 %v735_v28  ;;  %v767_v46 = vsub.bf16 0, %v1634_v60  ;;  %v1180_v10 = vld [vmem:[%s1726_s6] ss:$0 sm:$0xff] }
  0x36   : > { %vm751_vm0 = vcmp.gt.bf16.partialorder %v1634_v60, 0  ;;  %v768_v48 = vsub.bf16 0, %v1645_v61  ;;  %vm752_vm1 = vcmp.gt.bf16.partialorder %v1645_v61, 0 }
  0x38   : > { %v1384_v36 = vpop.eup %1383 }
  0x39   : > { %v1386_v16 = vpop.eup %1385  ;;  %v741_v38 = vsub.bf16 %v1384_v36, %v1399_v0 }
  0x3a   : > { %v742_v58 = vsub.bf16 %v1386_v16, %v1399_v0 }
  0x3b   : > { %1295 = vmatmul.mubr.msk.bf16.vlgmr.msra.gmra.mrb[8].mxu1 %vm803_vm11, %v1163_v31  ;;  %1305 = vmatmul.mubr.msk.bf16.vlgmr.msra.gmra.mrb[8].mxu0 %vm803_vm11, %v1172_v33  ;;  %v757_v39 = vsel %vm749_vm14, %v1588_v21, %v741_v38  ;;  %v773_v40 = vsel %vm749_vm14, %v741_v38, %v765_v34 }
  0x3c   : > { %v758_v41 = vsel %vm750_vm15, %v1593_v26, %v742_v58  ;;  %v774_v42 = vsel %vm750_vm15, %v742_v58, %v766_v57 }
  0x3d   : > { %v1164_v43 = vcombine.low %v757_v39, %v758_v41  ;;  %v1173_v44 = vcombine.low %v773_v40, %v774_v42 }
  0x3f   : > { %1298 = vmatprep.mubr.msk.bf16.mxu1 %vm803_vm11, %v1164_v43  ;;  %1308 = vmatprep.mubr.msk.bf16.mxu0 %vm803_vm11, %v1173_v44  ;;  %v1388_v19 = vpop.eup %1387 }
  0x40   : > { %v1390_v49 = vpop.eup %1389  ;;  %v743_v21 = vsub.bf16 %v1388_v19, %v1399_v0 }
  0x41   : > { %v744_v26 = vsub.bf16 %v1390_v49, %v1399_v0 }
  0x42   : > { %v759_v50 = vsel %vm751_vm0, %v1634_v60, %v743_v21  ;;  %v775_v51 = vsel %vm751_vm0, %v743_v21, %v767_v46 }
  0x43   : > { %v760_v52 = vsel %vm752_vm1, %v1645_v61, %v744_v26  ;;  %v776_v53 = vsel %vm752_vm1, %v744_v26, %v768_v48 }
  0x44   : > { %v1165_v54 = vcombine.low %v759_v50, %v760_v52  ;;  %v1174_v27 = vcombine.low %v775_v51, %v776_v53 }
  0x46   : > { %1299 = vmatmul.mubr.msk.bf16.gmra.mrb[12].mxu1 %vm803_vm11, %v1165_v54  ;;  %1309 = vmatmul.mubr.msk.bf16.gmra.mrb[12].mxu0 %vm803_vm11, %v1174_v27 }
  0xfe   : > { %v1266_v55 = vpop.f32.mrb[0].mxu1  ;;  %v1286_v56 = vpop.f32.mrb[0].mxu0 }
  0xff   : > { %v663_v59 = vadd.f32 %v1286_v56, %v1266_v55  ;;  %v521_v25 = vpop.f32.mrb[1].mxu1  ;;  %v654_v32 = vpop.f32.mrb[1].mxu0 }
 0x100   : > { %v655_v29 = vadd.f32 %v654_v32, %v521_v25  ;;  %v1267_v62 = vpop.f32.mrb[2].mxu1  ;;  %v1287_v0 = vpop.f32.mrb[2].mxu0 }
 0x101   : > { %v666_v63 = vadd.f32 %v1287_v0, %v1267_v62  ;;  %v524_v60 = vpop.f32.mrb[3].mxu1  ;;  %v657_v1 = vpop.f32.mrb[3].mxu0 }
 0x102   : > { %v658_v35 = vadd.f32 %v657_v1, %v524_v60 }
 0x106   : > { %v1270_v61 = vpop.f32.mrb[4].mxu1  ;;  %v1290_v2 = vpop.f32.mrb[4].mxu0 }
 0x107   : > { %v679_v3 = vadd.f32 %v1290_v2, %v1270_v61  ;;  %v537_v4 = vpop.f32.mrb[5].mxu1  ;;  %v670_v5 = vpop.f32.mrb[5].mxu0 }
 0x108   : > { %v671_v6 = vadd.f32 %v670_v5, %v537_v4  ;;  %v1271_v7 = vpop.f32.mrb[6].mxu1  ;;  %v1291_v8 = vpop.f32.mrb[6].mxu0 }
 0x109   : > { %v682_v37 = vadd.f32 %v1291_v8, %v1271_v7  ;;  %v540_v11 = vpop.f32.mrb[7].mxu1  ;;  %v673_v12 = vpop.f32.mrb[7].mxu0 }
 0x10a   : > { %v674_v13 = vadd.f32 %v673_v12, %v540_v11 }
 0x10e   : > { %v1296_v14 = vpop.f32.mrb[8].mxu1  ;;  %v1306_v15 = vpop.f32.mrb[8].mxu0 }
 0x10f   : > { %v883_v17 = vadd.f32 %v1296_v14, %v663_v59  ;;  %v850_v45 = vpop.f32.mrb[9].mxu1  ;;  %v961_v18 = vpop.f32.mrb[9].mxu0 }
 0x110   : > { %v881_v20 = vadd.f32 %v850_v45, %v655_v29  ;;  %v1297_v22 = vpop.f32.mrb[10].mxu1  ;;  %v1307_v9 = vpop.f32.mrb[10].mxu0 }
 0x111   : > { %v994_v23 = vadd.f32 %v1306_v15, %v883_v17  ;;  %v884_v47 = vadd.f32 %v1297_v22, %v666_v63  ;;  %v853_v24 = vpop.f32.mrb[11].mxu1  ;;  %v964_v28 = vpop.f32.mrb[11].mxu0 }
 0x112   : > { %v992_v30 = vadd.f32 %v961_v18, %v881_v20  ;;  %v882_v31 = vadd.f32 %v853_v24, %v658_v35 }
 0x113   : > { %v995_v33 = vadd.f32 %v1307_v9, %v884_v47  ;;  %v1009_v36 = vadd.f32 %v1180_v10, %v994_v23 }
 0x114   : > { %v993_v34 = vadd.f32 %v964_v28, %v882_v31  ;;  %v1007_v16 = vadd.f32 %v1180_v10, %v992_v30 }
 0x115   : > { %v1010_v57 = vadd.f32 %v1180_v10, %v995_v33 }
 0x116   : > { %v1008_v38 = vadd.f32 %v1180_v10, %v993_v34 }
 0x117   : > { %v1207_v58 = vpack.c.bf16 %v1010_v57, %v1009_v36 }
 0x118   : > { %v1202_v39 = vpack.c.bf16 %v1008_v38, %v1007_v16 }
 0x119   : > { %1219 = vst [vmem:[%s302_s22 + $0x8] sm:$0xff] %v1207_v58   ;;  %v1300_v40 = vpop.f32.mrb[12].mxu1  ;;  %v1310_v41 = vpop.f32.mrb[12].mxu0 }
 0x11a   : > { %1203 = vst [vmem:[%s302_s22] sm:$0xff] %v1202_v39   ;;  %v887_v42 = vadd.f32 %v1300_v40, %v679_v3  ;;  %v866_v43 = vpop.f32.mrb[13].mxu1  ;;  %v977_v44 = vpop.f32.mrb[13].mxu0 }
 0x11b   : > { %v885_v46 = vadd.f32 %v866_v43, %v671_v6  ;;  %v1301_v19 = vpop.f32.mrb[14].mxu1  ;;  %v1311_v48 = vpop.f32.mrb[14].mxu0 }
 0x11c   : > { %v998_v49 = vadd.f32 %v1310_v41, %v887_v42  ;;  %v888_v21 = vadd.f32 %v1301_v19, %v682_v37  ;;  %v869_v26 = vpop.f32.mrb[15].mxu1  ;;  %v980_v50 = vpop.f32.mrb[15].mxu0 }
 0x11d   : > { %v996_v51 = vadd.f32 %v977_v44, %v885_v46  ;;  %v886_v52 = vadd.f32 %v869_v26, %v674_v13 }
 0x11e   : > { %v999_v53 = vadd.f32 %v1311_v48, %v888_v21  ;;  %v1013_v27 = vadd.f32 %v1180_v10, %v998_v49 }
 0x11f   : > { %v997_v54 = vadd.f32 %v980_v50, %v886_v52  ;;  %v1011_v56 = vadd.f32 %v1180_v10, %v996_v51 }
 0x120   : > { %v1014_v55 = vadd.f32 %v1180_v10, %v999_v53 }
 0x121   : > { %v1012_v59 = vadd.f32 %v1180_v10, %v997_v54 }
 0x122   : > { %v1217_v25 = vpack.c.bf16 %v1014_v55, %v1013_v27 }
 0x123   : > { %v1212_v32 = vpack.c.bf16 %v1012_v59, %v1011_v56 }
 0x124   : > { %1221 = vst [vmem:[%s302_s22 + $0x18] sm:$0xff] %v1217_v25  }
 0x125   : > { %1220 = vst [vmem:[%s302_s22 + $0x10] sm:$0xff] %v1212_v32  }
 0x126 PF: > { %s17_s24 = sadd.s32 1, %s1397_s24  }
 0x127   : > { %p14_p4 = scmp.ge.s32.totalorder %s17_s24, 4  }
 0x129   :  { %16 = sbr.rel (!%p14_p4) target bundleno = 1 (0x1), region = 81 }

// kernel: pixelcnn_forward.45
= control target key start
LH: loop header
LB: loop body
LE: loop exit
PB: predicated region body
PF: predicated region fallthrough
CT: control target
= control target key end

     0   :  { %s515_s12 = smov 0   ;;  %s538_s0 = inlined_call_operand.vmem [shape: bf16[128,12], index: 0, kind: input, shape index: {}]   ;;  %s539_s1 = inlined_call_operand.vmem [shape: bf16[12,128], index: 1, kind: input, shape index: {}]   ;;  %s540_s2 = inlined_call_operand.vmem [shape: f32[1,128], index: 2, kind: input, shape index: {}]   ;;  %s541_s3 = inlined_call_operand.vmem [shape: bf16[128,128], index: 3, kind: output, shape index: {}]  }
   0x1 LB: > { %s395_s13 = sadd.s32 4294967295, %s493_s12   ;;  %p399_p0 = scmp.ge.s32.totalorder %s493_s12, 1  ;;  %s493_s12 = sphi %s515_s12, %s13_s12  }
   0x2   : > { %p138_p1 = scmp.lt.s32.totalorder %s493_s12, 3 }
   0x4   : > { %p139_p2 = pnand %p399_p0, %p138_p1 }
   0x5   : > { %v482_v0 = vld [vmem:[%s539_s1] sm:$0x3f] (!%p139_p2)   ;;  %vm230_vm0 = vcmask (!%p139_p2), 1045504   ;;  %s400_s16 = sshll.u32 (!%p139_p2), %s395_s13, 3  ;;  %vm217_vm1 = vcmask (!%p139_p2), 97280  }
   0x6   : > { %142 = sbr.rel (%p139_p2) target bundleno = 238 (0xee), region = 32  ;;  %472 = vmatprep.subr.msk.bf16.mxu0 (!%p139_p2), %vm230_vm0, %v482_v0  ;;  %473 = vmatprep.subr.msk.bf16.mxu1 (!%p139_p2), %vm230_vm0, %v482_v0  ;;  %v232_v1 = vsel (!%p139_p2), %vm230_vm0, %v482_v0, 0  ;;  %p163_p3 = scmp.lt.s32.totalorder (!%p139_p2), %s400_s16, 15  ;;  %v404_v7 = vld [vmem:[%s540_s2] ss:$0 sm:$0xff] (!%p139_p2) }
   0x7   : > { %461 = vmatpush3.bf16.msra.mxu0 (!%p139_p2), %v232_v1  ;;  %471 = vmatpush3.bf16.msra.mxu1 (!%p139_p2), %v232_v1 }
   0xd   : > { %s543_s16 = smov (!%p163_p3, %s400_s16), 15 }
   0xe   : > { %s401_s17 = sshll.u32 %s543_s16, 2 }
   0xf   : > { %s166_s20 = scalar_lea.vmem %s538_s0, %s401_s17  ;;  %s172_s25 = scalar_lea.vmem %s541_s3, %s401_s17 }
  0x10   : > { %v483_v2 = vld [vmem:[%s166_s20] sm:$0xff]   ;;  %v484_v3 = vld [vmem:[%s166_s20 + $0x10] sm:$0xff]   ;;  %v485_v4 = vld [vmem:[%s166_s20 + $0x8] sm:$0xff]  }
  0x11   : > { %462 = vmatprep.mubr.msk.bf16.mxu0 %vm217_vm1, %v483_v2  ;;  %466 = vmatprep.mubr.msk.bf16.mxu1 %vm217_vm1, %v484_v3  ;;  %v486_v5 = vld [vmem:[%s166_s20 + $0x18] sm:$0xff]  }
  0x12   : > { %463 = vmatmul.mubr.msk.bf16.vlgmr.msra.gmra.mrb[0].mxu0 %vm217_vm1, %v485_v4  ;;  %467 = vmatmul.mubr.msk.bf16.vlgmr.msra.gmra.mrb[0].mxu1 %vm217_vm1, %v486_v5 }
  0xe5   : > { %v464_v6 = vpop.f32.mrb[0].mxu0  ;;  %v468_v8 = vpop.f32.mrb[0].mxu1 }
  0xe6   : > { %v268_v9 = vpop.f32.mrb[1].mxu0  ;;  %v284_v10 = vpop.f32.mrb[1].mxu1  ;;  %v277_v12 = vadd.f32 %v464_v6, %v404_v7  ;;  %v293_v16 = vadd.f32 %v468_v8, %v404_v7 }
  0xe7   : > { %v465_v11 = vpop.f32.mrb[2].mxu0  ;;  %v469_v14 = vpop.f32.mrb[2].mxu1  ;;  %v269_v17 = vadd.f32 %v404_v7, %v268_v9  ;;  %v285_v21 = vadd.f32 %v404_v7, %v284_v10 }
  0xe8   : > { %v280_v13 = vadd.f32 %v465_v11, %v404_v7  ;;  %v271_v15 = vpop.f32.mrb[3].mxu0  ;;  %v296_v18 = vadd.f32 %v469_v14, %v404_v7  ;;  %v287_v20 = vpop.f32.mrb[3].mxu1 }
  0xe9   : > { %v272_v19 = vadd.f32 %v404_v7, %v271_v15  ;;  %v288_v23 = vadd.f32 %v404_v7, %v287_v20 }
  0xea   : > { %v440_v22 = vpack.c.bf16 %v280_v13, %v277_v12  ;;  %v450_v24 = vpack.c.bf16 %v296_v18, %v293_v16 }
  0xeb   : > { %v435_v25 = vpack.c.bf16 %v272_v19, %v269_v17  ;;  %v445_v26 = vpack.c.bf16 %v288_v23, %v285_v21 }
  0xec   : > { %452 = vst [vmem:[%s172_s25 + $0x8] sm:$0xff] %v440_v22   ;;  %454 = vst [vmem:[%s172_s25 + $0x18] sm:$0xff] %v450_v24  }
  0xed   : > { %436 = vst [vmem:[%s172_s25] sm:$0xff] %v435_v25   ;;  %453 = vst [vmem:[%s172_s25 + $0x10] sm:$0xff] %v445_v26  }
  0xee PF: > { %s13_s12 = sadd.s32 1, %s493_s12  }
  0xef   : > { %p10_p4 = scmp.ge.s32.totalorder %s13_s12, 4  }
  0xf1   :  { %12 = sbr.rel (!%p10_p4) target bundleno = 1 (0x1), region = 62 }

// kernel: pixelcnn_forward.46
= control target key start
LH: loop header
LB: loop body
LE: loop exit
PB: predicated region body
PF: predicated region fallthrough
CT: control target
= control target key end

     0   :  { %s507_s12 = smov 0   ;;  %s530_s0 = inlined_call_operand.vmem [shape: bf16[128,8], index: 0, kind: input, shape index: {}]   ;;  %s531_s1 = inlined_call_operand.vmem [shape: bf16[8,128], index: 1, kind: input, shape index: {}]   ;;  %s532_s2 = inlined_call_operand.vmem [shape: f32[1,128], index: 2, kind: input, shape index: {}]   ;;  %s533_s3 = inlined_call_operand.vmem [shape: bf16[128,128], index: 3, kind: output, shape index: {}]  }
   0x1 LB: > { %s389_s13 = sadd.s32 4294967295, %s485_s12   ;;  %p393_p0 = scmp.ge.s32.totalorder %s485_s12, 1  ;;  %s485_s12 = sphi %s507_s12, %s13_s12  }
   0x2   : > { %p138_p1 = scmp.lt.s32.totalorder %s485_s12, 3 }
   0x4   : > { %p139_p2 = pnand %p393_p0, %p138_p1 }
   0x5   : > { %v183_v0 = vld [vmem:[%s531_s1] sm:$0xf] (!%p139_p2)  ;;  %vm224_vm0 = vcmask (!%p139_p2), 1043456   ;;  %s394_s16 = sshll.u32 (!%p139_p2), %s389_s13, 3  ;;  %vm211_vm1 = vcmask (!%p139_p2), 64512  }
   0x6   : > { %142 = sbr.rel (%p139_p2) target bundleno = 238 (0xee), region = 32  ;;  %465 = vmatprep.subr.msk.bf16.mxu0 (!%p139_p2), %vm224_vm0, %v183_v0  ;;  %466 = vmatprep.subr.msk.bf16.mxu1 (!%p139_p2), %vm224_vm0, %v183_v0  ;;  %v226_v1 = vsel (!%p139_p2), %vm224_vm0, %v183_v0, 0  ;;  %p163_p3 = scmp.lt.s32.totalorder (!%p139_p2), %s394_s16, 15  ;;  %v398_v7 = vld [vmem:[%s532_s2] ss:$0 sm:$0xff] (!%p139_p2) }
   0x7   : > { %454 = vmatpush3.bf16.msra.mxu0 (!%p139_p2), %v226_v1  ;;  %464 = vmatpush3.bf16.msra.mxu1 (!%p139_p2), %v226_v1 }
   0xd   : > { %s535_s16 = smov (!%p163_p3, %s394_s16), 15 }
   0xe   : > { %s395_s17 = sshll.u32 %s535_s16, 2 }
   0xf   : > { %s166_s20 = scalar_lea.vmem %s530_s0, %s395_s17  ;;  %s172_s25 = scalar_lea.vmem %s533_s3, %s395_s17 }
  0x10   : > { %v475_v2 = vld [vmem:[%s166_s20] sm:$0xff]   ;;  %v476_v3 = vld [vmem:[%s166_s20 + $0x10] sm:$0xff]   ;;  %v477_v4 = vld [vmem:[%s166_s20 + $0x8] sm:$0xff]  }
  0x11   : > { %455 = vmatprep.mubr.msk.bf16.mxu0 %vm211_vm1, %v475_v2  ;;  %459 = vmatprep.mubr.msk.bf16.mxu1 %vm211_vm1, %v476_v3  ;;  %v478_v5 = vld [vmem:[%s166_s20 + $0x18] sm:$0xff]  }
  0x12   : > { %456 = vmatmul.mubr.msk.bf16.vlgmr.msra.gmra.mrb[0].mxu0 %vm211_vm1, %v477_v4  ;;  %460 = vmatmul.mubr.msk.bf16.vlgmr.msra.gmra.mrb[0].mxu1 %vm211_vm1, %v478_v5 }
  0xe5   : > { %v457_v6 = vpop.f32.mrb[0].mxu0  ;;  %v461_v8 = vpop.f32.mrb[0].mxu1 }
  0xe6   : > { %v262_v9 = vpop.f32.mrb[1].mxu0  ;;  %v278_v10 = vpop.f32.mrb[1].mxu1  ;;  %v271_v12 = vadd.f32 %v457_v6, %v398_v7  ;;  %v287_v16 = vadd.f32 %v461_v8, %v398_v7 }
  0xe7   : > { %v458_v11 = vpop.f32.mrb[2].mxu0  ;;  %v462_v14 = vpop.f32.mrb[2].mxu1  ;;  %v263_v17 = vadd.f32 %v398_v7, %v262_v9  ;;  %v279_v21 = vadd.f32 %v398_v7, %v278_v10 }
  0xe8   : > { %v274_v13 = vadd.f32 %v458_v11, %v398_v7  ;;  %v265_v15 = vpop.f32.mrb[3].mxu0  ;;  %v290_v18 = vadd.f32 %v462_v14, %v398_v7  ;;  %v281_v20 = vpop.f32.mrb[3].mxu1 }
  0xe9   : > { %v266_v19 = vadd.f32 %v398_v7, %v265_v15  ;;  %v282_v23 = vadd.f32 %v398_v7, %v281_v20 }
  0xea   : > { %v433_v22 = vpack.c.bf16 %v274_v13, %v271_v12  ;;  %v443_v24 = vpack.c.bf16 %v290_v18, %v287_v16 }
  0xeb   : > { %v428_v25 = vpack.c.bf16 %v266_v19, %v263_v17  ;;  %v438_v26 = vpack.c.bf16 %v282_v23, %v279_v21 }
  0xec   : > { %445 = vst [vmem:[%s172_s25 + $0x8] sm:$0xff] %v433_v22   ;;  %447 = vst [vmem:[%s172_s25 + $0x18] sm:$0xff] %v443_v24  }
  0xed   : > { %429 = vst [vmem:[%s172_s25] sm:$0xff] %v428_v25   ;;  %446 = vst [vmem:[%s172_s25 + $0x10] sm:$0xff] %v438_v26  }
  0xee PF: > { %s13_s12 = sadd.s32 1, %s485_s12  }
  0xef   : > { %p10_p4 = scmp.ge.s32.totalorder %s13_s12, 4  }
  0xf1   :  { %12 = sbr.rel (!%p10_p4) target bundleno = 1 (0x1), region = 62 }

// kernel: pixelcnn_forward.49
= control target key start
LH: loop header
LB: loop body
LE: loop exit
PB: predicated region body
PF: predicated region fallthrough
CT: control target
= control target key end

     0   :  { %s1388_s24 = smov 0   ;;  %s1698_s0 = inlined_call_operand.vmem [shape: bf16[128,64], index: 0, kind: input, shape index: {}]   ;;  %s1699_s1 = inlined_call_operand.vmem [shape: bf16[64,128], index: 1, kind: input, shape index: {}]   ;;  %s1700_s2 = inlined_call_operand.vmem [shape: bf16[64,128], index: 2, kind: input, shape index: {}]   ;;  %s1701_s3 = inlined_call_operand.vmem [shape: bf16[128,16], index: 3, kind: input, shape index: {}]   ;;  %s1702_s4 = inlined_call_operand.vmem [shape: bf16[16,128], index: 4, kind: input, shape index: {}]   ;;  %s1703_s5 = inlined_call_operand.vmem [shape: bf16[16,128], index: 5, kind: input, shape index: {}]   ;;  %s1704_s6 = inlined_call_operand.vmem [shape: f32[1,128], index: 6, kind: input, shape index: {}]   ;;  %s1705_s7 = inlined_call_operand.vmem [shape: bf16[128,128], index: 7, kind: output, shape index: {}]  }
   0x1 LB: > { %s1091_s25 = sadd.s32 4294967295, %s1345_s24   ;;  %p1095_p0 = scmp.ge.s32.totalorder %s1345_s24, 1  ;;  %s1345_s24 = sphi %s1388_s24, %s17_s24  }
   0x2   : > { %p249_p1 = scmp.lt.s32.totalorder %s1345_s24, 3 }
   0x4   : > { %p250_p2 = pnand %p1095_p0, %p249_p1 }
   0x5   : > { %v1297_v0 = vld [vmem:[%s1700_s2] sm:$0xff] (!%p250_p2)   ;;  %s1096_s28 = sshll.u32 (!%p250_p2), %s1091_s25, 3  ;;  %v1298_v1 = vld [vmem:[%s1700_s2 + $0x8] sm:$0xff] (!%p250_p2)   ;;  %v1299_v2 = vld [vmem:[%s1700_s2 + $0x10] sm:$0xff] (!%p250_p2)   ;;  %vm454_vm1 = vcmask (!%p250_p2), 523264   ;;  %vm771_vm3 = vcmask (!%p250_p2), 130048  }
   0x6   : > { %253 = sbr.rel (%p250_p2) target bundleno = 307 (0x133), region = 48  ;;  %p287_p3 = scmp.lt.s32.totalorder (!%p250_p2), %s1096_s28, 15  ;;  %1212 = vmatprep.subr.bf16.mxu1 (!%p250_p2), %v1297_v0  ;;  %v1301_v3 = vld [vmem:[%s1702_s4] sm:$0xff] (!%p250_p2)   ;;  %v1300_v7 = vld [vmem:[%s1700_s2 + $0x18] sm:$0xff] (!%p250_p2)   ;;  %v1347_v54 = vmov (!%p250_p2), 1065369472  }
   0x7   : > { %1213 = vmatpush3.bf16.msra.mxu1 (!%p250_p2), %v1297_v0  ;;  %1244 = vmatprep.subr.bf16.mxu0 (!%p250_p2), %v1301_v3  ;;  %v1444_v15 = vld [vmem:[%s1703_s5] sm:$0xff] (!%p250_p2)  }
   0x8   : > { %1214 = vmatprep.subr.bf16.mxu1 (!%p250_p2), %v1298_v1  ;;  %1245 = vmatpush3.bf16.msra.mxu0 (!%p250_p2), %v1301_v3  ;;  %v1452_v20 = vld [vmem:[%s1699_s1] sm:$0xff] (!%p250_p2)  }
   0x9   : > { %1254 = vmatprep.subr.bf16.mxu0 (!%p250_p2), %v1444_v15 }
   0xb   : > { %1215 = vmatpush3.bf16.msra.mxu1 (!%p250_p2), %v1298_v1 }
   0xc   : > { %1216 = vmatprep.subr.bf16.mxu1 (!%p250_p2), %v1299_v2 }
   0xd   : > { %s1707_s28 = smov (!%p287_p3, %s1096_s28), 15 }
   0xe   : > { %s1408_s12 = sshll.u32 %s1707_s28, 2 }
   0xf   : > { %s1414_s15 = scalar_lea.vmem %s1698_s0, %s1408_s12  ;;  %s1420_s18 = scalar_lea.vmem %s1701_s3, %s1408_s12  ;;  %1217 = vmatpush3.bf16.msra.mxu1 %v1299_v2 }
  0x10   : > { %v1423_v4 = vld [vmem:[%s1414_s15] sm:$0xf]  ;;  %v1426_v5 = vld [vmem:[%s1414_s15 + $0x4] sm:$0xf]  ;;  %v1447_v17 = vld [vmem:[%s1414_s15 + $0x8] sm:$0xf]  ;;  %1218 = vmatprep.subr.bf16.mxu1 %v1300_v7  ;;  %s302_s14 = scalar_lea.vmem %s1705_s7, %s1408_s12 }
  0x11   : > { %v1429_v6 = vld [vmem:[%s1420_s18] sm:$0xf]  ;;  %v314_v8 = vand.u32 2147450879, %v1423_v4  ;;  %v315_v9 = vand.u32 2147450879, %v1426_v5 }
  0x12   : > { %v1437_v10 = vld [vmem:[%s1420_s18 + $0x4] sm:$0xf]  ;;  %v665_v11 = vand.u32 2147450879, %v1429_v6  ;;  %v1456_v23 = vld [vmem:[%s1414_s15 + $0xc] sm:$0xf] }
  0x13   : > { %v322_v12 = vsub.bf16 0, %v314_v8  ;;  %v323_v13 = vsub.bf16 0, %v315_v9  ;;  %v666_v14 = vand.u32 2147450879, %v1437_v10  ;;  %v316_v24 = vand.u32 2147450879, %v1447_v17  ;;  %1219 = vmatpush3.bf16.msra.mxu1 %v1300_v7 }
  0x14   : > { %v673_v16 = vsub.bf16 0, %v665_v11  ;;  %v317_v26 = vand.u32 2147450879, %v1456_v23  ;;  %v1461_v28 = vld [vmem:[%s1420_s18 + $0x8] sm:$0xf]  ;;  %1228 = vmatprep.subr.bf16.mxu1 %v1452_v20  ;;  %vm362_vm0 = vcmp.gt.bf16.partialorder %v1423_v4, 0 }
  0x15   : > { %v331_v18 = vmul.bf16 1069105081, %v322_v12  ;;  %v334_v19 = vmul.bf16 1069105081, %v323_v13  ;;  %v674_v21 = vsub.bf16 0, %v666_v14  ;;  %v324_v27 = vsub.bf16 0, %v316_v24 }
  0x16   : > { %v682_v22 = vmul.bf16 1069105081, %v673_v16  ;;  %v325_v29 = vsub.bf16 0, %v317_v26  ;;  %v1465_v30 = vld [vmem:[%s1420_s18 + $0xc] sm:$0xf]  ;;  %vm363_vm2 = vcmp.gt.bf16.partialorder %v1426_v5, 0 }
  0x17   : > { %1307 = vpow.bf16 %v331_v18  ;;  %v685_v25 = vmul.bf16 1069105081, %v674_v21  ;;  %v667_v31 = vand.u32 2147450879, %v1461_v28  ;;  %v337_v32 = vmul.bf16 1069105081, %v324_v27 }
  0x18   : > { %1309 = vpow.bf16 %v334_v19  ;;  %v668_v33 = vand.u32 2147450879, %v1465_v30  ;;  %v340_v34 = vmul.bf16 1069105081, %v325_v29  ;;  %v1470_v38 = vld [vmem:[%s1414_s15 + $0x10] sm:$0xf] }
  0x19   : > { %1311 = vpow.bf16 %v682_v22  ;;  %v675_v35 = vsub.bf16 0, %v667_v31  ;;  %v1473_v39 = vld [vmem:[%s1414_s15 + $0x14] sm:$0xf]  ;;  %v318_v41 = vand.u32 2147450879, %v1470_v38  ;;  %v378_v45 = vsub.bf16 0, %v1423_v4 }
  0x1a   : > { %1313 = vpow.bf16 %v685_v25  ;;  %v676_v36 = vsub.bf16 0, %v668_v33  ;;  %v319_v42 = vand.u32 2147450879, %v1473_v39  ;;  %v379_v46 = vsub.bf16 0, %v1426_v5  ;;  %v1482_v47 = vld [vmem:[%s1420_s18 + $0x10] sm:$0xf] }
  0x1b   : > { %1315 = vpow.bf16 %v337_v32  ;;  %v688_v37 = vmul.bf16 1069105081, %v675_v35  ;;  %v326_v43 = vsub.bf16 0, %v318_v41  ;;  %v1485_v48 = vld [vmem:[%s1420_s18 + $0x14] sm:$0xf]  ;;  %vm713_vm4 = vcmp.gt.bf16.partialorder %v1429_v6, 0 }
  0x1c   : > { %1317 = vpow.bf16 %v340_v34  ;;  %v691_v40 = vmul.bf16 1069105081, %v676_v36  ;;  %v327_v44 = vsub.bf16 0, %v319_v42  ;;  %v669_v52 = vand.u32 2147450879, %v1482_v47 }
  0x1d   : > { %1319 = vpow.bf16 %v688_v37  ;;  %v343_v50 = vmul.bf16 1069105081, %v326_v43  ;;  %vm714_vm5 = vcmp.gt.bf16.partialorder %v1437_v10, 0  ;;  %v670_v56 = vand.u32 2147450879, %v1485_v48  ;;  %v1304_v37 = vld [vmem:[%s1699_s1 + $0x8] sm:$0xff]  }
  0x1e   : > { %1321 = vpow.bf16 %v691_v40  ;;  %v346_v51 = vmul.bf16 1069105081, %v327_v44  ;;  %v1495_v57 = vld [vmem:[%s1414_s15 + $0x18] sm:$0xf]  ;;  %vm364_vm6 = vcmp.gt.bf16.partialorder %v1447_v17, 0  ;;  %v677_v60 = vsub.bf16 0, %v669_v52 }
  0x1f   : > { %1323 = vpow.bf16 %v343_v50  ;;  %v380_v0 = vsub.bf16 0, %v1447_v17  ;;  %v678_v3 = vsub.bf16 0, %v670_v56  ;;  %v1515_v7 = vld [vmem:[%s1414_s15 + $0x1c] sm:$0xf]  ;;  %v320_v8 = vand.u32 2147450879, %v1495_v57 }
  0x20   : > { %1325 = vpow.bf16 %v346_v51  ;;  %v381_v13 = vsub.bf16 0, %v1456_v23  ;;  %v694_v14 = vmul.bf16 1069105081, %v677_v60  ;;  %vm365_vm7 = vcmp.gt.bf16.partialorder %v1456_v23, 0  ;;  %v1559_v43 = vld [vmem:[%s1420_s18 + $0x18] sm:$0xf] }
  0x21   : > { %v697_v21 = vmul.bf16 1069105081, %v678_v3  ;;  %v321_v25 = vand.u32 2147450879, %v1515_v7  ;;  %vm715_vm8 = vcmp.gt.bf16.partialorder %v1461_v28, 0  ;;  %v328_v29 = vsub.bf16 0, %v320_v8 }
  0x22   : > { %v1308_v49 = vpop.eup %1307  ;;  %1327 = vpow.bf16 %v694_v14  ;;  %vm716_vm9 = vcmp.gt.bf16.partialorder %v1465_v30, 0  ;;  %v1562_v44 = vld [vmem:[%s1420_s18 + $0x1c] sm:$0xf]  ;;  %vm366_vm10 = vcmp.gt.bf16.partialorder %v1470_v38, 0  ;;  %v383_v51 = vsub.bf16 0, %v1473_v39  ;;  %v1305_v56 = vld [vmem:[%s1699_s1 + $0x10] sm:$0xff]  }
  0x23   : > { %v1310_v53 = vpop.eup %1309  ;;  %v1489_v55 = vsub.bf16 %v1308_v49, %v1347_v54  ;;  %1329 = vpow.bf16 %v697_v21  ;;  %v329_v34 = vsub.bf16 0, %v321_v25  ;;  %v349_v40 = vmul.bf16 1069105081, %v328_v29 }
  0x24   : > { %v1312_v58 = vpop.eup %1311  ;;  %v1498_v59 = vsub.bf16 %v1310_v53, %v1347_v54  ;;  %vm367_vm11 = vcmp.gt.bf16.partialorder %v1473_v39, 0  ;;  %vm717_vm12 = vcmp.gt.bf16.partialorder %v1482_v47, 0  ;;  %vm718_vm13 = vcmp.gt.bf16.partialorder %v1485_v48, 0 }
  0x25   : > { %v1314_v61 = vpop.eup %1313  ;;  %v386_v62 = vsel %vm362_vm0, %v1489_v55, %v378_v45  ;;  %v1505_v63 = vsub.bf16 %v1312_v58, %v1347_v54  ;;  %v352_v42 = vmul.bf16 1069105081, %v329_v34  ;;  %1331 = vpow.bf16 %v349_v40 }
  0x26   : > { %v387_v1 = vsel %vm363_vm2, %v1498_v59, %v379_v46  ;;  %v1512_v2 = vsub.bf16 %v1314_v61, %v1347_v54  ;;  %v1316_v9 = vpop.eup %1315  ;;  %v382_v46 = vsub.bf16 0, %v1470_v38  ;;  %v671_v58 = vand.u32 2147450879, %v1559_v43 }
  0x27   : > { %v1102_v11 = vcombine.low %v386_v62, %v387_v1  ;;  %v721_v12 = vsel %vm713_vm4, %v1429_v6, %v1505_v63  ;;  %v1318_v16 = vpop.eup %1317  ;;  %v1528_v19 = vsub.bf16 %v1316_v9, %v1347_v54  ;;  %1333 = vpow.bf16 %v352_v42 }
  0x28   : > { %v722_v18 = vsel %vm714_vm5, %v1437_v10, %v1512_v2  ;;  %v1533_v24 = vsub.bf16 %v1318_v16, %v1347_v54  ;;  %v1320_v26 = vpop.eup %1319  ;;  %v679_v62 = vsub.bf16 0, %v671_v58  ;;  %v384_v21 = vsub.bf16 0, %v1495_v57 }
  0x29   : > { %1220 = vmatprep.mubr.msk.bf16.mxu1 %vm454_vm1, %v1102_v11  ;;  %v1126_v22 = vcombine.low %v721_v12, %v722_v18  ;;  %v388_v27 = vsel %vm364_vm6, %v1528_v19, %v380_v0  ;;  %v1322_v31 = vpop.eup %1321  ;;  %v1545_v33 = vsub.bf16 %v1320_v26, %v1347_v54  ;;  %vm368_vm14 = vcmp.gt.bf16.partialorder %v1495_v57, 0 }
  0x2a   : > { %v389_v32 = vsel %vm365_vm7, %v1533_v24, %v381_v13  ;;  %v1549_v36 = vsub.bf16 %v1322_v31, %v1347_v54  ;;  %v1324_v49 = vpop.eup %1323  ;;  %v700_v9 = vmul.bf16 1069105081, %v679_v62  ;;  %v385_v26 = vsub.bf16 0, %v1515_v7 }
  0x2b   : > { %1246 = vmatprep.mubr.msk.bf16.mxu0 %vm771_vm3, %v1126_v22  ;;  %v1103_v35 = vcombine.low %v388_v27, %v389_v32  ;;  %v723_v41 = vsel %vm715_vm8, %v1461_v28, %v1545_v33  ;;  %v1326_v52 = vpop.eup %1325  ;;  %v358_v53 = vsub.bf16 %v1324_v49, %v1347_v54  ;;  %v370_v29 = vsel %vm362_vm0, %v1423_v4, %v1489_v55 }
  0x2c   : > { %v724_v45 = vsel %vm716_vm9, %v1465_v30, %v1549_v36  ;;  %v359_v60 = vsub.bf16 %v1326_v52, %v1347_v54  ;;  %1335 = vpow.bf16 %v700_v9  ;;  %v371_v31 = vsel %vm363_vm2, %v1426_v5, %v1498_v59 }
  0x2d   : > { %1221 = vmatmul.mubr.msk.bf16.vlgmr.msra.gmra.mrb[0].mxu1 %vm454_vm1, %v1103_v35  ;;  %v1127_v50 = vcombine.low %v723_v41, %v724_v45  ;;  %v390_v61 = vsel %vm366_vm10, %v358_v53, %v382_v46  ;;  %v1328_v3 = vpop.eup %1327  ;;  %vm369_vm15 = vcmp.gt.bf16.partialorder %v1515_v7, 0  ;;  %v729_v35 = vsub.bf16 0, %v1429_v6 }
  0x2e   : > { %1229 = vmatpush3.bf16.msra.mxu1 %v1452_v20  ;;  %v672_v20 = vand.u32 2147450879, %v1562_v44  ;;  %v391_v1 = vsel %vm367_vm11, %v359_v60, %v383_v51  ;;  %v1330_v12 = vpop.eup %1329  ;;  %v709_v13 = vsub.bf16 %v1328_v3, %v1347_v54  ;;  %v730_v4 = vsub.bf16 0, %v1437_v10 }
  0x2f   : > { %1230 = vmatprep.subr.bf16.mxu1 %v1304_v37  ;;  %1247 = vmatmul.mubr.msk.bf16.vlgmr.msra.gmra.mrb[0].mxu0 %vm771_vm3, %v1127_v50  ;;  %v1104_v8 = vcombine.low %v390_v61, %v391_v1  ;;  %v710_v14 = vsub.bf16 %v1330_v12, %v1347_v54  ;;  %v1114_v5 = vcombine.low %v370_v29, %v371_v31  ;;  %vm719_vm0 = vcmp.gt.bf16.partialorder %v1559_v43, 0 }
  0x30   : > { %1255 = vmatpush3.bf16.msra.mxu0 %v1444_v15  ;;  %v680_v0 = vsub.bf16 0, %v672_v20  ;;  %v1306_v15 = vld [vmem:[%s1699_s1 + $0x18] sm:$0xff]   ;;  %v725_v16 = vsel %vm717_vm12, %v1482_v47, %v709_v13  ;;  %v1332_v22 = vpop.eup %1331  ;;  %v737_v40 = vsel %vm713_vm4, %v1505_v63, %v729_v35  ;;  %v738_v42 = vsel %vm714_vm5, %v1512_v2, %v730_v4 }
  0x31   : > { %1224 = vmatprep.mubr.msk.bf16.mxu1 %vm454_vm1, %v1104_v8  ;;  %v726_v18 = vsel %vm718_vm13, %v1485_v48, %v710_v14  ;;  %v360_v32 = vsub.bf16 %v1332_v22, %v1347_v54  ;;  %v372_v45 = vsel %vm364_vm6, %v1447_v17, %v1528_v19  ;;  %v373_v46 = vsel %vm365_vm7, %v1456_v23, %v1533_v24 }
  0x32   : > { %1231 = vmatpush3.bf16.msra.mxu1 %v1304_v37  ;;  %v703_v11 = vmul.bf16 1069105081, %v680_v0  ;;  %v1128_v25 = vcombine.low %v725_v16, %v726_v18  ;;  %v1334_v27 = vpop.eup %1333  ;;  %vm720_vm2 = vcmp.gt.bf16.partialorder %v1562_v44, 0  ;;  %v374_v10 = vsel %vm366_vm10, %v1470_v38, %v358_v53 }
  0x33   : > { %1232 = vmatprep.subr.bf16.mxu1 %v1305_v56  ;;  %v361_v34 = vsub.bf16 %v1334_v27, %v1347_v54  ;;  %v392_v37 = vsel %vm368_vm14, %v360_v32, %v384_v21  ;;  %v375_v17 = vsel %vm367_vm11, %v1473_v39, %v359_v60  ;;  %v1115_v23 = vcombine.low %v372_v45, %v373_v46 }
  0x34   : > { %1337 = vpow.bf16 %v703_v11  ;;  %1250 = vmatprep.mubr.msk.bf16.mxu0 %vm771_vm3, %v1128_v25  ;;  %v731_v19 = vsub.bf16 0, %v1461_v28  ;;  %v732_v49 = vsub.bf16 0, %v1465_v30  ;;  %v1135_v38 = vcombine.low %v737_v40, %v738_v42 }
  0x35   : > { %v393_v55 = vsel %vm369_vm15, %v361_v34, %v385_v26  ;;  %v1116_v51 = vcombine.low %v374_v10, %v375_v17  ;;  %v733_v39 = vsub.bf16 0, %v1482_v47  ;;  %v376_v58 = vsel %vm368_vm14, %v1495_v57, %v360_v32 }
  0x36   : > { %1233 = vmatpush3.bf16.msra.mxu1 %v1305_v56  ;;  %v1105_v59 = vcombine.low %v392_v37, %v393_v55  ;;  %v739_v53 = vsel %vm715_vm8, %v1545_v33, %v731_v19  ;;  %v740_v56 = vsel %vm716_vm9, %v1549_v36, %v732_v49  ;;  %v377_v28 = vsel %vm369_vm15, %v1515_v7, %v361_v34 }
  0x37   : > { %1234 = vmatprep.subr.bf16.mxu1 %v1306_v15  ;;  %v1336_v41 = vpop.eup %1335  ;;  %v741_v33 = vsel %vm717_vm12, %v709_v13, %v733_v39  ;;  %v1136_v30 = vcombine.low %v739_v53, %v740_v56  ;;  %v1117_v36 = vcombine.low %v376_v58, %v377_v28  ;;  %v735_v61 = vsub.bf16 0, %v1559_v43 }
  0x38   : > { %1225 = vmatmul.mubr.msk.bf16.gmra.mrb[4].mxu1 %vm454_vm1, %v1105_v59  ;;  %v711_v63 = vsub.bf16 %v1336_v41, %v1347_v54  ;;  %v736_v62 = vsub.bf16 0, %v1562_v44 }
  0x39   : > { %1236 = vmatprep.mubr.msk.bf16.mxu1 %vm454_vm1, %v1114_v5 }
  0x3a   : > { %1235 = vmatpush3.bf16.msra.mxu1 %v1306_v15  ;;  %v727_v24 = vsel %vm719_vm0, %v1559_v43, %v711_v63  ;;  %v743_v47 = vsel %vm719_vm0, %v711_v63, %v735_v61  ;;  %v1144_v43 = vld [vmem:[%s1704_s6] ss:$0 sm:$0xff] }
  0x3f   : > { %v1338_v6 = vpop.eup %1337 }
  0x40   : > { %v712_v2 = vsub.bf16 %v1338_v6, %v1347_v54  ;;  %v734_v54 = vsub.bf16 0, %v1485_v48  ;;  %1237 = vmatmul.mubr.msk.bf16.vlgmr.msra.gmra.mrb[0].mxu1 %vm454_vm1, %v1115_v23 }
  0x41   : > { %1240 = vmatprep.mubr.msk.bf16.mxu1 %vm454_vm1, %v1116_v51 }
  0x42   : > { %v728_v50 = vsel %vm720_vm2, %v1562_v44, %v712_v2  ;;  %v742_v20 = vsel %vm718_vm13, %v710_v14, %v734_v54  ;;  %v744_v48 = vsel %vm720_vm2, %v712_v2, %v736_v62 }
  0x43   : > { %v1129_v52 = vcombine.low %v727_v24, %v728_v50  ;;  %v1137_v60 = vcombine.low %v741_v33, %v742_v20  ;;  %v1138_v57 = vcombine.low %v743_v47, %v744_v48 }
  0x45   : > { %1251 = vmatmul.mubr.msk.bf16.gmra.mrb[4].mxu0 %vm771_vm3, %v1129_v52 }
  0x46   : > { %1256 = vmatprep.mubr.msk.bf16.mxu0 %vm771_vm3, %v1135_v38 }
  0x48   : > { %1241 = vmatmul.mubr.msk.bf16.gmra.mrb[4].mxu1 %vm454_vm1, %v1117_v36 }
  0x4d   : > { %1257 = vmatmul.mubr.msk.bf16.vlgmr.msra.gmra.mrb[0].mxu0 %vm771_vm3, %v1136_v30 }
  0x4e   : > { %1260 = vmatprep.mubr.msk.bf16.mxu0 %vm771_vm3, %v1137_v60 }
  0x55   : > { %1261 = vmatmul.mubr.msk.bf16.gmra.mrb[4].mxu0 %vm771_vm3, %v1138_v57 }
 0x113   : > { %v1238_v7 = vpop.f32.mrb[0].mxu1 }
 0x114   : > { %v622_v0 = vpop.f32.mrb[1].mxu1 }
 0x115   : > { %v1239_v1 = vpop.f32.mrb[2].mxu1 }
 0x116   : > { %v625_v3 = vpop.f32.mrb[3].mxu1 }
 0x11b   : > { %v1242_v9 = vpop.f32.mrb[4].mxu1 }
 0x11c   : > { %v638_v12 = vpop.f32.mrb[5].mxu1 }
 0x11d   : > { %v1243_v14 = vpop.f32.mrb[6].mxu1 }
 0x11e   : > { %v641_v21 = vpop.f32.mrb[7].mxu1 }
 0x120   : > { %v1258_v8 = vpop.f32.mrb[0].mxu0 }
 0x121   : > { %v1264_v11 = vadd.f32 %v1258_v8, %v1238_v7  ;;  %v929_v15 = vpop.f32.mrb[1].mxu0 }
 0x122   : > { %v1265_v13 = vadd.f32 %v929_v15, %v622_v0  ;;  %v1259_v44 = vpop.f32.mrb[2].mxu0 }
 0x123   : > { %v1266_v16 = vadd.f32 %v1259_v44, %v1239_v1  ;;  %v932_v18 = vpop.f32.mrb[3].mxu0  ;;  %v977_v25 = vadd.f32 %v1264_v11, %v1144_v43 }
 0x124   : > { %v1267_v22 = vadd.f32 %v932_v18, %v625_v3  ;;  %v975_v27 = vadd.f32 %v1265_v13, %v1144_v43 }
 0x125   : > { %v978_v26 = vadd.f32 %v1266_v16, %v1144_v43 }
 0x126   : > { %v976_v29 = vadd.f32 %v1267_v22, %v1144_v43 }
 0x127   : > { %v1171_v31 = vpack.c.bf16 %v978_v26, %v977_v25 }
 0x128   : > { %v1166_v32 = vpack.c.bf16 %v976_v29, %v975_v27  ;;  %v1262_v34 = vpop.f32.mrb[4].mxu0 }
 0x129   : > { %1183 = vst [vmem:[%s302_s14 + $0x8] sm:$0xff] %v1171_v31   ;;  %v1268_v35 = vadd.f32 %v1262_v34, %v1242_v9  ;;  %v945_v37 = vpop.f32.mrb[5].mxu0 }
 0x12a   : > { %1167 = vst [vmem:[%s302_s14] sm:$0xff] %v1166_v32   ;;  %v1269_v4 = vadd.f32 %v945_v37, %v638_v12  ;;  %v1263_v55 = vpop.f32.mrb[6].mxu0 }
 0x12b   : > { %v1270_v5 = vadd.f32 %v1263_v55, %v1243_v14  ;;  %v948_v59 = vpop.f32.mrb[7].mxu0  ;;  %v981_v41 = vadd.f32 %v1268_v35, %v1144_v43 }
 0x12c   : > { %v1271_v40 = vadd.f32 %v948_v59, %v641_v21  ;;  %v979_v45 = vadd.f32 %v1269_v4, %v1144_v43 }
 0x12d   : > { %v982_v42 = vadd.f32 %v1270_v5, %v1144_v43 }
 0x12e   : > { %v980_v46 = vadd.f32 %v1271_v40, %v1144_v43 }
 0x12f   : > { %v1181_v6 = vpack.c.bf16 %v982_v42, %v981_v41 }
 0x130   : > { %v1176_v63 = vpack.c.bf16 %v980_v46, %v979_v45 }
 0x131   : > { %1185 = vst [vmem:[%s302_s14 + $0x18] sm:$0xff] %v1181_v6  }
 0x132   : > { %1184 = vst [vmem:[%s302_s14 + $0x10] sm:$0xff] %v1176_v63  }
 0x133 PF: > { %s17_s24 = sadd.s32 1, %s1345_s24  }
 0x134   : > { %p14_p4 = scmp.ge.s32.totalorder %s17_s24, 4  }
 0x136   :  { %16 = sbr.rel (!%p14_p4) target bundleno = 1 (0x1), region = 81 }

// kernel: pixelcnn_forward.52
= control target key start
LH: loop header
LB: loop body
LE: loop exit
PB: predicated region body
PF: predicated region fallthrough
CT: control target
= control target key end

     0   :  { %s421_s12 = smov 0   ;;  %s453_s0 = inlined_call_operand.vmem [shape: bf16[32,64], index: 0, kind: input, shape index: {}]   ;;  %s454_s1 = inlined_call_operand.vmem [shape: bf16[64,128], index: 1, kind: input, shape index: {}]   ;;  %s455_s2 = inlined_call_operand.vmem [shape: f32[1,128], index: 2, kind: input, shape index: {}]   ;;  %s456_s3 = inlined_call_operand.vmem [shape: bf16[32,128], index: 3, kind: output, shape index: {}]  }
   0x1 LB: > { %s332_s13 = sadd.s32 4294967295, %s397_s12   ;;  %p336_p0 = scmp.ge.s32.totalorder %s397_s12, 1  ;;  %s397_s12 = sphi %s421_s12, %s13_s12  }
   0x2   : > { %p138_p1 = scmp.lt.s32.totalorder %s397_s12, 3 }
   0x4   : > { %p139_p2 = pnand %p336_p0, %p138_p1 }
   0x5   : > { %v386_v0 = vld [vmem:[%s454_s1] sm:$0xff] (!%p139_p2)   ;;  %v399_v1 = vmov (!%p139_p2), 0.0   ;;  %v387_v2 = vld [vmem:[%s454_s1 + $0x8] sm:$0xff] (!%p139_p2)   ;;  %vm400_vm0 = vmmov (!%p139_p2), 0   ;;  %s337_s18 = sshll.u32 (!%p139_p2), %s332_s13, 1  ;;  %v388_v3 = vld [vmem:[%s454_s1 + $0x10] sm:$0xff] (!%p139_p2)  }
   0x6   : > { %142 = sbr.rel (%p139_p2) target bundleno = 241 (0xf1), region = 32  ;;  %364 = vmatprep.subr.bf16.mxu0 (!%p139_p2), %v399_v1  ;;  %372 = vmatprep.mubr.msk.bf16.mxu0 (!%p139_p2), %vm400_vm0, %v399_v1  ;;  %p163_p3 = scmp.lt.s32.totalorder (!%p139_p2), %s337_s18, 3  ;;  %v389_v4 = vld [vmem:[%s454_s1 + $0x18] sm:$0xff] (!%p139_p2)   ;;  %vm221_vm1 = vcmask (!%p139_p2), 523264   ;;  %v341_v6 = vld [vmem:[%s455_s2] ss:$0 sm:$0xff] (!%p139_p2) }
   0x7   : > { %365 = vmatpush3.bf16.msra.mxu0 (!%p139_p2), %v386_v0 }
   0x8   : > { %366 = vmatprep.subr.bf16.mxu0 (!%p139_p2), %v399_v1 }
   0xb   : > { %367 = vmatpush3.bf16.msra.mxu0 (!%p139_p2), %v387_v2 }
   0xc   : > { %368 = vmatprep.subr.bf16.mxu0 (!%p139_p2), %v399_v1 }
   0xd   : > { %s458_s18 = smov (!%p163_p3, %s337_s18), 3 }
   0xe   : > { %s338_s21 = sshll.u32 %s458_s18, 2 }
   0xf   : > { %s166_s24 = scalar_lea.vmem %s453_s0, %s338_s21  ;;  %369 = vmatpush3.bf16.msra.mxu0 %v388_v3  ;;  %s172_s4 = scalar_lea.vmem %s456_s3, %s338_s21 }
  0x10   : > { %370 = vmatprep.subr.bf16.mxu0 %v399_v1  ;;  %v390_v5 = vld [vmem:[%s166_s24] sm:$0xff]  }
  0x13   : > { %371 = vmatpush3.bf16.msra.mxu0 %v389_v4 }
  0x16   : > { %373 = vmatmul.mubr.msk.bf16.vlgmr.msra.gmra.mrb[0].mxu0 %vm221_vm1, %v390_v5 }
  0xe9   : > { %v259_v7 = vpop.f32.mrb[0].mxu0 }
  0xea   : > { %v374_v8 = vpop.f32.mrb[1].mxu0  ;;  %v260_v10 = vadd.f32 %v341_v6, %v259_v7 }
  0xeb   : > { %v262_v9 = vpop.f32.mrb[2].mxu0 }
  0xec   : > { %v263_v11 = vadd.f32 %v341_v6, %v262_v9  ;;  %v375_v12 = vpop.f32.mrb[3].mxu0 }
  0xee   : > { %v357_v13 = vpack.c.bf16 %v263_v11, %v260_v10 }
  0xf0   : > { %358 = vst [vmem:[%s172_s4] sm:$0xff] %v357_v13  }
  0xf1 PF: > { %s13_s12 = sadd.s32 1, %s397_s12  }
  0xf2   : > { %p10_p4 = scmp.ge.s32.totalorder %s13_s12, 4  }
  0xf4   :  { %12 = sbr.rel (!%p10_p4) target bundleno = 1 (0x1), region = 62 }

// kernel: pixelcnn_forward.50
= control target key start
LH: loop header
LB: loop body
LE: loop exit
PB: predicated region body
PF: predicated region fallthrough
CT: control target
= control target key end

     0   :  { %s1468_s27 = smov 0   ;;  %s1735_s0 = inlined_call_operand.vmem [shape: bf16[128,64], index: 0, kind: input, shape index: {}]   ;;  %s1736_s1 = inlined_call_operand.vmem [shape: bf16[64,128], index: 1, kind: input, shape index: {}]   ;;  %s1737_s2 = inlined_call_operand.vmem [shape: bf16[64,128], index: 2, kind: input, shape index: {}]   ;;  %s1738_s3 = inlined_call_operand.vmem [shape: bf16[64,128], index: 3, kind: input, shape index: {}]   ;;  %s1739_s4 = inlined_call_operand.vmem [shape: bf16[64,128], index: 4, kind: input, shape index: {}]   ;;  %s1740_s5 = inlined_call_operand.vmem [shape: f32[1,128], index: 5, kind: input, shape index: {}, may-alias: {5,6}]   ;;  %s1741_s6 = inlined_call_operand.vmem [shape: f32[1,128], index: 6, kind: input, shape index: {}, may-alias: {5,6}]   ;;  %s1742_s7 = inlined_call_operand.vmem [shape: bf16[128,128], index: 7, kind: input, shape index: {}]   ;;  %s1743_s8 = inlined_call_operand.vmem [shape: bf16[128,128], index: 8, kind: output, shape index: {}]  }
   0x1 LB: > { %s1116_s28 = sadd.s32 4294967295, %s1420_s27   ;;  %p1120_p0 = scmp.ge.s32.totalorder %s1420_s27, 1  ;;  %s1420_s27 = sphi %s1468_s27, %s18_s27  }
   0x2   : > { %p274_p1 = scmp.lt.s32.totalorder %s1420_s27, 3 }
   0x4   : > { %p275_p2 = pnand %p1120_p0, %p274_p1 }
   0x5   : > { %v1350_v0 = vld [vmem:[%s1739_s4] sm:$0xff] (!%p275_p2)   ;;  %s1121_s9 = sshll.u32 (!%p275_p2), %s1116_s28, 3  ;;  %v1351_v1 = vld [vmem:[%s1739_s4 + $0x8] sm:$0xff] (!%p275_p2)   ;;  %v1352_v2 = vld [vmem:[%s1739_s4 + $0x10] sm:$0xff] (!%p275_p2)   ;;  %v1422_v46 = vmov (!%p275_p2), 1065369472  }
   0x6   : > { %278 = sbr.rel (%p275_p2) target bundleno = 323 (0x143), region = 52  ;;  %p314_p3 = scmp.lt.s32.totalorder (!%p275_p2), %s1121_s9, 15  ;;  %1293 = vmatprep.subr.bf16.mxu1 (!%p275_p2), %v1350_v0  ;;  %v1354_v3 = vld [vmem:[%s1737_s2] sm:$0xff] (!%p275_p2)   ;;  %v1353_v7 = vld [vmem:[%s1739_s4 + $0x18] sm:$0xff] (!%p275_p2)   ;;  %v1356_v15 = vld [vmem:[%s1737_s2 + $0x8] sm:$0xff] (!%p275_p2)   ;;  %vm507_vm4 = vcmask (!%p275_p2), 523264  }
   0x7   : > { %1294 = vmatpush3.bf16.msra.mxu1 (!%p275_p2), %v1350_v0  ;;  %1261 = vmatprep.subr.bf16.mxu0 (!%p275_p2), %v1354_v3  ;;  %v1521_v19 = vld [vmem:[%s1738_s3] sm:$0xff] (!%p275_p2)   ;;  %v1358_v23 = vld [vmem:[%s1737_s2 + $0x10] sm:$0xff] (!%p275_p2)   ;;  %v1360_v28 = vld [vmem:[%s1737_s2 + $0x18] sm:$0xff] (!%p275_p2)  }
   0x8   : > { %1295 = vmatprep.subr.bf16.mxu1 (!%p275_p2), %v1351_v1  ;;  %1262 = vmatpush3.bf16.msra.mxu0 (!%p275_p2), %v1354_v3  ;;  %v1362_v42 = vld [vmem:[%s1736_s1] sm:$0xff] (!%p275_p2)   ;;  %v1357_v61 = vld [vmem:[%s1738_s3 + $0x8] sm:$0xff] (!%p275_p2)  }
   0x9   : > { %1263 = vmatprep.subr.bf16.mxu0 (!%p275_p2), %v1356_v15  ;;  %v1363_v63 = vld [vmem:[%s1736_s1 + $0x8] sm:$0xff] (!%p275_p2)  }
   0xb   : > { %1296 = vmatpush3.bf16.msra.mxu1 (!%p275_p2), %v1351_v1 }
   0xc   : > { %1297 = vmatprep.subr.bf16.mxu1 (!%p275_p2), %v1352_v2  ;;  %1264 = vmatpush3.bf16.msra.mxu0 (!%p275_p2), %v1356_v15 }
   0xd   : > { %s1745_s9 = smov (!%p314_p3, %s1121_s9), 15  ;;  %1265 = vmatprep.subr.bf16.mxu0 %v1358_v23 }
   0xe   : > { %s1488_s16 = sshll.u32 %s1745_s9, 2 }
   0xf   : > { %s1494_s19 = scalar_lea.vmem %s1735_s0, %s1488_s16  ;;  %1298 = vmatpush3.bf16.msra.mxu1 %v1352_v2  ;;  %s1687_s29 = scalar_lea.vmem %s1742_s7, %s1488_s16 }
  0x10   : > { %v1497_v4 = vld [vmem:[%s1494_s19] sm:$0xf]  ;;  %v1500_v5 = vld [vmem:[%s1494_s19 + $0x4] sm:$0xf]  ;;  %v1503_v6 = vld [vmem:[%s1494_s19 + $0x8] sm:$0xf]  ;;  %1299 = vmatprep.subr.bf16.mxu1 %v1353_v7  ;;  %1266 = vmatpush3.bf16.msra.mxu0 %v1358_v23  ;;  %s1719_s12 = scalar_lea.vmem %s1743_s8, %s1488_s16 }
  0x11   : > { %v341_v8 = vand.u32 2147450879, %v1497_v4  ;;  %v342_v9 = vand.u32 2147450879, %v1500_v5  ;;  %v1511_v10 = vld [vmem:[%s1494_s19 + $0xc] sm:$0xf]  ;;  %1267 = vmatprep.subr.bf16.mxu0 %v1360_v28 }
  0x12   : > { %v343_v11 = vand.u32 2147450879, %v1503_v6  ;;  %v344_v14 = vand.u32 2147450879, %v1511_v10  ;;  %v1527_v24 = vld [vmem:[%s1494_s19 + $0x10] sm:$0xf] }
  0x13   : > { %v349_v12 = vsub.bf16 0, %v341_v8  ;;  %v350_v13 = vsub.bf16 0, %v342_v9  ;;  %1300 = vmatpush3.bf16.msra.mxu1 %v1353_v7  ;;  %v1530_v25 = vld [vmem:[%s1494_s19 + $0x14] sm:$0xf]  ;;  %v345_v26 = vand.u32 2147450879, %v1527_v24 }
  0x14   : > { %v351_v16 = vsub.bf16 0, %v343_v11  ;;  %v352_v20 = vsub.bf16 0, %v344_v14  ;;  %1309 = vmatprep.subr.bf16.mxu1 %v1521_v19  ;;  %v346_v27 = vand.u32 2147450879, %v1530_v25  ;;  %v1539_v31 = vld [vmem:[%s1494_s19 + $0x18] sm:$0xf]  ;;  %1268 = vmatpush3.bf16.msra.mxu0 %v1360_v28 }
  0x15   : > { %v358_v17 = vmul.bf16 1069105081, %v349_v12  ;;  %v361_v18 = vmul.bf16 1069105081, %v350_v13  ;;  %v353_v29 = vsub.bf16 0, %v345_v26  ;;  %v405_v41 = vsub.bf16 0, %v1497_v4  ;;  %1277 = vmatprep.subr.bf16.mxu0 %v1362_v42 }
  0x16   : > { %v364_v21 = vmul.bf16 1069105081, %v351_v16  ;;  %v367_v22 = vmul.bf16 1069105081, %v352_v20  ;;  %v354_v30 = vsub.bf16 0, %v346_v27  ;;  %vm389_vm0 = vcmp.gt.bf16.partialorder %v1497_v4, 0 }
  0x17   : > { %1366 = vpow.bf16 %v358_v17  ;;  %v1542_v32 = vld [vmem:[%s1494_s19 + $0x1c] sm:$0xf]  ;;  %v347_v33 = vand.u32 2147450879, %v1539_v31  ;;  %v370_v35 = vmul.bf16 1069105081, %v353_v29 }
  0x18   : > { %1368 = vpow.bf16 %v361_v18  ;;  %v348_v34 = vand.u32 2147450879, %v1542_v32  ;;  %v373_v36 = vmul.bf16 1069105081, %v354_v30  ;;  %v406_v44 = vsub.bf16 0, %v1500_v5  ;;  %v1359_v12 = vld [vmem:[%s1738_s3 + $0x10] sm:$0xff]  }
  0x19   : > { %1370 = vpow.bf16 %v364_v21  ;;  %v355_v37 = vsub.bf16 0, %v347_v33  ;;  %vm390_vm1 = vcmp.gt.bf16.partialorder %v1500_v5, 0  ;;  %v407_v48 = vsub.bf16 0, %v1503_v6  ;;  %v1361_v26 = vld [vmem:[%s1738_s3 + $0x18] sm:$0xff]  }
  0x1a   : > { %1372 = vpow.bf16 %v367_v22  ;;  %v356_v38 = vsub.bf16 0, %v348_v34  ;;  %vm391_vm2 = vcmp.gt.bf16.partialorder %v1503_v6, 0  ;;  %v408_v51 = vsub.bf16 0, %v1511_v10  ;;  %v1365_v27 = vld [vmem:[%s1736_s1 + $0x18] sm:$0xff]  }
  0x1b   : > { %1374 = vpow.bf16 %v370_v35  ;;  %v376_v39 = vmul.bf16 1069105081, %v355_v37  ;;  %vm392_vm3 = vcmp.gt.bf16.partialorder %v1511_v10, 0  ;;  %v409_v62 = vsub.bf16 0, %v1527_v24  ;;  %v1168_v35 = vld [vmem:[%s1741_s6] ss:$0 sm:$0xff] }
  0x1c   : > { %1376 = vpow.bf16 %v373_v36  ;;  %v379_v40 = vmul.bf16 1069105081, %v356_v38  ;;  %vm393_vm5 = vcmp.gt.bf16.partialorder %v1527_v24, 0  ;;  %v410_v1 = vsub.bf16 0, %v1530_v25 }
  0x1d   : > { %1378 = vpow.bf16 %v376_v39  ;;  %vm394_vm6 = vcmp.gt.bf16.partialorder %v1530_v25, 0  ;;  %v411_v8 = vsub.bf16 0, %v1539_v31  ;;  %vm395_vm7 = vcmp.gt.bf16.partialorder %v1539_v31, 0 }
  0x1e   : > { %1380 = vpow.bf16 %v379_v40  ;;  %vm396_vm8 = vcmp.gt.bf16.partialorder %v1542_v32, 0  ;;  %v412_v13 = vsub.bf16 0, %v1542_v32 }
  0x22   : > { %v1367_v43 = vpop.eup %1366 }
  0x23   : > { %v1369_v45 = vpop.eup %1368  ;;  %v381_v47 = vsub.bf16 %v1367_v43, %v1422_v46 }
  0x24   : > { %v1371_v49 = vpop.eup %1370  ;;  %v382_v50 = vsub.bf16 %v1369_v45, %v1422_v46 }
  0x25   : > { %v1373_v52 = vpop.eup %1372  ;;  %v413_v53 = vsel %vm389_vm0, %v381_v47, %v405_v41  ;;  %v383_v54 = vsub.bf16 %v1371_v49, %v1422_v46  ;;  %v397_v15 = vsel %vm389_vm0, %v1497_v4, %v381_v47 }
  0x26   : > { %v414_v55 = vsel %vm390_vm1, %v382_v50, %v406_v44  ;;  %v384_v56 = vsub.bf16 %v1373_v52, %v1422_v46  ;;  %v1375_v0 = vpop.eup %1374  ;;  %v398_v16 = vsel %vm390_vm1, %v1500_v5, %v382_v50 }
  0x27   : > { %v1127_v57 = vcombine.low %v413_v53, %v414_v55  ;;  %v415_v58 = vsel %vm391_vm2, %v383_v54, %v407_v48  ;;  %v1377_v2 = vpop.eup %1376  ;;  %v385_v3 = vsub.bf16 %v1375_v0, %v1422_v46  ;;  %v1139_v5 = vcombine.low %v397_v15, %v398_v16 }
  0x28   : > { %v416_v59 = vsel %vm392_vm3, %v384_v56, %v408_v51  ;;  %v386_v7 = vsub.bf16 %v1377_v2, %v1422_v46  ;;  %v1379_v9 = vpop.eup %1378  ;;  %v399_v28 = vsel %vm391_vm2, %v1503_v6, %v383_v54  ;;  %v400_v29 = vsel %vm392_vm3, %v1511_v10, %v384_v56 }
  0x29   : > { %1301 = vmatprep.mubr.msk.bf16.mxu1 %vm507_vm4, %v1127_v57  ;;  %v1128_v60 = vcombine.low %v415_v58, %v416_v59  ;;  %1269 = vmatprep.mubr.msk.bf16.mxu0 %vm507_vm4, %v1127_v57  ;;  %v417_v11 = vsel %vm393_vm5, %v385_v3, %v409_v62  ;;  %v1381_v14 = vpop.eup %1380  ;;  %v387_v18 = vsub.bf16 %v1379_v9, %v1422_v46 }
  0x2a   : > { %v418_v17 = vsel %vm394_vm6, %v386_v7, %v410_v1  ;;  %v388_v21 = vsub.bf16 %v1381_v14, %v1422_v46  ;;  %v401_v30 = vsel %vm393_vm5, %v1527_v24, %v385_v3  ;;  %v402_v33 = vsel %vm394_vm6, %v1530_v25, %v386_v7 }
  0x2b   : > { %1302 = vmatmul.mubr.msk.bf16.vlgmr.msra.gmra.mrb[0].mxu1 %vm507_vm4, %v1128_v60  ;;  %1270 = vmatmul.mubr.msk.bf16.vlgmr.msra.gmra.mrb[0].mxu0 %vm507_vm4, %v1128_v60  ;;  %v1129_v20 = vcombine.low %v417_v11, %v418_v17  ;;  %v419_v22 = vsel %vm395_vm7, %v387_v18, %v411_v8  ;;  %v1140_v6 = vcombine.low %v399_v28, %v400_v29 }
  0x2c   : > { %1310 = vmatpush3.bf16.msra.mxu1 %v1521_v19  ;;  %1278 = vmatpush3.bf16.msra.mxu0 %v1362_v42  ;;  %v1364_v19 = vld [vmem:[%s1736_s1 + $0x10] sm:$0xff]   ;;  %v420_v4 = vsel %vm396_vm8, %v388_v21, %v412_v13  ;;  %v1141_v34 = vcombine.low %v401_v30, %v402_v33  ;;  %v403_v10 = vsel %vm395_vm7, %v1539_v31, %v387_v18  ;;  %v1223_v33 = vld [vmem:[%s1687_s29 + $0x8] sm:$0xff]  }
  0x2d   : > { %1311 = vmatprep.subr.bf16.mxu1 %v1357_v61  ;;  %1279 = vmatprep.subr.bf16.mxu0 %v1363_v63  ;;  %v1130_v23 = vcombine.low %v419_v22, %v420_v4  ;;  %v404_v24 = vsel %vm396_vm8, %v1542_v32, %v388_v21 }
  0x2e   : > { %1305 = vmatprep.mubr.msk.bf16.mxu1 %vm507_vm4, %v1129_v20  ;;  %1273 = vmatprep.mubr.msk.bf16.mxu0 %vm507_vm4, %v1129_v20  ;;  %v1142_v25 = vcombine.low %v403_v10, %v404_v24 }
  0x30   : > { %1312 = vmatpush3.bf16.msra.mxu1 %v1357_v61  ;;  %1280 = vmatpush3.bf16.msra.mxu0 %v1363_v63 }
  0x31   : > { %1313 = vmatprep.subr.bf16.mxu1 %v1359_v12  ;;  %1281 = vmatprep.subr.bf16.mxu0 %v1364_v19 }
  0x33   : > { %1306 = vmatmul.mubr.msk.bf16.gmra.mrb[4].mxu1 %vm507_vm4, %v1130_v23  ;;  %1274 = vmatmul.mubr.msk.bf16.gmra.mrb[4].mxu0 %vm507_vm4, %v1130_v23 }
  0x34   : > { %1314 = vmatpush3.bf16.msra.mxu1 %v1359_v12  ;;  %1317 = vmatprep.mubr.msk.bf16.mxu1 %vm507_vm4, %v1139_v5 }
  0x35   : > { %1315 = vmatprep.subr.bf16.mxu1 %v1361_v26  ;;  %1282 = vmatpush3.bf16.msra.mxu0 %v1364_v19 }
  0x36   : > { %1283 = vmatprep.subr.bf16.mxu0 %v1365_v27  ;;  %1285 = vmatprep.mubr.msk.bf16.mxu0 %vm507_vm4, %v1139_v5 }
  0x38   : > { %1316 = vmatpush3.bf16.msra.mxu1 %v1361_v26 }
  0x39   : > { %1284 = vmatpush3.bf16.msra.mxu0 %v1365_v27 }
  0x3b   : > { %1318 = vmatmul.mubr.msk.bf16.vlgmr.msra.gmra.mrb[0].mxu1 %vm507_vm4, %v1140_v6 }
  0x3c   : > { %1321 = vmatprep.mubr.msk.bf16.mxu1 %vm507_vm4, %v1141_v34  ;;  %1286 = vmatmul.mubr.msk.bf16.vlgmr.msra.gmra.mrb[0].mxu0 %vm507_vm4, %v1140_v6  ;;  %v1188_v6 = vld [vmem:[%s1687_s29] sm:$0xff]  }
  0x3d   : > { %1289 = vmatprep.mubr.msk.bf16.mxu0 %vm507_vm4, %v1141_v34 }
  0x43   : > { %1322 = vmatmul.mubr.msk.bf16.gmra.mrb[4].mxu1 %vm507_vm4, %v1142_v25 }
  0x44   : > { %1290 = vmatmul.mubr.msk.bf16.gmra.mrb[4].mxu0 %vm507_vm4, %v1142_v25 }
 0x10e   : > { %v1319_v36 = vpop.f32.mrb[0].mxu1 }
 0x10f   : > { %v1643_v37 = vadd.f32 %v1319_v36, %v1168_v35  ;;  %v867_v31 = vpop.f32.mrb[1].mxu1  ;;  %v1645_v38 = vpop.f32.mrb[0].mxu0 }
 0x110   : > { %v1647_v32 = vadd.f32 %v1168_v35, %v867_v31  ;;  %v1320_v39 = vpop.f32.mrb[2].mxu1  ;;  %v1649_v40 = vpop.f32.mrb[1].mxu0 }
 0x111   : > { %v922_v41 = vand.u32 2147483647, %v1643_v37  ;;  %v1652_v42 = vadd.f32 %v1320_v39, %v1168_v35  ;;  %v870_v43 = vpop.f32.mrb[3].mxu1  ;;  %v1654_v44 = vpop.f32.mrb[2].mxu0  ;;  %v1193_v39 = vunpack.c.l.bf16 %v1223_v33  ;;  %vm954_vm9 = vcmp.ge.f32.partialorder %v1643_v37, 0.0 }
 0x112   : > { %v920_v45 = vand.u32 2147483647, %v1647_v32  ;;  %v1657_v46 = vadd.f32 %v1168_v35, %v870_v43  ;;  %v1659_v47 = vpop.f32.mrb[3].mxu0  ;;  %vm952_vm10 = vcmp.ge.f32.partialorder %v1647_v32, 0.0  ;;  %v1225_v32 = vld [vmem:[%s1687_s29 + $0x18] sm:$0xff]  }
 0x113   : > { %v930_v48 = vsub.f32 0.0, %v922_v41  ;;  %v923_v49 = vand.u32 2147483647, %v1652_v42  ;;  %v1189_v41 = vunpack.c.l.bf16 %v1188_v6  ;;  %vm955_vm11 = vcmp.ge.f32.partialorder %v1652_v42, 0.0 }
 0x114   : > { %v928_v50 = vsub.f32 0.0, %v920_v45  ;;  %v921_v51 = vand.u32 2147483647, %v1657_v46  ;;  %v1194_v45 = vunpack.c.h.bf16 %v1223_v33  ;;  %vm953_vm12 = vcmp.ge.f32.partialorder %v1657_v46, 0.0 }
 0x115   : > { %v940_v52 = vmul.f32 1.442695, %v930_v48  ;;  %v931_v53 = vsub.f32 0.0, %v923_v49 }
 0x116   : > { %v936_v54 = vmul.f32 1.442695, %v928_v50  ;;  %v929_v55 = vsub.f32 0.0, %v921_v51  ;;  %v1323_v56 = vpop.f32.mrb[4].mxu1 }
 0x117   : > { %1382 = vpow2.f32 %v940_v52  ;;  %v942_v57 = vmul.f32 1.442695, %v931_v53  ;;  %v1663_v58 = vadd.f32 %v1323_v56, %v1168_v35  ;;  %v883_v59 = vpop.f32.mrb[5].mxu1  ;;  %v1665_v60 = vpop.f32.mrb[4].mxu0 }
 0x118   : > { %1384 = vpow2.f32 %v936_v54  ;;  %v938_v61 = vmul.f32 1.442695, %v929_v55  ;;  %v1667_v62 = vadd.f32 %v1168_v35, %v883_v59  ;;  %v1324_v63 = vpop.f32.mrb[6].mxu1  ;;  %v1669_v0 = vpop.f32.mrb[5].mxu0 }
 0x119   : > { %1386 = vpow2.f32 %v942_v57  ;;  %v926_v1 = vand.u32 2147483647, %v1663_v58  ;;  %v1672_v2 = vadd.f32 %v1324_v63, %v1168_v35  ;;  %v886_v3 = vpop.f32.mrb[7].mxu1  ;;  %v1674_v7 = vpop.f32.mrb[6].mxu0  ;;  %vm958_vm13 = vcmp.ge.f32.partialorder %v1663_v58, 0.0 }
 0x11a   : > { %1388 = vpow2.f32 %v938_v61  ;;  %v924_v8 = vand.u32 2147483647, %v1667_v62  ;;  %v1677_v9 = vadd.f32 %v1168_v35, %v886_v3  ;;  %v1679_v11 = vpop.f32.mrb[7].mxu0  ;;  %v1694_v35 = vld [vmem:[%s1740_s5] ss:$0 sm:$0xff]  ;;  %v1190_v3 = vunpack.c.h.bf16 %v1188_v6 }
 0x11b   : > { %v934_v12 = vsub.f32 0.0, %v926_v1  ;;  %v927_v13 = vand.u32 2147483647, %v1672_v2  ;;  %v714_v50 = vadd.f32 %v1645_v38, %v1694_v35  ;;  %v712_v55 = vadd.f32 %v1694_v35, %v1649_v40  ;;  %v1224_v1 = vld [vmem:[%s1687_s29 + $0x10] sm:$0xff]  }
 0x11c   : > { %v932_v14 = vsub.f32 0.0, %v924_v8  ;;  %v925_v15 = vand.u32 2147483647, %v1677_v9  ;;  %v715_v61 = vadd.f32 %v1654_v44, %v1694_v35  ;;  %v713_v8 = vadd.f32 %v1694_v35, %v1659_v47 }
 0x11d   : > { %v948_v16 = vmul.f32 1.442695, %v934_v12  ;;  %v935_v17 = vsub.f32 0.0, %v927_v13  ;;  %v1201_v13 = vunpack.c.l.bf16 %v1225_v32  ;;  %vm956_vm14 = vcmp.ge.f32.partialorder %v1667_v62, 0.0 }
 0x11e   : > { %v944_v18 = vmul.f32 1.442695, %v932_v14  ;;  %v933_v19 = vsub.f32 0.0, %v925_v15  ;;  %v718_v14 = vadd.f32 %v1665_v60, %v1694_v35  ;;  %v1197_v15 = vunpack.c.l.bf16 %v1224_v1 }
 0x11f   : > { %1390 = vpow2.f32 %v948_v16  ;;  %v950_v20 = vmul.f32 1.442695, %v935_v17  ;;  %v1202_v16 = vunpack.c.h.bf16 %v1225_v32  ;;  %vm959_vm15 = vcmp.ge.f32.partialorder %v1672_v2, 0.0 }
 0x120   : > { %1392 = vpow2.f32 %v944_v18  ;;  %v946_v21 = vmul.f32 1.442695, %v933_v19  ;;  %v716_v62 = vadd.f32 %v1694_v35, %v1669_v0  ;;  %vm957_vm0 = vcmp.ge.f32.partialorder %v1677_v9, 0.0 }
 0x121   : > { %v1383_v22 = vpop.eup %1382  ;;  %1394 = vpow2.f32 %v950_v20  ;;  %v1198_v6 = vunpack.c.h.bf16 %v1224_v1  ;;  %v717_v0 = vadd.f32 %v1694_v35, %v1679_v11 }
 0x122   : > { %v1385_v4 = vpop.eup %1384  ;;  %v970_v5 = vadd.f32 1.0, %v1383_v22  ;;  %1396 = vpow2.f32 %v946_v21  ;;  %v962_v49 = vsel %vm954_vm9, 1.0, %v1383_v22 }
 0x123   : > { %v1387_v23 = vpop.eup %1386  ;;  %v968_v26 = vadd.f32 1.0, %v1385_v4  ;;  %v960_v52 = vsel %vm952_vm10, 1.0, %v1385_v4 }
 0x124   : > { %v1389_v27 = vpop.eup %1388  ;;  %v971_v28 = vadd.f32 1.0, %v1387_v23  ;;  %1398 = vrcp.f32 %v970_v5  ;;  %v963_v54 = vsel %vm955_vm11, 1.0, %v1387_v23 }
 0x125   : > { %v969_v29 = vadd.f32 1.0, %v1389_v27  ;;  %1400 = vrcp.f32 %v968_v26  ;;  %v961_v59 = vsel %vm953_vm12, 1.0, %v1389_v27 }
 0x126   : > { %1402 = vrcp.f32 %v971_v28 }
 0x127   : > { %1404 = vrcp.f32 %v969_v29  ;;  %v719_v29 = vadd.f32 %v1674_v7, %v1694_v35 }
 0x129   : > { %v1391_v30 = vpop.eup %1390 }
 0x12a   : > { %v1393_v34 = vpop.eup %1392  ;;  %v974_v10 = vadd.f32 1.0, %v1391_v30  ;;  %v966_v19 = vsel %vm958_vm13, 1.0, %v1391_v30 }
 0x12b   : > { %v1395_v24 = vpop.eup %1394  ;;  %v972_v25 = vadd.f32 1.0, %v1393_v34  ;;  %v964_v21 = vsel %vm956_vm14, 1.0, %v1393_v34 }
 0x12c   : > { %v1397_v36 = vpop.eup %1396  ;;  %v975_v31 = vadd.f32 1.0, %v1395_v24  ;;  %1406 = vrcp.f32 %v974_v10  ;;  %v967_v5 = vsel %vm959_vm15, 1.0, %v1395_v24 }
 0x12d   : > { %v973_v43 = vadd.f32 1.0, %v1397_v36  ;;  %1408 = vrcp.f32 %v972_v25  ;;  %v965_v27 = vsel %vm957_vm0, 1.0, %v1397_v36 }
 0x12e   : > { %v1399_v48 = vpop.eup %1398  ;;  %1410 = vrcp.f32 %v975_v31 }
 0x12f   : > { %v1401_v51 = vpop.eup %1400  ;;  %v986_v53 = vmul.f32 %v1399_v48, %v962_v49  ;;  %1412 = vrcp.f32 %v973_v43 }
 0x130   : > { %v1403_v37 = vpop.eup %1402  ;;  %v984_v56 = vmul.f32 %v1401_v51, %v960_v52 }
 0x131   : > { %v1405_v57 = vpop.eup %1404  ;;  %v994_v38 = vmul.f32 %v986_v53, %v714_v50  ;;  %v987_v63 = vmul.f32 %v1403_v37, %v963_v54 }
 0x132   : > { %v992_v42 = vmul.f32 %v984_v56, %v712_v55  ;;  %v985_v46 = vmul.f32 %v1405_v57, %v961_v59 }
 0x133   : > { %v995_v12 = vmul.f32 %v987_v63, %v715_v61  ;;  %v1002_v44 = vadd.f32 %v1193_v39, %v994_v38 }
 0x134   : > { %v993_v40 = vmul.f32 %v985_v46, %v713_v8  ;;  %v1000_v47 = vadd.f32 %v1189_v41, %v992_v42 }
 0x135   : > { %v1003_v17 = vadd.f32 %v1194_v45, %v995_v12 }
 0x136   : > { %v1407_v18 = vpop.eup %1406  ;;  %v1001_v60 = vadd.f32 %v1190_v3, %v993_v40 }
 0x137   : > { %v1409_v20 = vpop.eup %1408  ;;  %v1211_v58 = vpack.c.bf16 %v1003_v17, %v1002_v44  ;;  %v990_v22 = vmul.f32 %v1407_v18, %v966_v19 }
 0x138   : > { %v1411_v4 = vpop.eup %1410  ;;  %v1206_v2 = vpack.c.bf16 %v1001_v60, %v1000_v47  ;;  %v988_v23 = vmul.f32 %v1409_v20, %v964_v21 }
 0x139   : > { %v1413_v26 = vpop.eup %1412  ;;  %1226 = vst [vmem:[%s1719_s12 + $0x8] sm:$0xff] %v1211_v58   ;;  %v998_v28 = vmul.f32 %v990_v22, %v718_v14  ;;  %v991_v30 = vmul.f32 %v1411_v4, %v967_v5 }
 0x13a   : > { %1207 = vst [vmem:[%s1719_s12] sm:$0xff] %v1206_v2   ;;  %v996_v33 = vmul.f32 %v988_v23, %v716_v62  ;;  %v989_v34 = vmul.f32 %v1413_v26, %v965_v27 }
 0x13b   : > { %v999_v9 = vmul.f32 %v991_v30, %v719_v29  ;;  %v1006_v24 = vadd.f32 %v1201_v13, %v998_v28 }
 0x13c   : > { %v997_v10 = vmul.f32 %v989_v34, %v717_v0  ;;  %v1004_v36 = vadd.f32 %v1197_v15, %v996_v33 }
 0x13d   : > { %v1007_v25 = vadd.f32 %v1202_v16, %v999_v9 }
 0x13e   : > { %v1005_v31 = vadd.f32 %v1198_v6, %v997_v10 }
 0x13f   : > { %v1221_v39 = vpack.c.bf16 %v1007_v25, %v1006_v24 }
 0x140   : > { %v1216_v41 = vpack.c.bf16 %v1005_v31, %v1004_v36 }
 0x141   : > { %1228 = vst [vmem:[%s1719_s12 + $0x18] sm:$0xff] %v1221_v39  }
 0x142   : > { %1227 = vst [vmem:[%s1719_s12 + $0x10] sm:$0xff] %v1216_v41  }
 0x143 PF: > { %s18_s27 = sadd.s32 1, %s1420_s27  }
 0x144   : > { %p15_p4 = scmp.ge.s32.totalorder %s18_s27, 4  }
 0x146   :  { %17 = sbr.rel (!%p15_p4) target bundleno = 1 (0x1), region = 85 }

// kernel: pixelcnn_forward.55
= control target key start
LH: loop header
LB: loop body
LE: loop exit
PB: predicated region body
PF: predicated region fallthrough
CT: control target
= control target key end

     0   :  { %s890_s24 = smov 0   ;;  %s970_s0 = inlined_call_operand.vmem [shape: bf16[32,64], index: 0, kind: input, shape index: {}]   ;;  %s971_s1 = inlined_call_operand.vmem [shape: bf16[64,128], index: 1, kind: input, shape index: {}]   ;;  %s972_s2 = inlined_call_operand.vmem [shape: bf16[64,128], index: 2, kind: input, shape index: {}]   ;;  %s973_s3 = inlined_call_operand.vmem [shape: bf16[32,16], index: 3, kind: input, shape index: {}]   ;;  %s974_s4 = inlined_call_operand.vmem [shape: bf16[16,128], index: 4, kind: input, shape index: {}]   ;;  %s975_s5 = inlined_call_operand.vmem [shape: bf16[16,128], index: 5, kind: input, shape index: {}]   ;;  %s976_s6 = inlined_call_operand.vmem [shape: f32[1,128], index: 6, kind: input, shape index: {}]   ;;  %s977_s7 = inlined_call_operand.vmem [shape: bf16[32,128], index: 7, kind: output, shape index: {}]  }
   0x1 LB: > { %s719_s25 = sadd.s32 4294967295, %s845_s24   ;;  %p723_p0 = scmp.ge.s32.totalorder %s845_s24, 1  ;;  %s845_s24 = sphi %s890_s24, %s17_s24  }
   0x2   : > { %p249_p1 = scmp.lt.s32.totalorder %s845_s24, 3 }
   0x4   : > { %p250_p2 = pnand %p723_p0, %p249_p1 }
   0x5   : > { %v821_v0 = vld [vmem:[%s972_s2] sm:$0xff] (!%p250_p2)   ;;  %v847_v1 = vmov (!%p250_p2), 0.0   ;;  %v823_v3 = vld [vmem:[%s972_s2 + $0x8] sm:$0xff] (!%p250_p2)   ;;  %vm848_vm0 = vmmov (!%p250_p2), 0   ;;  %s724_s9 = sshll.u32 (!%p250_p2), %s719_s25, 1  ;;  %v825_v5 = vld [vmem:[%s972_s2 + $0x10] sm:$0xff] (!%p250_p2)  }
   0x6   : > { %253 = sbr.rel (%p250_p2) target bundleno = 272 (0x110), region = 48  ;;  %774 = vmatprep.subr.bf16.mxu0 (!%p250_p2), %v847_v1  ;;  %786 = vmatprep.subr.bf16.mxu1 (!%p250_p2), %v847_v1  ;;  %v822_v2 = vld [vmem:[%s971_s1] sm:$0xff] (!%p250_p2)   ;;  %v824_v4 = vld [vmem:[%s971_s1 + $0x8] sm:$0xff] (!%p250_p2)   ;;  %p287_p3 = scmp.lt.s32.totalorder (!%p250_p2), %s724_s9, 3  ;;  %v826_v6 = vld [vmem:[%s971_s1 + $0x10] sm:$0xff] (!%p250_p2)   ;;  %vm373_vm3 = vcmask (!%p250_p2), 523264  }
   0x7   : > { %775 = vmatpush3.bf16.msra.mxu0 (!%p250_p2), %v821_v0  ;;  %782 = vmatprep.mubr.msk.bf16.mxu0 (!%p250_p2), %vm848_vm0, %v847_v1  ;;  %v827_v9 = vld [vmem:[%s972_s2 + $0x18] sm:$0xff] (!%p250_p2)   ;;  %v849_v29 = vmov (!%p250_p2), 1065369472   ;;  %v829_v39 = vld [vmem:[%s974_s4] sm:$0xff] (!%p250_p2)   ;;  %vm528_vm6 = vcmask (!%p250_p2), 130048  }
   0x8   : > { %787 = vmatpush3.bf16.msra.mxu1 (!%p250_p2), %v822_v2  ;;  %776 = vmatprep.subr.bf16.mxu0 (!%p250_p2), %v847_v1  ;;  %v828_v12 = vld [vmem:[%s971_s1 + $0x18] sm:$0xff] (!%p250_p2)   ;;  %v830_v40 = vld [vmem:[%s975_s5] sm:$0xff] (!%p250_p2)  }
   0x9   : > { %788 = vmatprep.subr.bf16.mxu1 (!%p250_p2), %v847_v1  ;;  %794 = vmatprep.mubr.msk.bf16.mxu1 (!%p250_p2), %vm848_vm0, %v847_v1 }
   0xb   : > { %777 = vmatpush3.bf16.msra.mxu0 (!%p250_p2), %v823_v3 }
   0xc   : > { %789 = vmatpush3.bf16.msra.mxu1 (!%p250_p2), %v824_v4  ;;  %778 = vmatprep.subr.bf16.mxu0 (!%p250_p2), %v847_v1 }
   0xd   : > { %s979_s9 = smov (!%p287_p3, %s724_s9), 3  ;;  %790 = vmatprep.subr.bf16.mxu1 %v847_v1 }
   0xe   : > { %s925_s16 = sshll.u32 %s979_s9, 2 }
   0xf   : > { %s290_s19 = scalar_lea.vmem %s970_s0, %s925_s16  ;;  %s296_s22 = scalar_lea.vmem %s973_s3, %s925_s16  ;;  %779 = vmatpush3.bf16.msra.mxu0 %v825_v5 }
  0x10   : > { %v306_v7 = vld [vmem:[%s290_s19] sm:$0xf]  ;;  %v307_v8 = vld [vmem:[%s290_s19 + $0x4] sm:$0xf]  ;;  %791 = vmatpush3.bf16.msra.mxu1 %v826_v6  ;;  %780 = vmatprep.subr.bf16.mxu0 %v847_v1  ;;  %s302_s13 = scalar_lea.vmem %s977_s7, %s925_s16 }
  0x11   : > { %v308_v10 = vand.u32 2147450879, %v306_v7  ;;  %v309_v11 = vand.u32 2147450879, %v307_v8  ;;  %792 = vmatprep.subr.bf16.mxu1 %v847_v1  ;;  %v491_v15 = vld [vmem:[%s296_s22] sm:$0xf] }
  0x12   : > { %v492_v16 = vld [vmem:[%s296_s22 + $0x4] sm:$0xf]  ;;  %v497_v17 = vand.u32 2147450879, %v491_v15  ;;  %v324_v25 = vsub.bf16 0, %v306_v7  ;;  %vm320_vm1 = vcmp.gt.bf16.partialorder %v306_v7, 0 }
  0x13   : > { %v310_v13 = vsub.bf16 0, %v308_v10  ;;  %v311_v14 = vsub.bf16 0, %v309_v11  ;;  %781 = vmatpush3.bf16.msra.mxu0 %v827_v9  ;;  %v498_v20 = vand.u32 2147450879, %v492_v16  ;;  %v325_v27 = vsub.bf16 0, %v307_v8 }
  0x14   : > { %793 = vmatpush3.bf16.msra.mxu1 %v828_v12  ;;  %798 = vmatprep.subr.bf16.mxu0 %v847_v1  ;;  %v499_v21 = vsub.bf16 0, %v497_v17  ;;  %vm321_vm2 = vcmp.gt.bf16.partialorder %v307_v8, 0  ;;  %vm509_vm4 = vcmp.gt.bf16.partialorder %v491_v15, 0  ;;  %v513_v35 = vsub.bf16 0, %v491_v15  ;;  %v748_v9 = vld [vmem:[%s976_s6] ss:$0 sm:$0xff] }
  0x15   : > { %v313_v18 = vmul.bf16 1069105081, %v310_v13  ;;  %v316_v19 = vmul.bf16 1069105081, %v311_v14  ;;  %804 = vmatprep.subr.bf16.mxu1 %v847_v1  ;;  %v500_v22 = vsub.bf16 0, %v498_v20  ;;  %v514_v42 = vsub.bf16 0, %v492_v16 }
  0x16   : > { %v502_v23 = vmul.bf16 1069105081, %v499_v21  ;;  %vm510_vm5 = vcmp.gt.bf16.partialorder %v492_v16, 0 }
  0x17   : > { %831 = vpow.bf16 %v313_v18  ;;  %v505_v24 = vmul.bf16 1069105081, %v500_v22 }
  0x18   : > { %833 = vpow.bf16 %v316_v19 }
  0x19   : > { %835 = vpow.bf16 %v502_v23 }
  0x1a   : > { %837 = vpow.bf16 %v505_v24 }
  0x22   : > { %v832_v26 = vpop.eup %831 }
  0x23   : > { %v834_v28 = vpop.eup %833  ;;  %v318_v30 = vsub.bf16 %v832_v26, %v849_v29 }
  0x24   : > { %v319_v31 = vsub.bf16 %v834_v28, %v849_v29  ;;  %v836_v32 = vpop.eup %835 }
  0x25   : > { %v326_v33 = vsel %vm320_vm1, %v318_v30, %v324_v25  ;;  %v322_v34 = vsel %vm320_vm1, %v306_v7, %v318_v30  ;;  %v838_v36 = vpop.eup %837  ;;  %v507_v41 = vsub.bf16 %v836_v32, %v849_v29 }
  0x26   : > { %v327_v37 = vsel %vm321_vm2, %v319_v31, %v325_v27  ;;  %v323_v38 = vsel %vm321_vm2, %v307_v8, %v319_v31  ;;  %v508_v45 = vsub.bf16 %v838_v36, %v849_v29 }
  0x27   : > { %v730_v43 = vcombine.low %v326_v33, %v327_v37  ;;  %v736_v44 = vcombine.low %v322_v34, %v323_v38  ;;  %v511_v46 = vsel %vm509_vm4, %v491_v15, %v507_v41  ;;  %v515_v48 = vsel %vm509_vm4, %v507_v41, %v513_v35 }
  0x28   : > { %v512_v47 = vsel %vm510_vm5, %v492_v16, %v508_v45  ;;  %v516_v49 = vsel %vm510_vm5, %v508_v45, %v514_v42 }
  0x29   : > { %783 = vmatmul.mubr.msk.bf16.vlgmr.msra.gmra.mrb[0].mxu0 %vm373_vm3, %v730_v43  ;;  %795 = vmatmul.mubr.msk.bf16.vlgmr.msra.gmra.mrb[0].mxu1 %vm373_vm3, %v736_v44  ;;  %v742_v50 = vcombine.low %v511_v46, %v512_v47  ;;  %v745_v51 = vcombine.low %v515_v48, %v516_v49 }
  0x2a   : > { %799 = vmatpush3.bf16.msra.mxu0 %v829_v39  ;;  %805 = vmatpush3.bf16.msra.mxu1 %v830_v40 }
  0x2b   : > { %800 = vmatprep.mubr.msk.bf16.mxu0 %vm848_vm0, %v847_v1  ;;  %806 = vmatprep.mubr.msk.bf16.mxu1 %vm848_vm0, %v847_v1 }
  0x31   : > { %801 = vmatmul.mubr.msk.bf16.vlgmr.msra.gmra.mrb[4].mxu0 %vm528_vm6, %v742_v50  ;;  %807 = vmatmul.mubr.msk.bf16.vlgmr.msra.gmra.mrb[4].mxu1 %vm528_vm6, %v745_v51 }
  0xfc   : > { %v411_v52 = vpop.f32.mrb[0].mxu0  ;;  %v484_v53 = vpop.f32.mrb[0].mxu1 }
  0xfd   : > { %v485_v54 = vadd.f32 %v484_v53, %v411_v52  ;;  %v784_v55 = vpop.f32.mrb[1].mxu0  ;;  %v796_v56 = vpop.f32.mrb[1].mxu1 }
  0xfe   : > { %v414_v57 = vpop.f32.mrb[2].mxu0  ;;  %v487_v58 = vpop.f32.mrb[2].mxu1 }
  0xff   : > { %v488_v59 = vadd.f32 %v487_v58, %v414_v57  ;;  %v785_v60 = vpop.f32.mrb[3].mxu0  ;;  %v797_v61 = vpop.f32.mrb[3].mxu1 }
 0x104   : > { %v566_v62 = vpop.f32.mrb[4].mxu0  ;;  %v623_v63 = vpop.f32.mrb[4].mxu1 }
 0x105   : > { %v573_v0 = vadd.f32 %v566_v62, %v485_v54  ;;  %v802_v1 = vpop.f32.mrb[5].mxu0  ;;  %v808_v2 = vpop.f32.mrb[5].mxu1 }
 0x106   : > { %v569_v3 = vpop.f32.mrb[6].mxu0  ;;  %v626_v4 = vpop.f32.mrb[6].mxu1 }
 0x107   : > { %v630_v5 = vadd.f32 %v623_v63, %v573_v0  ;;  %v574_v6 = vadd.f32 %v569_v3, %v488_v59  ;;  %v803_v7 = vpop.f32.mrb[7].mxu0  ;;  %v809_v8 = vpop.f32.mrb[7].mxu1 }
 0x109   : > { %v631_v10 = vadd.f32 %v626_v4, %v574_v6  ;;  %v639_v11 = vadd.f32 %v748_v9, %v630_v5 }
 0x10b   : > { %v640_v12 = vadd.f32 %v748_v9, %v631_v10 }
 0x10d   : > { %v758_v13 = vpack.c.bf16 %v640_v12, %v639_v11 }
 0x10f   : > { %759 = vst [vmem:[%s302_s13] sm:$0xff] %v758_v13  }
 0x110 PF: > { %s17_s24 = sadd.s32 1, %s845_s24  }
 0x111   : > { %p14_p4 = scmp.ge.s32.totalorder %s17_s24, 4  }
 0x113   :  { %16 = sbr.rel (!%p14_p4) target bundleno = 1 (0x1), region = 81 }

// kernel: pixelcnn_forward.56
= control target key start
LH: loop header
LB: loop body
LE: loop exit
PB: predicated region body
PF: predicated region fallthrough
CT: control target
= control target key end

     0   :  { %s999_s27 = smov 0   ;;  %s1106_s0 = inlined_call_operand.vmem [shape: bf16[32,64], index: 0, kind: input, shape index: {}]   ;;  %s1107_s1 = inlined_call_operand.vmem [shape: bf16[64,128], index: 1, kind: input, shape index: {}]   ;;  %s1108_s2 = inlined_call_operand.vmem [shape: bf16[64,128], index: 2, kind: input, shape index: {}]   ;;  %s1109_s3 = inlined_call_operand.vmem [shape: bf16[64,128], index: 3, kind: input, shape index: {}]   ;;  %s1110_s4 = inlined_call_operand.vmem [shape: bf16[64,128], index: 4, kind: input, shape index: {}]   ;;  %s1111_s5 = inlined_call_operand.vmem [shape: f32[1,128], index: 5, kind: input, shape index: {}, may-alias: {5,6}]   ;;  %s1112_s6 = inlined_call_operand.vmem [shape: f32[1,128], index: 6, kind: input, shape index: {}, may-alias: {5,6}]   ;;  %s1113_s7 = inlined_call_operand.vmem [shape: bf16[32,128], index: 7, kind: input, shape index: {}]   ;;  %s1114_s8 = inlined_call_operand.vmem [shape: bf16[32,128], index: 8, kind: output, shape index: {}]  }
   0x1 LB: > { %s786_s28 = sadd.s32 4294967295, %s949_s27   ;;  %p790_p0 = scmp.ge.s32.totalorder %s949_s27, 1  ;;  %s949_s27 = sphi %s999_s27, %s18_s27  }
   0x2   : > { %p274_p1 = scmp.lt.s32.totalorder %s949_s27, 3 }
   0x4   : > { %p275_p2 = pnand %p790_p0, %p274_p1 }
   0x5   : > { %v915_v0 = vld [vmem:[%s1108_s2] sm:$0xff] (!%p275_p2)   ;;  %v951_v1 = vmov (!%p275_p2), 0.0   ;;  %v917_v3 = vld [vmem:[%s1108_s2 + $0x8] sm:$0xff] (!%p275_p2)   ;;  %vm952_vm0 = vmmov (!%p275_p2), 0   ;;  %s791_s13 = sshll.u32 (!%p275_p2), %s786_s28, 1  ;;  %v919_v5 = vld [vmem:[%s1108_s2 + $0x10] sm:$0xff] (!%p275_p2)  }
   0x6   : > { %278 = sbr.rel (%p275_p2) target bundleno = 314 (0x13a), region = 52  ;;  %856 = vmatprep.subr.bf16.mxu0 (!%p275_p2), %v951_v1  ;;  %868 = vmatprep.subr.bf16.mxu1 (!%p275_p2), %v951_v1  ;;  %v916_v2 = vld [vmem:[%s1107_s1] sm:$0xff] (!%p275_p2)   ;;  %v918_v4 = vld [vmem:[%s1107_s1 + $0x8] sm:$0xff] (!%p275_p2)   ;;  %p314_p3 = scmp.lt.s32.totalorder (!%p275_p2), %s791_s13, 3  ;;  %v920_v6 = vld [vmem:[%s1107_s1 + $0x10] sm:$0xff] (!%p275_p2)   ;;  %vm420_vm3 = vcmask (!%p275_p2), 523264  }
   0x7   : > { %857 = vmatpush3.bf16.msra.mxu0 (!%p275_p2), %v915_v0  ;;  %864 = vmatprep.mubr.msk.bf16.mxu0 (!%p275_p2), %vm952_vm0, %v951_v1  ;;  %v921_v9 = vld [vmem:[%s1108_s2 + $0x18] sm:$0xff] (!%p275_p2)   ;;  %v953_v21 = vmov (!%p275_p2), 1065369472   ;;  %v923_v28 = vld [vmem:[%s1110_s4] sm:$0xff] (!%p275_p2)   ;;  %v925_v32 = vld [vmem:[%s1110_s4 + $0x8] sm:$0xff] (!%p275_p2)  }
   0x8   : > { %869 = vmatpush3.bf16.msra.mxu1 (!%p275_p2), %v916_v2  ;;  %858 = vmatprep.subr.bf16.mxu0 (!%p275_p2), %v951_v1  ;;  %v922_v12 = vld [vmem:[%s1107_s1 + $0x18] sm:$0xff] (!%p275_p2)   ;;  %v924_v29 = vld [vmem:[%s1109_s3] sm:$0xff] (!%p275_p2)   ;;  %v926_v33 = vld [vmem:[%s1109_s3 + $0x8] sm:$0xff] (!%p275_p2)  }
   0x9   : > { %870 = vmatprep.subr.bf16.mxu1 (!%p275_p2), %v951_v1  ;;  %876 = vmatprep.mubr.msk.bf16.mxu1 (!%p275_p2), %vm952_vm0, %v951_v1  ;;  %v927_v34 = vld [vmem:[%s1110_s4 + $0x10] sm:$0xff] (!%p275_p2)   ;;  %v929_v36 = vld [vmem:[%s1110_s4 + $0x18] sm:$0xff] (!%p275_p2)   ;;  %v820_v49 = vld [vmem:[%s1112_s6] ss:$0 sm:$0xff] (!%p275_p2) }
   0xa   : > { %v928_v35 = vld [vmem:[%s1109_s3 + $0x10] sm:$0xff] (!%p275_p2)   ;;  %v930_v37 = vld [vmem:[%s1109_s3 + $0x18] sm:$0xff] (!%p275_p2)  }
   0xb   : > { %859 = vmatpush3.bf16.msra.mxu0 (!%p275_p2), %v917_v3 }
   0xc   : > { %871 = vmatpush3.bf16.msra.mxu1 (!%p275_p2), %v918_v4  ;;  %860 = vmatprep.subr.bf16.mxu0 (!%p275_p2), %v951_v1 }
   0xd   : > { %s1116_s13 = smov (!%p314_p3, %s791_s13), 3  ;;  %872 = vmatprep.subr.bf16.mxu1 %v951_v1 }
   0xe   : > { %s1034_s20 = sshll.u32 %s1116_s13, 2 }
   0xf   : > { %s317_s23 = scalar_lea.vmem %s1106_s0, %s1034_s20  ;;  %861 = vmatpush3.bf16.msra.mxu0 %v919_v5  ;;  %s323_s29 = scalar_lea.vmem %s1113_s7, %s1034_s20 }
  0x10   : > { %v333_v7 = vld [vmem:[%s317_s23] sm:$0xf]  ;;  %v334_v8 = vld [vmem:[%s317_s23 + $0x4] sm:$0xf]  ;;  %873 = vmatpush3.bf16.msra.mxu1 %v920_v6  ;;  %862 = vmatprep.subr.bf16.mxu0 %v951_v1  ;;  %s329_s12 = scalar_lea.vmem %s1114_s8, %s1034_s20 }
  0x11   : > { %v335_v10 = vand.u32 2147450879, %v333_v7  ;;  %v336_v11 = vand.u32 2147450879, %v334_v8  ;;  %874 = vmatprep.subr.bf16.mxu1 %v951_v1  ;;  %v351_v17 = vsub.bf16 0, %v333_v7  ;;  %vm347_vm1 = vcmp.gt.bf16.partialorder %v333_v7, 0 }
  0x12   : > { %v352_v19 = vsub.bf16 0, %v334_v8  ;;  %vm348_vm2 = vcmp.gt.bf16.partialorder %v334_v8, 0 }
  0x13   : > { %v337_v13 = vsub.bf16 0, %v335_v10  ;;  %v338_v14 = vsub.bf16 0, %v336_v11  ;;  %863 = vmatpush3.bf16.msra.mxu0 %v921_v9 }
  0x14   : > { %875 = vmatpush3.bf16.msra.mxu1 %v922_v12  ;;  %880 = vmatprep.subr.bf16.mxu0 %v951_v1 }
  0x15   : > { %v340_v15 = vmul.bf16 1069105081, %v337_v13  ;;  %v343_v16 = vmul.bf16 1069105081, %v338_v14  ;;  %892 = vmatprep.subr.bf16.mxu1 %v951_v1 }
  0x17   : > { %931 = vpow.bf16 %v340_v15 }
  0x18   : > { %933 = vpow.bf16 %v343_v16 }
  0x22   : > { %v932_v18 = vpop.eup %931 }
  0x23   : > { %v934_v20 = vpop.eup %933  ;;  %v345_v22 = vsub.bf16 %v932_v18, %v953_v21 }
  0x24   : > { %v346_v23 = vsub.bf16 %v934_v20, %v953_v21 }
  0x25   : > { %v353_v24 = vsel %vm347_vm1, %v345_v22, %v351_v17  ;;  %v349_v25 = vsel %vm347_vm1, %v333_v7, %v345_v22  ;;  %v809_v7 = vld [vmem:[%s1111_s5] ss:$0 sm:$0xff] }
  0x26   : > { %v354_v26 = vsel %vm348_vm2, %v346_v23, %v352_v19  ;;  %v350_v27 = vsel %vm348_vm2, %v334_v8, %v346_v23  ;;  %v828_v8 = vld [vmem:[%s323_s29] sm:$0xff]  }
  0x27   : > { %v797_v30 = vcombine.low %v353_v24, %v354_v26  ;;  %v803_v31 = vcombine.low %v349_v25, %v350_v27  ;;  %v829_v14 = vunpack.c.l.bf16 %v828_v8  ;;  %v830_v18 = vunpack.c.h.bf16 %v828_v8 }
  0x29   : > { %865 = vmatmul.mubr.msk.bf16.vlgmr.msra.gmra.mrb[0].mxu0 %vm420_vm3, %v797_v30  ;;  %877 = vmatmul.mubr.msk.bf16.vlgmr.msra.gmra.mrb[0].mxu1 %vm420_vm3, %v803_v31 }
  0x2a   : > { %881 = vmatpush3.bf16.msra.mxu0 %v923_v28  ;;  %893 = vmatpush3.bf16.msra.mxu1 %v924_v29 }
  0x2b   : > { %882 = vmatprep.subr.bf16.mxu0 %v951_v1  ;;  %894 = vmatprep.subr.bf16.mxu1 %v951_v1 }
  0x2c   : > { %888 = vmatprep.mubr.msk.bf16.mxu0 %vm952_vm0, %v951_v1  ;;  %900 = vmatprep.mubr.msk.bf16.mxu1 %vm952_vm0, %v951_v1 }
  0x2e   : > { %883 = vmatpush3.bf16.msra.mxu0 %v925_v32  ;;  %895 = vmatpush3.bf16.msra.mxu1 %v926_v33 }
  0x2f   : > { %884 = vmatprep.subr.bf16.mxu0 %v951_v1  ;;  %896 = vmatprep.subr.bf16.mxu1 %v951_v1 }
  0x32   : > { %885 = vmatpush3.bf16.msra.mxu0 %v927_v34  ;;  %897 = vmatpush3.bf16.msra.mxu1 %v928_v35 }
  0x33   : > { %886 = vmatprep.subr.bf16.mxu0 %v951_v1  ;;  %898 = vmatprep.subr.bf16.mxu1 %v951_v1 }
  0x36   : > { %887 = vmatpush3.bf16.msra.mxu0 %v929_v36  ;;  %899 = vmatpush3.bf16.msra.mxu1 %v930_v37 }
  0x39   : > { %889 = vmatmul.mubr.msk.bf16.vlgmr.msra.gmra.mrb[4].mxu0 %vm420_vm3, %v797_v30  ;;  %901 = vmatmul.mubr.msk.bf16.vlgmr.msra.gmra.mrb[4].mxu1 %vm420_vm3, %v803_v31 }
  0xfc   : > { %v458_v38 = vpop.f32.mrb[0].mxu0  ;;  %v531_v39 = vpop.f32.mrb[0].mxu1 }
  0xfd   : > { %v532_v40 = vadd.f32 %v531_v39, %v458_v38  ;;  %v866_v41 = vpop.f32.mrb[1].mxu0  ;;  %v878_v42 = vpop.f32.mrb[1].mxu1 }
  0xfe   : > { %v461_v43 = vpop.f32.mrb[2].mxu0  ;;  %v534_v44 = vpop.f32.mrb[2].mxu1 }
  0xff   : > { %v535_v45 = vadd.f32 %v534_v44, %v461_v43  ;;  %v867_v46 = vpop.f32.mrb[3].mxu0  ;;  %v879_v47 = vpop.f32.mrb[3].mxu1  ;;  %v544_v11 = vadd.f32 %v809_v7, %v532_v40 }
 0x101   : > { %v545_v16 = vadd.f32 %v809_v7, %v535_v45 }
 0x10c   : > { %v604_v48 = vpop.f32.mrb[4].mxu0  ;;  %v669_v50 = vpop.f32.mrb[4].mxu1 }
 0x10d   : > { %v670_v51 = vadd.f32 %v669_v50, %v604_v48  ;;  %v890_v52 = vpop.f32.mrb[5].mxu0  ;;  %v902_v53 = vpop.f32.mrb[5].mxu1 }
 0x10e   : > { %v607_v54 = vpop.f32.mrb[6].mxu0  ;;  %v672_v55 = vpop.f32.mrb[6].mxu1 }
 0x10f   : > { %v682_v56 = vadd.f32 %v820_v49, %v670_v51  ;;  %v673_v57 = vadd.f32 %v672_v55, %v607_v54  ;;  %v891_v58 = vpop.f32.mrb[7].mxu0  ;;  %v903_v59 = vpop.f32.mrb[7].mxu1 }
 0x111   : > { %v686_v60 = vand.u32 2147483647, %v682_v56  ;;  %v683_v61 = vadd.f32 %v820_v49, %v673_v57  ;;  %vm694_vm4 = vcmp.ge.f32.partialorder %v682_v56, 0.0 }
 0x113   : > { %v688_v62 = vsub.f32 0.0, %v686_v60  ;;  %v687_v63 = vand.u32 2147483647, %v683_v61  ;;  %vm695_vm5 = vcmp.ge.f32.partialorder %v683_v61, 0.0 }
 0x115   : > { %v690_v0 = vmul.f32 1.442695, %v688_v62  ;;  %v689_v1 = vsub.f32 0.0, %v687_v63 }
 0x117   : > { %935 = vpow2.f32 %v690_v0  ;;  %v692_v2 = vmul.f32 1.442695, %v689_v1 }
 0x119   : > { %937 = vpow2.f32 %v692_v2 }
 0x121   : > { %v936_v3 = vpop.eup %935 }
 0x122   : > { %v698_v4 = vadd.f32 1.0, %v936_v3  ;;  %v696_v10 = vsel %vm694_vm4, 1.0, %v936_v3 }
 0x123   : > { %v938_v5 = vpop.eup %937 }
 0x124   : > { %939 = vrcp.f32 %v698_v4  ;;  %v699_v6 = vadd.f32 1.0, %v938_v5  ;;  %v697_v15 = vsel %vm695_vm5, 1.0, %v938_v5 }
 0x126   : > { %941 = vrcp.f32 %v699_v6 }
 0x12e   : > { %v940_v9 = vpop.eup %939 }
 0x12f   : > { %v702_v12 = vmul.f32 %v940_v9, %v696_v10 }
 0x130   : > { %v942_v13 = vpop.eup %941 }
 0x131   : > { %v704_v17 = vmul.f32 %v702_v12, %v544_v11  ;;  %v703_v19 = vmul.f32 %v942_v13, %v697_v15 }
 0x133   : > { %v705_v20 = vmul.f32 %v703_v19, %v545_v16  ;;  %v706_v21 = vadd.f32 %v829_v14, %v704_v17 }
 0x135   : > { %v707_v22 = vadd.f32 %v830_v18, %v705_v20 }
 0x137   : > { %v834_v23 = vpack.c.bf16 %v707_v22, %v706_v21 }
 0x139   : > { %835 = vst [vmem:[%s329_s12] sm:$0xff] %v834_v23  }
 0x13a PF: > { %s18_s27 = sadd.s32 1, %s949_s27  }
 0x13b   : > { %p15_p4 = scmp.ge.s32.totalorder %s18_s27, 4  }
 0x13d   :  { %17 = sbr.rel (!%p15_p4) target bundleno = 1 (0x1), region = 85 }

// kernel: pixelcnn_forward.58
= control target key start
LH: loop header
LB: loop body
LE: loop exit
PB: predicated region body
PF: predicated region fallthrough
CT: control target
= control target key end

     0   :  { %v134_v0 = vmov 0.0   ;;  %vm135_vm0 = vmmov 0   ;;  %vm55_vm1 = vcmask 523264   ;;  %s177_s1 = inlined_call_operand.vmem [shape: bf16[64,128], index: 1, kind: input, shape index: {}]   ;;  %s178_s0 = inlined_call_operand.vmem [shape: bf16[8,64], index: 0, kind: input, shape index: {}]   ;;  %s179_s2 = inlined_call_operand.vmem [shape: f32[1,128], index: 2, kind: input, shape index: {}]   ;;  %s180_s3 = inlined_call_operand.vmem [shape: bf16[8,128], index: 3, kind: output, shape index: {}]  }
   0x1   :  { %116 = vmatprep.subr.bf16.mxu0 %v134_v0  ;;  %v130_v1 = vld [vmem:[%s177_s1] sm:$0xff]   ;;  %124 = vmatprep.mubr.msk.bf16.mxu0 %vm135_vm0, %v134_v0  ;;  %v131_v2 = vld [vmem:[%s177_s1 + $0x8] sm:$0xff]   ;;  %v132_v3 = vld [vmem:[%s177_s1 + $0x10] sm:$0xff]  }
   0x2   :  { %117 = vmatpush3.bf16.msra.mxu0 %v130_v1  ;;  %v133_v4 = vld [vmem:[%s177_s1 + $0x18] sm:$0xff]   ;;  %v15_v5 = vld [vmem:[%s178_s0] sm:$0xf] }
   0x3   :  { %118 = vmatprep.subr.bf16.mxu0 %v134_v0  ;;  %v105_v6 = vld [vmem:[%s179_s2] ss:$0 sm:$0xff] }
   0x6   :  { %119 = vmatpush3.bf16.msra.mxu0 %v131_v2 }
   0x7   :  { %120 = vmatprep.subr.bf16.mxu0 %v134_v0 }
   0xa   :  { %121 = vmatpush3.bf16.msra.mxu0 %v132_v3 }
   0xb   :  { %122 = vmatprep.subr.bf16.mxu0 %v134_v0 }
   0xe   :  { %123 = vmatpush3.bf16.msra.mxu0 %v133_v4 }
  0x11   :  { %125 = vmatmul.mubr.msk.bf16.vlgmr.msra.gmra.mrb[0].mxu0 %vm55_vm1, %v15_v5 }
  0xe4   :  { %v93_v7 = vpop.f32.mrb[0].mxu0 }
  0xe5   :  { %v94_v8 = vadd.f32 %v105_v6, %v93_v7  ;;  %v126_v9 = vpop.f32.mrb[1].mxu0 }
  0xe6   :  { %v96_v10 = vpop.f32.mrb[2].mxu0 }
  0xe7   :  { %v99_v11 = vpack.c.bf16 %v94_v8, %v94_v8  ;;  %v127_v12 = vpop.f32.mrb[3].mxu0 }
  0xe9   :  { %100 = vst [vmem:[%s180_s3] sm:$0xf] %v99_v11 }

// kernel: pixelcnn_forward.62
= control target key start
LH: loop header
LB: loop body
LE: loop exit
PB: predicated region body
PF: predicated region fallthrough
CT: control target
= control target key end

     0   :  { %v487_v0 = vmov 0.0   ;;  %vm488_vm0 = vmmov 0   ;;  %v489_v15 = vmov 1065369472   ;;  %vm101_vm2 = vcmask 523264   ;;  %s626_s2 = inlined_call_operand.vmem [shape: bf16[64,128], index: 2, kind: input, shape index: {}]   ;;  %s627_s1 = inlined_call_operand.vmem [shape: bf16[64,128], index: 1, kind: input, shape index: {}]   ;;  %s628_s0 = inlined_call_operand.vmem [shape: bf16[8,64], index: 0, kind: input, shape index: {}]   ;;  %s629_s4 = inlined_call_operand.vmem [shape: bf16[64,128], index: 4, kind: input, shape index: {}]   ;;  %s630_s3 = inlined_call_operand.vmem [shape: bf16[64,128], index: 3, kind: input, shape index: {}]   ;;  %s631_s6 = inlined_call_operand.vmem [shape: f32[1,128], index: 6, kind: input, shape index: {}, may-alias: {5,6}]   ;;  %s632_s5 = inlined_call_operand.vmem [shape: f32[1,128], index: 5, kind: input, shape index: {}, may-alias: {5,6}]   ;;  %s633_s7 = inlined_call_operand.vmem [shape: bf16[8,128], index: 7, kind: input, shape index: {}]   ;;  %s634_s8 = inlined_call_operand.vmem [shape: bf16[8,128], index: 8, kind: output, shape index: {}]  }
   0x1   :  { %414 = vmatprep.subr.bf16.mxu0 %v487_v0  ;;  %426 = vmatprep.subr.bf16.mxu1 %v487_v0  ;;  %v465_v1 = vld [vmem:[%s626_s2] sm:$0xff]   ;;  %v467_v3 = vld [vmem:[%s626_s2 + $0x8] sm:$0xff]   ;;  %v469_v5 = vld [vmem:[%s626_s2 + $0x10] sm:$0xff]  }
   0x2   :  { %v466_v2 = vld [vmem:[%s627_s1] sm:$0xff]   ;;  %422 = vmatprep.mubr.msk.bf16.mxu0 %vm488_vm0, %v487_v0  ;;  %434 = vmatprep.mubr.msk.bf16.mxu1 %vm488_vm0, %v487_v0  ;;  %v468_v4 = vld [vmem:[%s627_s1 + $0x8] sm:$0xff]   ;;  %v470_v6 = vld [vmem:[%s627_s1 + $0x10] sm:$0xff]  }
   0x3   :  { %415 = vmatpush3.bf16.msra.mxu0 %v465_v1  ;;  %427 = vmatpush3.bf16.msra.mxu1 %v466_v2  ;;  %v31_v7 = vld [vmem:[%s628_s0] sm:$0xf]  ;;  %v471_v8 = vld [vmem:[%s626_s2 + $0x18] sm:$0xff]   ;;  %v475_v21 = vld [vmem:[%s629_s4 + $0x8] sm:$0xff]  }
   0x4   :  { %416 = vmatprep.subr.bf16.mxu0 %v487_v0  ;;  %428 = vmatprep.subr.bf16.mxu1 %v487_v0  ;;  %v32_v9 = vand.u32 2147450879, %v31_v7  ;;  %v472_v10 = vld [vmem:[%s627_s1 + $0x18] sm:$0xff]   ;;  %v40_v13 = vsub.bf16 0, %v31_v7  ;;  %vm38_vm1 = vcmp.gt.bf16.partialorder %v31_v7, 0  ;;  %v473_v17 = vld [vmem:[%s629_s4] sm:$0xff]  }
   0x5   :  { %v474_v18 = vld [vmem:[%s630_s3] sm:$0xff]   ;;  %v476_v22 = vld [vmem:[%s630_s3 + $0x8] sm:$0xff]   ;;  %v477_v23 = vld [vmem:[%s629_s4 + $0x10] sm:$0xff]  }
   0x6   :  { %v33_v11 = vsub.bf16 0, %v32_v9  ;;  %v478_v24 = vld [vmem:[%s630_s3 + $0x10] sm:$0xff]   ;;  %v479_v25 = vld [vmem:[%s629_s4 + $0x18] sm:$0xff]   ;;  %v393_v37 = vld [vmem:[%s631_s6] ss:$0 sm:$0xff] }
   0x7   :  { %417 = vmatpush3.bf16.msra.mxu0 %v467_v3  ;;  %429 = vmatpush3.bf16.msra.mxu1 %v468_v4  ;;  %v480_v26 = vld [vmem:[%s630_s3 + $0x18] sm:$0xff]   ;;  %v382_v52 = vld [vmem:[%s632_s5] ss:$0 sm:$0xff] }
   0x8   :  { %418 = vmatprep.subr.bf16.mxu0 %v487_v0  ;;  %430 = vmatprep.subr.bf16.mxu1 %v487_v0  ;;  %v35_v12 = vmul.bf16 1069105081, %v33_v11  ;;  %v76_v53 = vld [vmem:[%s633_s7] sm:$0xf] }
   0x9   :  { %v354_v57 = vunpack.c.l.bf16 %v76_v53 }
   0xa   :  { %481 = vpow.bf16 %v35_v12 }
   0xb   :  { %419 = vmatpush3.bf16.msra.mxu0 %v469_v5  ;;  %431 = vmatpush3.bf16.msra.mxu1 %v470_v6 }
   0xc   :  { %420 = vmatprep.subr.bf16.mxu0 %v487_v0  ;;  %432 = vmatprep.subr.bf16.mxu1 %v487_v0 }
   0xf   :  { %421 = vmatpush3.bf16.msra.mxu0 %v471_v8  ;;  %433 = vmatpush3.bf16.msra.mxu1 %v472_v10 }
  0x10   :  { %438 = vmatprep.subr.bf16.mxu0 %v487_v0  ;;  %450 = vmatprep.subr.bf16.mxu1 %v487_v0 }
  0x15   :  { %v482_v14 = vpop.eup %481 }
  0x16   :  { %v37_v16 = vsub.bf16 %v482_v14, %v489_v15 }
  0x18   :  { %v41_v19 = vsel %vm38_vm1, %v37_v16, %v40_v13  ;;  %v39_v20 = vsel %vm38_vm1, %v31_v7, %v37_v16 }
  0x19   :  { %423 = vmatmul.mubr.msk.bf16.vlgmr.msra.gmra.mrb[0].mxu0 %vm101_vm2, %v41_v19  ;;  %435 = vmatmul.mubr.msk.bf16.vlgmr.msra.gmra.mrb[0].mxu1 %vm101_vm2, %v39_v20 }
  0x1a   :  { %439 = vmatpush3.bf16.msra.mxu0 %v473_v17  ;;  %451 = vmatpush3.bf16.msra.mxu1 %v474_v18 }
  0x1b   :  { %440 = vmatprep.subr.bf16.mxu0 %v487_v0  ;;  %452 = vmatprep.subr.bf16.mxu1 %v487_v0 }
  0x1c   :  { %446 = vmatprep.mubr.msk.bf16.mxu0 %vm488_vm0, %v487_v0  ;;  %458 = vmatprep.mubr.msk.bf16.mxu1 %vm488_vm0, %v487_v0 }
  0x1e   :  { %441 = vmatpush3.bf16.msra.mxu0 %v475_v21  ;;  %453 = vmatpush3.bf16.msra.mxu1 %v476_v22 }
  0x1f   :  { %442 = vmatprep.subr.bf16.mxu0 %v487_v0  ;;  %454 = vmatprep.subr.bf16.mxu1 %v487_v0 }
  0x22   :  { %443 = vmatpush3.bf16.msra.mxu0 %v477_v23  ;;  %455 = vmatpush3.bf16.msra.mxu1 %v478_v24 }
  0x23   :  { %444 = vmatprep.subr.bf16.mxu0 %v487_v0  ;;  %456 = vmatprep.subr.bf16.mxu1 %v487_v0 }
  0x26   :  { %445 = vmatpush3.bf16.msra.mxu0 %v479_v25  ;;  %457 = vmatpush3.bf16.msra.mxu1 %v480_v26 }
  0x29   :  { %447 = vmatmul.mubr.msk.bf16.vlgmr.msra.gmra.mrb[4].mxu0 %vm101_vm2, %v41_v19  ;;  %459 = vmatmul.mubr.msk.bf16.vlgmr.msra.gmra.mrb[4].mxu1 %vm101_vm2, %v39_v20 }
  0xec   :  { %v139_v27 = vpop.f32.mrb[0].mxu0  ;;  %v206_v28 = vpop.f32.mrb[0].mxu1 }
  0xed   :  { %v207_v29 = vadd.f32 %v206_v28, %v139_v27  ;;  %v424_v30 = vpop.f32.mrb[1].mxu0  ;;  %v436_v31 = vpop.f32.mrb[1].mxu1 }
  0xee   :  { %v142_v32 = vpop.f32.mrb[2].mxu0  ;;  %v209_v33 = vpop.f32.mrb[2].mxu1 }
  0xef   :  { %v425_v34 = vpop.f32.mrb[3].mxu0  ;;  %v437_v35 = vpop.f32.mrb[3].mxu1  ;;  %v218_v56 = vadd.f32 %v382_v52, %v207_v29 }
  0xfc   :  { %v277_v36 = vpop.f32.mrb[4].mxu0  ;;  %v341_v38 = vpop.f32.mrb[4].mxu1 }
  0xfd   :  { %v342_v39 = vadd.f32 %v341_v38, %v277_v36  ;;  %v448_v40 = vpop.f32.mrb[5].mxu0  ;;  %v460_v41 = vpop.f32.mrb[5].mxu1 }
  0xfe   :  { %v280_v42 = vpop.f32.mrb[6].mxu0  ;;  %v344_v43 = vpop.f32.mrb[6].mxu1 }
  0xff   :  { %v353_v44 = vadd.f32 %v393_v37, %v342_v39  ;;  %v449_v45 = vpop.f32.mrb[7].mxu0  ;;  %v461_v46 = vpop.f32.mrb[7].mxu1 }
 0x101   :  { %v355_v47 = vand.u32 2147483647, %v353_v44  ;;  %vm359_vm3 = vcmp.ge.f32.partialorder %v353_v44, 0.0 }
 0x103   :  { %v356_v48 = vsub.f32 0.0, %v355_v47 }
 0x105   :  { %v357_v49 = vmul.f32 1.442695, %v356_v48 }
 0x107   :  { %483 = vpow2.f32 %v357_v49 }
 0x111   :  { %v484_v50 = vpop.eup %483 }
 0x112   :  { %v361_v51 = vadd.f32 1.0, %v484_v50  ;;  %v360_v55 = vsel %vm359_vm3, 1.0, %v484_v50 }
 0x114   :  { %485 = vrcp.f32 %v361_v51 }
 0x11e   :  { %v486_v54 = vpop.eup %485 }
 0x11f   :  { %v363_v58 = vmul.f32 %v486_v54, %v360_v55 }
 0x121   :  { %v364_v59 = vmul.f32 %v363_v58, %v218_v56 }
 0x123   :  { %v365_v60 = vadd.f32 %v364_v59, %v354_v57 }
 0x125   :  { %v366_v61 = vpack.c.bf16 %v365_v60, %v365_v60 }
 0x127   :  { %367 = vst [vmem:[%s634_s8] sm:$0xf] %v366_v61 }

// kernel: pixelcnn_forward.61
= control target key start
LH: loop header
LB: loop body
LE: loop exit
PB: predicated region body
PF: predicated region fallthrough
CT: control target
= control target key end

     0   :  { %v402_v0 = vmov 0.0   ;;  %vm403_vm0 = vmmov 0   ;;  %v404_v19 = vmov 1065369472   ;;  %vm79_vm2 = vcmask 523264   ;;  %s491_s2 = inlined_call_operand.vmem [shape: bf16[64,128], index: 2, kind: input, shape index: {}]   ;;  %s492_s1 = inlined_call_operand.vmem [shape: bf16[64,128], index: 1, kind: input, shape index: {}]   ;;  %s493_s0 = inlined_call_operand.vmem [shape: bf16[8,64], index: 0, kind: input, shape index: {}]   ;;  %s494_s4 = inlined_call_operand.vmem [shape: bf16[16,128], index: 4, kind: input, shape index: {}]   ;;  %s495_s3 = inlined_call_operand.vmem [shape: bf16[8,16], index: 3, kind: input, shape index: {}]   ;;  %s496_s5 = inlined_call_operand.vmem [shape: bf16[16,128], index: 5, kind: input, shape index: {}]   ;;  %s497_s6 = inlined_call_operand.vmem [shape: f32[1,128], index: 6, kind: input, shape index: {}]   ;;  %s498_s7 = inlined_call_operand.vmem [shape: bf16[8,128], index: 7, kind: output, shape index: {}]  }
   0x1   :  { %349 = vmatprep.subr.bf16.mxu0 %v402_v0  ;;  %v388_v1 = vld [vmem:[%s491_s2] sm:$0xff]   ;;  %361 = vmatprep.subr.bf16.mxu1 %v402_v0  ;;  %v390_v3 = vld [vmem:[%s491_s2 + $0x8] sm:$0xff]   ;;  %v392_v5 = vld [vmem:[%s491_s2 + $0x10] sm:$0xff]   ;;  %vm211_vm4 = vcmask 130048  }
   0x2   :  { %v389_v2 = vld [vmem:[%s492_s1] sm:$0xff]   ;;  %357 = vmatprep.mubr.msk.bf16.mxu0 %vm403_vm0, %v402_v0  ;;  %369 = vmatprep.mubr.msk.bf16.mxu1 %vm403_vm0, %v402_v0  ;;  %v391_v4 = vld [vmem:[%s492_s1 + $0x8] sm:$0xff]   ;;  %v393_v6 = vld [vmem:[%s492_s1 + $0x10] sm:$0xff]  }
   0x3   :  { %350 = vmatpush3.bf16.msra.mxu0 %v388_v1  ;;  %362 = vmatpush3.bf16.msra.mxu1 %v389_v2  ;;  %v28_v7 = vld [vmem:[%s493_s0] sm:$0xf]  ;;  %v394_v8 = vld [vmem:[%s491_s2 + $0x18] sm:$0xff]  }
   0x4   :  { %351 = vmatprep.subr.bf16.mxu0 %v402_v0  ;;  %363 = vmatprep.subr.bf16.mxu1 %v402_v0  ;;  %v29_v9 = vand.u32 2147450879, %v28_v7  ;;  %v190_v10 = vld [vmem:[%s495_s3] sm:$0xf]  ;;  %v395_v11 = vld [vmem:[%s492_s1 + $0x18] sm:$0xff]   ;;  %v37_v17 = vsub.bf16 0, %v28_v7 }
   0x5   :  { %v195_v13 = vand.u32 2147450879, %v190_v10  ;;  %vm35_vm1 = vcmp.gt.bf16.partialorder %v28_v7, 0  ;;  %v396_v21 = vld [vmem:[%s494_s4] sm:$0xff]   ;;  %v203_v27 = vsub.bf16 0, %v190_v10  ;;  %vm201_vm3 = vcmp.gt.bf16.partialorder %v190_v10, 0 }
   0x6   :  { %v30_v12 = vsub.bf16 0, %v29_v9  ;;  %v397_v22 = vld [vmem:[%s496_s5] sm:$0xff]  }
   0x7   :  { %352 = vmatpush3.bf16.msra.mxu0 %v390_v3  ;;  %364 = vmatpush3.bf16.msra.mxu1 %v391_v4  ;;  %v196_v15 = vsub.bf16 0, %v195_v13  ;;  %v334_v44 = vld [vmem:[%s497_s6] ss:$0 sm:$0xff] }
   0x8   :  { %353 = vmatprep.subr.bf16.mxu0 %v402_v0  ;;  %365 = vmatprep.subr.bf16.mxu1 %v402_v0  ;;  %v32_v14 = vmul.bf16 1069105081, %v30_v12 }
   0x9   :  { %v198_v16 = vmul.bf16 1069105081, %v196_v15 }
   0xa   :  { %398 = vpow.bf16 %v32_v14 }
   0xb   :  { %354 = vmatpush3.bf16.msra.mxu0 %v392_v5  ;;  %366 = vmatpush3.bf16.msra.mxu1 %v393_v6  ;;  %400 = vpow.bf16 %v198_v16 }
   0xc   :  { %355 = vmatprep.subr.bf16.mxu0 %v402_v0  ;;  %367 = vmatprep.subr.bf16.mxu1 %v402_v0 }
   0xf   :  { %356 = vmatpush3.bf16.msra.mxu0 %v394_v8  ;;  %368 = vmatpush3.bf16.msra.mxu1 %v395_v11 }
  0x10   :  { %373 = vmatprep.subr.bf16.mxu0 %v402_v0  ;;  %379 = vmatprep.subr.bf16.mxu1 %v402_v0 }
  0x15   :  { %v399_v18 = vpop.eup %398 }
  0x16   :  { %v34_v20 = vsub.bf16 %v399_v18, %v404_v19  ;;  %v401_v23 = vpop.eup %400 }
  0x17   :  { %v200_v26 = vsub.bf16 %v401_v23, %v404_v19 }
  0x18   :  { %v38_v24 = vsel %vm35_vm1, %v34_v20, %v37_v17  ;;  %v36_v25 = vsel %vm35_vm1, %v28_v7, %v34_v20 }
  0x19   :  { %358 = vmatmul.mubr.msk.bf16.vlgmr.msra.gmra.mrb[0].mxu0 %vm79_vm2, %v38_v24  ;;  %370 = vmatmul.mubr.msk.bf16.vlgmr.msra.gmra.mrb[0].mxu1 %vm79_vm2, %v36_v25  ;;  %v202_v28 = vsel %vm201_vm3, %v190_v10, %v200_v26  ;;  %v204_v29 = vsel %vm201_vm3, %v200_v26, %v203_v27 }
  0x1a   :  { %374 = vmatpush3.bf16.msra.mxu0 %v396_v21  ;;  %380 = vmatpush3.bf16.msra.mxu1 %v397_v22 }
  0x1b   :  { %375 = vmatprep.mubr.msk.bf16.mxu0 %vm403_vm0, %v402_v0  ;;  %381 = vmatprep.mubr.msk.bf16.mxu1 %vm403_vm0, %v402_v0 }
  0x21   :  { %376 = vmatmul.mubr.msk.bf16.vlgmr.msra.gmra.mrb[4].mxu0 %vm211_vm4, %v202_v28  ;;  %382 = vmatmul.mubr.msk.bf16.vlgmr.msra.gmra.mrb[4].mxu1 %vm211_vm4, %v204_v29 }
  0xec   :  { %v117_v30 = vpop.f32.mrb[0].mxu0  ;;  %v184_v31 = vpop.f32.mrb[0].mxu1 }
  0xed   :  { %v185_v32 = vadd.f32 %v184_v31, %v117_v30  ;;  %v359_v33 = vpop.f32.mrb[1].mxu0  ;;  %v371_v34 = vpop.f32.mrb[1].mxu1 }
  0xee   :  { %v120_v35 = vpop.f32.mrb[2].mxu0  ;;  %v187_v36 = vpop.f32.mrb[2].mxu1 }
  0xef   :  { %v360_v37 = vpop.f32.mrb[3].mxu0  ;;  %v372_v38 = vpop.f32.mrb[3].mxu1 }
  0xf4   :  { %v249_v39 = vpop.f32.mrb[4].mxu0  ;;  %v299_v40 = vpop.f32.mrb[4].mxu1 }
  0xf5   :  { %v255_v41 = vadd.f32 %v249_v39, %v185_v32  ;;  %v377_v42 = vpop.f32.mrb[5].mxu0  ;;  %v383_v43 = vpop.f32.mrb[5].mxu1 }
  0xf6   :  { %v252_v45 = vpop.f32.mrb[6].mxu0  ;;  %v302_v46 = vpop.f32.mrb[6].mxu1 }
  0xf7   :  { %v305_v47 = vadd.f32 %v299_v40, %v255_v41  ;;  %v378_v48 = vpop.f32.mrb[7].mxu0  ;;  %v384_v49 = vpop.f32.mrb[7].mxu1 }
  0xf9   :  { %v313_v50 = vadd.f32 %v334_v44, %v305_v47 }
  0xfb   :  { %v314_v51 = vpack.c.bf16 %v313_v50, %v313_v50 }
  0xfd   :  { %315 = vst [vmem:[%s498_s7] sm:$0xf] %v314_v51 }

// kernel: pixelcnn_forward.65
= control target key start
LH: loop header
LB: loop body
LE: loop exit
PB: predicated region body
PF: predicated region fallthrough
CT: control target
= control target key end

     0   :  { %v428_v0 = vmov 0.0   ;;  %vm429_vm0 = vmmov 0   ;;  %v430_v19 = vmov 1065369472   ;;  %vm79_vm2 = vcmask 523264   ;;  %s539_s2 = inlined_call_operand.vmem [shape: bf16[64,128], index: 2, kind: input, shape index: {}]   ;;  %s540_s1 = inlined_call_operand.vmem [shape: bf16[64,128], index: 1, kind: input, shape index: {}]   ;;  %s541_s0 = inlined_call_operand.vmem [shape: bf16[8,64], index: 0, kind: input, shape index: {}]   ;;  %s542_s4 = inlined_call_operand.vmem [shape: bf16[32,128], index: 4, kind: input, shape index: {}]   ;;  %s543_s5 = inlined_call_operand.vmem [shape: bf16[32,128], index: 5, kind: input, shape index: {}]   ;;  %s544_s3 = inlined_call_operand.vmem [shape: bf16[8,32], index: 3, kind: input, shape index: {}]   ;;  %s545_s6 = inlined_call_operand.vmem [shape: f32[1,128], index: 6, kind: input, shape index: {}]   ;;  %s546_s7 = inlined_call_operand.vmem [shape: bf16[8,128], index: 7, kind: output, shape index: {}]  }
   0x1   :  { %369 = vmatprep.subr.bf16.mxu0 %v428_v0  ;;  %v412_v1 = vld [vmem:[%s539_s2] sm:$0xff]   ;;  %381 = vmatprep.subr.bf16.mxu1 %v428_v0  ;;  %v414_v3 = vld [vmem:[%s539_s2 + $0x8] sm:$0xff]   ;;  %v416_v5 = vld [vmem:[%s539_s2 + $0x10] sm:$0xff]   ;;  %vm221_vm4 = vcmask 261120  }
   0x2   :  { %v413_v2 = vld [vmem:[%s540_s1] sm:$0xff]   ;;  %377 = vmatprep.mubr.msk.bf16.mxu0 %vm429_vm0, %v428_v0  ;;  %389 = vmatprep.mubr.msk.bf16.mxu1 %vm429_vm0, %v428_v0  ;;  %v415_v4 = vld [vmem:[%s540_s1 + $0x8] sm:$0xff]   ;;  %v417_v6 = vld [vmem:[%s540_s1 + $0x10] sm:$0xff]  }
   0x3   :  { %370 = vmatpush3.bf16.msra.mxu0 %v412_v1  ;;  %382 = vmatpush3.bf16.msra.mxu1 %v413_v2  ;;  %v28_v7 = vld [vmem:[%s541_s0] sm:$0xf]  ;;  %v418_v8 = vld [vmem:[%s539_s2 + $0x18] sm:$0xff]   ;;  %v422_v26 = vld [vmem:[%s542_s4 + $0x8] sm:$0xff]  }
   0x4   :  { %371 = vmatprep.subr.bf16.mxu0 %v428_v0  ;;  %383 = vmatprep.subr.bf16.mxu1 %v428_v0  ;;  %v29_v9 = vand.u32 2147450879, %v28_v7  ;;  %v419_v10 = vld [vmem:[%s540_s1 + $0x18] sm:$0xff]   ;;  %v190_v12 = vld [vmem:[%s544_s3] sm:$0xf]  ;;  %v37_v17 = vsub.bf16 0, %v28_v7 }
   0x5   :  { %v199_v14 = vand.u32 2147450879, %v190_v12  ;;  %vm35_vm1 = vcmp.gt.bf16.partialorder %v28_v7, 0  ;;  %v420_v21 = vld [vmem:[%s542_s4] sm:$0xff]   ;;  %v423_v27 = vld [vmem:[%s543_s5 + $0x8] sm:$0xff]   ;;  %v207_v29 = vsub.bf16 0, %v190_v12 }
   0x6   :  { %v30_v11 = vsub.bf16 0, %v29_v9  ;;  %v421_v22 = vld [vmem:[%s543_s5] sm:$0xff]   ;;  %vm205_vm3 = vcmp.gt.bf16.partialorder %v190_v12, 0 }
   0x7   :  { %372 = vmatpush3.bf16.msra.mxu0 %v414_v3  ;;  %384 = vmatpush3.bf16.msra.mxu1 %v415_v4  ;;  %v200_v15 = vsub.bf16 0, %v199_v14  ;;  %v352_v46 = vld [vmem:[%s545_s6] ss:$0 sm:$0xff] }
   0x8   :  { %373 = vmatprep.subr.bf16.mxu0 %v428_v0  ;;  %385 = vmatprep.subr.bf16.mxu1 %v428_v0  ;;  %v32_v13 = vmul.bf16 1069105081, %v30_v11 }
   0x9   :  { %v202_v16 = vmul.bf16 1069105081, %v200_v15 }
   0xa   :  { %424 = vpow.bf16 %v32_v13 }
   0xb   :  { %374 = vmatpush3.bf16.msra.mxu0 %v416_v5  ;;  %386 = vmatpush3.bf16.msra.mxu1 %v417_v6  ;;  %426 = vpow.bf16 %v202_v16 }
   0xc   :  { %375 = vmatprep.subr.bf16.mxu0 %v428_v0  ;;  %387 = vmatprep.subr.bf16.mxu1 %v428_v0 }
   0xf   :  { %376 = vmatpush3.bf16.msra.mxu0 %v418_v8  ;;  %388 = vmatpush3.bf16.msra.mxu1 %v419_v10 }
  0x10   :  { %393 = vmatprep.subr.bf16.mxu0 %v428_v0  ;;  %401 = vmatprep.subr.bf16.mxu1 %v428_v0 }
  0x15   :  { %v425_v18 = vpop.eup %424 }
  0x16   :  { %v34_v20 = vsub.bf16 %v425_v18, %v430_v19  ;;  %v427_v25 = vpop.eup %426 }
  0x17   :  { %v204_v28 = vsub.bf16 %v427_v25, %v430_v19 }
  0x18   :  { %v38_v23 = vsel %vm35_vm1, %v34_v20, %v37_v17  ;;  %v36_v24 = vsel %vm35_vm1, %v28_v7, %v34_v20 }
  0x19   :  { %378 = vmatmul.mubr.msk.bf16.vlgmr.msra.gmra.mrb[0].mxu0 %vm79_vm2, %v38_v23  ;;  %390 = vmatmul.mubr.msk.bf16.vlgmr.msra.gmra.mrb[0].mxu1 %vm79_vm2, %v36_v24  ;;  %v206_v30 = vsel %vm205_vm3, %v190_v12, %v204_v28  ;;  %v208_v31 = vsel %vm205_vm3, %v204_v28, %v207_v29 }
  0x1a   :  { %394 = vmatpush3.bf16.msra.mxu0 %v420_v21  ;;  %402 = vmatpush3.bf16.msra.mxu1 %v421_v22 }
  0x1b   :  { %395 = vmatprep.subr.bf16.mxu0 %v428_v0  ;;  %403 = vmatprep.subr.bf16.mxu1 %v428_v0 }
  0x1c   :  { %397 = vmatprep.mubr.msk.bf16.mxu0 %vm429_vm0, %v428_v0  ;;  %405 = vmatprep.mubr.msk.bf16.mxu1 %vm429_vm0, %v428_v0 }
  0x1e   :  { %396 = vmatpush3.bf16.msra.mxu0 %v422_v26  ;;  %404 = vmatpush3.bf16.msra.mxu1 %v423_v27 }
  0x21   :  { %398 = vmatmul.mubr.msk.bf16.vlgmr.msra.gmra.mrb[4].mxu0 %vm221_vm4, %v206_v30  ;;  %406 = vmatmul.mubr.msk.bf16.vlgmr.msra.gmra.mrb[4].mxu1 %vm221_vm4, %v208_v31 }
  0xec   :  { %v117_v32 = vpop.f32.mrb[0].mxu0  ;;  %v184_v33 = vpop.f32.mrb[0].mxu1 }
  0xed   :  { %v185_v34 = vadd.f32 %v184_v33, %v117_v32  ;;  %v379_v35 = vpop.f32.mrb[1].mxu0  ;;  %v391_v36 = vpop.f32.mrb[1].mxu1 }
  0xee   :  { %v120_v37 = vpop.f32.mrb[2].mxu0  ;;  %v187_v38 = vpop.f32.mrb[2].mxu1 }
  0xef   :  { %v380_v39 = vpop.f32.mrb[3].mxu0  ;;  %v392_v40 = vpop.f32.mrb[3].mxu1 }
  0xf4   :  { %v259_v41 = vpop.f32.mrb[4].mxu0  ;;  %v315_v42 = vpop.f32.mrb[4].mxu1 }
  0xf5   :  { %v265_v43 = vadd.f32 %v259_v41, %v185_v34  ;;  %v399_v44 = vpop.f32.mrb[5].mxu0  ;;  %v407_v45 = vpop.f32.mrb[5].mxu1 }
  0xf6   :  { %v262_v47 = vpop.f32.mrb[6].mxu0  ;;  %v318_v48 = vpop.f32.mrb[6].mxu1 }
  0xf7   :  { %v321_v49 = vadd.f32 %v315_v42, %v265_v43  ;;  %v400_v50 = vpop.f32.mrb[7].mxu0  ;;  %v408_v51 = vpop.f32.mrb[7].mxu1 }
  0xf9   :  { %v329_v52 = vadd.f32 %v352_v46, %v321_v49 }
  0xfb   :  { %v330_v53 = vpack.c.bf16 %v329_v52, %v329_v52 }
  0xfd   :  { %331 = vst [vmem:[%s546_s7] sm:$0xf] %v330_v53 }

// kernel: pixelcnn_forward.68
= control target key start
LH: loop header
LB: loop body
LE: loop exit
PB: predicated region body
PF: predicated region fallthrough
CT: control target
= control target key end

     0   :  { %s459_s12 = smov 0   ;;  %s491_s0 = inlined_call_operand.vmem [shape: bf16[64,64], index: 0, kind: input, shape index: {}]   ;;  %s492_s1 = inlined_call_operand.vmem [shape: bf16[64,128], index: 1, kind: input, shape index: {}]   ;;  %s493_s2 = inlined_call_operand.vmem [shape: f32[1,128], index: 2, kind: input, shape index: {}]   ;;  %s494_s3 = inlined_call_operand.vmem [shape: bf16[64,128], index: 3, kind: output, shape index: {}]  }
   0x1 LB: > { %s360_s13 = sadd.s32 4294967295, %s437_s12   ;;  %p364_p0 = scmp.ge.s32.totalorder %s437_s12, 1  ;;  %s437_s12 = sphi %s459_s12, %s13_s12  }
   0x2   : > { %p138_p1 = scmp.lt.s32.totalorder %s437_s12, 3 }
   0x4   : > { %p139_p2 = pnand %p364_p0, %p138_p1 }
   0x5   : > { %v425_v0 = vld [vmem:[%s492_s1] sm:$0xff] (!%p139_p2)   ;;  %s365_s16 = sshll.u32 (!%p139_p2), %s360_s13, 2  ;;  %v426_v1 = vld [vmem:[%s492_s1 + $0x8] sm:$0xff] (!%p139_p2)   ;;  %v427_v2 = vld [vmem:[%s492_s1 + $0x10] sm:$0xff] (!%p139_p2)   ;;  %vm228_vm0 = vcmask (!%p139_p2), 523264  }
   0x6   : > { %142 = sbr.rel (%p139_p2) target bundleno = 242 (0xf2), region = 32  ;;  %p163_p3 = scmp.lt.s32.totalorder (!%p139_p2), %s365_s16, 7  ;;  %405 = vmatprep.subr.bf16.mxu0 (!%p139_p2), %v425_v0  ;;  %v428_v4 = vld [vmem:[%s492_s1 + $0x18] sm:$0xff] (!%p139_p2)   ;;  %v369_v7 = vld [vmem:[%s493_s2] ss:$0 sm:$0xff] (!%p139_p2) }
   0x7   : > { %406 = vmatpush3.bf16.msra.mxu0 (!%p139_p2), %v425_v0 }
   0x8   : > { %407 = vmatprep.subr.bf16.mxu0 (!%p139_p2), %v426_v1 }
   0xb   : > { %408 = vmatpush3.bf16.msra.mxu0 (!%p139_p2), %v426_v1 }
   0xc   : > { %409 = vmatprep.subr.bf16.mxu0 (!%p139_p2), %v427_v2 }
   0xd   : > { %s496_s16 = smov (!%p163_p3, %s365_s16), 7 }
   0xe   : > { %s366_s21 = sshll.u32 %s496_s16, 2 }
   0xf   : > { %s166_s24 = scalar_lea.vmem %s491_s0, %s366_s21  ;;  %410 = vmatpush3.bf16.msra.mxu0 %v427_v2  ;;  %s172_s4 = scalar_lea.vmem %s494_s3, %s366_s21 }
  0x10   : > { %v429_v3 = vld [vmem:[%s166_s24] sm:$0xff]   ;;  %411 = vmatprep.subr.bf16.mxu0 %v428_v4  ;;  %v430_v5 = vld [vmem:[%s166_s24 + $0x8] sm:$0xff]  }
  0x11   : > { %413 = vmatprep.mubr.msk.bf16.mxu0 %vm228_vm0, %v429_v3 }
  0x13   : > { %412 = vmatpush3.bf16.msra.mxu0 %v428_v4 }
  0x16   : > { %414 = vmatmul.mubr.msk.bf16.vlgmr.msra.gmra.mrb[0].mxu0 %vm228_vm0, %v430_v5 }
  0xe9   : > { %v415_v6 = vpop.f32.mrb[0].mxu0 }
  0xea   : > { %v269_v8 = vpop.f32.mrb[1].mxu0  ;;  %v278_v10 = vadd.f32 %v415_v6, %v369_v7 }
  0xeb   : > { %v416_v9 = vpop.f32.mrb[2].mxu0  ;;  %v270_v13 = vadd.f32 %v369_v7, %v269_v8 }
  0xec   : > { %v281_v11 = vadd.f32 %v416_v9, %v369_v7  ;;  %v272_v12 = vpop.f32.mrb[3].mxu0 }
  0xed   : > { %v273_v14 = vadd.f32 %v369_v7, %v272_v12 }
  0xee   : > { %v396_v15 = vpack.c.bf16 %v281_v11, %v278_v10 }
  0xef   : > { %v391_v16 = vpack.c.bf16 %v273_v14, %v270_v13 }
  0xf0   : > { %398 = vst [vmem:[%s172_s4 + $0x8] sm:$0xff] %v396_v15  }
  0xf1   : > { %392 = vst [vmem:[%s172_s4] sm:$0xff] %v391_v16  }
  0xf2 PF: > { %s13_s12 = sadd.s32 1, %s437_s12  }
  0xf3   : > { %p10_p4 = scmp.ge.s32.totalorder %s13_s12, 4  }
  0xf5   :  { %12 = sbr.rel (!%p10_p4) target bundleno = 1 (0x1), region = 62 }

// kernel: pixelcnn_forward.71
= control target key start
LH: loop header
LB: loop body
LE: loop exit
PB: predicated region body
PF: predicated region fallthrough
CT: control target
= control target key end

     0   :  { %s916_s24 = smov 0   ;;  %s1000_s0 = inlined_call_operand.vmem [shape: bf16[32,64], index: 0, kind: input, shape index: {}]   ;;  %s1001_s1 = inlined_call_operand.vmem [shape: bf16[64,128], index: 1, kind: input, shape index: {}]   ;;  %s1002_s2 = inlined_call_operand.vmem [shape: bf16[64,128], index: 2, kind: input, shape index: {}]   ;;  %s1003_s3 = inlined_call_operand.vmem [shape: bf16[32,32], index: 3, kind: input, shape index: {}]   ;;  %s1004_s4 = inlined_call_operand.vmem [shape: bf16[32,128], index: 4, kind: input, shape index: {}]   ;;  %s1005_s5 = inlined_call_operand.vmem [shape: bf16[32,128], index: 5, kind: input, shape index: {}]   ;;  %s1006_s6 = inlined_call_operand.vmem [shape: f32[1,128], index: 6, kind: input, shape index: {}]   ;;  %s1007_s7 = inlined_call_operand.vmem [shape: bf16[32,128], index: 7, kind: output, shape index: {}]  }
   0x1 LB: > { %s735_s25 = sadd.s32 4294967295, %s871_s24   ;;  %p739_p0 = scmp.ge.s32.totalorder %s871_s24, 1  ;;  %s871_s24 = sphi %s916_s24, %s17_s24  }
   0x2   : > { %p249_p1 = scmp.lt.s32.totalorder %s871_s24, 3 }
   0x4   : > { %p250_p2 = pnand %p739_p0, %p249_p1 }
   0x5   : > { %v845_v0 = vld [vmem:[%s1002_s2] sm:$0xff] (!%p250_p2)   ;;  %v873_v1 = vmov (!%p250_p2), 0.0   ;;  %v847_v3 = vld [vmem:[%s1002_s2 + $0x8] sm:$0xff] (!%p250_p2)   ;;  %vm874_vm0 = vmmov (!%p250_p2), 0   ;;  %s740_s9 = sshll.u32 (!%p250_p2), %s735_s25, 1  ;;  %v849_v5 = vld [vmem:[%s1002_s2 + $0x10] sm:$0xff] (!%p250_p2)  }
   0x6   : > { %253 = sbr.rel (%p250_p2) target bundleno = 272 (0x110), region = 48  ;;  %794 = vmatprep.subr.bf16.mxu0 (!%p250_p2), %v873_v1  ;;  %806 = vmatprep.subr.bf16.mxu1 (!%p250_p2), %v873_v1  ;;  %v846_v2 = vld [vmem:[%s1001_s1] sm:$0xff] (!%p250_p2)   ;;  %v848_v4 = vld [vmem:[%s1001_s1 + $0x8] sm:$0xff] (!%p250_p2)   ;;  %p287_p3 = scmp.lt.s32.totalorder (!%p250_p2), %s740_s9, 3  ;;  %v850_v6 = vld [vmem:[%s1001_s1 + $0x10] sm:$0xff] (!%p250_p2)   ;;  %vm373_vm3 = vcmask (!%p250_p2), 523264  }
   0x7   : > { %795 = vmatpush3.bf16.msra.mxu0 (!%p250_p2), %v845_v0  ;;  %802 = vmatprep.mubr.msk.bf16.mxu0 (!%p250_p2), %vm874_vm0, %v873_v1  ;;  %v851_v9 = vld [vmem:[%s1002_s2 + $0x18] sm:$0xff] (!%p250_p2)   ;;  %v875_v29 = vmov (!%p250_p2), 1065369472   ;;  %v853_v36 = vld [vmem:[%s1004_s4] sm:$0xff] (!%p250_p2)   ;;  %v855_v45 = vld [vmem:[%s1004_s4 + $0x8] sm:$0xff] (!%p250_p2)   ;;  %vm538_vm6 = vcmask (!%p250_p2), 261120  }
   0x8   : > { %807 = vmatpush3.bf16.msra.mxu1 (!%p250_p2), %v846_v2  ;;  %796 = vmatprep.subr.bf16.mxu0 (!%p250_p2), %v873_v1  ;;  %v852_v12 = vld [vmem:[%s1001_s1 + $0x18] sm:$0xff] (!%p250_p2)   ;;  %v854_v37 = vld [vmem:[%s1005_s5] sm:$0xff] (!%p250_p2)   ;;  %v856_v46 = vld [vmem:[%s1005_s5 + $0x8] sm:$0xff] (!%p250_p2)  }
   0x9   : > { %808 = vmatprep.subr.bf16.mxu1 (!%p250_p2), %v873_v1  ;;  %814 = vmatprep.mubr.msk.bf16.mxu1 (!%p250_p2), %vm874_vm0, %v873_v1 }
   0xb   : > { %797 = vmatpush3.bf16.msra.mxu0 (!%p250_p2), %v847_v3 }
   0xc   : > { %809 = vmatpush3.bf16.msra.mxu1 (!%p250_p2), %v848_v4  ;;  %798 = vmatprep.subr.bf16.mxu0 (!%p250_p2), %v873_v1 }
   0xd   : > { %s1009_s9 = smov (!%p287_p3, %s740_s9), 3  ;;  %810 = vmatprep.subr.bf16.mxu1 %v873_v1 }
   0xe   : > { %s951_s16 = sshll.u32 %s1009_s9, 2 }
   0xf   : > { %s290_s19 = scalar_lea.vmem %s1000_s0, %s951_s16  ;;  %799 = vmatpush3.bf16.msra.mxu0 %v849_v5  ;;  %s296_s27 = scalar_lea.vmem %s1003_s3, %s951_s16 }
  0x10   : > { %v306_v7 = vld [vmem:[%s290_s19] sm:$0xf]  ;;  %v307_v8 = vld [vmem:[%s290_s19 + $0x4] sm:$0xf]  ;;  %811 = vmatpush3.bf16.msra.mxu1 %v850_v6  ;;  %800 = vmatprep.subr.bf16.mxu0 %v873_v1  ;;  %s302_s18 = scalar_lea.vmem %s1007_s7, %s951_s16 }
  0x11   : > { %v308_v10 = vand.u32 2147450879, %v306_v7  ;;  %v309_v11 = vand.u32 2147450879, %v307_v8  ;;  %812 = vmatprep.subr.bf16.mxu1 %v873_v1  ;;  %v491_v17 = vld [vmem:[%s296_s27] sm:$0xf] }
  0x12   : > { %v492_v18 = vld [vmem:[%s296_s27 + $0x4] sm:$0xf]  ;;  %v501_v19 = vand.u32 2147450879, %v491_v17  ;;  %v324_v25 = vsub.bf16 0, %v306_v7  ;;  %vm320_vm1 = vcmp.gt.bf16.partialorder %v306_v7, 0 }
  0x13   : > { %v310_v13 = vsub.bf16 0, %v308_v10  ;;  %v311_v14 = vsub.bf16 0, %v309_v11  ;;  %801 = vmatpush3.bf16.msra.mxu0 %v851_v9  ;;  %v502_v20 = vand.u32 2147450879, %v492_v18  ;;  %v325_v27 = vsub.bf16 0, %v307_v8 }
  0x14   : > { %813 = vmatpush3.bf16.msra.mxu1 %v852_v12  ;;  %818 = vmatprep.subr.bf16.mxu0 %v873_v1  ;;  %v503_v21 = vsub.bf16 0, %v501_v19  ;;  %vm321_vm2 = vcmp.gt.bf16.partialorder %v307_v8, 0  ;;  %v517_v40 = vsub.bf16 0, %v491_v17  ;;  %vm513_vm4 = vcmp.gt.bf16.partialorder %v491_v17, 0  ;;  %v766_v11 = vld [vmem:[%s1006_s6] ss:$0 sm:$0xff] }
  0x15   : > { %v313_v15 = vmul.bf16 1069105081, %v310_v13  ;;  %v316_v16 = vmul.bf16 1069105081, %v311_v14  ;;  %826 = vmatprep.subr.bf16.mxu1 %v873_v1  ;;  %v504_v22 = vsub.bf16 0, %v502_v20  ;;  %v518_v42 = vsub.bf16 0, %v492_v18 }
  0x16   : > { %v506_v23 = vmul.bf16 1069105081, %v503_v21  ;;  %vm514_vm5 = vcmp.gt.bf16.partialorder %v492_v18, 0 }
  0x17   : > { %857 = vpow.bf16 %v313_v15  ;;  %v509_v24 = vmul.bf16 1069105081, %v504_v22 }
  0x18   : > { %859 = vpow.bf16 %v316_v16 }
  0x19   : > { %861 = vpow.bf16 %v506_v23 }
  0x1a   : > { %863 = vpow.bf16 %v509_v24 }
  0x22   : > { %v858_v26 = vpop.eup %857 }
  0x23   : > { %v860_v28 = vpop.eup %859  ;;  %v318_v30 = vsub.bf16 %v858_v26, %v875_v29 }
  0x24   : > { %v319_v31 = vsub.bf16 %v860_v28, %v875_v29  ;;  %v862_v41 = vpop.eup %861 }
  0x25   : > { %v326_v32 = vsel %vm320_vm1, %v318_v30, %v324_v25  ;;  %v322_v33 = vsel %vm320_vm1, %v306_v7, %v318_v30  ;;  %v864_v43 = vpop.eup %863  ;;  %v511_v44 = vsub.bf16 %v862_v41, %v875_v29 }
  0x26   : > { %v327_v34 = vsel %vm321_vm2, %v319_v31, %v325_v27  ;;  %v323_v35 = vsel %vm321_vm2, %v307_v8, %v319_v31  ;;  %v512_v47 = vsub.bf16 %v864_v43, %v875_v29 }
  0x27   : > { %v746_v38 = vcombine.low %v326_v32, %v327_v34  ;;  %v752_v39 = vcombine.low %v322_v33, %v323_v35  ;;  %v515_v48 = vsel %vm513_vm4, %v491_v17, %v511_v44  ;;  %v519_v49 = vsel %vm513_vm4, %v511_v44, %v517_v40 }
  0x28   : > { %v516_v50 = vsel %vm514_vm5, %v492_v18, %v512_v47  ;;  %v520_v51 = vsel %vm514_vm5, %v512_v47, %v518_v42 }
  0x29   : > { %803 = vmatmul.mubr.msk.bf16.vlgmr.msra.gmra.mrb[0].mxu0 %vm373_vm3, %v746_v38  ;;  %815 = vmatmul.mubr.msk.bf16.vlgmr.msra.gmra.mrb[0].mxu1 %vm373_vm3, %v752_v39  ;;  %v758_v52 = vcombine.low %v515_v48, %v516_v50  ;;  %v762_v53 = vcombine.low %v519_v49, %v520_v51 }
  0x2a   : > { %819 = vmatpush3.bf16.msra.mxu0 %v853_v36  ;;  %827 = vmatpush3.bf16.msra.mxu1 %v854_v37 }
  0x2b   : > { %820 = vmatprep.subr.bf16.mxu0 %v873_v1  ;;  %828 = vmatprep.subr.bf16.mxu1 %v873_v1 }
  0x2c   : > { %822 = vmatprep.mubr.msk.bf16.mxu0 %vm874_vm0, %v873_v1  ;;  %830 = vmatprep.mubr.msk.bf16.mxu1 %vm874_vm0, %v873_v1 }
  0x2e   : > { %821 = vmatpush3.bf16.msra.mxu0 %v855_v45  ;;  %829 = vmatpush3.bf16.msra.mxu1 %v856_v46 }
  0x31   : > { %823 = vmatmul.mubr.msk.bf16.vlgmr.msra.gmra.mrb[4].mxu0 %vm538_vm6, %v758_v52  ;;  %831 = vmatmul.mubr.msk.bf16.vlgmr.msra.gmra.mrb[4].mxu1 %vm538_vm6, %v762_v53 }
  0xfc   : > { %v411_v54 = vpop.f32.mrb[0].mxu0  ;;  %v484_v55 = vpop.f32.mrb[0].mxu1 }
  0xfd   : > { %v485_v56 = vadd.f32 %v484_v55, %v411_v54  ;;  %v804_v57 = vpop.f32.mrb[1].mxu0  ;;  %v816_v58 = vpop.f32.mrb[1].mxu1 }
  0xfe   : > { %v414_v59 = vpop.f32.mrb[2].mxu0  ;;  %v487_v60 = vpop.f32.mrb[2].mxu1 }
  0xff   : > { %v488_v61 = vadd.f32 %v487_v60, %v414_v59  ;;  %v805_v62 = vpop.f32.mrb[3].mxu0  ;;  %v817_v63 = vpop.f32.mrb[3].mxu1 }
 0x104   : > { %v576_v0 = vpop.f32.mrb[4].mxu0  ;;  %v639_v1 = vpop.f32.mrb[4].mxu1 }
 0x105   : > { %v583_v2 = vadd.f32 %v576_v0, %v485_v56  ;;  %v824_v3 = vpop.f32.mrb[5].mxu0  ;;  %v832_v4 = vpop.f32.mrb[5].mxu1 }
 0x106   : > { %v579_v5 = vpop.f32.mrb[6].mxu0  ;;  %v642_v6 = vpop.f32.mrb[6].mxu1 }
 0x107   : > { %v646_v7 = vadd.f32 %v639_v1, %v583_v2  ;;  %v584_v8 = vadd.f32 %v579_v5, %v488_v61  ;;  %v825_v9 = vpop.f32.mrb[7].mxu0  ;;  %v833_v10 = vpop.f32.mrb[7].mxu1 }
 0x109   : > { %v647_v12 = vadd.f32 %v642_v6, %v584_v8  ;;  %v655_v13 = vadd.f32 %v766_v11, %v646_v7 }
 0x10b   : > { %v656_v14 = vadd.f32 %v766_v11, %v647_v12 }
 0x10d   : > { %v776_v15 = vpack.c.bf16 %v656_v14, %v655_v13 }
 0x10f   : > { %777 = vst [vmem:[%s302_s18] sm:$0xff] %v776_v15  }
 0x110 PF: > { %s17_s24 = sadd.s32 1, %s871_s24  }
 0x111   : > { %p14_p4 = scmp.ge.s32.totalorder %s17_s24, 4  }
 0x113   :  { %16 = sbr.rel (!%p14_p4) target bundleno = 1 (0x1), region = 81 }

// kernel: pixelcnn_forward.78
= control target key start
LH: loop header
LB: loop body
LE: loop exit
PB: predicated region body
PF: predicated region fallthrough
CT: control target
= control target key end

     0   :  { %s641_s12 = smov 0   ;;  %s686_s0 = inlined_call_operand.vmem [shape: bf16[192,64], index: 0, kind: input, shape index: {}]   ;;  %s687_s1 = inlined_call_operand.vmem [shape: bf16[64,128], index: 1, kind: input, shape index: {}]   ;;  %s688_s2 = inlined_call_operand.vmem [shape: f32[1,128], index: 2, kind: input, shape index: {}]   ;;  %s689_s3 = inlined_call_operand.vmem [shape: bf16[192,128], index: 3, kind: output, shape index: {}]  }
   0x1 LB: > { %s472_s13 = sadd.s32 4294967295, %s619_s12   ;;  %p476_p0 = scmp.ge.s32.totalorder %s619_s12, 1  ;;  %s619_s12 = sphi %s641_s12, %s13_s12  }
   0x2   : > { %p138_p1 = scmp.lt.s32.totalorder %s619_s12, 3 }
   0x4   : > { %p139_p2 = pnand %p476_p0, %p138_p1 }
   0x5   : > { %v603_v0 = vld [vmem:[%s687_s1] sm:$0xff] (!%p139_p2)   ;;  %s162_s16 = smul.u32 (!%p139_p2), 12, %s472_s13  ;;  %v604_v1 = vld [vmem:[%s687_s1 + $0x8] sm:$0xff] (!%p139_p2)   ;;  %v605_v2 = vld [vmem:[%s687_s1 + $0x10] sm:$0xff] (!%p139_p2)   ;;  %vm256_vm0 = vcmask (!%p139_p2), 523264  }
   0x6   : > { %142 = sbr.rel (%p139_p2) target bundleno = 250 (0xfa), region = 32  ;;  %587 = vmatprep.subr.bf16.mxu1 (!%p139_p2), %v603_v0  ;;  %567 = vmatprep.subr.bf16.mxu0 (!%p139_p2), %v603_v0  ;;  %v606_v3 = vld [vmem:[%s687_s1 + $0x18] sm:$0xff] (!%p139_p2)   ;;  %v479_v10 = vld [vmem:[%s688_s2] ss:$0 sm:$0xff] (!%p139_p2) }
   0x7   : > { %p163_p3 = scmp.lt.s32.totalorder (!%p139_p2), %s162_s16, 23  ;;  %591 = vmatpush3.bf16.msra.mxu1 (!%p139_p2), %v603_v0  ;;  %568 = vmatpush3.bf16.msra.mxu0 (!%p139_p2), %v603_v0 }
   0x8   : > { %588 = vmatprep.subr.bf16.mxu1 (!%p139_p2), %v604_v1  ;;  %569 = vmatprep.subr.bf16.mxu0 (!%p139_p2), %v604_v1 }
   0xb   : > { %592 = vmatpush3.bf16.msra.mxu1 (!%p139_p2), %v604_v1  ;;  %570 = vmatpush3.bf16.msra.mxu0 (!%p139_p2), %v604_v1 }
   0xc   : > { %589 = vmatprep.subr.bf16.mxu1 (!%p139_p2), %v605_v2  ;;  %571 = vmatprep.subr.bf16.mxu0 (!%p139_p2), %v605_v2 }
   0xd   : > { %s691_s16 = smov (!%p163_p3, %s162_s16), 23 }
   0xe   : > { %s477_s21 = sshll.u32 %s691_s16, 2 }
   0xf   : > { %s166_s26 = scalar_lea.vmem %s686_s0, %s477_s21  ;;  %593 = vmatpush3.bf16.msra.mxu1 %v605_v2  ;;  %572 = vmatpush3.bf16.msra.mxu0 %v605_v2  ;;  %s172_s4 = scalar_lea.vmem %s689_s3, %s477_s21 }
  0x10   : > { %v607_v4 = vld [vmem:[%s166_s26 + $0x10] sm:$0xff]   ;;  %v609_v5 = vld [vmem:[%s166_s26] sm:$0xff]   ;;  %590 = vmatprep.subr.bf16.mxu1 %v606_v3  ;;  %573 = vmatprep.subr.bf16.mxu0 %v606_v3  ;;  %v608_v6 = vld [vmem:[%s166_s26 + $0x18] sm:$0xff]  }
  0x11   : > { %579 = vmatprep.mubr.msk.bf16.mxu1 %vm256_vm0, %v607_v4  ;;  %575 = vmatprep.mubr.msk.bf16.mxu0 %vm256_vm0, %v609_v5  ;;  %v610_v7 = vld [vmem:[%s166_s26 + $0x8] sm:$0xff]   ;;  %v611_v8 = vld [vmem:[%s166_s26 + $0x20] sm:$0xff]  }
  0x12   : > { %v612_v9 = vld [vmem:[%s166_s26 + $0x28] sm:$0xff]  }
  0x13   : > { %594 = vmatpush3.bf16.msra.mxu1 %v606_v3  ;;  %574 = vmatpush3.bf16.msra.mxu0 %v606_v3 }
  0x16   : > { %580 = vmatmul.mubr.msk.bf16.vlgmr.msra.gmra.mrb[0].mxu1 %vm256_vm0, %v608_v6  ;;  %576 = vmatmul.mubr.msk.bf16.vlgmr.msra.gmra.mrb[0].mxu0 %vm256_vm0, %v610_v7 }
  0x17   : > { %583 = vmatprep.mubr.msk.bf16.mxu1 %vm256_vm0, %v611_v8 }
  0x1e   : > { %584 = vmatmul.mubr.msk.bf16.gmra.mrb[4].mxu1 %vm256_vm0, %v612_v9 }
  0xe9   : > { %v581_v11 = vpop.f32.mrb[0].mxu1  ;;  %v577_v12 = vpop.f32.mrb[0].mxu0 }
  0xea   : > { %v325_v13 = vpop.f32.mrb[1].mxu1  ;;  %v318_v14 = vadd.f32 %v577_v12, %v479_v10  ;;  %v309_v15 = vpop.f32.mrb[1].mxu0  ;;  %v334_v19 = vadd.f32 %v581_v11, %v479_v10 }
  0xeb   : > { %v582_v16 = vpop.f32.mrb[2].mxu1  ;;  %v310_v17 = vadd.f32 %v479_v10, %v309_v15  ;;  %v578_v18 = vpop.f32.mrb[2].mxu0  ;;  %v326_v24 = vadd.f32 %v479_v10, %v325_v13 }
  0xec   : > { %v337_v20 = vadd.f32 %v582_v16, %v479_v10  ;;  %v328_v21 = vpop.f32.mrb[3].mxu1  ;;  %v321_v22 = vadd.f32 %v578_v18, %v479_v10  ;;  %v312_v23 = vpop.f32.mrb[3].mxu0 }
  0xed   : > { %v329_v25 = vadd.f32 %v479_v10, %v328_v21  ;;  %v313_v26 = vadd.f32 %v479_v10, %v312_v23 }
  0xee   : > { %v540_v27 = vpack.c.bf16 %v337_v20, %v334_v19  ;;  %v530_v28 = vpack.c.bf16 %v321_v22, %v318_v14 }
  0xef   : > { %v535_v29 = vpack.c.bf16 %v329_v25, %v326_v24  ;;  %v525_v30 = vpack.c.bf16 %v313_v26, %v310_v17 }
  0xf0   : > { %554 = vst [vmem:[%s172_s4 + $0x18] sm:$0xff] %v540_v27   ;;  %552 = vst [vmem:[%s172_s4 + $0x8] sm:$0xff] %v530_v28  }
  0xf1   : > { %553 = vst [vmem:[%s172_s4 + $0x10] sm:$0xff] %v535_v29   ;;  %526 = vst [vmem:[%s172_s4] sm:$0xff] %v525_v30   ;;  %v585_v31 = vpop.f32.mrb[4].mxu1 }
  0xf2   : > { %v341_v32 = vpop.f32.mrb[5].mxu1  ;;  %v350_v34 = vadd.f32 %v585_v31, %v479_v10 }
  0xf3   : > { %v586_v33 = vpop.f32.mrb[6].mxu1  ;;  %v342_v37 = vadd.f32 %v479_v10, %v341_v32 }
  0xf4   : > { %v353_v35 = vadd.f32 %v586_v33, %v479_v10  ;;  %v344_v36 = vpop.f32.mrb[7].mxu1 }
  0xf5   : > { %v345_v38 = vadd.f32 %v479_v10, %v344_v36 }
  0xf6   : > { %v550_v39 = vpack.c.bf16 %v353_v35, %v350_v34 }
  0xf7   : > { %v545_v40 = vpack.c.bf16 %v345_v38, %v342_v37 }
  0xf8   : > { %556 = vst [vmem:[%s172_s4 + $0x28] sm:$0xff] %v550_v39  }
  0xf9   : > { %555 = vst [vmem:[%s172_s4 + $0x20] sm:$0xff] %v545_v40  }
  0xfa PF: > { %s13_s12 = sadd.s32 1, %s619_s12  }
  0xfb   : > { %p10_p4 = scmp.ge.s32.totalorder %s13_s12, 4  }
  0xfd   :  { %12 = sbr.rel (!%p10_p4) target bundleno = 1 (0x1), region = 62 }

// kernel: pixelcnn_forward.87
= control target key start
LH: loop header
LB: loop body
LE: loop exit
PB: predicated region body
PF: predicated region fallthrough
CT: control target
= control target key end

     0   :  { %8 = vsyncpa [#allocation3], 0  ;;  %s751_s0 = inlined_call_operand.vmem [shape: bf16[128,16], index: 0, kind: input, shape index: {}]   ;;  %s752_s1 = inlined_call_operand.vmem [shape: bf16[16,128], index: 1, kind: input, shape index: {}]   ;;  %s753_s2 = inlined_call_operand.vmem [shape: f32[1,128], index: 2, kind: input, shape index: {}]   ;;  %s754_s3 = inlined_call_operand.hbm [shape: f32[128,128], index: 3, kind: output, shape index: {}]  }
   0x1   :  { %10 = vsyncpa [#allocation3 + $0x1], 0  ;;  %s630_s12 = smov 0   ;;  %s632_s13 = smov 0  }
   0x2   :  { %s634_s14 = smov 0   ;;  %s636_s15 = smov 0  }
   0x3 LB: > { %s651_s16 = sadd.s32 4294967295, %s604_s15   ;;  %s443_s17 = sadd.s32 4294967294, %s604_s15   ;;  %s604_s15 = sphi %s636_s15, %s760_s15   ;;  %s600_s14 = sphi %s634_s14, %s759_s14   ;;  %s596_s13 = sphi %s632_s13, %s758_s13   ;;  %s592_s12 = sphi %s630_s12, %s757_s12  }
   0x4   : > { %s655_s18 = sadd.s32 1, %s604_s15   ;;  %s91_s19 = sadd.s32 1, %s600_s14 }
   0x5   : > { %s88_s20 = ssub.s32 %s604_s15, %s655_s18  ;;  %p101_p0 = scmp.ne.s32.totalorder %s600_s14, %s596_s13 }
   0x6   : > { %p89_p1 = scmp.eq.s32.totalorder %s88_s20, 0  ;;  %p102_p2 = scmp.eq.s32.totalorder %s651_s16, 1 }
   0x7   : > { %p107_p3 = scmp.ne.s32.totalorder %s596_s13, %s592_s12  ;;  %p108_p4 = scmp.eq.s32.totalorder %s443_s17, 1 }
   0x8   : > { %s666_s21 = scalar_select %p89_p1, %s600_s14, %s91_s19  }
   0x9   : > { %p668_p5 = por %p102_p2, %p101_p0  ;;  %p672_p6 = por %p108_p4, %p107_p3 }
   0xa   : > { %p446_p7 = scmp.ge.s32.totalorder %s604_s15, 1  ;;  %p141_p8 = scmp.lt.s32.totalorder %s604_s15, 3 }
   0xc   : > { %p142_p9 = pnand %p446_p7, %p141_p8 }
   0xd   : > { %v525_v0 = vld [vmem:[%s752_s1] sm:$0xff] (!%p142_p9)   ;;  %s448_s26 = sshll.u32 (!%p142_p9), %s651_s16, 3  ;;  %v606_v35 = vmov (!%p142_p9), 1065369472   ;;  %vm281_vm4 = vcmask (!%p142_p9), 130048   ;;  %s162_s4 = sand.u32 (!%p142_p9), 1, %s596_s13  }
   0xe   : > { %145 = sbr.rel (%p142_p9) target bundleno = 287 (0x11f), region = 32  ;;  %p166_p10 = scmp.lt.s32.totalorder (!%p142_p9), %s448_s26, 15  ;;  %471 = vmatprep.subr.bf16.mxu0 (!%p142_p9), %v525_v0  ;;  %481 = vmatprep.subr.bf16.mxu1 (!%p142_p9), %v525_v0  ;;  %v450_v62 = vld [vmem:[%s753_s2] ss:$0 sm:$0xff] (!%p142_p9) }
   0xf   : > { %472 = vmatpush3.bf16.msra.mxu0 (!%p142_p9), %v525_v0  ;;  %482 = vmatpush3.bf16.msra.mxu1 (!%p142_p9), %v525_v0  ;;  %s447_s5 = sshll.u32 (!%p142_p9), %s162_s4, 6  ;;  %s465_s8 = sshll.u32 (!%p142_p9), %s651_s16, 10 }
  0x10   : > { %s164_s9 = scalar_lea.vmem (!%p142_p9), [#allocation2], %s447_s5  ;;  %s704_s16 = scalar_lea.hbm (!%p142_p9), %s754_s3, %s465_s8 }
  0x11   : > { %s381_s10 = sshll.u32 (!%p142_p9), %s164_s9, 4  ;;  %s710_s19 = scalar_lea.sflag (!%p142_p9), [#allocation3], %s162_s4  ;;  %s706_s10 = int_to_ptr.vmem [resolvable:$true] %s381_s10 }
  0x12   : > { %s542_s20 = scalar_lea.vmem (!%p142_p9), %s706_s10, 1024  ;;  %s607_s24 = smov (!%p142_p9), [#allocation2]  }
  0x13   : > { %p543_p11 = scmp.ne.s32.totalorder (!%p142_p9), %s706_s10, %s542_s20  ;;  %s546_s25 = sshll.u32 (!%p142_p9), %s607_s24, 4  ;;  %s547_s25 = int_to_ptr.vmem [resolvable:$false] %s546_s25 }
  0x14   : > { %p549_p0 = scmp.lt.s32.totalorder (!%p142_p9), %s706_s10, %s547_s25 }
  0x15   : > { %s762_s26 = smov (!%p166_p10, %s448_s26), 15  ;;  %p544_p12 = pnand %p543_p11, %p668_p5 }
  0x16   : > { %s449_s27 = sshll.u32 %s762_s26, 2  ;;  %s548_s26 = scalar_lea.vmem %s547_s25, 2048 }
  0x17   : > { %s169_s30 = scalar_lea.vmem %s751_s0, %s449_s27  ;;  %p545_p13 = pneg %p544_p12 }
  0x18   : > { %v174_v1 = vld [vmem:[%s169_s30] sm:$0xf]  ;;  %v175_v2 = vld [vmem:[%s169_s30 + $0x4] sm:$0xf]  ;;  %v178_v3 = vld [vmem:[%s169_s30 + $0x10] sm:$0xf]  ;;  %p550_p1 = scmp.lt.s32.totalorder %s548_s26, %s542_s20 }
  0x19   : > { %v190_v4 = vand.u32 2147450879, %v174_v1  ;;  %v191_v5 = vand.u32 2147450879, %v175_v2  ;;  %v179_v6 = vld [vmem:[%s169_s30 + $0x14] sm:$0xf] }
  0x1a   : > { %v194_v7 = vand.u32 2147450879, %v178_v3  ;;  %v195_v10 = vand.u32 2147450879, %v179_v6  ;;  %v176_v12 = vld [vmem:[%s169_s30 + $0x8] sm:$0xf]  ;;  %p551_p2 = por %p550_p1, %p549_p0 }
  0x1b   : > { %v198_v8 = vsub.bf16 0, %v190_v4  ;;  %v199_v9 = vsub.bf16 0, %v191_v5  ;;  %v685_v13 = vld [vmem:[%s169_s30 + $0xc] sm:$0xf]  ;;  %v192_v18 = vand.u32 2147450879, %v176_v12 }
  0x1c   : > { %v202_v11 = vsub.bf16 0, %v194_v7  ;;  %v203_v16 = vsub.bf16 0, %v195_v10  ;;  %v193_v20 = vand.u32 2147450879, %v685_v13  ;;  %v180_v21 = vld [vmem:[%s169_s30 + $0x18] sm:$0xf]  ;;  %p552_p3 = pnand %p551_p2, %p545_p13 }
  0x1d   : > { %v207_v14 = vmul.bf16 1069105081, %v198_v8  ;;  %v210_v15 = vmul.bf16 1069105081, %v199_v9  ;;  %v200_v22 = vsub.bf16 0, %v192_v18  ;;  %vm182_vm0 = vcmp.gt.bf16.partialorder %v174_v1, 0 }
  0x1e   : > { %v219_v17 = vmul.bf16 1069105081, %v202_v11  ;;  %v222_v19 = vmul.bf16 1069105081, %v203_v16  ;;  %v181_v23 = vld [vmem:[%s169_s30 + $0x1c] sm:$0xf] }
  0x1f   : > { %526 = vpow.bf16 %v207_v14  ;;  %v196_v24 = vand.u32 2147450879, %v180_v21  ;;  %v201_v25 = vsub.bf16 0, %v193_v20  ;;  %v197_v26 = vand.u32 2147450879, %v181_v23 }
  0x20   : > { %528 = vpow.bf16 %v210_v15  ;;  %v213_v27 = vmul.bf16 1069105081, %v200_v22  ;;  %vm183_vm1 = vcmp.gt.bf16.partialorder %v175_v2, 0  ;;  %vm186_vm2 = vcmp.gt.bf16.partialorder %v178_v3, 0 }
  0x21   : > { %530 = vpow.bf16 %v219_v17  ;;  %v204_v28 = vsub.bf16 0, %v196_v24  ;;  %v216_v29 = vmul.bf16 1069105081, %v201_v25  ;;  %v205_v30 = vsub.bf16 0, %v197_v26 }
  0x22   : > { %532 = vpow.bf16 %v222_v19  ;;  %vm187_vm3 = vcmp.gt.bf16.partialorder %v179_v6, 0  ;;  %vm184_vm5 = vcmp.gt.bf16.partialorder %v176_v12, 0  ;;  %vm185_vm6 = vcmp.gt.bf16.partialorder %v685_v13, 0 }
  0x23   : > { %534 = vpow.bf16 %v213_v27  ;;  %v225_v31 = vmul.bf16 1069105081, %v204_v28  ;;  %v228_v32 = vmul.bf16 1069105081, %v205_v30  ;;  %vm188_vm7 = vcmp.gt.bf16.partialorder %v180_v21, 0 }
  0x24   : > { %536 = vpow.bf16 %v216_v29  ;;  %vm189_vm8 = vcmp.gt.bf16.partialorder %v181_v23, 0 }
  0x25   : > { %538 = vpow.bf16 %v225_v31 }
  0x26   : > { %540 = vpow.bf16 %v228_v32 }
  0x2a   : > { %v527_v33 = vpop.eup %526 }
  0x2b   : > { %v529_v34 = vpop.eup %528  ;;  %v230_v36 = vsub.bf16 %v527_v33, %v606_v35 }
  0x2c   : > { %v531_v37 = vpop.eup %530  ;;  %v231_v38 = vsub.bf16 %v529_v34, %v606_v35 }
  0x2d   : > { %v533_v39 = vpop.eup %532  ;;  %v238_v40 = vsel %vm182_vm0, %v174_v1, %v230_v36  ;;  %v234_v41 = vsub.bf16 %v531_v37, %v606_v35 }
  0x2e   : > { %v239_v42 = vsel %vm183_vm1, %v175_v2, %v231_v38  ;;  %v235_v43 = vsub.bf16 %v533_v39, %v606_v35  ;;  %v535_v44 = vpop.eup %534 }
  0x2f   : > { %v451_v45 = vcombine.low %v238_v40, %v239_v42  ;;  %v242_v46 = vsel %vm186_vm2, %v178_v3, %v234_v41  ;;  %v537_v47 = vpop.eup %536  ;;  %v232_v49 = vsub.bf16 %v535_v44, %v606_v35 }
  0x30   : > { %v243_v48 = vsel %vm187_vm3, %v179_v6, %v235_v43  ;;  %v539_v50 = vpop.eup %538  ;;  %v233_v52 = vsub.bf16 %v537_v47, %v606_v35 }
  0x31   : > { %473 = vmatprep.mubr.msk.bf16.mxu0 %vm281_vm4, %v451_v45  ;;  %v453_v51 = vcombine.low %v242_v46, %v243_v48  ;;  %v541_v53 = vpop.eup %540  ;;  %v240_v54 = vsel %vm184_vm5, %v176_v12, %v232_v49  ;;  %v236_v55 = vsub.bf16 %v539_v50, %v606_v35 }
  0x32   : > { %v241_v56 = vsel %vm185_vm6, %v685_v13, %v233_v52  ;;  %v237_v57 = vsub.bf16 %v541_v53, %v606_v35 }
  0x33   : > { %477 = vmatprep.mubr.msk.bf16.mxu1 %vm281_vm4, %v453_v51  ;;  %v452_v58 = vcombine.low %v240_v54, %v241_v56  ;;  %v244_v59 = vsel %vm188_vm7, %v180_v21, %v236_v55 }
  0x34   : > { %v245_v60 = vsel %vm189_vm8, %v181_v23, %v237_v57 }
  0x35   : > { %474 = vmatmul.mubr.msk.bf16.vlgmr.msra.gmra.mrb[0].mxu0 %vm281_vm4, %v452_v58  ;;  %v454_v61 = vcombine.low %v244_v59, %v245_v60 }
  0x37   : > { %478 = vmatmul.mubr.msk.bf16.vlgmr.msra.gmra.mrb[0].mxu1 %vm281_vm4, %v454_v61 }
 0x108   : > { %v475_v63 = vpop.f32.mrb[0].mxu0 }
 0x109   : > { %v337_v0 = vadd.f32 %v475_v63, %v450_v62  ;;  %v328_v1 = vpop.f32.mrb[1].mxu0 }
 0x10a   : > { %v479_v2 = vpop.f32.mrb[0].mxu1  ;;  %v329_v3 = vadd.f32 %v450_v62, %v328_v1  ;;  %v476_v4 = vpop.f32.mrb[2].mxu0 }
 0x10b   : > { %361 = vst [vmem:[%s164_s9 + $0x10] sm:$0xff] %v337_v0  ;;  %v353_v5 = vadd.f32 %v479_v2, %v450_v62  ;;  %v344_v6 = vpop.f32.mrb[1].mxu1  ;;  %v340_v7 = vadd.f32 %v476_v4, %v450_v62  ;;  %v331_v8 = vpop.f32.mrb[3].mxu0 }
 0x10c   : > { %359 = vst [vmem:[%s164_s9] sm:$0xff] %v329_v3  ;;  %v345_v9 = vadd.f32 %v450_v62, %v344_v6  ;;  %v480_v10 = vpop.f32.mrb[2].mxu1  ;;  %v332_v11 = vadd.f32 %v450_v62, %v331_v8 }
 0x10d   : > { %365 = vst [vmem:[%s164_s9 + $0x30] sm:$0xff] %v353_v5  ;;  %362 = vst [vmem:[%s164_s9 + $0x18] sm:$0xff] %v340_v7  ;;  %v356_v12 = vadd.f32 %v480_v10, %v450_v62  ;;  %v347_v13 = vpop.f32.mrb[3].mxu1 }
 0x10e   : > { %363 = vst [vmem:[%s164_s9 + $0x20] sm:$0xff] %v345_v9  ;;  %360 = vst [vmem:[%s164_s9 + $0x8] sm:$0xff] %v332_v11  ;;  %v348_v14 = vadd.f32 %v450_v62, %v347_v13 }
 0x10f   : > { %366 = vst [vmem:[%s164_s9 + $0x38] sm:$0xff] %v356_v12 }
 0x110   : > { %364 = vst [vmem:[%s164_s9 + $0x28] sm:$0xff] %v348_v14 }
 0x111   : > { %555 = shalt.err (!%p552_p3)
}
 0x112   : > { %s556_s27 = scalar_lea.hbm %s704_s16, 1024  ;;  %s560_s30 = scalar_lea.hbm %s754_s3, 2048 }
 0x113   : > { %p557_p4 = scmp.ne.s32.totalorder %s704_s16, %s556_s27  ;;  %p561_p9 = scmp.lt.u32.totalorder %s704_s16, %s754_s3 }
 0x114   : > { %p562_p10 = scmp.lt.u32.totalorder %s560_s30, %s556_s27  ;;  %p564_p12 = scmp.lt.u32.totalorder %s556_s27, %s704_s16 }
 0x115   : > { %p558_p7 = pnand %p557_p4, %p668_p5 }
 0x116   : > { %p563_p11 = por %p562_p10, %p561_p9 }
 0x117   : > { %p559_p8 = pneg %p558_p7 }
 0x118   : > { %p565_p13 = por %p564_p12, %p563_p11 }
 0x11a   : > { %p566_p0 = pnand %p565_p13, %p559_p8 }
 0x11c   : > { %569 = shalt.err (!%p566_p0)
}
 0x11d   : > { %s608_s6 = smov 128   ;;  %s609_s7 = smov 8  }
 0x11e   : > { %483 = dma.vmem_to_hbm [thread:$0]  (%p668_p5), %s706_s10, 1024, %s704_s16, %s710_s19, %s608_s6, %s608_s6, %s609_s7  }
 0x11f PF: > { %p489_p1 = scmp.ge.s32.totalorder %s604_s15, 2  ;;  %s396_s8 = sand.u32 1, %s592_s12  }
 0x120   : > { %s397_s9 = scalar_lea.sflag [#allocation3], %s396_s8 }
 0x121   : > { %p486_p2 = pnand %p489_p1, %p672_p6 }
 0x123   : > { %587 = dma.done.wait (!%p486_p2), %s397_s9, 1024  }
 0x124   : > { %589 = vsyncadd (!%p486_p2), %s397_s9, 4294966272  ;;  %p13_p3 = scmp.ge.s32.totalorder %s655_s18, 4   ;;  %s757_s12 = smov %s596_s13 }
 0x125   : > { %s758_s13 = smov %s600_s14  ;;  %s759_s14 = smov %s666_s21 }
 0x126   : > { %s760_s15 = smov %s655_s18  ;;  %15 = sbr.rel (!%p13_p3) target bundleno = 3 (0x3), region = 67 }
 0x12d   :  { %402 = vsyncpa [#allocation3], 1 }
 0x12e   :  { %404 = vsyncpa [#allocation3 + $0x1], 1 }

// kernel: pixelcnn_forward.81
= control target key start
LH: loop header
LB: loop body
LE: loop exit
PB: predicated region body
PF: predicated region fallthrough
CT: control target
= control target key end

     0   :  { %s1414_s24 = smov 0   ;;  %s1734_s0 = inlined_call_operand.vmem [shape: bf16[128,64], index: 0, kind: input, shape index: {}]   ;;  %s1735_s1 = inlined_call_operand.vmem [shape: bf16[64,128], index: 1, kind: input, shape index: {}]   ;;  %s1736_s2 = inlined_call_operand.vmem [shape: bf16[64,128], index: 2, kind: input, shape index: {}]   ;;  %s1737_s3 = inlined_call_operand.vmem [shape: bf16[128,32], index: 3, kind: input, shape index: {}]   ;;  %s1738_s4 = inlined_call_operand.vmem [shape: bf16[32,128], index: 4, kind: input, shape index: {}]   ;;  %s1739_s5 = inlined_call_operand.vmem [shape: bf16[32,128], index: 5, kind: input, shape index: {}]   ;;  %s1740_s6 = inlined_call_operand.vmem [shape: f32[1,128], index: 6, kind: input, shape index: {}]   ;;  %s1741_s7 = inlined_call_operand.vmem [shape: bf16[128,128], index: 7, kind: output, shape index: {}]  }
   0x1 LB: > { %s1107_s25 = sadd.s32 4294967295, %s1371_s24   ;;  %p1111_p0 = scmp.ge.s32.totalorder %s1371_s24, 1  ;;  %s1371_s24 = sphi %s1414_s24, %s17_s24  }
   0x2   : > { %p249_p1 = scmp.lt.s32.totalorder %s1371_s24, 3 }
   0x4   : > { %p250_p2 = pnand %p1111_p0, %p249_p1 }
   0x5   : > { %v1321_v0 = vld [vmem:[%s1736_s2] sm:$0xff] (!%p250_p2)   ;;  %s1112_s28 = sshll.u32 (!%p250_p2), %s1107_s25, 3  ;;  %v1322_v1 = vld [vmem:[%s1736_s2 + $0x8] sm:$0xff] (!%p250_p2)   ;;  %v1323_v3 = vld [vmem:[%s1736_s2 + $0x10] sm:$0xff] (!%p250_p2)   ;;  %vm454_vm0 = vcmask (!%p250_p2), 523264   ;;  %vm781_vm4 = vcmask (!%p250_p2), 261120  }
   0x6   : > { %253 = sbr.rel (%p250_p2) target bundleno = 301 (0x12d), region = 48  ;;  %p287_p3 = scmp.lt.s32.totalorder (!%p250_p2), %s1112_s28, 15  ;;  %1232 = vmatprep.subr.bf16.mxu1 (!%p250_p2), %v1321_v0  ;;  %v1324_v2 = vld [vmem:[%s1738_s4] sm:$0xff] (!%p250_p2)   ;;  %v1326_v4 = vld [vmem:[%s1738_s4 + $0x8] sm:$0xff] (!%p250_p2)   ;;  %v1325_v7 = vld [vmem:[%s1736_s2 + $0x18] sm:$0xff] (!%p250_p2)  }
   0x7   : > { %1233 = vmatpush3.bf16.msra.mxu1 (!%p250_p2), %v1321_v0  ;;  %1264 = vmatprep.subr.bf16.mxu0 (!%p250_p2), %v1324_v2  ;;  %v1473_v16 = vld [vmem:[%s1735_s1] sm:$0xff] (!%p250_p2)   ;;  %v1373_v52 = vmov (!%p250_p2), 1065369472  }
   0x8   : > { %1234 = vmatprep.subr.bf16.mxu1 (!%p250_p2), %v1322_v1  ;;  %1265 = vmatpush3.bf16.msra.mxu0 (!%p250_p2), %v1324_v2  ;;  %v1478_v21 = vld [vmem:[%s1739_s5] sm:$0xff] (!%p250_p2)  }
   0x9   : > { %1266 = vmatprep.subr.bf16.mxu0 (!%p250_p2), %v1326_v4 }
   0xb   : > { %1235 = vmatpush3.bf16.msra.mxu1 (!%p250_p2), %v1322_v1 }
   0xc   : > { %1236 = vmatprep.subr.bf16.mxu1 (!%p250_p2), %v1323_v3  ;;  %1267 = vmatpush3.bf16.msra.mxu0 (!%p250_p2), %v1326_v4 }
   0xd   : > { %s1743_s28 = smov (!%p287_p3, %s1112_s28), 15  ;;  %1276 = vmatprep.subr.bf16.mxu0 %v1478_v21 }
   0xe   : > { %s1437_s14 = sshll.u32 %s1743_s28, 2 }
   0xf   : > { %s1443_s17 = scalar_lea.vmem %s1734_s0, %s1437_s14  ;;  %s1449_s20 = scalar_lea.vmem %s1737_s3, %s1437_s14  ;;  %1237 = vmatpush3.bf16.msra.mxu1 %v1323_v3 }
  0x10   : > { %v1452_v5 = vld [vmem:[%s1443_s17] sm:$0xf]  ;;  %v1455_v6 = vld [vmem:[%s1443_s17 + $0x4] sm:$0xf]  ;;  %1238 = vmatprep.subr.bf16.mxu1 %v1325_v7  ;;  %v1481_v22 = vld [vmem:[%s1443_s17 + $0x8] sm:$0xf]  ;;  %s302_s18 = scalar_lea.vmem %s1741_s7, %s1437_s14 }
  0x11   : > { %v314_v8 = vand.u32 2147450879, %v1452_v5  ;;  %v315_v9 = vand.u32 2147450879, %v1455_v6  ;;  %v1463_v10 = vld [vmem:[%s1449_s20] sm:$0xf] }
  0x12   : > { %v1466_v11 = vld [vmem:[%s1449_s20 + $0x4] sm:$0xf]  ;;  %v669_v14 = vand.u32 2147450879, %v1463_v10  ;;  %v1484_v25 = vld [vmem:[%s1443_s17 + $0xc] sm:$0xf] }
  0x13   : > { %v322_v12 = vsub.bf16 0, %v314_v8  ;;  %v323_v13 = vsub.bf16 0, %v315_v9  ;;  %v670_v15 = vand.u32 2147450879, %v1466_v11  ;;  %1239 = vmatpush3.bf16.msra.mxu1 %v1325_v7  ;;  %v316_v26 = vand.u32 2147450879, %v1481_v22 }
  0x14   : > { %v677_v19 = vsub.bf16 0, %v669_v14  ;;  %v317_v27 = vand.u32 2147450879, %v1484_v25  ;;  %1248 = vmatprep.subr.bf16.mxu1 %v1473_v16  ;;  %v1491_v28 = vld [vmem:[%s1449_s20 + $0x8] sm:$0xf]  ;;  %vm362_vm1 = vcmp.gt.bf16.partialorder %v1452_v5, 0 }
  0x15   : > { %v331_v17 = vmul.bf16 1069105081, %v322_v12  ;;  %v334_v18 = vmul.bf16 1069105081, %v323_v13  ;;  %v678_v20 = vsub.bf16 0, %v670_v15  ;;  %v324_v29 = vsub.bf16 0, %v316_v26 }
  0x16   : > { %v686_v23 = vmul.bf16 1069105081, %v677_v19  ;;  %v325_v30 = vsub.bf16 0, %v317_v27  ;;  %v1494_v31 = vld [vmem:[%s1449_s20 + $0xc] sm:$0xf]  ;;  %vm363_vm2 = vcmp.gt.bf16.partialorder %v1455_v6, 0 }
  0x17   : > { %1333 = vpow.bf16 %v331_v17  ;;  %v689_v24 = vmul.bf16 1069105081, %v678_v20  ;;  %v671_v32 = vand.u32 2147450879, %v1491_v28  ;;  %v672_v33 = vand.u32 2147450879, %v1494_v31 }
  0x18   : > { %1335 = vpow.bf16 %v334_v18  ;;  %v337_v34 = vmul.bf16 1069105081, %v324_v29  ;;  %v340_v35 = vmul.bf16 1069105081, %v325_v30  ;;  %v1499_v39 = vld [vmem:[%s1443_s17 + $0x10] sm:$0xf] }
  0x19   : > { %1337 = vpow.bf16 %v686_v23  ;;  %v679_v36 = vsub.bf16 0, %v671_v32  ;;  %v680_v37 = vsub.bf16 0, %v672_v33  ;;  %v1502_v40 = vld [vmem:[%s1443_s17 + $0x14] sm:$0xf]  ;;  %v318_v42 = vand.u32 2147450879, %v1499_v39 }
  0x1a   : > { %1339 = vpow.bf16 %v689_v24  ;;  %v319_v43 = vand.u32 2147450879, %v1502_v40  ;;  %v378_v44 = vsub.bf16 0, %v1452_v5  ;;  %v379_v45 = vsub.bf16 0, %v1455_v6  ;;  %v1511_v49 = vld [vmem:[%s1449_s20 + $0x10] sm:$0xf] }
  0x1b   : > { %1341 = vpow.bf16 %v337_v34  ;;  %v692_v38 = vmul.bf16 1069105081, %v679_v36  ;;  %v695_v41 = vmul.bf16 1069105081, %v680_v37  ;;  %v326_v46 = vsub.bf16 0, %v318_v42 }
  0x1c   : > { %1343 = vpow.bf16 %v340_v35  ;;  %v327_v47 = vsub.bf16 0, %v319_v43  ;;  %v1514_v50 = vld [vmem:[%s1449_s20 + $0x14] sm:$0xf]  ;;  %v673_v56 = vand.u32 2147450879, %v1511_v49  ;;  %vm717_vm3 = vcmp.gt.bf16.partialorder %v1463_v10, 0 }
  0x1d   : > { %1345 = vpow.bf16 %v692_v38  ;;  %v343_v54 = vmul.bf16 1069105081, %v326_v46  ;;  %v674_v59 = vand.u32 2147450879, %v1514_v50  ;;  %vm718_vm5 = vcmp.gt.bf16.partialorder %v1466_v11, 0  ;;  %v1329_v43 = vld [vmem:[%s1735_s1 + $0x8] sm:$0xff]  }
  0x1e   : > { %1347 = vpow.bf16 %v695_v41  ;;  %v346_v55 = vmul.bf16 1069105081, %v327_v47  ;;  %v1533_v63 = vld [vmem:[%s1443_s17 + $0x18] sm:$0xf]  ;;  %v1542_v2 = vld [vmem:[%s1443_s17 + $0x1c] sm:$0xf] }
  0x1f   : > { %1349 = vpow.bf16 %v343_v54  ;;  %vm364_vm6 = vcmp.gt.bf16.partialorder %v1481_v22, 0  ;;  %v681_v7 = vsub.bf16 0, %v673_v56  ;;  %v380_v9 = vsub.bf16 0, %v1481_v22  ;;  %v1581_v38 = vld [vmem:[%s1449_s20 + $0x18] sm:$0xf] }
  0x20   : > { %1351 = vpow.bf16 %v346_v55  ;;  %v682_v12 = vsub.bf16 0, %v674_v59  ;;  %v320_v13 = vand.u32 2147450879, %v1533_v63  ;;  %v381_v17 = vsub.bf16 0, %v1484_v25  ;;  %v1331_v55 = vld [vmem:[%s1739_s5 + $0x8] sm:$0xff]  }
  0x21   : > { %v698_v18 = vmul.bf16 1069105081, %v681_v7  ;;  %v321_v19 = vand.u32 2147450879, %v1542_v2  ;;  %vm365_vm7 = vcmp.gt.bf16.partialorder %v1484_v25, 0  ;;  %vm719_vm8 = vcmp.gt.bf16.partialorder %v1491_v28, 0 }
  0x22   : > { %v1334_v48 = vpop.eup %1333  ;;  %v701_v24 = vmul.bf16 1069105081, %v682_v12  ;;  %v328_v26 = vsub.bf16 0, %v320_v13  ;;  %vm720_vm9 = vcmp.gt.bf16.partialorder %v1494_v31, 0  ;;  %v382_v46 = vsub.bf16 0, %v1499_v39 }
  0x23   : > { %v1336_v51 = vpop.eup %1335  ;;  %v1517_v53 = vsub.bf16 %v1334_v48, %v1373_v52  ;;  %1353 = vpow.bf16 %v698_v18  ;;  %v329_v30 = vsub.bf16 0, %v321_v19  ;;  %vm366_vm10 = vcmp.gt.bf16.partialorder %v1499_v39, 0 }
  0x24   : > { %v1338_v57 = vpop.eup %1337  ;;  %v1521_v58 = vsub.bf16 %v1336_v51, %v1373_v52  ;;  %1355 = vpow.bf16 %v701_v24  ;;  %v349_v37 = vmul.bf16 1069105081, %v328_v26  ;;  %v383_v54 = vsub.bf16 0, %v1502_v40 }
  0x25   : > { %v1340_v60 = vpop.eup %1339  ;;  %v386_v61 = vsel %vm362_vm1, %v1517_v53, %v378_v44  ;;  %v1529_v62 = vsub.bf16 %v1338_v57, %v1373_v52  ;;  %v1591_v44 = vld [vmem:[%s1449_s20 + $0x1c] sm:$0xf]  ;;  %v352_v47 = vmul.bf16 1069105081, %v329_v30  ;;  %v675_v56 = vand.u32 2147450879, %v1581_v38 }
  0x26   : > { %v387_v0 = vsel %vm363_vm2, %v1521_v58, %v379_v45  ;;  %v1539_v1 = vsub.bf16 %v1340_v60, %v1373_v52  ;;  %v1342_v14 = vpop.eup %1341  ;;  %1357 = vpow.bf16 %v349_v37  ;;  %vm367_vm11 = vcmp.gt.bf16.partialorder %v1502_v40, 0 }
  0x27   : > { %v1118_v3 = vcombine.low %v386_v61, %v387_v0  ;;  %v725_v4 = vsel %vm717_vm3, %v1463_v10, %v1529_v62  ;;  %v1344_v20 = vpop.eup %1343  ;;  %v1559_v23 = vsub.bf16 %v1342_v14, %v1373_v52  ;;  %1359 = vpow.bf16 %v352_v47  ;;  %v1330_v0 = vld [vmem:[%s1735_s1 + $0x10] sm:$0xff]  }
  0x28   : > { %v726_v8 = vsel %vm718_vm5, %v1466_v11, %v1539_v1  ;;  %v1346_v27 = vpop.eup %1345  ;;  %v1564_v29 = vsub.bf16 %v1344_v20, %v1373_v52  ;;  %v676_v60 = vand.u32 2147450879, %v1591_v44  ;;  %vm721_vm12 = vcmp.gt.bf16.partialorder %v1511_v49, 0 }
  0x29   : > { %1240 = vmatprep.mubr.msk.bf16.mxu1 %vm454_vm0, %v1118_v3  ;;  %v1142_v15 = vcombine.low %v725_v4, %v726_v8  ;;  %v1348_v32 = vpop.eup %1347  ;;  %v388_v33 = vsel %vm364_vm6, %v1559_v23, %v380_v9  ;;  %v1571_v34 = vsub.bf16 %v1346_v27, %v1373_v52  ;;  %v683_v3 = vsub.bf16 0, %v675_v56 }
  0x2a   : > { %v389_v35 = vsel %vm365_vm7, %v1564_v29, %v381_v17  ;;  %v1578_v36 = vsub.bf16 %v1348_v32, %v1373_v52  ;;  %v1350_v48 = vpop.eup %1349  ;;  %v684_v4 = vsub.bf16 0, %v676_v60  ;;  %vm722_vm13 = vcmp.gt.bf16.partialorder %v1514_v50, 0 }
  0x2b   : > { %1268 = vmatprep.mubr.msk.bf16.mxu0 %vm781_vm4, %v1142_v15  ;;  %v1119_v41 = vcombine.low %v388_v33, %v389_v35  ;;  %v727_v42 = vsel %vm719_vm8, %v1491_v28, %v1571_v34  ;;  %v1352_v57 = vpop.eup %1351  ;;  %v1607_v59 = vsub.bf16 %v1350_v48, %v1373_v52  ;;  %v704_v8 = vmul.bf16 1069105081, %v683_v3 }
  0x2c   : > { %v728_v45 = vsel %vm720_vm9, %v1494_v31, %v1578_v36  ;;  %v359_v61 = vsub.bf16 %v1352_v57, %v1373_v52  ;;  %v707_v12 = vmul.bf16 1069105081, %v684_v4  ;;  %v384_v19 = vsub.bf16 0, %v1533_v63 }
  0x2d   : > { %1241 = vmatmul.mubr.msk.bf16.vlgmr.msra.gmra.mrb[0].mxu1 %vm454_vm0, %v1119_v41  ;;  %v1143_v51 = vcombine.low %v727_v42, %v728_v45  ;;  %1361 = vpow.bf16 %v704_v8  ;;  %vm368_vm14 = vcmp.gt.bf16.partialorder %v1533_v63, 0  ;;  %v385_v30 = vsub.bf16 0, %v1542_v2 }
  0x2e   : > { %1249 = vmatpush3.bf16.msra.mxu1 %v1473_v16  ;;  %v390_v16 = vsel %vm366_vm10, %v1607_v59, %v382_v46  ;;  %v391_v7 = vsel %vm367_vm11, %v359_v61, %v383_v54  ;;  %v1354_v13 = vpop.eup %1353  ;;  %1363 = vpow.bf16 %v707_v12  ;;  %v370_v33 = vsel %vm362_vm1, %v1452_v5, %v1517_v53 }
  0x2f   : > { %1269 = vmatmul.mubr.msk.bf16.vlgmr.msra.gmra.mrb[0].mxu0 %vm781_vm4, %v1143_v51  ;;  %1250 = vmatprep.subr.bf16.mxu1 %v1329_v43  ;;  %v1120_v9 = vcombine.low %v390_v16, %v391_v7  ;;  %v1356_v14 = vpop.eup %1355  ;;  %v713_v15 = vsub.bf16 %v1354_v13, %v1373_v52  ;;  %v371_v35 = vsel %vm363_vm2, %v1455_v6, %v1521_v58  ;;  %vm369_vm15 = vcmp.gt.bf16.partialorder %v1542_v2, 0 }
  0x30   : > { %1277 = vmatpush3.bf16.msra.mxu0 %v1478_v21  ;;  %v1332_v21 = vld [vmem:[%s1735_s1 + $0x18] sm:$0xff]   ;;  %v714_v17 = vsub.bf16 %v1356_v14, %v1373_v52  ;;  %v733_v42 = vsub.bf16 0, %v1463_v10  ;;  %v1130_v53 = vcombine.low %v370_v33, %v371_v35  ;;  %vm723_vm1 = vcmp.gt.bf16.partialorder %v1581_v38, 0 }
  0x31   : > { %1278 = vmatprep.subr.bf16.mxu0 %v1331_v55  ;;  %1244 = vmatprep.mubr.msk.bf16.mxu1 %vm454_vm0, %v1120_v9  ;;  %v729_v18 = vsel %vm721_vm12, %v1511_v49, %v713_v15  ;;  %v1358_v20 = vpop.eup %1357  ;;  %vm724_vm2 = vcmp.gt.bf16.partialorder %v1591_v44, 0  ;;  %v372_v51 = vsel %vm364_vm6, %v1481_v22, %v1559_v23  ;;  %v373_v10 = vsel %vm365_vm7, %v1484_v25, %v1564_v29 }
  0x32   : > { %1251 = vmatpush3.bf16.msra.mxu1 %v1329_v43  ;;  %v730_v24 = vsel %vm722_vm13, %v1514_v50, %v714_v17  ;;  %v360_v27 = vsub.bf16 %v1358_v20, %v1373_v52  ;;  %v1360_v32 = vpop.eup %1359  ;;  %v734_v43 = vsub.bf16 0, %v1466_v11  ;;  %v741_v46 = vsel %vm717_vm3, %v1529_v62, %v733_v42 }
  0x33   : > { %1252 = vmatprep.subr.bf16.mxu1 %v1330_v0  ;;  %v1144_v26 = vcombine.low %v729_v18, %v730_v24  ;;  %v361_v37 = vsub.bf16 %v1360_v32, %v1373_v52  ;;  %v375_v22 = vsel %vm367_vm11, %v1502_v40, %v359_v61  ;;  %v735_v23 = vsub.bf16 0, %v1491_v28 }
  0x34   : > { %1279 = vmatpush3.bf16.msra.mxu0 %v1331_v55  ;;  %v392_v41 = vsel %vm368_vm14, %v360_v27, %v384_v19  ;;  %v742_v47 = vsel %vm718_vm5, %v1539_v1, %v734_v43  ;;  %v374_v1 = vsel %vm366_vm10, %v1499_v39, %v1607_v59  ;;  %v736_v25 = vsub.bf16 0, %v1494_v31 }
  0x35   : > { %1272 = vmatprep.mubr.msk.bf16.mxu0 %vm781_vm4, %v1144_v26  ;;  %v393_v5 = vsel %vm369_vm15, %v361_v37, %v385_v30  ;;  %v1152_v29 = vcombine.low %v741_v46, %v742_v47  ;;  %v1131_v54 = vcombine.low %v372_v51, %v373_v10  ;;  %v737_v56 = vsub.bf16 0, %v1511_v49 }
  0x36   : > { %1253 = vmatpush3.bf16.msra.mxu1 %v1330_v0  ;;  %v1121_v45 = vcombine.low %v392_v41, %v393_v5  ;;  %v738_v57 = vsub.bf16 0, %v1514_v50  ;;  %v1132_v39 = vcombine.low %v374_v1, %v375_v22  ;;  %v743_v40 = vsel %vm719_vm8, %v1571_v34, %v735_v23 }
  0x37   : > { %1254 = vmatprep.subr.bf16.mxu1 %v1332_v21  ;;  %v744_v59 = vsel %vm720_vm9, %v1578_v36, %v736_v25  ;;  %v745_v60 = vsel %vm721_vm12, %v713_v15, %v737_v56  ;;  %v376_v28 = vsel %vm368_vm14, %v1533_v63, %v360_v27  ;;  %v377_v31 = vsel %vm369_vm15, %v1542_v2, %v361_v37 }
  0x38   : > { %v1362_v6 = vpop.eup %1361  ;;  %1245 = vmatmul.mubr.msk.bf16.gmra.mrb[4].mxu1 %vm454_vm0, %v1121_v45  ;;  %v746_v61 = vsel %vm722_vm13, %v714_v17, %v738_v57  ;;  %v1153_v34 = vcombine.low %v743_v40, %v744_v59  ;;  %v739_v0 = vsub.bf16 0, %v1581_v38  ;;  %v740_v49 = vsub.bf16 0, %v1591_v44 }
  0x39   : > { %v1364_v58 = vpop.eup %1363  ;;  %v715_v48 = vsub.bf16 %v1362_v6, %v1373_v52  ;;  %1256 = vmatprep.mubr.msk.bf16.mxu1 %vm454_vm0, %v1130_v53  ;;  %v1154_v36 = vcombine.low %v745_v60, %v746_v61  ;;  %v1133_v3 = vcombine.low %v376_v28, %v377_v31 }
  0x3a   : > { %1255 = vmatpush3.bf16.msra.mxu1 %v1332_v21  ;;  %v716_v62 = vsub.bf16 %v1364_v58, %v1373_v52 }
  0x3b   : > { %v731_v11 = vsel %vm723_vm1, %v1581_v38, %v715_v48  ;;  %v747_v50 = vsel %vm723_vm1, %v715_v48, %v739_v0  ;;  %v1162_v38 = vld [vmem:[%s1740_s6] ss:$0 sm:$0xff] }
  0x3c   : > { %v732_v52 = vsel %vm724_vm2, %v1591_v44, %v716_v62  ;;  %v748_v63 = vsel %vm724_vm2, %v716_v62, %v740_v49 }
  0x3d   : > { %v1145_v55 = vcombine.low %v731_v11, %v732_v52  ;;  %v1155_v2 = vcombine.low %v747_v50, %v748_v63 }
  0x3f   : > { %1273 = vmatmul.mubr.msk.bf16.gmra.mrb[4].mxu0 %vm781_vm4, %v1145_v55 }
  0x40   : > { %1280 = vmatprep.mubr.msk.bf16.mxu0 %vm781_vm4, %v1152_v29  ;;  %1257 = vmatmul.mubr.msk.bf16.vlgmr.msra.gmra.mrb[0].mxu1 %vm454_vm0, %v1131_v54 }
  0x41   : > { %1260 = vmatprep.mubr.msk.bf16.mxu1 %vm454_vm0, %v1132_v39 }
  0x47   : > { %1281 = vmatmul.mubr.msk.bf16.vlgmr.msra.gmra.mrb[0].mxu0 %vm781_vm4, %v1153_v34 }
  0x48   : > { %1284 = vmatprep.mubr.msk.bf16.mxu0 %vm781_vm4, %v1154_v36  ;;  %1261 = vmatmul.mubr.msk.bf16.gmra.mrb[4].mxu1 %vm454_vm0, %v1133_v3 }
  0x4f   : > { %1285 = vmatmul.mubr.msk.bf16.gmra.mrb[4].mxu0 %vm781_vm4, %v1155_v2 }
 0x113   : > { %v1258_v16 = vpop.f32.mrb[0].mxu1 }
 0x114   : > { %v622_v4 = vpop.f32.mrb[1].mxu1 }
 0x115   : > { %v1259_v7 = vpop.f32.mrb[2].mxu1 }
 0x116   : > { %v625_v8 = vpop.f32.mrb[3].mxu1 }
 0x11a   : > { %v1282_v9 = vpop.f32.mrb[0].mxu0 }
 0x11b   : > { %v1288_v12 = vadd.f32 %v1282_v9, %v1258_v16  ;;  %v945_v13 = vpop.f32.mrb[1].mxu0  ;;  %v1262_v14 = vpop.f32.mrb[4].mxu1 }
 0x11c   : > { %v1289_v21 = vadd.f32 %v945_v13, %v622_v4  ;;  %v1283_v44 = vpop.f32.mrb[2].mxu0  ;;  %v638_v18 = vpop.f32.mrb[5].mxu1 }
 0x11d   : > { %v1290_v15 = vadd.f32 %v1283_v44, %v1259_v7  ;;  %v948_v17 = vpop.f32.mrb[3].mxu0  ;;  %v1263_v20 = vpop.f32.mrb[6].mxu1  ;;  %v993_v24 = vadd.f32 %v1288_v12, %v1162_v38 }
 0x11e   : > { %v1291_v19 = vadd.f32 %v948_v17, %v625_v8  ;;  %v641_v27 = vpop.f32.mrb[7].mxu1  ;;  %v991_v30 = vadd.f32 %v1289_v21, %v1162_v38 }
 0x11f   : > { %v994_v26 = vadd.f32 %v1290_v15, %v1162_v38 }
 0x120   : > { %v992_v32 = vadd.f32 %v1291_v19, %v1162_v38 }
 0x121   : > { %v1189_v33 = vpack.c.bf16 %v994_v26, %v993_v24 }
 0x122   : > { %v1184_v35 = vpack.c.bf16 %v992_v32, %v991_v30  ;;  %v1286_v37 = vpop.f32.mrb[4].mxu0 }
 0x123   : > { %1201 = vst [vmem:[%s302_s18 + $0x8] sm:$0xff] %v1189_v33   ;;  %v1292_v41 = vadd.f32 %v1286_v37, %v1262_v14  ;;  %v961_v42 = vpop.f32.mrb[5].mxu0 }
 0x124   : > { %1185 = vst [vmem:[%s302_s18] sm:$0xff] %v1184_v35   ;;  %v1293_v43 = vadd.f32 %v961_v42, %v638_v18  ;;  %v1287_v5 = vpop.f32.mrb[6].mxu0 }
 0x125   : > { %v1294_v53 = vadd.f32 %v1287_v5, %v1263_v20  ;;  %v964_v45 = vpop.f32.mrb[7].mxu0  ;;  %v997_v58 = vadd.f32 %v1292_v41, %v1162_v38 }
 0x126   : > { %v1295_v6 = vadd.f32 %v964_v45, %v641_v27  ;;  %v995_v47 = vadd.f32 %v1293_v43, %v1162_v38 }
 0x127   : > { %v998_v46 = vadd.f32 %v1294_v53, %v1162_v38 }
 0x128   : > { %v996_v48 = vadd.f32 %v1295_v6, %v1162_v38 }
 0x129   : > { %v1199_v51 = vpack.c.bf16 %v998_v46, %v997_v58 }
 0x12a   : > { %v1194_v10 = vpack.c.bf16 %v996_v48, %v995_v47 }
 0x12b   : > { %1203 = vst [vmem:[%s302_s18 + $0x18] sm:$0xff] %v1199_v51  }
 0x12c   : > { %1202 = vst [vmem:[%s302_s18 + $0x10] sm:$0xff] %v1194_v10  }
 0x12d PF: > { %s17_s24 = sadd.s32 1, %s1371_s24  }
 0x12e   : > { %p14_p4 = scmp.ge.s32.totalorder %s17_s24, 4  }
 0x130   :  { %16 = sbr.rel (!%p14_p4) target bundleno = 1 (0x1), region = 81 }

</bundles_post_ra>
